<compile_context>
chip_gen: v6e
topology: v6e:2x2x1
jax: 0.10.0
libtpu: 0.0.40
codegen_flags: <defaults>
</compile_context>

<pallas_src>
import jax
import jax.numpy as jnp
from jax.experimental import pallas as pl
from jax.experimental.pallas import tpu as pltpu


# ----------------------------------------------------------------------------
# Static CNNMnist geometry (fc1 = 320 = 20*4*4 forces 28x28 inputs).
# ----------------------------------------------------------------------------
_IMG = 28                      # input H = W
_K = 5                         # conv kernel size
_C1 = 10                       # conv1 out channels
_C2 = 20                       # conv2 out channels
_CO1 = _IMG - _K + 1           # 24: conv1 valid output width
_HP1 = _CO1 // 2               # 12: pooled conv1 width
_CO2 = _HP1 - _K + 1           # 8 : conv2 valid output width
_HP2 = _CO2 // 2               # 4 : pooled conv2 width
_NPIX = _IMG * _IMG            # 784: flattened input spatial
_NPIX_PAD = 1024               # lane pad (needs >= 784 + 4*28 + 4 = 900)
_N1 = _HP1 * _HP1              # 144: flattened pooled1 spatial
_N1_PAD = 256                  # lane pad (needs >= 144 + 4*12 + 4 = 196)
_N2 = _HP2 * _HP2              # 16 : flattened pooled2 spatial
_FC1 = 50                      # fc1 width


# ----------------------------------------------------------------------------
# Fused whole-network kernel (one grid step per image).
# ----------------------------------------------------------------------------
def _cnn_mnist_kernel(x_ref, w1_ref, b1_ref, w2_ref, b2_ref,
                      map1_ref, map2_ref,
                      fc1w_ref, fc1b_ref, fc2w_ref, fc2b_ref, out_ref):
    f32 = jnp.float32
    x = x_ref[0].astype(f32)                       # (C_in, 1024) padded flat image
    c_in = x.shape[0]

    # ---- conv1: 5x5 valid, C_in -> 10, on the flat (stride-28) layout -------
    acc1 = jnp.zeros((_C1, _NPIX), f32)
    for dy in range(_K):
        for dx in range(_K):
            tap = dy * _K + dx
            off = dy * _IMG + dx
            w_t = w1_ref[tap]                      # (10, C_in)
            x_t = x[:, off:off + _NPIX]            # (C_in, 784) shifted tap
            if c_in == 1:                          # MNIST: rank-1 tap on the VPU
                acc1 = acc1 + w_t[:, 0:1] * x_t[0:1, :]
            else:
                acc1 = acc1 + jnp.dot(w_t, x_t, preferred_element_type=f32)

    # ---- maxpool 2x2 + bias + relu (shift-max + gather-matmul epilogue) -----
    m1 = jnp.maximum(acc1[:, 0:_NPIX - 1], acc1[:, 1:_NPIX])              # x-pairs
    m2 = jnp.maximum(m1[:, 0:_NPIX - 1 - _IMG], m1[:, _IMG:_NPIX - 1])    # y-pairs
    sel1 = (jax.lax.broadcasted_iota(jnp.int32, (_NPIX - 1 - _IMG, _N1_PAD), 0)
            == map1_ref[...]).astype(f32)                                 # (755, 256)
    pool1 = jnp.dot(m2, sel1, preferred_element_type=f32)                 # (10, 256)
    p1 = jnp.maximum(pool1 + b1_ref[...], 0.0)                            # (10, 256)

    # ---- conv2: 5x5 valid, 10 -> 20 (Dropout2d = identity in eval) ----------
    acc2 = jnp.zeros((_C2, _N1), f32)
    for dy in range(_K):
        for dx in range(_K):
            tap = dy * _K + dx
            off = dy * _HP1 + dx
            acc2 = acc2 + jnp.dot(w2_ref[tap], p1[:, off:off + _N1],
                                  preferred_element_type=f32)             # (20, 144)

    # ---- maxpool 2x2 + bias + relu -------------------------------------------
    n1 = jnp.maximum(acc2[:, 0:_N1 - 1], acc2[:, 1:_N1])
    n2 = jnp.maximum(n1[:, 0:_N1 - 1 - _HP1], n1[:, _HP1:_N1 - 1])
    sel2 = (jax.lax.broadcasted_iota(jnp.int32, (_N1 - 1 - _HP1, _N2), 0)
            == map2_ref[...]).astype(f32)                                 # (131, 16)
    pool2 = jnp.dot(n2, sel2, preferred_element_type=f32)                 # (20, 16)
    p2 = jnp.maximum(pool2 + b2_ref[...], 0.0)       # (20, 16) == torch flatten order

    # ---- fc1 (320 -> 50) + relu; flatten folded into per-channel weights ----
    h = fc1b_ref[...]                                                     # (1, 50)
    for c in range(_C2):
        h = h + jnp.dot(p2[c:c + 1, :], fc1w_ref[c],
                        preferred_element_type=f32)
    h = jnp.maximum(h, 0.0)
    # F.dropout: identity (eval mode)

    # ---- fc2 (50 -> num_classes) + log_softmax -------------------------------
    logits = jnp.dot(h, fc2w_ref[...], preferred_element_type=f32) + fc2b_ref[...]
    zmax = jnp.max(logits, axis=-1, keepdims=True)
    z = logits - zmax
    lse = jnp.log(jnp.sum(jnp.exp(z), axis=-1, keepdims=True))
    out_ref[0] = (z - lse).astype(out_ref.dtype)


# ----------------------------------------------------------------------------
# Wrapper: trace-time weight repacking + the single pallas_call.
# ----------------------------------------------------------------------------
def cnn_mnist_forward(x, params):
    B, c_in, H, W = x.shape
    assert (H, W) == (_IMG, _IMG), "CNNMnist requires 28x28 inputs (fc1 is 320-wide)"
    f32 = jnp.float32
    num_classes = params["fc2_w"].shape[0]

    # Lane-padded flat image: every shifted conv tap is a static lane slice.
    x_flat = x.astype(f32).reshape(B, c_in, _NPIX)
    x_pad = jnp.pad(x_flat, ((0, 0), (0, 0), (0, _NPIX_PAD - _NPIX)))

    # Conv weights as one (C_out, C_in) matrix per kernel tap.
    w1 = params["conv1_w"].astype(f32).transpose(2, 3, 0, 1).reshape(_K * _K, _C1, c_in)
    w2 = params["conv2_w"].astype(f32).transpose(2, 3, 0, 1).reshape(_K * _K, _C2, _C1)
    b1 = params["conv1_b"].astype(f32).reshape(_C1, 1)
    b2 = params["conv2_b"].astype(f32).reshape(_C2, 1)

    # Column maps for the in-kernel pooling gather-matmuls (-1 = padded column).
    q1 = jnp.arange(_N1_PAD, dtype=jnp.int32)
    map1 = jnp.where(q1 < _N1,
                     2 * _IMG * (q1 // _HP1) + 2 * (q1 % _HP1),
                     -1).reshape(1, _N1_PAD)
    q2 = jnp.arange(_N2, dtype=jnp.int32)
    map2 = (2 * _HP1 * (q2 // _HP2) + 2 * (q2 % _HP2)).reshape(1, _N2)

    # FC weights: fold the torch-order (c, y, x) flatten into fc1_w.
    fc1w = params["fc1_w"].astype(f32).reshape(_FC1, _C2, _N2).transpose(1, 2, 0)  # (20,16,50)
    fc1b = params["fc1_b"].astype(f32).reshape(1, _FC1)
    fc2w = params["fc2_w"].astype(f32).T                                           # (50, nc)
    fc2b = params["fc2_b"].astype(f32).reshape(1, num_classes)

    out = pl.pallas_call(
        _cnn_mnist_kernel,
        out_shape=jax.ShapeDtypeStruct((B, 1, num_classes), f32),
        grid=(B,),
        in_specs=[
            pl.BlockSpec((1, c_in, _NPIX_PAD), lambda b: (b, 0, 0)),
            pl.BlockSpec((_K * _K, _C1, c_in), lambda b: (0, 0, 0)),
            pl.BlockSpec((_C1, 1), lambda b: (0, 0)),
            pl.BlockSpec((_K * _K, _C2, _C1), lambda b: (0, 0, 0)),
            pl.BlockSpec((_C2, 1), lambda b: (0, 0)),
            pl.BlockSpec((1, _N1_PAD), lambda b: (0, 0)),
            pl.BlockSpec((1, _N2), lambda b: (0, 0)),
            pl.BlockSpec((_C2, _N2, _FC1), lambda b: (0, 0, 0)),
            pl.BlockSpec((1, _FC1), lambda b: (0, 0)),
            pl.BlockSpec((_FC1, num_classes), lambda b: (0, 0)),
            pl.BlockSpec((1, num_classes), lambda b: (0, 0)),
        ],
        out_specs=pl.BlockSpec((1, 1, num_classes), lambda b: (b, 0, 0)),
        compiler_params=pltpu.CompilerParams(
            dimension_semantics=("parallel",)),
    )(x_pad, w1, b1, w2, b2, map1, map2, fc1w, fc1b, fc2w, fc2b)
    return out.reshape(B, num_classes)


# ----------------------------------------------------------------------------
# Plain-JAX reference (PyTorch semantics, eval mode) for self-checking.
# ----------------------------------------------------------------------------
def _reference_forward(x, params):
    hp = jax.lax.Precision.HIGHEST

    def conv(xx, w, b):
        y = jax.lax.conv_general_dilated(
            xx, w, window_strides=(1, 1), padding="VALID",
            dimension_numbers=("NCHW", "OIHW", "NCHW"), precision=hp)
        return y + b[None, :, None, None]

    def pool_relu(y):
        a = y[:, :, 0::2, 0::2]
        b = y[:, :, 0::2, 1::2]
        c = y[:, :, 1::2, 0::2]
        d = y[:, :, 1::2, 1::2]
        return jnp.maximum(jnp.maximum(jnp.maximum(a, b), jnp.maximum(c, d)), 0.0)

    y1 = pool_relu(conv(x, params["conv1_w"], params["conv1_b"]))
    y2 = pool_relu(conv(y1, params["conv2_w"], params["conv2_b"]))
    flat = y2.reshape(x.shape[0], -1)
    h = jnp.maximum(jnp.dot(flat, params["fc1_w"].T, precision=hp) + params["fc1_b"], 0.0)
    logits = jnp.dot(h, params["fc2_w"].T, precision=hp) + params["fc2_b"]
    return jax.nn.log_softmax(logits, axis=-1)


# ----------------------------------------------------------------------------
# Main
# ----------------------------------------------------------------------------
if __name__ == "__main__":
    B, C_IN, NUM_CLASSES = 2, 1, 10

    key = jax.random.PRNGKey(0)
    ks = jax.random.split(key, 9)
    x = jax.random.normal(ks[0], (B, C_IN, _IMG, _IMG), jnp.float32)

    params = {
        "conv1_w": jax.random.normal(ks[1], (_C1, C_IN, _K, _K), jnp.float32) * 0.1,
        "conv1_b": jax.random.normal(ks[2], (_C1,), jnp.float32) * 0.1,
        "conv2_w": jax.random.normal(ks[3], (_C2, _C1, _K, _K), jnp.float32) * 0.05,
        "conv2_b": jax.random.normal(ks[4], (_C2,), jnp.float32) * 0.05,
        "fc1_w": jax.random.normal(ks[5], (_FC1, _C2 * _N2), jnp.float32) * 0.05,
        "fc1_b": jax.random.normal(ks[6], (_FC1,), jnp.float32) * 0.05,
        "fc2_w": jax.random.normal(ks[7], (NUM_CLASSES, _FC1), jnp.float32) * 0.1,
        "fc2_b": jax.random.normal(ks[8], (NUM_CLASSES,), jnp.float32) * 0.1,
    }

    fwd = jax.jit(cnn_mnist_forward)
    out = jax.block_until_ready(fwd(x, params))

    assert out.shape == (B, NUM_CLASSES), out.shape
    # log_softmax rows must exponentiate-sum to 1
    assert jnp.allclose(jnp.sum(jnp.exp(out), axis=-1), 1.0, atol=1e-4)
    # match the plain-JAX / PyTorch-semantics reference
    ref = jax.block_until_ready(_reference_forward(x, params))
    assert jnp.allclose(out, ref, atol=1e-3, rtol=1e-3), float(jnp.max(jnp.abs(out - ref)))

    print("KERNEL_OK")
</pallas_src>

<mosaic_0001>
module attributes {stable_mosaic.version = 11 : i64} {
  func.func @_cnn_mnist_kernel(%arg0: i32, %arg1: memref<1x1x1024xf32, #tpu.memory_space<vmem>>, %arg2: memref<25x10x1xf32, #tpu.memory_space<vmem>>, %arg3: memref<10x1xf32, #tpu.memory_space<vmem>>, %arg4: memref<25x20x10xf32, #tpu.memory_space<vmem>>, %arg5: memref<20x1xf32, #tpu.memory_space<vmem>>, %arg6: memref<1x256xi32, #tpu.memory_space<vmem>>, %arg7: memref<1x16xi32, #tpu.memory_space<vmem>>, %arg8: memref<20x16x50xf32, #tpu.memory_space<vmem>>, %arg9: memref<1x50xf32, #tpu.memory_space<vmem>>, %arg10: memref<50x10xf32, #tpu.memory_space<vmem>>, %arg11: memref<1x10xf32, #tpu.memory_space<vmem>>, %arg12: memref<1x1x10xf32, #tpu.memory_space<vmem>>) attributes {dimension_semantics = [#tpu.dimension_semantics<parallel>], iteration_bounds = array<i64: 2>, scalar_prefetch = 0 : i64, scratch_operands = 0 : i64, tpu.core_type = #tpu.core_type<tc>, window_params = [{transform_indices = @transform_0, window_bounds = array<i64: 1, 1, 1024>}, {pipeline_mode = #tpu.pipeline_mode<synchronous>, transform_indices = @transform_1, window_bounds = array<i64: 25, 10, 1>}, {pipeline_mode = #tpu.pipeline_mode<synchronous>, transform_indices = @transform_2, window_bounds = array<i64: 10, 1>}, {pipeline_mode = #tpu.pipeline_mode<synchronous>, transform_indices = @transform_3, window_bounds = array<i64: 25, 20, 10>}, {pipeline_mode = #tpu.pipeline_mode<synchronous>, transform_indices = @transform_4, window_bounds = array<i64: 20, 1>}, {pipeline_mode = #tpu.pipeline_mode<synchronous>, transform_indices = @transform_5, window_bounds = array<i64: 1, 256>}, {pipeline_mode = #tpu.pipeline_mode<synchronous>, transform_indices = @transform_6, window_bounds = array<i64: 1, 16>}, {pipeline_mode = #tpu.pipeline_mode<synchronous>, transform_indices = @transform_7, window_bounds = array<i64: 20, 16, 50>}, {pipeline_mode = #tpu.pipeline_mode<synchronous>, transform_indices = @transform_8, window_bounds = array<i64: 1, 50>}, {pipeline_mode = #tpu.pipeline_mode<synchronous>, transform_indices = @transform_9, window_bounds = array<i64: 50, 10>}, {pipeline_mode = #tpu.pipeline_mode<synchronous>, transform_indices = @transform_10, window_bounds = array<i64: 1, 10>}, {transform_indices = @transform_11, window_bounds = array<i64: 1, 1, 10>}]} {
    %c0 = arith.constant 0 : index
    %c0_0 = arith.constant 0 : index
    %c0_1 = arith.constant 0 : index
    %0 = vector.load %arg1[%c0, %c0_0, %c0_1] : memref<1x1x1024xf32, #tpu.memory_space<vmem>>, vector<1x1x1024xf32>
    %1 = vector.shape_cast %0 : vector<1x1x1024xf32> to vector<1x1024xf32>
    %cst = arith.constant 0.000000e+00 : f32
    %2 = vector.broadcast %cst : f32 to vector<10x784xf32>
    %c0_2 = arith.constant 0 : index
    %c0_3 = arith.constant 0 : index
    %c0_4 = arith.constant 0 : index
    %3 = vector.load %arg2[%c0_2, %c0_3, %c0_4] : memref<25x10x1xf32, #tpu.memory_space<vmem>>, vector<1x10x1xf32>
    %4 = vector.shape_cast %3 : vector<1x10x1xf32> to vector<10x1xf32>
    %5 = vector.extract_strided_slice %1 {offsets = [0, 0], sizes = [1, 784], strides = [1, 1]} : vector<1x1024xf32> to vector<1x784xf32>
    %6 = vector.broadcast %4 : vector<10x1xf32> to vector<10x784xf32>
    %7 = vector.broadcast %5 : vector<1x784xf32> to vector<10x784xf32>
    %8 = arith.mulf %6, %7 : vector<10x784xf32>
    %9 = arith.addf %2, %8 : vector<10x784xf32>
    %c1 = arith.constant 1 : index
    %c0_5 = arith.constant 0 : index
    %c0_6 = arith.constant 0 : index
    %10 = vector.load %arg2[%c1, %c0_5, %c0_6] : memref<25x10x1xf32, #tpu.memory_space<vmem>>, vector<1x10x1xf32>
    %11 = vector.shape_cast %10 : vector<1x10x1xf32> to vector<10x1xf32>
    %12 = vector.extract_strided_slice %1 {offsets = [0, 1], sizes = [1, 784], strides = [1, 1]} : vector<1x1024xf32> to vector<1x784xf32>
    %13 = vector.broadcast %11 : vector<10x1xf32> to vector<10x784xf32>
    %14 = vector.broadcast %12 : vector<1x784xf32> to vector<10x784xf32>
    %15 = arith.mulf %13, %14 : vector<10x784xf32>
    %16 = arith.addf %9, %15 : vector<10x784xf32>
    %c2 = arith.constant 2 : index
    %c0_7 = arith.constant 0 : index
    %c0_8 = arith.constant 0 : index
    %17 = vector.load %arg2[%c2, %c0_7, %c0_8] : memref<25x10x1xf32, #tpu.memory_space<vmem>>, vector<1x10x1xf32>
    %18 = vector.shape_cast %17 : vector<1x10x1xf32> to vector<10x1xf32>
    %19 = vector.extract_strided_slice %1 {offsets = [0, 2], sizes = [1, 784], strides = [1, 1]} : vector<1x1024xf32> to vector<1x784xf32>
    %20 = vector.broadcast %18 : vector<10x1xf32> to vector<10x784xf32>
    %21 = vector.broadcast %19 : vector<1x784xf32> to vector<10x784xf32>
    %22 = arith.mulf %20, %21 : vector<10x784xf32>
    %23 = arith.addf %16, %22 : vector<10x784xf32>
    %c3 = arith.constant 3 : index
    %c0_9 = arith.constant 0 : index
    %c0_10 = arith.constant 0 : index
    %24 = vector.load %arg2[%c3, %c0_9, %c0_10] : memref<25x10x1xf32, #tpu.memory_space<vmem>>, vector<1x10x1xf32>
    %25 = vector.shape_cast %24 : vector<1x10x1xf32> to vector<10x1xf32>
    %26 = vector.extract_strided_slice %1 {offsets = [0, 3], sizes = [1, 784], strides = [1, 1]} : vector<1x1024xf32> to vector<1x784xf32>
    %27 = vector.broadcast %25 : vector<10x1xf32> to vector<10x784xf32>
    %28 = vector.broadcast %26 : vector<1x784xf32> to vector<10x784xf32>
    %29 = arith.mulf %27, %28 : vector<10x784xf32>
    %30 = arith.addf %23, %29 : vector<10x784xf32>
    %c4 = arith.constant 4 : index
    %c0_11 = arith.constant 0 : index
    %c0_12 = arith.constant 0 : index
    %31 = vector.load %arg2[%c4, %c0_11, %c0_12] : memref<25x10x1xf32, #tpu.memory_space<vmem>>, vector<1x10x1xf32>
    %32 = vector.shape_cast %31 : vector<1x10x1xf32> to vector<10x1xf32>
    %33 = vector.extract_strided_slice %1 {offsets = [0, 4], sizes = [1, 784], strides = [1, 1]} : vector<1x1024xf32> to vector<1x784xf32>
    %34 = vector.broadcast %32 : vector<10x1xf32> to vector<10x784xf32>
    %35 = vector.broadcast %33 : vector<1x784xf32> to vector<10x784xf32>
    %36 = arith.mulf %34, %35 : vector<10x784xf32>
    %37 = arith.addf %30, %36 : vector<10x784xf32>
    %c5 = arith.constant 5 : index
    %c0_13 = arith.constant 0 : index
    %c0_14 = arith.constant 0 : index
    %38 = vector.load %arg2[%c5, %c0_13, %c0_14] : memref<25x10x1xf32, #tpu.memory_space<vmem>>, vector<1x10x1xf32>
    %39 = vector.shape_cast %38 : vector<1x10x1xf32> to vector<10x1xf32>
    %40 = vector.extract_strided_slice %1 {offsets = [0, 28], sizes = [1, 784], strides = [1, 1]} : vector<1x1024xf32> to vector<1x784xf32>
    %41 = vector.broadcast %39 : vector<10x1xf32> to vector<10x784xf32>
    %42 = vector.broadcast %40 : vector<1x784xf32> to vector<10x784xf32>
    %43 = arith.mulf %41, %42 : vector<10x784xf32>
    %44 = arith.addf %37, %43 : vector<10x784xf32>
    %c6 = arith.constant 6 : index
    %c0_15 = arith.constant 0 : index
    %c0_16 = arith.constant 0 : index
    %45 = vector.load %arg2[%c6, %c0_15, %c0_16] : memref<25x10x1xf32, #tpu.memory_space<vmem>>, vector<1x10x1xf32>
    %46 = vector.shape_cast %45 : vector<1x10x1xf32> to vector<10x1xf32>
    %47 = vector.extract_strided_slice %1 {offsets = [0, 29], sizes = [1, 784], strides = [1, 1]} : vector<1x1024xf32> to vector<1x784xf32>
    %48 = vector.broadcast %46 : vector<10x1xf32> to vector<10x784xf32>
    %49 = vector.broadcast %47 : vector<1x784xf32> to vector<10x784xf32>
    %50 = arith.mulf %48, %49 : vector<10x784xf32>
    %51 = arith.addf %44, %50 : vector<10x784xf32>
    %c7 = arith.constant 7 : index
    %c0_17 = arith.constant 0 : index
    %c0_18 = arith.constant 0 : index
    %52 = vector.load %arg2[%c7, %c0_17, %c0_18] : memref<25x10x1xf32, #tpu.memory_space<vmem>>, vector<1x10x1xf32>
    %53 = vector.shape_cast %52 : vector<1x10x1xf32> to vector<10x1xf32>
    %54 = vector.extract_strided_slice %1 {offsets = [0, 30], sizes = [1, 784], strides = [1, 1]} : vector<1x1024xf32> to vector<1x784xf32>
    %55 = vector.broadcast %53 : vector<10x1xf32> to vector<10x784xf32>
    %56 = vector.broadcast %54 : vector<1x784xf32> to vector<10x784xf32>
    %57 = arith.mulf %55, %56 : vector<10x784xf32>
    %58 = arith.addf %51, %57 : vector<10x784xf32>
    %c8 = arith.constant 8 : index
    %c0_19 = arith.constant 0 : index
    %c0_20 = arith.constant 0 : index
    %59 = vector.load %arg2[%c8, %c0_19, %c0_20] : memref<25x10x1xf32, #tpu.memory_space<vmem>>, vector<1x10x1xf32>
    %60 = vector.shape_cast %59 : vector<1x10x1xf32> to vector<10x1xf32>
    %61 = vector.extract_strided_slice %1 {offsets = [0, 31], sizes = [1, 784], strides = [1, 1]} : vector<1x1024xf32> to vector<1x784xf32>
    %62 = vector.broadcast %60 : vector<10x1xf32> to vector<10x784xf32>
    %63 = vector.broadcast %61 : vector<1x784xf32> to vector<10x784xf32>
    %64 = arith.mulf %62, %63 : vector<10x784xf32>
    %65 = arith.addf %58, %64 : vector<10x784xf32>
    %c9 = arith.constant 9 : index
    %c0_21 = arith.constant 0 : index
    %c0_22 = arith.constant 0 : index
    %66 = vector.load %arg2[%c9, %c0_21, %c0_22] : memref<25x10x1xf32, #tpu.memory_space<vmem>>, vector<1x10x1xf32>
    %67 = vector.shape_cast %66 : vector<1x10x1xf32> to vector<10x1xf32>
    %68 = vector.extract_strided_slice %1 {offsets = [0, 32], sizes = [1, 784], strides = [1, 1]} : vector<1x1024xf32> to vector<1x784xf32>
    %69 = vector.broadcast %67 : vector<10x1xf32> to vector<10x784xf32>
    %70 = vector.broadcast %68 : vector<1x784xf32> to vector<10x784xf32>
    %71 = arith.mulf %69, %70 : vector<10x784xf32>
    %72 = arith.addf %65, %71 : vector<10x784xf32>
    %c10 = arith.constant 10 : index
    %c0_23 = arith.constant 0 : index
    %c0_24 = arith.constant 0 : index
    %73 = vector.load %arg2[%c10, %c0_23, %c0_24] : memref<25x10x1xf32, #tpu.memory_space<vmem>>, vector<1x10x1xf32>
    %74 = vector.shape_cast %73 : vector<1x10x1xf32> to vector<10x1xf32>
    %75 = vector.extract_strided_slice %1 {offsets = [0, 56], sizes = [1, 784], strides = [1, 1]} : vector<1x1024xf32> to vector<1x784xf32>
    %76 = vector.broadcast %74 : vector<10x1xf32> to vector<10x784xf32>
    %77 = vector.broadcast %75 : vector<1x784xf32> to vector<10x784xf32>
    %78 = arith.mulf %76, %77 : vector<10x784xf32>
    %79 = arith.addf %72, %78 : vector<10x784xf32>
    %c11 = arith.constant 11 : index
    %c0_25 = arith.constant 0 : index
    %c0_26 = arith.constant 0 : index
    %80 = vector.load %arg2[%c11, %c0_25, %c0_26] : memref<25x10x1xf32, #tpu.memory_space<vmem>>, vector<1x10x1xf32>
    %81 = vector.shape_cast %80 : vector<1x10x1xf32> to vector<10x1xf32>
    %82 = vector.extract_strided_slice %1 {offsets = [0, 57], sizes = [1, 784], strides = [1, 1]} : vector<1x1024xf32> to vector<1x784xf32>
    %83 = vector.broadcast %81 : vector<10x1xf32> to vector<10x784xf32>
    %84 = vector.broadcast %82 : vector<1x784xf32> to vector<10x784xf32>
    %85 = arith.mulf %83, %84 : vector<10x784xf32>
    %86 = arith.addf %79, %85 : vector<10x784xf32>
    %c12 = arith.constant 12 : index
    %c0_27 = arith.constant 0 : index
    %c0_28 = arith.constant 0 : index
    %87 = vector.load %arg2[%c12, %c0_27, %c0_28] : memref<25x10x1xf32, #tpu.memory_space<vmem>>, vector<1x10x1xf32>
    %88 = vector.shape_cast %87 : vector<1x10x1xf32> to vector<10x1xf32>
    %89 = vector.extract_strided_slice %1 {offsets = [0, 58], sizes = [1, 784], strides = [1, 1]} : vector<1x1024xf32> to vector<1x784xf32>
    %90 = vector.broadcast %88 : vector<10x1xf32> to vector<10x784xf32>
    %91 = vector.broadcast %89 : vector<1x784xf32> to vector<10x784xf32>
    %92 = arith.mulf %90, %91 : vector<10x784xf32>
    %93 = arith.addf %86, %92 : vector<10x784xf32>
    %c13 = arith.constant 13 : index
    %c0_29 = arith.constant 0 : index
    %c0_30 = arith.constant 0 : index
    %94 = vector.load %arg2[%c13, %c0_29, %c0_30] : memref<25x10x1xf32, #tpu.memory_space<vmem>>, vector<1x10x1xf32>
    %95 = vector.shape_cast %94 : vector<1x10x1xf32> to vector<10x1xf32>
    %96 = vector.extract_strided_slice %1 {offsets = [0, 59], sizes = [1, 784], strides = [1, 1]} : vector<1x1024xf32> to vector<1x784xf32>
    %97 = vector.broadcast %95 : vector<10x1xf32> to vector<10x784xf32>
    %98 = vector.broadcast %96 : vector<1x784xf32> to vector<10x784xf32>
    %99 = arith.mulf %97, %98 : vector<10x784xf32>
    %100 = arith.addf %93, %99 : vector<10x784xf32>
    %c14 = arith.constant 14 : index
    %c0_31 = arith.constant 0 : index
    %c0_32 = arith.constant 0 : index
    %101 = vector.load %arg2[%c14, %c0_31, %c0_32] : memref<25x10x1xf32, #tpu.memory_space<vmem>>, vector<1x10x1xf32>
    %102 = vector.shape_cast %101 : vector<1x10x1xf32> to vector<10x1xf32>
    %103 = vector.extract_strided_slice %1 {offsets = [0, 60], sizes = [1, 784], strides = [1, 1]} : vector<1x1024xf32> to vector<1x784xf32>
    %104 = vector.broadcast %102 : vector<10x1xf32> to vector<10x784xf32>
    %105 = vector.broadcast %103 : vector<1x784xf32> to vector<10x784xf32>
    %106 = arith.mulf %104, %105 : vector<10x784xf32>
    %107 = arith.addf %100, %106 : vector<10x784xf32>
    %c15 = arith.constant 15 : index
    %c0_33 = arith.constant 0 : index
    %c0_34 = arith.constant 0 : index
    %108 = vector.load %arg2[%c15, %c0_33, %c0_34] : memref<25x10x1xf32, #tpu.memory_space<vmem>>, vector<1x10x1xf32>
    %109 = vector.shape_cast %108 : vector<1x10x1xf32> to vector<10x1xf32>
    %110 = vector.extract_strided_slice %1 {offsets = [0, 84], sizes = [1, 784], strides = [1, 1]} : vector<1x1024xf32> to vector<1x784xf32>
    %111 = vector.broadcast %109 : vector<10x1xf32> to vector<10x784xf32>
    %112 = vector.broadcast %110 : vector<1x784xf32> to vector<10x784xf32>
    %113 = arith.mulf %111, %112 : vector<10x784xf32>
    %114 = arith.addf %107, %113 : vector<10x784xf32>
    %c16 = arith.constant 16 : index
    %c0_35 = arith.constant 0 : index
    %c0_36 = arith.constant 0 : index
    %115 = vector.load %arg2[%c16, %c0_35, %c0_36] : memref<25x10x1xf32, #tpu.memory_space<vmem>>, vector<1x10x1xf32>
    %116 = vector.shape_cast %115 : vector<1x10x1xf32> to vector<10x1xf32>
    %117 = vector.extract_strided_slice %1 {offsets = [0, 85], sizes = [1, 784], strides = [1, 1]} : vector<1x1024xf32> to vector<1x784xf32>
    %118 = vector.broadcast %116 : vector<10x1xf32> to vector<10x784xf32>
    %119 = vector.broadcast %117 : vector<1x784xf32> to vector<10x784xf32>
    %120 = arith.mulf %118, %119 : vector<10x784xf32>
    %121 = arith.addf %114, %120 : vector<10x784xf32>
    %c17 = arith.constant 17 : index
    %c0_37 = arith.constant 0 : index
    %c0_38 = arith.constant 0 : index
    %122 = vector.load %arg2[%c17, %c0_37, %c0_38] : memref<25x10x1xf32, #tpu.memory_space<vmem>>, vector<1x10x1xf32>
    %123 = vector.shape_cast %122 : vector<1x10x1xf32> to vector<10x1xf32>
    %124 = vector.extract_strided_slice %1 {offsets = [0, 86], sizes = [1, 784], strides = [1, 1]} : vector<1x1024xf32> to vector<1x784xf32>
    %125 = vector.broadcast %123 : vector<10x1xf32> to vector<10x784xf32>
    %126 = vector.broadcast %124 : vector<1x784xf32> to vector<10x784xf32>
    %127 = arith.mulf %125, %126 : vector<10x784xf32>
    %128 = arith.addf %121, %127 : vector<10x784xf32>
    %c18 = arith.constant 18 : index
    %c0_39 = arith.constant 0 : index
    %c0_40 = arith.constant 0 : index
    %129 = vector.load %arg2[%c18, %c0_39, %c0_40] : memref<25x10x1xf32, #tpu.memory_space<vmem>>, vector<1x10x1xf32>
    %130 = vector.shape_cast %129 : vector<1x10x1xf32> to vector<10x1xf32>
    %131 = vector.extract_strided_slice %1 {offsets = [0, 87], sizes = [1, 784], strides = [1, 1]} : vector<1x1024xf32> to vector<1x784xf32>
    %132 = vector.broadcast %130 : vector<10x1xf32> to vector<10x784xf32>
    %133 = vector.broadcast %131 : vector<1x784xf32> to vector<10x784xf32>
    %134 = arith.mulf %132, %133 : vector<10x784xf32>
    %135 = arith.addf %128, %134 : vector<10x784xf32>
    %c19 = arith.constant 19 : index
    %c0_41 = arith.constant 0 : index
    %c0_42 = arith.constant 0 : index
    %136 = vector.load %arg2[%c19, %c0_41, %c0_42] : memref<25x10x1xf32, #tpu.memory_space<vmem>>, vector<1x10x1xf32>
    %137 = vector.shape_cast %136 : vector<1x10x1xf32> to vector<10x1xf32>
    %138 = vector.extract_strided_slice %1 {offsets = [0, 88], sizes = [1, 784], strides = [1, 1]} : vector<1x1024xf32> to vector<1x784xf32>
    %139 = vector.broadcast %137 : vector<10x1xf32> to vector<10x784xf32>
    %140 = vector.broadcast %138 : vector<1x784xf32> to vector<10x784xf32>
    %141 = arith.mulf %139, %140 : vector<10x784xf32>
    %142 = arith.addf %135, %141 : vector<10x784xf32>
    %c20 = arith.constant 20 : index
    %c0_43 = arith.constant 0 : index
    %c0_44 = arith.constant 0 : index
    %143 = vector.load %arg2[%c20, %c0_43, %c0_44] : memref<25x10x1xf32, #tpu.memory_space<vmem>>, vector<1x10x1xf32>
    %144 = vector.shape_cast %143 : vector<1x10x1xf32> to vector<10x1xf32>
    %145 = vector.extract_strided_slice %1 {offsets = [0, 112], sizes = [1, 784], strides = [1, 1]} : vector<1x1024xf32> to vector<1x784xf32>
    %146 = vector.broadcast %144 : vector<10x1xf32> to vector<10x784xf32>
    %147 = vector.broadcast %145 : vector<1x784xf32> to vector<10x784xf32>
    %148 = arith.mulf %146, %147 : vector<10x784xf32>
    %149 = arith.addf %142, %148 : vector<10x784xf32>
    %c21 = arith.constant 21 : index
    %c0_45 = arith.constant 0 : index
    %c0_46 = arith.constant 0 : index
    %150 = vector.load %arg2[%c21, %c0_45, %c0_46] : memref<25x10x1xf32, #tpu.memory_space<vmem>>, vector<1x10x1xf32>
    %151 = vector.shape_cast %150 : vector<1x10x1xf32> to vector<10x1xf32>
    %152 = vector.extract_strided_slice %1 {offsets = [0, 113], sizes = [1, 784], strides = [1, 1]} : vector<1x1024xf32> to vector<1x784xf32>
    %153 = vector.broadcast %151 : vector<10x1xf32> to vector<10x784xf32>
    %154 = vector.broadcast %152 : vector<1x784xf32> to vector<10x784xf32>
    %155 = arith.mulf %153, %154 : vector<10x784xf32>
    %156 = arith.addf %149, %155 : vector<10x784xf32>
    %c22 = arith.constant 22 : index
    %c0_47 = arith.constant 0 : index
    %c0_48 = arith.constant 0 : index
    %157 = vector.load %arg2[%c22, %c0_47, %c0_48] : memref<25x10x1xf32, #tpu.memory_space<vmem>>, vector<1x10x1xf32>
    %158 = vector.shape_cast %157 : vector<1x10x1xf32> to vector<10x1xf32>
    %159 = vector.extract_strided_slice %1 {offsets = [0, 114], sizes = [1, 784], strides = [1, 1]} : vector<1x1024xf32> to vector<1x784xf32>
    %160 = vector.broadcast %158 : vector<10x1xf32> to vector<10x784xf32>
    %161 = vector.broadcast %159 : vector<1x784xf32> to vector<10x784xf32>
    %162 = arith.mulf %160, %161 : vector<10x784xf32>
    %163 = arith.addf %156, %162 : vector<10x784xf32>
    %c23 = arith.constant 23 : index
    %c0_49 = arith.constant 0 : index
    %c0_50 = arith.constant 0 : index
    %164 = vector.load %arg2[%c23, %c0_49, %c0_50] : memref<25x10x1xf32, #tpu.memory_space<vmem>>, vector<1x10x1xf32>
    %165 = vector.shape_cast %164 : vector<1x10x1xf32> to vector<10x1xf32>
    %166 = vector.extract_strided_slice %1 {offsets = [0, 115], sizes = [1, 784], strides = [1, 1]} : vector<1x1024xf32> to vector<1x784xf32>
    %167 = vector.broadcast %165 : vector<10x1xf32> to vector<10x784xf32>
    %168 = vector.broadcast %166 : vector<1x784xf32> to vector<10x784xf32>
    %169 = arith.mulf %167, %168 : vector<10x784xf32>
    %170 = arith.addf %163, %169 : vector<10x784xf32>
    %c24 = arith.constant 24 : index
    %c0_51 = arith.constant 0 : index
    %c0_52 = arith.constant 0 : index
    %171 = vector.load %arg2[%c24, %c0_51, %c0_52] : memref<25x10x1xf32, #tpu.memory_space<vmem>>, vector<1x10x1xf32>
    %172 = vector.shape_cast %171 : vector<1x10x1xf32> to vector<10x1xf32>
    %173 = vector.extract_strided_slice %1 {offsets = [0, 116], sizes = [1, 784], strides = [1, 1]} : vector<1x1024xf32> to vector<1x784xf32>
    %174 = vector.broadcast %172 : vector<10x1xf32> to vector<10x784xf32>
    %175 = vector.broadcast %173 : vector<1x784xf32> to vector<10x784xf32>
    %176 = arith.mulf %174, %175 : vector<10x784xf32>
    %177 = arith.addf %170, %176 : vector<10x784xf32>
    %178 = vector.extract_strided_slice %177 {offsets = [0, 0], sizes = [10, 783], strides = [1, 1]} : vector<10x784xf32> to vector<10x783xf32>
    %179 = vector.extract_strided_slice %177 {offsets = [0, 1], sizes = [10, 783], strides = [1, 1]} : vector<10x784xf32> to vector<10x783xf32>
    %180 = arith.maximumf %178, %179 : vector<10x783xf32>
    %181 = vector.extract_strided_slice %180 {offsets = [0, 0], sizes = [10, 755], strides = [1, 1]} : vector<10x783xf32> to vector<10x755xf32>
    %182 = vector.extract_strided_slice %180 {offsets = [0, 28], sizes = [10, 755], strides = [1, 1]} : vector<10x783xf32> to vector<10x755xf32>
    %183 = arith.maximumf %181, %182 : vector<10x755xf32>
    %184 = tpu.iota {dimensions = array<i32: 0>} : vector<755x256xi32>
    %c0_53 = arith.constant 0 : index
    %c0_54 = arith.constant 0 : index
    %185 = vector.load %arg6[%c0_53, %c0_54] : memref<1x256xi32, #tpu.memory_space<vmem>>, vector<1x256xi32>
    %186 = vector.broadcast %185 : vector<1x256xi32> to vector<755x256xi32>
    %187 = arith.cmpi eq, %184, %186 : vector<755x256xi32>
    %188 = arith.extui %187 : vector<755x256xi1> to vector<755x256xi32>
    %189 = arith.sitofp %188 : vector<755x256xi32> to vector<755x256xf32>
    %cst_55 = arith.constant dense<0.000000e+00> : vector<10x256xf32>
    %190 = tpu.matmul %183, %189, %cst_55 {dimension_numbers = #tpu.dot_dimension_numbers<[1], [0], [0], [1], [0, 0, 1, 1], [], []>} : vector<10x755xf32>, vector<755x256xf32>, vector<10x256xf32> -> vector<10x256xf32>
    %c0_56 = arith.constant 0 : index
    %c0_57 = arith.constant 0 : index
    %191 = vector.load %arg3[%c0_56, %c0_57] : memref<10x1xf32, #tpu.memory_space<vmem>>, vector<10x1xf32>
    %192 = vector.broadcast %191 : vector<10x1xf32> to vector<10x256xf32>
    %193 = arith.addf %190, %192 : vector<10x256xf32>
    %cst_58 = arith.constant 0.000000e+00 : f32
    %194 = vector.broadcast %cst_58 : f32 to vector<10x256xf32>
    %195 = arith.maximumf %193, %194 : vector<10x256xf32>
    %cst_59 = arith.constant 0.000000e+00 : f32
    %196 = vector.broadcast %cst_59 : f32 to vector<20x144xf32>
    %c0_60 = arith.constant 0 : index
    %c0_61 = arith.constant 0 : index
    %c0_62 = arith.constant 0 : index
    %197 = vector.load %arg4[%c0_60, %c0_61, %c0_62] : memref<25x20x10xf32, #tpu.memory_space<vmem>>, vector<1x20x10xf32>
    %198 = vector.shape_cast %197 : vector<1x20x10xf32> to vector<20x10xf32>
    %199 = vector.extract_strided_slice %195 {offsets = [0, 0], sizes = [10, 144], strides = [1, 1]} : vector<10x256xf32> to vector<10x144xf32>
    %cst_63 = arith.constant dense<0.000000e+00> : vector<20x144xf32>
    %200 = tpu.matmul %198, %199, %cst_63 {dimension_numbers = #tpu.dot_dimension_numbers<[1], [0], [0], [1], [0, 0, 1, 1], [], []>} : vector<20x10xf32>, vector<10x144xf32>, vector<20x144xf32> -> vector<20x144xf32>
    %201 = arith.addf %196, %200 : vector<20x144xf32>
    %c1_64 = arith.constant 1 : index
    %c0_65 = arith.constant 0 : index
    %c0_66 = arith.constant 0 : index
    %202 = vector.load %arg4[%c1_64, %c0_65, %c0_66] : memref<25x20x10xf32, #tpu.memory_space<vmem>>, vector<1x20x10xf32>
    %203 = vector.shape_cast %202 : vector<1x20x10xf32> to vector<20x10xf32>
    %204 = vector.extract_strided_slice %195 {offsets = [0, 1], sizes = [10, 144], strides = [1, 1]} : vector<10x256xf32> to vector<10x144xf32>
    %cst_67 = arith.constant dense<0.000000e+00> : vector<20x144xf32>
    %205 = tpu.matmul %203, %204, %cst_67 {dimension_numbers = #tpu.dot_dimension_numbers<[1], [0], [0], [1], [0, 0, 1, 1], [], []>} : vector<20x10xf32>, vector<10x144xf32>, vector<20x144xf32> -> vector<20x144xf32>
    %206 = arith.addf %201, %205 : vector<20x144xf32>
    %c2_68 = arith.constant 2 : index
    %c0_69 = arith.constant 0 : index
    %c0_70 = arith.constant 0 : index
    %207 = vector.load %arg4[%c2_68, %c0_69, %c0_70] : memref<25x20x10xf32, #tpu.memory_space<vmem>>, vector<1x20x10xf32>
    %208 = vector.shape_cast %207 : vector<1x20x10xf32> to vector<20x10xf32>
    %209 = vector.extract_strided_slice %195 {offsets = [0, 2], sizes = [10, 144], strides = [1, 1]} : vector<10x256xf32> to vector<10x144xf32>
    %cst_71 = arith.constant dense<0.000000e+00> : vector<20x144xf32>
    %210 = tpu.matmul %208, %209, %cst_71 {dimension_numbers = #tpu.dot_dimension_numbers<[1], [0], [0], [1], [0, 0, 1, 1], [], []>} : vector<20x10xf32>, vector<10x144xf32>, vector<20x144xf32> -> vector<20x144xf32>
    %211 = arith.addf %206, %210 : vector<20x144xf32>
    %c3_72 = arith.constant 3 : index
    %c0_73 = arith.constant 0 : index
    %c0_74 = arith.constant 0 : index
    %212 = vector.load %arg4[%c3_72, %c0_73, %c0_74] : memref<25x20x10xf32, #tpu.memory_space<vmem>>, vector<1x20x10xf32>
    %213 = vector.shape_cast %212 : vector<1x20x10xf32> to vector<20x10xf32>
    %214 = vector.extract_strided_slice %195 {offsets = [0, 3], sizes = [10, 144], strides = [1, 1]} : vector<10x256xf32> to vector<10x144xf32>
    %cst_75 = arith.constant dense<0.000000e+00> : vector<20x144xf32>
    %215 = tpu.matmul %213, %214, %cst_75 {dimension_numbers = #tpu.dot_dimension_numbers<[1], [0], [0], [1], [0, 0, 1, 1], [], []>} : vector<20x10xf32>, vector<10x144xf32>, vector<20x144xf32> -> vector<20x144xf32>
    %216 = arith.addf %211, %215 : vector<20x144xf32>
    %c4_76 = arith.constant 4 : index
    %c0_77 = arith.constant 0 : index
    %c0_78 = arith.constant 0 : index
    %217 = vector.load %arg4[%c4_76, %c0_77, %c0_78] : memref<25x20x10xf32, #tpu.memory_space<vmem>>, vector<1x20x10xf32>
    %218 = vector.shape_cast %217 : vector<1x20x10xf32> to vector<20x10xf32>
    %219 = vector.extract_strided_slice %195 {offsets = [0, 4], sizes = [10, 144], strides = [1, 1]} : vector<10x256xf32> to vector<10x144xf32>
    %cst_79 = arith.constant dense<0.000000e+00> : vector<20x144xf32>
    %220 = tpu.matmul %218, %219, %cst_79 {dimension_numbers = #tpu.dot_dimension_numbers<[1], [0], [0], [1], [0, 0, 1, 1], [], []>} : vector<20x10xf32>, vector<10x144xf32>, vector<20x144xf32> -> vector<20x144xf32>
    %221 = arith.addf %216, %220 : vector<20x144xf32>
    %c5_80 = arith.constant 5 : index
    %c0_81 = arith.constant 0 : index
    %c0_82 = arith.constant 0 : index
    %222 = vector.load %arg4[%c5_80, %c0_81, %c0_82] : memref<25x20x10xf32, #tpu.memory_space<vmem>>, vector<1x20x10xf32>
    %223 = vector.shape_cast %222 : vector<1x20x10xf32> to vector<20x10xf32>
    %224 = vector.extract_strided_slice %195 {offsets = [0, 12], sizes = [10, 144], strides = [1, 1]} : vector<10x256xf32> to vector<10x144xf32>
    %cst_83 = arith.constant dense<0.000000e+00> : vector<20x144xf32>
    %225 = tpu.matmul %223, %224, %cst_83 {dimension_numbers = #tpu.dot_dimension_numbers<[1], [0], [0], [1], [0, 0, 1, 1], [], []>} : vector<20x10xf32>, vector<10x144xf32>, vector<20x144xf32> -> vector<20x144xf32>
    %226 = arith.addf %221, %225 : vector<20x144xf32>
    %c6_84 = arith.constant 6 : index
    %c0_85 = arith.constant 0 : index
    %c0_86 = arith.constant 0 : index
    %227 = vector.load %arg4[%c6_84, %c0_85, %c0_86] : memref<25x20x10xf32, #tpu.memory_space<vmem>>, vector<1x20x10xf32>
    %228 = vector.shape_cast %227 : vector<1x20x10xf32> to vector<20x10xf32>
    %229 = vector.extract_strided_slice %195 {offsets = [0, 13], sizes = [10, 144], strides = [1, 1]} : vector<10x256xf32> to vector<10x144xf32>
    %cst_87 = arith.constant dense<0.000000e+00> : vector<20x144xf32>
    %230 = tpu.matmul %228, %229, %cst_87 {dimension_numbers = #tpu.dot_dimension_numbers<[1], [0], [0], [1], [0, 0, 1, 1], [], []>} : vector<20x10xf32>, vector<10x144xf32>, vector<20x144xf32> -> vector<20x144xf32>
    %231 = arith.addf %226, %230 : vector<20x144xf32>
    %c7_88 = arith.constant 7 : index
    %c0_89 = arith.constant 0 : index
    %c0_90 = arith.constant 0 : index
    %232 = vector.load %arg4[%c7_88, %c0_89, %c0_90] : memref<25x20x10xf32, #tpu.memory_space<vmem>>, vector<1x20x10xf32>
    %233 = vector.shape_cast %232 : vector<1x20x10xf32> to vector<20x10xf32>
    %234 = vector.extract_strided_slice %195 {offsets = [0, 14], sizes = [10, 144], strides = [1, 1]} : vector<10x256xf32> to vector<10x144xf32>
    %cst_91 = arith.constant dense<0.000000e+00> : vector<20x144xf32>
    %235 = tpu.matmul %233, %234, %cst_91 {dimension_numbers = #tpu.dot_dimension_numbers<[1], [0], [0], [1], [0, 0, 1, 1], [], []>} : vector<20x10xf32>, vector<10x144xf32>, vector<20x144xf32> -> vector<20x144xf32>
    %236 = arith.addf %231, %235 : vector<20x144xf32>
    %c8_92 = arith.constant 8 : index
    %c0_93 = arith.constant 0 : index
    %c0_94 = arith.constant 0 : index
    %237 = vector.load %arg4[%c8_92, %c0_93, %c0_94] : memref<25x20x10xf32, #tpu.memory_space<vmem>>, vector<1x20x10xf32>
    %238 = vector.shape_cast %237 : vector<1x20x10xf32> to vector<20x10xf32>
    %239 = vector.extract_strided_slice %195 {offsets = [0, 15], sizes = [10, 144], strides = [1, 1]} : vector<10x256xf32> to vector<10x144xf32>
    %cst_95 = arith.constant dense<0.000000e+00> : vector<20x144xf32>
    %240 = tpu.matmul %238, %239, %cst_95 {dimension_numbers = #tpu.dot_dimension_numbers<[1], [0], [0], [1], [0, 0, 1, 1], [], []>} : vector<20x10xf32>, vector<10x144xf32>, vector<20x144xf32> -> vector<20x144xf32>
    %241 = arith.addf %236, %240 : vector<20x144xf32>
    %c9_96 = arith.constant 9 : index
    %c0_97 = arith.constant 0 : index
    %c0_98 = arith.constant 0 : index
    %242 = vector.load %arg4[%c9_96, %c0_97, %c0_98] : memref<25x20x10xf32, #tpu.memory_space<vmem>>, vector<1x20x10xf32>
    %243 = vector.shape_cast %242 : vector<1x20x10xf32> to vector<20x10xf32>
    %244 = vector.extract_strided_slice %195 {offsets = [0, 16], sizes = [10, 144], strides = [1, 1]} : vector<10x256xf32> to vector<10x144xf32>
    %cst_99 = arith.constant dense<0.000000e+00> : vector<20x144xf32>
    %245 = tpu.matmul %243, %244, %cst_99 {dimension_numbers = #tpu.dot_dimension_numbers<[1], [0], [0], [1], [0, 0, 1, 1], [], []>} : vector<20x10xf32>, vector<10x144xf32>, vector<20x144xf32> -> vector<20x144xf32>
    %246 = arith.addf %241, %245 : vector<20x144xf32>
    %c10_100 = arith.constant 10 : index
    %c0_101 = arith.constant 0 : index
    %c0_102 = arith.constant 0 : index
    %247 = vector.load %arg4[%c10_100, %c0_101, %c0_102] : memref<25x20x10xf32, #tpu.memory_space<vmem>>, vector<1x20x10xf32>
    %248 = vector.shape_cast %247 : vector<1x20x10xf32> to vector<20x10xf32>
    %249 = vector.extract_strided_slice %195 {offsets = [0, 24], sizes = [10, 144], strides = [1, 1]} : vector<10x256xf32> to vector<10x144xf32>
    %cst_103 = arith.constant dense<0.000000e+00> : vector<20x144xf32>
    %250 = tpu.matmul %248, %249, %cst_103 {dimension_numbers = #tpu.dot_dimension_numbers<[1], [0], [0], [1], [0, 0, 1, 1], [], []>} : vector<20x10xf32>, vector<10x144xf32>, vector<20x144xf32> -> vector<20x144xf32>
    %251 = arith.addf %246, %250 : vector<20x144xf32>
    %c11_104 = arith.constant 11 : index
    %c0_105 = arith.constant 0 : index
    %c0_106 = arith.constant 0 : index
    %252 = vector.load %arg4[%c11_104, %c0_105, %c0_106] : memref<25x20x10xf32, #tpu.memory_space<vmem>>, vector<1x20x10xf32>
    %253 = vector.shape_cast %252 : vector<1x20x10xf32> to vector<20x10xf32>
    %254 = vector.extract_strided_slice %195 {offsets = [0, 25], sizes = [10, 144], strides = [1, 1]} : vector<10x256xf32> to vector<10x144xf32>
    %cst_107 = arith.constant dense<0.000000e+00> : vector<20x144xf32>
    %255 = tpu.matmul %253, %254, %cst_107 {dimension_numbers = #tpu.dot_dimension_numbers<[1], [0], [0], [1], [0, 0, 1, 1], [], []>} : vector<20x10xf32>, vector<10x144xf32>, vector<20x144xf32> -> vector<20x144xf32>
    %256 = arith.addf %251, %255 : vector<20x144xf32>
    %c12_108 = arith.constant 12 : index
    %c0_109 = arith.constant 0 : index
    %c0_110 = arith.constant 0 : index
    %257 = vector.load %arg4[%c12_108, %c0_109, %c0_110] : memref<25x20x10xf32, #tpu.memory_space<vmem>>, vector<1x20x10xf32>
    %258 = vector.shape_cast %257 : vector<1x20x10xf32> to vector<20x10xf32>
    %259 = vector.extract_strided_slice %195 {offsets = [0, 26], sizes = [10, 144], strides = [1, 1]} : vector<10x256xf32> to vector<10x144xf32>
    %cst_111 = arith.constant dense<0.000000e+00> : vector<20x144xf32>
    %260 = tpu.matmul %258, %259, %cst_111 {dimension_numbers = #tpu.dot_dimension_numbers<[1], [0], [0], [1], [0, 0, 1, 1], [], []>} : vector<20x10xf32>, vector<10x144xf32>, vector<20x144xf32> -> vector<20x144xf32>
    %261 = arith.addf %256, %260 : vector<20x144xf32>
    %c13_112 = arith.constant 13 : index
    %c0_113 = arith.constant 0 : index
    %c0_114 = arith.constant 0 : index
    %262 = vector.load %arg4[%c13_112, %c0_113, %c0_114] : memref<25x20x10xf32, #tpu.memory_space<vmem>>, vector<1x20x10xf32>
    %263 = vector.shape_cast %262 : vector<1x20x10xf32> to vector<20x10xf32>
    %264 = vector.extract_strided_slice %195 {offsets = [0, 27], sizes = [10, 144], strides = [1, 1]} : vector<10x256xf32> to vector<10x144xf32>
    %cst_115 = arith.constant dense<0.000000e+00> : vector<20x144xf32>
    %265 = tpu.matmul %263, %264, %cst_115 {dimension_numbers = #tpu.dot_dimension_numbers<[1], [0], [0], [1], [0, 0, 1, 1], [], []>} : vector<20x10xf32>, vector<10x144xf32>, vector<20x144xf32> -> vector<20x144xf32>
    %266 = arith.addf %261, %265 : vector<20x144xf32>
    %c14_116 = arith.constant 14 : index
    %c0_117 = arith.constant 0 : index
    %c0_118 = arith.constant 0 : index
    %267 = vector.load %arg4[%c14_116, %c0_117, %c0_118] : memref<25x20x10xf32, #tpu.memory_space<vmem>>, vector<1x20x10xf32>
    %268 = vector.shape_cast %267 : vector<1x20x10xf32> to vector<20x10xf32>
    %269 = vector.extract_strided_slice %195 {offsets = [0, 28], sizes = [10, 144], strides = [1, 1]} : vector<10x256xf32> to vector<10x144xf32>
    %cst_119 = arith.constant dense<0.000000e+00> : vector<20x144xf32>
    %270 = tpu.matmul %268, %269, %cst_119 {dimension_numbers = #tpu.dot_dimension_numbers<[1], [0], [0], [1], [0, 0, 1, 1], [], []>} : vector<20x10xf32>, vector<10x144xf32>, vector<20x144xf32> -> vector<20x144xf32>
    %271 = arith.addf %266, %270 : vector<20x144xf32>
    %c15_120 = arith.constant 15 : index
    %c0_121 = arith.constant 0 : index
    %c0_122 = arith.constant 0 : index
    %272 = vector.load %arg4[%c15_120, %c0_121, %c0_122] : memref<25x20x10xf32, #tpu.memory_space<vmem>>, vector<1x20x10xf32>
    %273 = vector.shape_cast %272 : vector<1x20x10xf32> to vector<20x10xf32>
    %274 = vector.extract_strided_slice %195 {offsets = [0, 36], sizes = [10, 144], strides = [1, 1]} : vector<10x256xf32> to vector<10x144xf32>
    %cst_123 = arith.constant dense<0.000000e+00> : vector<20x144xf32>
    %275 = tpu.matmul %273, %274, %cst_123 {dimension_numbers = #tpu.dot_dimension_numbers<[1], [0], [0], [1], [0, 0, 1, 1], [], []>} : vector<20x10xf32>, vector<10x144xf32>, vector<20x144xf32> -> vector<20x144xf32>
    %276 = arith.addf %271, %275 : vector<20x144xf32>
    %c16_124 = arith.constant 16 : index
    %c0_125 = arith.constant 0 : index
    %c0_126 = arith.constant 0 : index
    %277 = vector.load %arg4[%c16_124, %c0_125, %c0_126] : memref<25x20x10xf32, #tpu.memory_space<vmem>>, vector<1x20x10xf32>
    %278 = vector.shape_cast %277 : vector<1x20x10xf32> to vector<20x10xf32>
    %279 = vector.extract_strided_slice %195 {offsets = [0, 37], sizes = [10, 144], strides = [1, 1]} : vector<10x256xf32> to vector<10x144xf32>
    %cst_127 = arith.constant dense<0.000000e+00> : vector<20x144xf32>
    %280 = tpu.matmul %278, %279, %cst_127 {dimension_numbers = #tpu.dot_dimension_numbers<[1], [0], [0], [1], [0, 0, 1, 1], [], []>} : vector<20x10xf32>, vector<10x144xf32>, vector<20x144xf32> -> vector<20x144xf32>
    %281 = arith.addf %276, %280 : vector<20x144xf32>
    %c17_128 = arith.constant 17 : index
    %c0_129 = arith.constant 0 : index
    %c0_130 = arith.constant 0 : index
    %282 = vector.load %arg4[%c17_128, %c0_129, %c0_130] : memref<25x20x10xf32, #tpu.memory_space<vmem>>, vector<1x20x10xf32>
    %283 = vector.shape_cast %282 : vector<1x20x10xf32> to vector<20x10xf32>
    %284 = vector.extract_strided_slice %195 {offsets = [0, 38], sizes = [10, 144], strides = [1, 1]} : vector<10x256xf32> to vector<10x144xf32>
    %cst_131 = arith.constant dense<0.000000e+00> : vector<20x144xf32>
    %285 = tpu.matmul %283, %284, %cst_131 {dimension_numbers = #tpu.dot_dimension_numbers<[1], [0], [0], [1], [0, 0, 1, 1], [], []>} : vector<20x10xf32>, vector<10x144xf32>, vector<20x144xf32> -> vector<20x144xf32>
    %286 = arith.addf %281, %285 : vector<20x144xf32>
    %c18_132 = arith.constant 18 : index
    %c0_133 = arith.constant 0 : index
    %c0_134 = arith.constant 0 : index
    %287 = vector.load %arg4[%c18_132, %c0_133, %c0_134] : memref<25x20x10xf32, #tpu.memory_space<vmem>>, vector<1x20x10xf32>
    %288 = vector.shape_cast %287 : vector<1x20x10xf32> to vector<20x10xf32>
    %289 = vector.extract_strided_slice %195 {offsets = [0, 39], sizes = [10, 144], strides = [1, 1]} : vector<10x256xf32> to vector<10x144xf32>
    %cst_135 = arith.constant dense<0.000000e+00> : vector<20x144xf32>
    %290 = tpu.matmul %288, %289, %cst_135 {dimension_numbers = #tpu.dot_dimension_numbers<[1], [0], [0], [1], [0, 0, 1, 1], [], []>} : vector<20x10xf32>, vector<10x144xf32>, vector<20x144xf32> -> vector<20x144xf32>
    %291 = arith.addf %286, %290 : vector<20x144xf32>
    %c19_136 = arith.constant 19 : index
    %c0_137 = arith.constant 0 : index
    %c0_138 = arith.constant 0 : index
    %292 = vector.load %arg4[%c19_136, %c0_137, %c0_138] : memref<25x20x10xf32, #tpu.memory_space<vmem>>, vector<1x20x10xf32>
    %293 = vector.shape_cast %292 : vector<1x20x10xf32> to vector<20x10xf32>
    %294 = vector.extract_strided_slice %195 {offsets = [0, 40], sizes = [10, 144], strides = [1, 1]} : vector<10x256xf32> to vector<10x144xf32>
    %cst_139 = arith.constant dense<0.000000e+00> : vector<20x144xf32>
    %295 = tpu.matmul %293, %294, %cst_139 {dimension_numbers = #tpu.dot_dimension_numbers<[1], [0], [0], [1], [0, 0, 1, 1], [], []>} : vector<20x10xf32>, vector<10x144xf32>, vector<20x144xf32> -> vector<20x144xf32>
    %296 = arith.addf %291, %295 : vector<20x144xf32>
    %c20_140 = arith.constant 20 : index
    %c0_141 = arith.constant 0 : index
    %c0_142 = arith.constant 0 : index
    %297 = vector.load %arg4[%c20_140, %c0_141, %c0_142] : memref<25x20x10xf32, #tpu.memory_space<vmem>>, vector<1x20x10xf32>
    %298 = vector.shape_cast %297 : vector<1x20x10xf32> to vector<20x10xf32>
    %299 = vector.extract_strided_slice %195 {offsets = [0, 48], sizes = [10, 144], strides = [1, 1]} : vector<10x256xf32> to vector<10x144xf32>
    %cst_143 = arith.constant dense<0.000000e+00> : vector<20x144xf32>
    %300 = tpu.matmul %298, %299, %cst_143 {dimension_numbers = #tpu.dot_dimension_numbers<[1], [0], [0], [1], [0, 0, 1, 1], [], []>} : vector<20x10xf32>, vector<10x144xf32>, vector<20x144xf32> -> vector<20x144xf32>
    %301 = arith.addf %296, %300 : vector<20x144xf32>
    %c21_144 = arith.constant 21 : index
    %c0_145 = arith.constant 0 : index
    %c0_146 = arith.constant 0 : index
    %302 = vector.load %arg4[%c21_144, %c0_145, %c0_146] : memref<25x20x10xf32, #tpu.memory_space<vmem>>, vector<1x20x10xf32>
    %303 = vector.shape_cast %302 : vector<1x20x10xf32> to vector<20x10xf32>
    %304 = vector.extract_strided_slice %195 {offsets = [0, 49], sizes = [10, 144], strides = [1, 1]} : vector<10x256xf32> to vector<10x144xf32>
    %cst_147 = arith.constant dense<0.000000e+00> : vector<20x144xf32>
    %305 = tpu.matmul %303, %304, %cst_147 {dimension_numbers = #tpu.dot_dimension_numbers<[1], [0], [0], [1], [0, 0, 1, 1], [], []>} : vector<20x10xf32>, vector<10x144xf32>, vector<20x144xf32> -> vector<20x144xf32>
    %306 = arith.addf %301, %305 : vector<20x144xf32>
    %c22_148 = arith.constant 22 : index
    %c0_149 = arith.constant 0 : index
    %c0_150 = arith.constant 0 : index
    %307 = vector.load %arg4[%c22_148, %c0_149, %c0_150] : memref<25x20x10xf32, #tpu.memory_space<vmem>>, vector<1x20x10xf32>
    %308 = vector.shape_cast %307 : vector<1x20x10xf32> to vector<20x10xf32>
    %309 = vector.extract_strided_slice %195 {offsets = [0, 50], sizes = [10, 144], strides = [1, 1]} : vector<10x256xf32> to vector<10x144xf32>
    %cst_151 = arith.constant dense<0.000000e+00> : vector<20x144xf32>
    %310 = tpu.matmul %308, %309, %cst_151 {dimension_numbers = #tpu.dot_dimension_numbers<[1], [0], [0], [1], [0, 0, 1, 1], [], []>} : vector<20x10xf32>, vector<10x144xf32>, vector<20x144xf32> -> vector<20x144xf32>
    %311 = arith.addf %306, %310 : vector<20x144xf32>
    %c23_152 = arith.constant 23 : index
    %c0_153 = arith.constant 0 : index
    %c0_154 = arith.constant 0 : index
    %312 = vector.load %arg4[%c23_152, %c0_153, %c0_154] : memref<25x20x10xf32, #tpu.memory_space<vmem>>, vector<1x20x10xf32>
    %313 = vector.shape_cast %312 : vector<1x20x10xf32> to vector<20x10xf32>
    %314 = vector.extract_strided_slice %195 {offsets = [0, 51], sizes = [10, 144], strides = [1, 1]} : vector<10x256xf32> to vector<10x144xf32>
    %cst_155 = arith.constant dense<0.000000e+00> : vector<20x144xf32>
    %315 = tpu.matmul %313, %314, %cst_155 {dimension_numbers = #tpu.dot_dimension_numbers<[1], [0], [0], [1], [0, 0, 1, 1], [], []>} : vector<20x10xf32>, vector<10x144xf32>, vector<20x144xf32> -> vector<20x144xf32>
    %316 = arith.addf %311, %315 : vector<20x144xf32>
    %c24_156 = arith.constant 24 : index
    %c0_157 = arith.constant 0 : index
    %c0_158 = arith.constant 0 : index
    %317 = vector.load %arg4[%c24_156, %c0_157, %c0_158] : memref<25x20x10xf32, #tpu.memory_space<vmem>>, vector<1x20x10xf32>
    %318 = vector.shape_cast %317 : vector<1x20x10xf32> to vector<20x10xf32>
    %319 = vector.extract_strided_slice %195 {offsets = [0, 52], sizes = [10, 144], strides = [1, 1]} : vector<10x256xf32> to vector<10x144xf32>
    %cst_159 = arith.constant dense<0.000000e+00> : vector<20x144xf32>
    %320 = tpu.matmul %318, %319, %cst_159 {dimension_numbers = #tpu.dot_dimension_numbers<[1], [0], [0], [1], [0, 0, 1, 1], [], []>} : vector<20x10xf32>, vector<10x144xf32>, vector<20x144xf32> -> vector<20x144xf32>
    %321 = arith.addf %316, %320 : vector<20x144xf32>
    %322 = vector.extract_strided_slice %321 {offsets = [0, 0], sizes = [20, 143], strides = [1, 1]} : vector<20x144xf32> to vector<20x143xf32>
    %323 = vector.extract_strided_slice %321 {offsets = [0, 1], sizes = [20, 143], strides = [1, 1]} : vector<20x144xf32> to vector<20x143xf32>
    %324 = arith.maximumf %322, %323 : vector<20x143xf32>
    %325 = vector.extract_strided_slice %324 {offsets = [0, 0], sizes = [20, 131], strides = [1, 1]} : vector<20x143xf32> to vector<20x131xf32>
    %326 = vector.extract_strided_slice %324 {offsets = [0, 12], sizes = [20, 131], strides = [1, 1]} : vector<20x143xf32> to vector<20x131xf32>
    %327 = arith.maximumf %325, %326 : vector<20x131xf32>
    %328 = tpu.iota {dimensions = array<i32: 0>} : vector<131x16xi32>
    %c0_160 = arith.constant 0 : index
    %c0_161 = arith.constant 0 : index
    %329 = vector.load %arg7[%c0_160, %c0_161] : memref<1x16xi32, #tpu.memory_space<vmem>>, vector<1x16xi32>
    %330 = vector.broadcast %329 : vector<1x16xi32> to vector<131x16xi32>
    %331 = arith.cmpi eq, %328, %330 : vector<131x16xi32>
    %332 = arith.extui %331 : vector<131x16xi1> to vector<131x16xi32>
    %333 = arith.sitofp %332 : vector<131x16xi32> to vector<131x16xf32>
    %cst_162 = arith.constant dense<0.000000e+00> : vector<20x16xf32>
    %334 = tpu.matmul %327, %333, %cst_162 {dimension_numbers = #tpu.dot_dimension_numbers<[1], [0], [0], [1], [0, 0, 1, 1], [], []>} : vector<20x131xf32>, vector<131x16xf32>, vector<20x16xf32> -> vector<20x16xf32>
    %c0_163 = arith.constant 0 : index
    %c0_164 = arith.constant 0 : index
    %335 = vector.load %arg5[%c0_163, %c0_164] : memref<20x1xf32, #tpu.memory_space<vmem>>, vector<20x1xf32>
    %336 = vector.broadcast %335 : vector<20x1xf32> to vector<20x16xf32>
    %337 = arith.addf %334, %336 : vector<20x16xf32>
    %cst_165 = arith.constant 0.000000e+00 : f32
    %338 = vector.broadcast %cst_165 : f32 to vector<20x16xf32>
    %339 = arith.maximumf %337, %338 : vector<20x16xf32>
    %c0_166 = arith.constant 0 : index
    %c0_167 = arith.constant 0 : index
    %340 = vector.load %arg9[%c0_166, %c0_167] : memref<1x50xf32, #tpu.memory_space<vmem>>, vector<1x50xf32>
    %341 = vector.extract_strided_slice %339 {offsets = [0, 0], sizes = [1, 16], strides = [1, 1]} : vector<20x16xf32> to vector<1x16xf32>
    %c0_168 = arith.constant 0 : index
    %c0_169 = arith.constant 0 : index
    %c0_170 = arith.constant 0 : index
    %342 = vector.load %arg8[%c0_168, %c0_169, %c0_170] : memref<20x16x50xf32, #tpu.memory_space<vmem>>, vector<1x16x50xf32>
    %343 = vector.shape_cast %342 : vector<1x16x50xf32> to vector<16x50xf32>
    %cst_171 = arith.constant dense<0.000000e+00> : vector<1x50xf32>
    %344 = tpu.matmul %341, %343, %cst_171 {dimension_numbers = #tpu.dot_dimension_numbers<[1], [0], [0], [1], [0, 0, 1, 1], [], []>} : vector<1x16xf32>, vector<16x50xf32>, vector<1x50xf32> -> vector<1x50xf32>
    %345 = arith.addf %340, %344 : vector<1x50xf32>
    %346 = vector.extract_strided_slice %339 {offsets = [1, 0], sizes = [1, 16], strides = [1, 1]} : vector<20x16xf32> to vector<1x16xf32>
    %c1_172 = arith.constant 1 : index
    %c0_173 = arith.constant 0 : index
    %c0_174 = arith.constant 0 : index
    %347 = vector.load %arg8[%c1_172, %c0_173, %c0_174] : memref<20x16x50xf32, #tpu.memory_space<vmem>>, vector<1x16x50xf32>
    %348 = vector.shape_cast %347 : vector<1x16x50xf32> to vector<16x50xf32>
    %cst_175 = arith.constant dense<0.000000e+00> : vector<1x50xf32>
    %349 = tpu.matmul %346, %348, %cst_175 {dimension_numbers = #tpu.dot_dimension_numbers<[1], [0], [0], [1], [0, 0, 1, 1], [], []>} : vector<1x16xf32>, vector<16x50xf32>, vector<1x50xf32> -> vector<1x50xf32>
    %350 = arith.addf %345, %349 : vector<1x50xf32>
    %351 = vector.extract_strided_slice %339 {offsets = [2, 0], sizes = [1, 16], strides = [1, 1]} : vector<20x16xf32> to vector<1x16xf32>
    %c2_176 = arith.constant 2 : index
    %c0_177 = arith.constant 0 : index
    %c0_178 = arith.constant 0 : index
    %352 = vector.load %arg8[%c2_176, %c0_177, %c0_178] : memref<20x16x50xf32, #tpu.memory_space<vmem>>, vector<1x16x50xf32>
    %353 = vector.shape_cast %352 : vector<1x16x50xf32> to vector<16x50xf32>
    %cst_179 = arith.constant dense<0.000000e+00> : vector<1x50xf32>
    %354 = tpu.matmul %351, %353, %cst_179 {dimension_numbers = #tpu.dot_dimension_numbers<[1], [0], [0], [1], [0, 0, 1, 1], [], []>} : vector<1x16xf32>, vector<16x50xf32>, vector<1x50xf32> -> vector<1x50xf32>
    %355 = arith.addf %350, %354 : vector<1x50xf32>
    %356 = vector.extract_strided_slice %339 {offsets = [3, 0], sizes = [1, 16], strides = [1, 1]} : vector<20x16xf32> to vector<1x16xf32>
    %c3_180 = arith.constant 3 : index
    %c0_181 = arith.constant 0 : index
    %c0_182 = arith.constant 0 : index
    %357 = vector.load %arg8[%c3_180, %c0_181, %c0_182] : memref<20x16x50xf32, #tpu.memory_space<vmem>>, vector<1x16x50xf32>
    %358 = vector.shape_cast %357 : vector<1x16x50xf32> to vector<16x50xf32>
    %cst_183 = arith.constant dense<0.000000e+00> : vector<1x50xf32>
    %359 = tpu.matmul %356, %358, %cst_183 {dimension_numbers = #tpu.dot_dimension_numbers<[1], [0], [0], [1], [0, 0, 1, 1], [], []>} : vector<1x16xf32>, vector<16x50xf32>, vector<1x50xf32> -> vector<1x50xf32>
    %360 = arith.addf %355, %359 : vector<1x50xf32>
    %361 = vector.extract_strided_slice %339 {offsets = [4, 0], sizes = [1, 16], strides = [1, 1]} : vector<20x16xf32> to vector<1x16xf32>
    %c4_184 = arith.constant 4 : index
    %c0_185 = arith.constant 0 : index
    %c0_186 = arith.constant 0 : index
    %362 = vector.load %arg8[%c4_184, %c0_185, %c0_186] : memref<20x16x50xf32, #tpu.memory_space<vmem>>, vector<1x16x50xf32>
    %363 = vector.shape_cast %362 : vector<1x16x50xf32> to vector<16x50xf32>
    %cst_187 = arith.constant dense<0.000000e+00> : vector<1x50xf32>
    %364 = tpu.matmul %361, %363, %cst_187 {dimension_numbers = #tpu.dot_dimension_numbers<[1], [0], [0], [1], [0, 0, 1, 1], [], []>} : vector<1x16xf32>, vector<16x50xf32>, vector<1x50xf32> -> vector<1x50xf32>
    %365 = arith.addf %360, %364 : vector<1x50xf32>
    %366 = vector.extract_strided_slice %339 {offsets = [5, 0], sizes = [1, 16], strides = [1, 1]} : vector<20x16xf32> to vector<1x16xf32>
    %c5_188 = arith.constant 5 : index
    %c0_189 = arith.constant 0 : index
    %c0_190 = arith.constant 0 : index
    %367 = vector.load %arg8[%c5_188, %c0_189, %c0_190] : memref<20x16x50xf32, #tpu.memory_space<vmem>>, vector<1x16x50xf32>
    %368 = vector.shape_cast %367 : vector<1x16x50xf32> to vector<16x50xf32>
    %cst_191 = arith.constant dense<0.000000e+00> : vector<1x50xf32>
    %369 = tpu.matmul %366, %368, %cst_191 {dimension_numbers = #tpu.dot_dimension_numbers<[1], [0], [0], [1], [0, 0, 1, 1], [], []>} : vector<1x16xf32>, vector<16x50xf32>, vector<1x50xf32> -> vector<1x50xf32>
    %370 = arith.addf %365, %369 : vector<1x50xf32>
    %371 = vector.extract_strided_slice %339 {offsets = [6, 0], sizes = [1, 16], strides = [1, 1]} : vector<20x16xf32> to vector<1x16xf32>
    %c6_192 = arith.constant 6 : index
    %c0_193 = arith.constant 0 : index
    %c0_194 = arith.constant 0 : index
    %372 = vector.load %arg8[%c6_192, %c0_193, %c0_194] : memref<20x16x50xf32, #tpu.memory_space<vmem>>, vector<1x16x50xf32>
    %373 = vector.shape_cast %372 : vector<1x16x50xf32> to vector<16x50xf32>
    %cst_195 = arith.constant dense<0.000000e+00> : vector<1x50xf32>
    %374 = tpu.matmul %371, %373, %cst_195 {dimension_numbers = #tpu.dot_dimension_numbers<[1], [0], [0], [1], [0, 0, 1, 1], [], []>} : vector<1x16xf32>, vector<16x50xf32>, vector<1x50xf32> -> vector<1x50xf32>
    %375 = arith.addf %370, %374 : vector<1x50xf32>
    %376 = vector.extract_strided_slice %339 {offsets = [7, 0], sizes = [1, 16], strides = [1, 1]} : vector<20x16xf32> to vector<1x16xf32>
    %c7_196 = arith.constant 7 : index
    %c0_197 = arith.constant 0 : index
    %c0_198 = arith.constant 0 : index
    %377 = vector.load %arg8[%c7_196, %c0_197, %c0_198] : memref<20x16x50xf32, #tpu.memory_space<vmem>>, vector<1x16x50xf32>
    %378 = vector.shape_cast %377 : vector<1x16x50xf32> to vector<16x50xf32>
    %cst_199 = arith.constant dense<0.000000e+00> : vector<1x50xf32>
    %379 = tpu.matmul %376, %378, %cst_199 {dimension_numbers = #tpu.dot_dimension_numbers<[1], [0], [0], [1], [0, 0, 1, 1], [], []>} : vector<1x16xf32>, vector<16x50xf32>, vector<1x50xf32> -> vector<1x50xf32>
    %380 = arith.addf %375, %379 : vector<1x50xf32>
    %381 = vector.extract_strided_slice %339 {offsets = [8, 0], sizes = [1, 16], strides = [1, 1]} : vector<20x16xf32> to vector<1x16xf32>
    %c8_200 = arith.constant 8 : index
    %c0_201 = arith.constant 0 : index
    %c0_202 = arith.constant 0 : index
    %382 = vector.load %arg8[%c8_200, %c0_201, %c0_202] : memref<20x16x50xf32, #tpu.memory_space<vmem>>, vector<1x16x50xf32>
    %383 = vector.shape_cast %382 : vector<1x16x50xf32> to vector<16x50xf32>
    %cst_203 = arith.constant dense<0.000000e+00> : vector<1x50xf32>
    %384 = tpu.matmul %381, %383, %cst_203 {dimension_numbers = #tpu.dot_dimension_numbers<[1], [0], [0], [1], [0, 0, 1, 1], [], []>} : vector<1x16xf32>, vector<16x50xf32>, vector<1x50xf32> -> vector<1x50xf32>
    %385 = arith.addf %380, %384 : vector<1x50xf32>
    %386 = vector.extract_strided_slice %339 {offsets = [9, 0], sizes = [1, 16], strides = [1, 1]} : vector<20x16xf32> to vector<1x16xf32>
    %c9_204 = arith.constant 9 : index
    %c0_205 = arith.constant 0 : index
    %c0_206 = arith.constant 0 : index
    %387 = vector.load %arg8[%c9_204, %c0_205, %c0_206] : memref<20x16x50xf32, #tpu.memory_space<vmem>>, vector<1x16x50xf32>
    %388 = vector.shape_cast %387 : vector<1x16x50xf32> to vector<16x50xf32>
    %cst_207 = arith.constant dense<0.000000e+00> : vector<1x50xf32>
    %389 = tpu.matmul %386, %388, %cst_207 {dimension_numbers = #tpu.dot_dimension_numbers<[1], [0], [0], [1], [0, 0, 1, 1], [], []>} : vector<1x16xf32>, vector<16x50xf32>, vector<1x50xf32> -> vector<1x50xf32>
    %390 = arith.addf %385, %389 : vector<1x50xf32>
    %391 = vector.extract_strided_slice %339 {offsets = [10, 0], sizes = [1, 16], strides = [1, 1]} : vector<20x16xf32> to vector<1x16xf32>
    %c10_208 = arith.constant 10 : index
    %c0_209 = arith.constant 0 : index
    %c0_210 = arith.constant 0 : index
    %392 = vector.load %arg8[%c10_208, %c0_209, %c0_210] : memref<20x16x50xf32, #tpu.memory_space<vmem>>, vector<1x16x50xf32>
    %393 = vector.shape_cast %392 : vector<1x16x50xf32> to vector<16x50xf32>
    %cst_211 = arith.constant dense<0.000000e+00> : vector<1x50xf32>
    %394 = tpu.matmul %391, %393, %cst_211 {dimension_numbers = #tpu.dot_dimension_numbers<[1], [0], [0], [1], [0, 0, 1, 1], [], []>} : vector<1x16xf32>, vector<16x50xf32>, vector<1x50xf32> -> vector<1x50xf32>
    %395 = arith.addf %390, %394 : vector<1x50xf32>
    %396 = vector.extract_strided_slice %339 {offsets = [11, 0], sizes = [1, 16], strides = [1, 1]} : vector<20x16xf32> to vector<1x16xf32>
    %c11_212 = arith.constant 11 : index
    %c0_213 = arith.constant 0 : index
    %c0_214 = arith.constant 0 : index
    %397 = vector.load %arg8[%c11_212, %c0_213, %c0_214] : memref<20x16x50xf32, #tpu.memory_space<vmem>>, vector<1x16x50xf32>
    %398 = vector.shape_cast %397 : vector<1x16x50xf32> to vector<16x50xf32>
    %cst_215 = arith.constant dense<0.000000e+00> : vector<1x50xf32>
    %399 = tpu.matmul %396, %398, %cst_215 {dimension_numbers = #tpu.dot_dimension_numbers<[1], [0], [0], [1], [0, 0, 1, 1], [], []>} : vector<1x16xf32>, vector<16x50xf32>, vector<1x50xf32> -> vector<1x50xf32>
    %400 = arith.addf %395, %399 : vector<1x50xf32>
    %401 = vector.extract_strided_slice %339 {offsets = [12, 0], sizes = [1, 16], strides = [1, 1]} : vector<20x16xf32> to vector<1x16xf32>
    %c12_216 = arith.constant 12 : index
    %c0_217 = arith.constant 0 : index
    %c0_218 = arith.constant 0 : index
    %402 = vector.load %arg8[%c12_216, %c0_217, %c0_218] : memref<20x16x50xf32, #tpu.memory_space<vmem>>, vector<1x16x50xf32>
    %403 = vector.shape_cast %402 : vector<1x16x50xf32> to vector<16x50xf32>
    %cst_219 = arith.constant dense<0.000000e+00> : vector<1x50xf32>
    %404 = tpu.matmul %401, %403, %cst_219 {dimension_numbers = #tpu.dot_dimension_numbers<[1], [0], [0], [1], [0, 0, 1, 1], [], []>} : vector<1x16xf32>, vector<16x50xf32>, vector<1x50xf32> -> vector<1x50xf32>
    %405 = arith.addf %400, %404 : vector<1x50xf32>
    %406 = vector.extract_strided_slice %339 {offsets = [13, 0], sizes = [1, 16], strides = [1, 1]} : vector<20x16xf32> to vector<1x16xf32>
    %c13_220 = arith.constant 13 : index
    %c0_221 = arith.constant 0 : index
    %c0_222 = arith.constant 0 : index
    %407 = vector.load %arg8[%c13_220, %c0_221, %c0_222] : memref<20x16x50xf32, #tpu.memory_space<vmem>>, vector<1x16x50xf32>
    %408 = vector.shape_cast %407 : vector<1x16x50xf32> to vector<16x50xf32>
    %cst_223 = arith.constant dense<0.000000e+00> : vector<1x50xf32>
    %409 = tpu.matmul %406, %408, %cst_223 {dimension_numbers = #tpu.dot_dimension_numbers<[1], [0], [0], [1], [0, 0, 1, 1], [], []>} : vector<1x16xf32>, vector<16x50xf32>, vector<1x50xf32> -> vector<1x50xf32>
    %410 = arith.addf %405, %409 : vector<1x50xf32>
    %411 = vector.extract_strided_slice %339 {offsets = [14, 0], sizes = [1, 16], strides = [1, 1]} : vector<20x16xf32> to vector<1x16xf32>
    %c14_224 = arith.constant 14 : index
    %c0_225 = arith.constant 0 : index
    %c0_226 = arith.constant 0 : index
    %412 = vector.load %arg8[%c14_224, %c0_225, %c0_226] : memref<20x16x50xf32, #tpu.memory_space<vmem>>, vector<1x16x50xf32>
    %413 = vector.shape_cast %412 : vector<1x16x50xf32> to vector<16x50xf32>
    %cst_227 = arith.constant dense<0.000000e+00> : vector<1x50xf32>
    %414 = tpu.matmul %411, %413, %cst_227 {dimension_numbers = #tpu.dot_dimension_numbers<[1], [0], [0], [1], [0, 0, 1, 1], [], []>} : vector<1x16xf32>, vector<16x50xf32>, vector<1x50xf32> -> vector<1x50xf32>
    %415 = arith.addf %410, %414 : vector<1x50xf32>
    %416 = vector.extract_strided_slice %339 {offsets = [15, 0], sizes = [1, 16], strides = [1, 1]} : vector<20x16xf32> to vector<1x16xf32>
    %c15_228 = arith.constant 15 : index
    %c0_229 = arith.constant 0 : index
    %c0_230 = arith.constant 0 : index
    %417 = vector.load %arg8[%c15_228, %c0_229, %c0_230] : memref<20x16x50xf32, #tpu.memory_space<vmem>>, vector<1x16x50xf32>
    %418 = vector.shape_cast %417 : vector<1x16x50xf32> to vector<16x50xf32>
    %cst_231 = arith.constant dense<0.000000e+00> : vector<1x50xf32>
    %419 = tpu.matmul %416, %418, %cst_231 {dimension_numbers = #tpu.dot_dimension_numbers<[1], [0], [0], [1], [0, 0, 1, 1], [], []>} : vector<1x16xf32>, vector<16x50xf32>, vector<1x50xf32> -> vector<1x50xf32>
    %420 = arith.addf %415, %419 : vector<1x50xf32>
    %421 = vector.extract_strided_slice %339 {offsets = [16, 0], sizes = [1, 16], strides = [1, 1]} : vector<20x16xf32> to vector<1x16xf32>
    %c16_232 = arith.constant 16 : index
    %c0_233 = arith.constant 0 : index
    %c0_234 = arith.constant 0 : index
    %422 = vector.load %arg8[%c16_232, %c0_233, %c0_234] : memref<20x16x50xf32, #tpu.memory_space<vmem>>, vector<1x16x50xf32>
    %423 = vector.shape_cast %422 : vector<1x16x50xf32> to vector<16x50xf32>
    %cst_235 = arith.constant dense<0.000000e+00> : vector<1x50xf32>
    %424 = tpu.matmul %421, %423, %cst_235 {dimension_numbers = #tpu.dot_dimension_numbers<[1], [0], [0], [1], [0, 0, 1, 1], [], []>} : vector<1x16xf32>, vector<16x50xf32>, vector<1x50xf32> -> vector<1x50xf32>
    %425 = arith.addf %420, %424 : vector<1x50xf32>
    %426 = vector.extract_strided_slice %339 {offsets = [17, 0], sizes = [1, 16], strides = [1, 1]} : vector<20x16xf32> to vector<1x16xf32>
    %c17_236 = arith.constant 17 : index
    %c0_237 = arith.constant 0 : index
    %c0_238 = arith.constant 0 : index
    %427 = vector.load %arg8[%c17_236, %c0_237, %c0_238] : memref<20x16x50xf32, #tpu.memory_space<vmem>>, vector<1x16x50xf32>
    %428 = vector.shape_cast %427 : vector<1x16x50xf32> to vector<16x50xf32>
    %cst_239 = arith.constant dense<0.000000e+00> : vector<1x50xf32>
    %429 = tpu.matmul %426, %428, %cst_239 {dimension_numbers = #tpu.dot_dimension_numbers<[1], [0], [0], [1], [0, 0, 1, 1], [], []>} : vector<1x16xf32>, vector<16x50xf32>, vector<1x50xf32> -> vector<1x50xf32>
    %430 = arith.addf %425, %429 : vector<1x50xf32>
    %431 = vector.extract_strided_slice %339 {offsets = [18, 0], sizes = [1, 16], strides = [1, 1]} : vector<20x16xf32> to vector<1x16xf32>
    %c18_240 = arith.constant 18 : index
    %c0_241 = arith.constant 0 : index
    %c0_242 = arith.constant 0 : index
    %432 = vector.load %arg8[%c18_240, %c0_241, %c0_242] : memref<20x16x50xf32, #tpu.memory_space<vmem>>, vector<1x16x50xf32>
    %433 = vector.shape_cast %432 : vector<1x16x50xf32> to vector<16x50xf32>
    %cst_243 = arith.constant dense<0.000000e+00> : vector<1x50xf32>
    %434 = tpu.matmul %431, %433, %cst_243 {dimension_numbers = #tpu.dot_dimension_numbers<[1], [0], [0], [1], [0, 0, 1, 1], [], []>} : vector<1x16xf32>, vector<16x50xf32>, vector<1x50xf32> -> vector<1x50xf32>
    %435 = arith.addf %430, %434 : vector<1x50xf32>
    %436 = vector.extract_strided_slice %339 {offsets = [19, 0], sizes = [1, 16], strides = [1, 1]} : vector<20x16xf32> to vector<1x16xf32>
    %c19_244 = arith.constant 19 : index
    %c0_245 = arith.constant 0 : index
    %c0_246 = arith.constant 0 : index
    %437 = vector.load %arg8[%c19_244, %c0_245, %c0_246] : memref<20x16x50xf32, #tpu.memory_space<vmem>>, vector<1x16x50xf32>
    %438 = vector.shape_cast %437 : vector<1x16x50xf32> to vector<16x50xf32>
    %cst_247 = arith.constant dense<0.000000e+00> : vector<1x50xf32>
    %439 = tpu.matmul %436, %438, %cst_247 {dimension_numbers = #tpu.dot_dimension_numbers<[1], [0], [0], [1], [0, 0, 1, 1], [], []>} : vector<1x16xf32>, vector<16x50xf32>, vector<1x50xf32> -> vector<1x50xf32>
    %440 = arith.addf %435, %439 : vector<1x50xf32>
    %cst_248 = arith.constant 0.000000e+00 : f32
    %441 = vector.broadcast %cst_248 : f32 to vector<1x50xf32>
    %442 = arith.maximumf %440, %441 : vector<1x50xf32>
    %c0_249 = arith.constant 0 : index
    %c0_250 = arith.constant 0 : index
    %443 = vector.load %arg10[%c0_249, %c0_250] : memref<50x10xf32, #tpu.memory_space<vmem>>, vector<50x10xf32>
    %cst_251 = arith.constant dense<0.000000e+00> : vector<1x10xf32>
    %444 = tpu.matmul %442, %443, %cst_251 {dimension_numbers = #tpu.dot_dimension_numbers<[1], [0], [0], [1], [0, 0, 1, 1], [], []>} : vector<1x50xf32>, vector<50x10xf32>, vector<1x10xf32> -> vector<1x10xf32>
    %c0_252 = arith.constant 0 : index
    %c0_253 = arith.constant 0 : index
    %445 = vector.load %arg11[%c0_252, %c0_253] : memref<1x10xf32, #tpu.memory_space<vmem>>, vector<1x10xf32>
    %446 = arith.addf %444, %445 : vector<1x10xf32>
    %cst_254 = arith.constant dense<0xFF800000> : vector<1xf32>
    %447 = vector.multi_reduction <maximumf>, %446, %cst_254 [1] : vector<1x10xf32> to vector<1xf32>
    %448 = vector.shape_cast %447 : vector<1xf32> to vector<1x1xf32>
    %449 = vector.broadcast %448 : vector<1x1xf32> to vector<1x10xf32>
    %450 = arith.subf %446, %449 : vector<1x10xf32>
    %451 = math.exp %450 : vector<1x10xf32>
    %cst_255 = arith.constant dense<0.000000e+00> : vector<1xf32>
    %452 = vector.multi_reduction <add>, %451, %cst_255 [1] : vector<1x10xf32> to vector<1xf32>
    %453 = vector.shape_cast %452 : vector<1xf32> to vector<1x1xf32>
    %454 = math.log %453 : vector<1x1xf32>
    %455 = vector.broadcast %454 : vector<1x1xf32> to vector<1x10xf32>
    %456 = arith.subf %450, %455 : vector<1x10xf32>
    %c0_256 = arith.constant 0 : index
    %c0_257 = arith.constant 0 : index
    %c0_258 = arith.constant 0 : index
    %457 = vector.load %arg12[%c0_256, %c0_257, %c0_258] : memref<1x1x10xf32, #tpu.memory_space<vmem>>, vector<1x1x10xf32>
    %458 = vector.shape_cast %457 : vector<1x1x10xf32> to vector<1x10xf32>
    %459 = vector.shape_cast %456 : vector<1x10xf32> to vector<1x1x10xf32>
    tpu.vector_store %arg12[%c0_256, %c0_257, %c0_258], %459 {strides = array<i32>} : memref<1x1x10xf32, #tpu.memory_space<vmem>>, vector<1x1x10xf32>,
    return
  }
  func.func @transform_0(%arg0: i32) -> (i32, i32, i32) {
    %c0_i32 = arith.constant 0 : i32
    %c0_i32_0 = arith.constant 0 : i32
    %c0_i32_1 = arith.constant 0 : i32
    return %arg0, %c0_i32, %c0_i32_0 : i32, i32, i32
  }
  func.func @transform_1(%arg0: i32) -> (i32, i32, i32) {
    %c0_i32 = arith.constant 0 : i32
    %c0_i32_0 = arith.constant 0 : i32
    %c0_i32_1 = arith.constant 0 : i32
    %c0_i32_2 = arith.constant 0 : i32
    return %c0_i32, %c0_i32_0, %c0_i32_1 : i32, i32, i32
  }
  func.func @transform_2(%arg0: i32) -> (i32, i32) {
    %c0_i32 = arith.constant 0 : i32
    %c0_i32_0 = arith.constant 0 : i32
    %c0_i32_1 = arith.constant 0 : i32
    return %c0_i32, %c0_i32_0 : i32, i32
  }
  func.func @transform_3(%arg0: i32) -> (i32, i32, i32) {
    %c0_i32 = arith.constant 0 : i32
    %c0_i32_0 = arith.constant 0 : i32
    %c0_i32_1 = arith.constant 0 : i32
    %c0_i32_2 = arith.constant 0 : i32
    return %c0_i32, %c0_i32_0, %c0_i32_1 : i32, i32, i32
  }
  func.func @transform_4(%arg0: i32) -> (i32, i32) {
    %c0_i32 = arith.constant 0 : i32
    %c0_i32_0 = arith.constant 0 : i32
    %c0_i32_1 = arith.constant 0 : i32
    return %c0_i32, %c0_i32_0 : i32, i32
  }
  func.func @transform_5(%arg0: i32) -> (i32, i32) {
    %c0_i32 = arith.constant 0 : i32
    %c0_i32_0 = arith.constant 0 : i32
    %c0_i32_1 = arith.constant 0 : i32
    return %c0_i32, %c0_i32_0 : i32, i32
  }
  func.func @transform_6(%arg0: i32) -> (i32, i32) {
    %c0_i32 = arith.constant 0 : i32
    %c0_i32_0 = arith.constant 0 : i32
    %c0_i32_1 = arith.constant 0 : i32
    return %c0_i32, %c0_i32_0 : i32, i32
  }
  func.func @transform_7(%arg0: i32) -> (i32, i32, i32) {
    %c0_i32 = arith.constant 0 : i32
    %c0_i32_0 = arith.constant 0 : i32
    %c0_i32_1 = arith.constant 0 : i32
    %c0_i32_2 = arith.constant 0 : i32
    return %c0_i32, %c0_i32_0, %c0_i32_1 : i32, i32, i32
  }
  func.func @transform_8(%arg0: i32) -> (i32, i32) {
    %c0_i32 = arith.constant 0 : i32
    %c0_i32_0 = arith.constant 0 : i32
    %c0_i32_1 = arith.constant 0 : i32
    return %c0_i32, %c0_i32_0 : i32, i32
  }
  func.func @transform_9(%arg0: i32) -> (i32, i32) {
    %c0_i32 = arith.constant 0 : i32
    %c0_i32_0 = arith.constant 0 : i32
    %c0_i32_1 = arith.constant 0 : i32
    return %c0_i32, %c0_i32_0 : i32, i32
  }
  func.func @transform_10(%arg0: i32) -> (i32, i32) {
    %c0_i32 = arith.constant 0 : i32
    %c0_i32_0 = arith.constant 0 : i32
    %c0_i32_1 = arith.constant 0 : i32
    return %c0_i32, %c0_i32_0 : i32, i32
  }
  func.func @transform_11(%arg0: i32) -> (i32, i32, i32) {
    %c0_i32 = arith.constant 0 : i32
    %c0_i32_0 = arith.constant 0 : i32
    %c0_i32_1 = arith.constant 0 : i32
    return %arg0, %c0_i32, %c0_i32_0 : i32, i32, i32
  }
}

</mosaic_0001>

<bundles_post_ra>
// kernel: cnn_mnist_forward.1
= control target key start
LH: loop header
LB: loop body
LE: loop exit
PB: predicated region body
PF: predicated region fallthrough
CT: control target
= control target key end

     0   :  { %s15519_s0 = inlined_call_operand.vmem [shape: f32[2,1,1024], index: 0, kind: input, shape index: {}]   ;;  %s15520_s1 = inlined_call_operand.vmem [shape: f32[25,10,1], index: 1, kind: input, shape index: {}]   ;;  %s15521_s2 = inlined_call_operand.vmem [shape: f32[10,1], index: 2, kind: input, shape index: {}]   ;;  %s15522_s3 = inlined_call_operand.vmem [shape: f32[25,20,10], index: 3, kind: input, shape index: {}]   ;;  %s15523_s4 = inlined_call_operand.vmem [shape: f32[20,1], index: 4, kind: input, shape index: {}]   ;;  %s15524_s5 = inlined_call_operand.vmem [shape: s32[1,256], index: 5, kind: input, shape index: {}]   ;;  %s15525_s6 = inlined_call_operand.vmem [shape: s32[1,16], index: 6, kind: input, shape index: {}]   ;;  %s15526_s7 = inlined_call_operand.vmem [shape: f32[20,16,50], index: 7, kind: input, shape index: {}]   ;;  %s15527_s8 = inlined_call_operand.vmem [shape: f32[1,50], index: 8, kind: input, shape index: {}]   ;;  %s15528_s9 = inlined_call_operand.vmem [shape: f32[50,10], index: 9, kind: input, shape index: {}]   ;;  %s15529_s10 = inlined_call_operand.vmem [shape: f32[1,10], index: 10, kind: input, shape index: {}]   ;;  %s15530_s11 = inlined_call_operand.hbm [shape: f32[2,1,10], index: 11, kind: output, shape index: {}]  }
   0x1   :  { %15864 = sst [smem:[#allocation244_spill]] %s15519_s0 }
   0x2   :  { %15865 = sst [smem:[#allocation245_spill]] %s15520_s1 }
   0x3   :  { %16 = vsyncpa [#allocation3], 0 }
   0x4   :  { %18 = vsyncpa [#allocation3 + $0x1], 0  ;;  %s10397_s17 = smov 0   ;;  %s10399_s18 = smov 0  }
   0x5   :  { %s10401_s19 = smov 0   ;;  %s10403_s20 = smov 0  }
   0x6 LB: > { %s10418_s21 = sadd.s32 4294967295, %s10287_s20   ;;  %s9132_s22 = sadd.s32 4294967294, %s10287_s20   ;;  %s10287_s20 = sphi %s10403_s20, %s16659_s20   ;;  %s10283_s19 = sphi %s10401_s19, %s16658_s19   ;;  %s10279_s18 = sphi %s10399_s18, %s16657_s18   ;;  %s10275_s17 = sphi %s10397_s17, %s16656_s17  }
   0x7   : > { %s10422_s23 = sadd.s32 1, %s10287_s20   ;;  %s267_s24 = sadd.s32 1, %s10283_s19 }
   0x8   : > { %s264_s25 = ssub.s32 %s10287_s20, %s10422_s23  ;;  %p277_p0 = scmp.ne.s32.totalorder %s10283_s19, %s10279_s18 }
   0x9   : > { %p265_p1 = scmp.eq.s32.totalorder %s264_s25, 0  ;;  %p278_p2 = scmp.eq.s32.totalorder %s10418_s21, 1 }
   0xa   : > { %p283_p3 = scmp.ne.s32.totalorder %s10279_s18, %s10275_s17  ;;  %p284_p4 = scmp.eq.s32.totalorder %s9132_s22, 1 }
   0xb   : > { %s10433_s26 = scalar_select %p265_p1, %s10283_s19, %s267_s24  }
   0xc   : > { %p10435_p5 = por %p278_p2, %p277_p0  ;;  %p10439_p6 = por %p284_p4, %p283_p3 }
   0xd   : > { %p9135_p7 = scmp.ge.s32.totalorder %s10287_s20, 1  ;;  %p339_p8 = scmp.lt.s32.totalorder %s10287_s20, 3 }
   0xf   : > { %p340_p9 = pnand %p9135_p7, %p339_p8 }
  0x11   : > { %343 = sbr.rel (%p340_p9) target bundleno = 3176 (0xc68), region = 64 }
  0x16   : > { %s15868_s1 = sld [smem:[#allocation245_spill]]  ;;  %v10289_v2 = vmov 0   ;;  %p377_p10 = scmp.lt.s32.totalorder %s10418_s21, 1  ;;  %v395_v36 = vlaneseq  ;;  %vm15809_vm0 = vcmask 1039360   ;;  %vm15808_vm1 = vcmask 1031168  }
  0x17   : > { %10181 = vset.pattern.permute.xlu1 %v10289_v2  ;;  %10180 = vset.pattern.permute.xlu0 %v10289_v2  ;;  %s15870_s0 = sld [smem:[#allocation244_spill]]  ;;  %s15642_s15 = smov 127   ;;  %vm15815_vm2 = vcmask 1022976   ;;  %vm15827_vm3 = vcmask 1014784   ;;  %vm15829_vm4 = vcmask 818176   ;;  %vm1077_vm5 = vcmask 809984  }
  0x18   : > { %s378_s29 = scalar_select %p377_p10, %s10418_s21, 1  ;;  %v10552_v37 = vshrl.u32 %v395_v36, 7  ;;  %vm1187_vm6 = vcmask 801792   ;;  %vm15789_vm7 = vcmask 793600   ;;  %vm1407_vm8 = vcmask 785408  }
  0x19   : > { %s15650_s16 = smov 126   ;;  %s15657_s22 = smov 125   ;;  %vm15792_vm9 = vcmask 588800   ;;  %vm15796_vm10 = vcmask 580608   ;;  %vm15799_vm11 = vcmask 572416   ;;  %vm1847_vm12 = vcmask 564224  }
  0x1a   : > { %s9136_s30 = sshll.u32 %s378_s29, 3  ;;  %15869 = vst [vmem:[#allocation5_spill] sm:$0xff] %v10552_v37  ;;  %v405_v38 = vsub.s32 2, %v10552_v37  ;;  %v15546_v39 = vsub.s32 1, %v10552_v37  ;;  %v413_v43 = vsub.s32 4, %v10552_v37  ;;  %v409_v44 = vsub.s32 3, %v10552_v37 }
  0x1b   : > { %v15545_v47 = vsub.s32 0, %v10552_v37  ;;  %s15531_s24 = smov 124   ;;  %s15533_s25 = smov 100   ;;  %vm15804_vm13 = vcmask 556032   ;;  %vm15803_vm14 = vcmask 359424   ;;  %vm15805_vm15 = vcmask 351232  }
  0x1c   : > { %v9141_v0 = vld [vmem:[%s15868_s1 + $0x30] sm:$0xff]  ;;  %v9143_v3 = vld [vmem:[%s15868_s1 + $0x40] sm:$0xff]  ;;  %v9138_v25 = vld [vmem:[%s15868_s1 + $0x18] sm:$0x3]  ;;  %s15535_s29 = smov 99   ;;  %s15554_s12 = smov 69  }
  0x1d   : > { %v9137_v1 = vld [vmem:[%s15868_s1 + $0x10] sm:$0xff]  ;;  %683 = vperm.xlu1 %10181, %v9141_v0   ;;  %v9139_v4 = vld [vmem:[%s15868_s1 + $0x20] sm:$0xff]  ;;  %v9140_v27 = vld [vmem:[%s15868_s1 + $0x28] sm:$0x3]  ;;  %s10557_s14 = scalar_lea.vmem %s15870_s0, %s9136_s30  ;;  %s15537_s30 = smov 98  }
  0x1e   : > { %463 = vperm.xlu0 %10180, %v9137_v1   ;;  %v9147_v5 = vld [vmem:[%s15868_s1 + $0x60] sm:$0xff]  ;;  %v9145_v6 = vld [vmem:[%s15868_s1 + $0x50] sm:$0xff]  ;;  %v9142_v28 = vld [vmem:[%s15868_s1 + $0x38] sm:$0x3]  ;;  %s10311_s13 = smov 14  }
  0x1f   : > { %v9151_v7 = vld [vmem:[%s15868_s1 + $0x80] sm:$0xff]  ;;  %v9149_v8 = vld [vmem:[%s15868_s1 + $0x70] sm:$0xff]  ;;  %v9144_v29 = vld [vmem:[%s15868_s1 + $0x48] sm:$0x3] }
  0x20   : > { %v9155_v9 = vld [vmem:[%s15868_s1 + $0xa0] sm:$0xff]  ;;  %v9153_v10 = vld [vmem:[%s15868_s1 + $0x90] sm:$0xff]  ;;  %v9146_v30 = vld [vmem:[%s15868_s1 + $0x58] sm:$0x3] }
  0x21   : > { %793 = vperm.xlu1 %10181, %v9143_v3   ;;  %v9159_v11 = vld [vmem:[%s15868_s1 + $0xc0] sm:$0xff]  ;;  %v9157_v12 = vld [vmem:[%s15868_s1 + $0xb0] sm:$0xff]  ;;  %v9148_v31 = vld [vmem:[%s15868_s1 + $0x68] sm:$0x3] }
  0x22   : > { %573 = vperm.xlu0 %10180, %v9139_v4   ;;  %v9163_v13 = vld [vmem:[%s15868_s1 + $0xe0] sm:$0xff]  ;;  %v9161_v14 = vld [vmem:[%s15868_s1 + $0xd0] sm:$0xff]  ;;  %v9150_v32 = vld [vmem:[%s15868_s1 + $0x78] sm:$0x3] }
  0x23   : > { %v9167_v15 = vld [vmem:[%s15868_s1 + $0x100] sm:$0xff]  ;;  %v9165_v16 = vld [vmem:[%s15868_s1 + $0xf0] sm:$0xff]  ;;  %v9152_v33 = vld [vmem:[%s15868_s1 + $0x88] sm:$0x3] }
  0x24   : > { %v9171_v17 = vld [vmem:[%s15868_s1 + $0x120] sm:$0xff]  ;;  %v9169_v18 = vld [vmem:[%s15868_s1 + $0x110] sm:$0xff]  ;;  %v9154_v34 = vld [vmem:[%s15868_s1 + $0x98] sm:$0x3] }
  0x25   : > { %1013 = vperm.xlu1 %10181, %v9147_v5   ;;  %v9175_v19 = vld [vmem:[%s15868_s1 + $0x140] sm:$0xff]  ;;  %v9173_v20 = vld [vmem:[%s15868_s1 + $0x130] sm:$0xff]  ;;  %v9156_v35 = vld [vmem:[%s15868_s1 + $0xa8] sm:$0x3] }
  0x26   : > { %903 = vperm.xlu0 %10180, %v9145_v6   ;;  %v9179_v21 = vld [vmem:[%s15868_s1 + $0x160] sm:$0xff]  ;;  %v9177_v22 = vld [vmem:[%s15868_s1 + $0x150] sm:$0xff] }
  0x27   : > { %v9183_v23 = vld [vmem:[%s15868_s1 + $0x180] sm:$0xff]  ;;  %v9181_v24 = vld [vmem:[%s15868_s1 + $0x170] sm:$0xff] }
  0x28   : > { %v382_v26 = vld [vmem:[%s15868_s1] sm:$0xff] }
  0x29   : > { %1233 = vperm.xlu1 %10181, %v9151_v7   ;;  %v10562_v40 = vld [vmem:[%s10557_s14] sm:$0xff] }
  0x2a   : > { %1123 = vperm.xlu0 %10180, %v9149_v8   ;;  %v10565_v41 = vrot.slane %v10562_v40, %v405_v38  ;;  %v10570_v42 = vrot.slane %v10562_v40, %v15546_v39  ;;  %v10584_v50 = vrot.slane %v10562_v40, %v413_v43  ;;  %v10587_v51 = vrot.slane %v10562_v40, %v409_v44  ;;  %v9160_v43 = vld [vmem:[%s15868_s1 + $0xc8] sm:$0x3] }
  0x2b   : > { %v10600_v55 = vrot.slane %v10562_v40, %v15545_v47 }
  0x2d   : > { %1453 = vperm.xlu1 %10181, %v9155_v9  }
  0x2e   : > { %1343 = vperm.xlu0 %10180, %v9153_v10  }
  0x31   : > { %1673 = vperm.xlu1 %10181, %v9159_v11  }
  0x32   : > { %1563 = vperm.xlu0 %10180, %v9157_v12  }
  0x35   : > { %1893 = vperm.xlu1 %10181, %v9163_v13  }
  0x36   : > { %1783 = vperm.xlu0 %10180, %v9161_v14  }
  0x39   : > { %2113 = vperm.xlu1 %10181, %v9167_v15  }
  0x3a   : > { %2003 = vperm.xlu0 %10180, %v9165_v16  }
  0x3d   : > { %2333 = vperm.xlu1 %10181, %v9171_v17  }
  0x3e   : > { %2223 = vperm.xlu0 %10180, %v9169_v18  }
  0x41   : > { %2553 = vperm.xlu1 %10181, %v9175_v19  }
  0x42   : > { %2443 = vperm.xlu0 %10180, %v9173_v20  }
  0x45   : > { %2788 = vperm.xlu1 %10181, %v9179_v21  }
  0x46   : > { %2663 = vperm.xlu0 %10180, %v9177_v22  }
  0x49   : > { %3028 = vperm.xlu1 %10181, %v9183_v23  }
  0x4a   : > { %2908 = vperm.xlu0 %10180, %v9181_v24  }
  0x4d   : > { %386 = vperm.xlu1 %10181, %v382_v26  }
  0x4e   : > { %468 = vperm.xlu0 %10180, %v9138_v25  }
  0x51   : > { %688 = vperm.xlu1 %10181, %v9142_v28   ;;  %v9158_v28 = vld [vmem:[%s15868_s1 + $0xb8] sm:$0x3] }
  0x52   : > { %578 = vperm.xlu0 %10180, %v9140_v27  }
  0x55   : > { %908 = vperm.xlu1 %10181, %v9146_v30  }
  0x56   : > { %798 = vperm.xlu0 %10180, %v9144_v29  }
  0x59   : > { %1018 = vperm.xlu1 %10181, %v9148_v31  }
  0x5d   : > { %1128 = vperm.xlu1 %10181, %v9150_v32  }
  0x61   : > { %1238 = vperm.xlu1 %10181, %v9152_v33  }
  0x65   : > { %1348 = vperm.xlu1 %10181, %v9154_v34  }
  0x69   : > { %1458 = vperm.xlu1 %10181, %v9156_v35  }
  0x98   : > { %v10574_v45 = vpop.permute.xlu1 %683 }
  0x99   : > { %v10576_v46 = vpop.permute.xlu0 %463  ;;  %v692_v62 = vmul.f32 %v10574_v45, %v10570_v42  ;;  %v694_v1 = vmul.f32 %v10574_v45, %v10587_v51  ;;  %v693_v5 = vmul.f32 %v10574_v45, %v10565_v41  ;;  %v695_v8 = vmul.f32 %v10574_v45, %v10584_v50 }
  0x9a   : > { %v473_v48 = vmul.f32 %v10576_v46, %v10565_v41  ;;  %v472_v49 = vmul.f32 %v10576_v46, %v10570_v42  ;;  %v475_v53 = vmul.f32 %v10576_v46, %v10584_v50  ;;  %v474_v54 = vmul.f32 %v10576_v46, %v10587_v51 }
  0x9b   : > { %v471_v58 = vmul.f32 %v10576_v46, %v10600_v55  ;;  %v691_v11 = vmul.f32 %v10574_v45, %v10600_v55 }
  0x9c   : > { %503 = vrot.lane.b32.xlu0 %v473_v48, %s15642_s15  ;;  %501 = vrot.lane.b32.xlu1 %v472_v49, %s15642_s15  ;;  %v10591_v52 = vpop.permute.xlu1 %793 }
  0x9d   : > { %v10602_v56 = vpop.permute.xlu0 %573  ;;  %v802_v4 = vmul.f32 %v10591_v52, %v10570_v42  ;;  %v804_v7 = vmul.f32 %v10591_v52, %v10587_v51  ;;  %v803_v14 = vmul.f32 %v10591_v52, %v10565_v41  ;;  %v805_v17 = vmul.f32 %v10591_v52, %v10584_v50 }
  0x9e   : > { %v582_v57 = vmul.f32 %v10602_v56, %v10570_v42  ;;  %v584_v60 = vmul.f32 %v10602_v56, %v10587_v51  ;;  %v583_v61 = vmul.f32 %v10602_v56, %v10565_v41  ;;  %v585_v0 = vmul.f32 %v10602_v56, %v10584_v50 }
  0x9f   : > { %v581_v2 = vmul.f32 %v10602_v56, %v10600_v55  ;;  %v801_v19 = vmul.f32 %v10591_v52, %v10600_v55 }
  0xa0   : > { %507 = vrot.lane.b32.xlu0 %v475_v53, %s15642_s15  ;;  %505 = vrot.lane.b32.xlu1 %v474_v54, %s15642_s15  ;;  %v10610_v59 = vpop.permute.xlu1 %1013 }
  0xa1   : > { %v10648_v9 = vpop.permute.xlu0 %903  ;;  %v1022_v16 = vmul.f32 %v10610_v59, %v10570_v42  ;;  %v1024_v18 = vmul.f32 %v10610_v59, %v10587_v51  ;;  %v1023_v33 = vmul.f32 %v10610_v59, %v10565_v41  ;;  %v1025_v38 = vmul.f32 %v10610_v59, %v10584_v50 }
  0xa2   : > { %v912_v10 = vmul.f32 %v10648_v9, %v10570_v42  ;;  %v914_v13 = vmul.f32 %v10648_v9, %v10587_v51  ;;  %v913_v23 = vmul.f32 %v10648_v9, %v10565_v41  ;;  %v915_v27 = vmul.f32 %v10648_v9, %v10584_v50 }
  0xa3   : > { %v911_v29 = vmul.f32 %v10648_v9, %v10600_v55  ;;  %v1021_v44 = vmul.f32 %v10610_v59, %v10600_v55 }
  0xa4   : > { %611 = vrot.lane.b32.xlu1 %v582_v57, %s15650_s16  ;;  %499 = vrot.lane.b32.xlu0 %v471_v58, %s15642_s15  ;;  %v10622_v63 = vpop.permute.xlu1 %1233 }
  0xa5   : > { %v10678_v20 = vpop.permute.xlu0 %1123  ;;  %v1242_v32 = vmul.f32 %v10622_v63, %v10570_v42  ;;  %v1244_v36 = vmul.f32 %v10622_v63, %v10587_v51 }
  0xa6   : > { %v1132_v22 = vmul.f32 %v10678_v20, %v10570_v42  ;;  %v1134_v26 = vmul.f32 %v10678_v20, %v10587_v51  ;;  %v1133_v54 = vmul.f32 %v10678_v20, %v10565_v41 }
  0xa8   : > { %615 = vrot.lane.b32.xlu1 %v584_v60, %s15650_s16  ;;  %613 = vrot.lane.b32.xlu0 %v583_v61, %s15650_s16  ;;  %v10632_v3 = vpop.permute.xlu1 %1453  ;;  %v1135_v61 = vmul.f32 %v10678_v20, %v10584_v50 }
  0xa9   : > { %v10690_v24 = vpop.permute.xlu0 %1343 }
  0xaa   : > { %v1352_v53 = vmul.f32 %v10690_v24, %v10570_v42  ;;  %v1354_v60 = vmul.f32 %v10690_v24, %v10587_v51 }
  0xac   : > { %721 = vrot.lane.b32.xlu1 %v692_v62, %s15657_s22  ;;  %617 = vrot.lane.b32.xlu0 %v585_v0, %s15650_s16  ;;  %v10642_v6 = vpop.permute.xlu1 %1673  ;;  %v9162_v62 = vld [vmem:[%s15868_s1 + $0xd8] sm:$0x3]  ;;  %v1131_v0 = vmul.f32 %v10678_v20, %v10600_v55 }
  0xad   : > { %v10705_v30 = vpop.permute.xlu0 %1563 }
  0xb0   : > { %725 = vrot.lane.b32.xlu1 %v694_v1, %s15657_s22  ;;  %609 = vrot.lane.b32.xlu0 %v581_v2, %s15650_s16  ;;  %v10656_v12 = vpop.permute.xlu1 %1893 }
  0xb1   : > { %v10716_v34 = vpop.permute.xlu0 %1783 }
  0xb2   : > { %v1795_v39 = vmul.f32 %v10716_v34, %v10584_v50 }
  0xb4   : > { %831 = vrot.lane.b32.xlu1 %v802_v4, %s15531_s24  ;;  %723 = vrot.lane.b32.xlu0 %v693_v5, %s15657_s22  ;;  %v10666_v15 = vpop.permute.xlu1 %2113  ;;  %v1462_v4 = vmul.f32 %v10632_v3, %v10570_v42  ;;  %v1243_v5 = vmul.f32 %v10622_v63, %v10565_v41 }
  0xb5   : > { %v10731_v48 = vpop.permute.xlu0 %2003 }
  0xb8   : > { %835 = vrot.lane.b32.xlu1 %v804_v7, %s15531_s24  ;;  %727 = vrot.lane.b32.xlu0 %v695_v8, %s15657_s22  ;;  %v10680_v21 = vpop.permute.xlu1 %2333 }
  0xb9   : > { %v10742_v57 = vpop.permute.xlu0 %2223 }
  0xbc   : > { %941 = vrot.lane.b32.xlu1 %v912_v10, %s15533_s25  ;;  %719 = vrot.lane.b32.xlu0 %v691_v11, %s15657_s22  ;;  %v10692_v25 = vpop.permute.xlu1 %2553  ;;  %v1464_v10 = vmul.f32 %v10632_v3, %v10587_v51  ;;  %v1245_v11 = vmul.f32 %v10622_v63, %v10584_v50 }
  0xbd   : > { %v10757_v1 = vpop.permute.xlu0 %2443 }
  0xc0   : > { %945 = vrot.lane.b32.xlu1 %v914_v13, %s15533_s25  ;;  %833 = vrot.lane.b32.xlu0 %v803_v14, %s15531_s24  ;;  %v10707_v31 = vpop.permute.xlu1 %2788  ;;  %v9164_v13 = vld [vmem:[%s15868_s1 + $0xe8] sm:$0x3]  ;;  %v1241_v14 = vmul.f32 %v10622_v63, %v10600_v55 }
  0xc1   : > { %v10768_v7 = vpop.permute.xlu0 %2663 }
  0xc4   : > { %1051 = vrot.lane.b32.xlu1 %v1022_v16, %s15535_s29  ;;  %837 = vrot.lane.b32.xlu0 %v805_v17, %s15531_s24  ;;  %v10718_v35 = vpop.permute.xlu1 %3028 }
  0xc5   : > { %v10783_v16 = vpop.permute.xlu0 %2908 }
  0xc8   : > { %1055 = vrot.lane.b32.xlu1 %v1024_v18, %s15535_s29  ;;  %829 = vrot.lane.b32.xlu0 %v801_v19, %s15531_s24  ;;  %s15539_s24 = smov 97   ;;  %v10733_v49 = vpop.permute.xlu1 %386  ;;  %v1572_v18 = vmul.f32 %v10705_v30, %v10570_v42  ;;  %v1353_v19 = vmul.f32 %v10690_v24, %v10565_v41 }
  0xcc   : > { %1161 = vrot.lane.b32.xlu1 %v1132_v22, %s15537_s30  ;;  %943 = vrot.lane.b32.xlu0 %v913_v23, %s15533_s25  ;;  %v10744_v58 = vpop.permute.xlu1 %688  ;;  %v10794_v22 = vpop.permute.xlu0 %468 }
  0xd0   : > { %1165 = vrot.lane.b32.xlu1 %v1134_v26, %s15537_s30  ;;  %947 = vrot.lane.b32.xlu0 %v915_v27, %s15533_s25  ;;  %v10759_v2 = vpop.permute.xlu1 %908  ;;  %v1574_v26 = vmul.f32 %v10705_v30, %v10587_v51  ;;  %v1355_v27 = vmul.f32 %v10690_v24, %v10584_v50 }
  0xd4   : > { %1568 = vperm.xlu1 %10181, %v9158_v28   ;;  %939 = vrot.lane.b32.xlu0 %v911_v29, %s15533_s25  ;;  %s10298_s25 = smov 96   ;;  %v10770_v8 = vpop.permute.xlu1 %1018  ;;  %v9166_v28 = vld [vmem:[%s15868_s1 + $0xf8] sm:$0x3]  ;;  %v1351_v29 = vmul.f32 %v10690_v24, %v10600_v55 }
  0xd8   : > { %1271 = vrot.lane.b32.xlu1 %v1242_v32, %s15539_s24  ;;  %1053 = vrot.lane.b32.xlu0 %v1023_v33, %s15535_s29  ;;  %v10785_v17 = vpop.permute.xlu1 %1128  ;;  %v10809_v32 = vpop.permute.xlu0 %578 }
  0xdc   : > { %1275 = vrot.lane.b32.xlu1 %v1244_v36, %s15539_s24  ;;  %1057 = vrot.lane.b32.xlu0 %v1025_v38, %s15535_s29  ;;  %v10796_v23 = vpop.permute.xlu1 %1238  ;;  %v1682_v36 = vmul.f32 %v10642_v6, %v10570_v42  ;;  %v1463_v38 = vmul.f32 %v10632_v3, %v10565_v41 }
  0xe0   : > { %1678 = vperm.xlu1 %10181, %v9160_v43   ;;  %1049 = vrot.lane.b32.xlu0 %v1021_v44, %s15535_s29  ;;  %s15541_s29 = smov 72   ;;  %v10811_v33 = vpop.permute.xlu1 %1348  ;;  %v10820_v43 = vpop.permute.xlu0 %798 }
  0xe4   : > { %1381 = vrot.lane.b32.xlu1 %v1352_v53, %s10298_s25  ;;  %1163 = vrot.lane.b32.xlu0 %v1133_v54, %s15537_s30  ;;  %v10822_v44 = vpop.permute.xlu1 %1458  ;;  %v1684_v53 = vmul.f32 %v10642_v6, %v10587_v51  ;;  %v1465_v54 = vmul.f32 %v10632_v3, %v10584_v50 }
  0xe8   : > { %1385 = vrot.lane.b32.xlu1 %v1354_v60, %s10298_s25  ;;  %1167 = vrot.lane.b32.xlu0 %v1135_v61, %s15537_s30  ;;  %v9168_v60 = vld [vmem:[%s15868_s1 + $0x108] sm:$0x3] }
  0xec   : > { %1788 = vperm.xlu1 %10181, %v9162_v62   ;;  %1159 = vrot.lane.b32.xlu0 %v1131_v0, %s15537_s30  ;;  %s15543_s30 = smov 71   ;;  %v1461_v0 = vmul.f32 %v10632_v3, %v10600_v55 }
  0xf0   : > { %1491 = vrot.lane.b32.xlu1 %v1462_v4, %s15541_s29  ;;  %1273 = vrot.lane.b32.xlu0 %v1243_v5, %s15539_s24 }
  0xf4   : > { %1495 = vrot.lane.b32.xlu1 %v1464_v10, %s15541_s29  ;;  %1277 = vrot.lane.b32.xlu0 %v1245_v11, %s15539_s24  ;;  %v1792_v10 = vmul.f32 %v10716_v34, %v10570_v42  ;;  %v1573_v11 = vmul.f32 %v10705_v30, %v10565_v41 }
  0xf8   : > { %1898 = vperm.xlu1 %10181, %v9164_v13   ;;  %1269 = vrot.lane.b32.xlu0 %v1241_v14, %s15539_s24  ;;  %s15547_s24 = smov 70  }
  0xfc   : > { %1601 = vrot.lane.b32.xlu1 %v1572_v18, %s15543_s30  ;;  %1383 = vrot.lane.b32.xlu0 %v1353_v19, %s10298_s25  ;;  %v1794_v18 = vmul.f32 %v10716_v34, %v10587_v51  ;;  %v1575_v19 = vmul.f32 %v10705_v30, %v10584_v50 }
 0x100   : > { %1605 = vrot.lane.b32.xlu1 %v1574_v26, %s15543_s30  ;;  %1387 = vrot.lane.b32.xlu0 %v1355_v27, %s10298_s25  ;;  %v9170_v26 = vld [vmem:[%s15868_s1 + $0x118] sm:$0x3] }
 0x104   : > { %2008 = vperm.xlu1 %10181, %v9166_v28   ;;  %1379 = vrot.lane.b32.xlu0 %v1351_v29, %s10298_s25  ;;  %v1571_v29 = vmul.f32 %v10705_v30, %v10600_v55 }
 0x108   : > { %1711 = vrot.lane.b32.xlu1 %v1682_v36, %s15547_s24  ;;  %1493 = vrot.lane.b32.xlu0 %v1463_v38, %s15541_s29 }
 0x10c   : > { %1715 = vrot.lane.b32.xlu1 %v1684_v53, %s15547_s24  ;;  %1497 = vrot.lane.b32.xlu0 %v1465_v54, %s15541_s29  ;;  %v1902_v53 = vmul.f32 %v10656_v12, %v10570_v42  ;;  %v1683_v54 = vmul.f32 %v10642_v6, %v10565_v41 }
 0x10e   : > { %v10833_v61 = vpop.permute.xlu0 %503  ;;  %v10835_v62 = vpop.permute.xlu1 %501 }
 0x110   : > { %2118 = vperm.xlu1 %10181, %v9168_v60   ;;  %1489 = vrot.lane.b32.xlu0 %v1461_v0, %s15541_s29  ;;  %s15560_s29 = smov 68  }
 0x112   : > { %v10840_v4 = vpop.permute.xlu0 %507  ;;  %v10842_v5 = vpop.permute.xlu1 %505 }
 0x113   : > { %15871 = vst [vmem:[#allocation6_spill] sm:$0xff] %v10840_v4  ;;  %15872 = vst [vmem:[#allocation7_spill] sm:$0xff] %v10842_v5  ;;  %v481_v4 = vmul.f32 %v10794_v22, %v10587_v51 }
 0x114   : > { %1821 = vrot.lane.b32.xlu1 %v1792_v10, %s15554_s12  ;;  %1603 = vrot.lane.b32.xlu0 %v1573_v11, %s15543_s30  ;;  %v1904_v10 = vmul.f32 %v10656_v12, %v10587_v51  ;;  %v1685_v11 = vmul.f32 %v10642_v6, %v10584_v50 }
 0x116   : > { %v10850_v13 = vpop.permute.xlu1 %611  ;;  %v10852_v14 = vpop.permute.xlu0 %499 }
 0x117   : > { %15873 = vst [vmem:[#allocation8_spill] sm:$0xff] %v10850_v13 }
 0x118   : > { %1825 = vrot.lane.b32.xlu1 %v1794_v18, %s15554_s12  ;;  %1607 = vrot.lane.b32.xlu0 %v1575_v19, %s15543_s30  ;;  %v9172_v18 = vld [vmem:[%s15868_s1 + $0x128] sm:$0x3] }
 0x11a   : > { %v10863_v27 = vpop.permute.xlu1 %615  ;;  %v10865_v28 = vpop.permute.xlu0 %613 }
 0x11b   : > { %15874 = vst [vmem:[#allocation9_spill] sm:$0xff] %v10863_v27  ;;  %15875 = vst [vmem:[#allocation10_spill] sm:$0xff] %v10865_v28  ;;  %v417_v28 = vsub.s32 5, %v10552_v37 }
 0x11c   : > { %2228 = vperm.xlu1 %10181, %v9170_v26   ;;  %1599 = vrot.lane.b32.xlu0 %v1571_v29, %s15543_s30  ;;  %v1681_v29 = vmul.f32 %v10642_v6, %v10600_v55  ;;  %s15567_s30 = smov 44  }
 0x11e   : > { %v10870_v36 = vpop.permute.xlu1 %721  ;;  %v10872_v38 = vpop.permute.xlu0 %617 }
 0x11f   : > { %15876 = vst [vmem:[#allocation11_spill] sm:$0xff] %v10870_v36  ;;  %15877 = vst [vmem:[#allocation12_spill] sm:$0xff] %v10872_v38 }
 0x120   : > { %1931 = vrot.lane.b32.xlu1 %v1902_v53, %s15560_s29  ;;  %1713 = vrot.lane.b32.xlu0 %v1683_v54, %s15547_s24 }
 0x122   : > { %v10880_v60 = vpop.permute.xlu1 %725  ;;  %v10882_v0 = vpop.permute.xlu0 %609 }
 0x123   : > { %15878 = vst [vmem:[#allocation13_spill] sm:$0xff] %v10880_v60  ;;  %15879 = vst [vmem:[#allocation14_spill] sm:$0xff] %v10882_v0 }
 0x124   : > { %1935 = vrot.lane.b32.xlu1 %v1904_v10, %s15560_s29  ;;  %1717 = vrot.lane.b32.xlu0 %v1685_v11, %s15547_s24  ;;  %v2012_v10 = vmul.f32 %v10731_v48, %v10570_v42  ;;  %v1793_v11 = vmul.f32 %v10716_v34, %v10565_v41 }
 0x126   : > { %v10893_v19 = vpop.permute.xlu1 %831  ;;  %v10895_v26 = vpop.permute.xlu0 %723 }
 0x127   : > { %15880 = vst [vmem:[#allocation15_spill] sm:$0xff] %v10893_v19  ;;  %15881 = vst [vmem:[#allocation16_spill] sm:$0xff] %v10895_v26 }
 0x128   : > { %2338 = vperm.xlu1 %10181, %v9172_v18   ;;  %1709 = vrot.lane.b32.xlu0 %v1681_v29, %s15547_s24  ;;  %v2014_v29 = vmul.f32 %v10731_v48, %v10587_v51  ;;  %s15574_s24 = smov 43  }
 0x12a   : > { %v10900_v53 = vpop.permute.xlu1 %835  ;;  %v10902_v54 = vpop.permute.xlu0 %727 }
 0x12b   : > { %15882 = vst [vmem:[#allocation17_spill] sm:$0xff] %v10900_v53  ;;  %15883 = vst [vmem:[#allocation18_spill] sm:$0xff] %v10902_v54 }
 0x12c   : > { %2041 = vrot.lane.b32.xlu1 %v2012_v10, %s15567_s30  ;;  %1823 = vrot.lane.b32.xlu0 %v1793_v11, %s15554_s12  ;;  %v9174_v10 = vld [vmem:[%s15868_s1 + $0x138] sm:$0x3]  ;;  %v1791_v11 = vmul.f32 %v10716_v34, %v10600_v55 }
 0x12e   : > { %v10910_v47 = vpop.permute.xlu1 %941  ;;  %v10912_v18 = vpop.permute.xlu0 %719 }
 0x12f   : > { %15884 = vst [vmem:[#allocation19_spill] sm:$0xff] %v10910_v47  ;;  %15885 = vst [vmem:[#allocation20_spill] sm:$0xff] %v10912_v18 }
 0x130   : > { %2045 = vrot.lane.b32.xlu1 %v2014_v29, %s15567_s30  ;;  %1827 = vrot.lane.b32.xlu0 %v1795_v39, %s15554_s12  ;;  %v2122_v29 = vmul.f32 %v10666_v15, %v10570_v42  ;;  %v1903_v39 = vmul.f32 %v10656_v12, %v10565_v41 }
 0x132   : > { %v10923_v53 = vpop.permute.xlu0 %833  ;;  %v10927_v47 = vpop.permute.xlu1 %945 }
 0x133   : > { %15886 = vst [vmem:[#allocation21_spill] sm:$0xff] %v10923_v53  ;;  %15887 = vst [vmem:[#allocation22_spill] sm:$0xff] %v10927_v47 }
 0x134   : > { %2448 = vperm.xlu1 %10181, %v9174_v10   ;;  %1819 = vrot.lane.b32.xlu0 %v1791_v11, %s15554_s12  ;;  %v2124_v10 = vmul.f32 %v10666_v15, %v10587_v51  ;;  %v1905_v11 = vmul.f32 %v10656_v12, %v10584_v50  ;;  %s15581_s12 = smov 42  }
 0x136   : > { %v10930_v54 = vpop.permute.xlu0 %837  ;;  %v10938_v53 = vpop.permute.xlu1 %1051 }
 0x137   : > { %15888 = vst [vmem:[#allocation23_spill] sm:$0xff] %v10930_v54  ;;  %15889 = vst [vmem:[#allocation24_spill] sm:$0xff] %v10938_v53 }
 0x138   : > { %2151 = vrot.lane.b32.xlu1 %v2122_v29, %s15574_s24  ;;  %1933 = vrot.lane.b32.xlu0 %v1903_v39, %s15560_s29  ;;  %v9176_v29 = vld [vmem:[%s15868_s1 + $0x148] sm:$0x3]  ;;  %v1901_v39 = vmul.f32 %v10656_v12, %v10600_v55 }
 0x13a   : > { %v10940_v60 = vpop.permute.xlu0 %829  ;;  %v10955_v53 = vpop.permute.xlu1 %1055 }
 0x13b   : > { %15890 = vst [vmem:[#allocation25_spill] sm:$0xff] %v10940_v60  ;;  %15892 = vst [vmem:[#allocation27_spill] sm:$0xff] %v10955_v53 }
 0x13c   : > { %2155 = vrot.lane.b32.xlu1 %v2124_v10, %s15574_s24  ;;  %1937 = vrot.lane.b32.xlu0 %v1905_v11, %s15560_s29  ;;  %v2232_v10 = vmul.f32 %v10742_v57, %v10570_v42  ;;  %v2013_v11 = vmul.f32 %v10731_v48, %v10565_v41 }
 0x13e   : > { %v10951_v47 = vpop.permute.xlu0 %943 }
 0x13f   : > { %15891 = vst [vmem:[#allocation26_spill] sm:$0xff] %v10951_v47  ;;  %v10966_v47 = vpop.permute.xlu1 %1161 }
 0x140   : > { %2558 = vperm.xlu1 %10181, %v9176_v29   ;;  %1929 = vrot.lane.b32.xlu0 %v1901_v39, %s15560_s29  ;;  %15894 = vst [vmem:[#allocation29_spill] sm:$0xff] %v10966_v47  ;;  %v2234_v29 = vmul.f32 %v10742_v57, %v10587_v51  ;;  %v2015_v39 = vmul.f32 %v10731_v48, %v10584_v50  ;;  %s15606_s29 = smov 41  }
 0x142   : > { %v10958_v54 = vpop.permute.xlu0 %947 }
 0x143   : > { %15893 = vst [vmem:[#allocation28_spill] sm:$0xff] %v10958_v54  ;;  %v10983_v54 = vpop.permute.xlu1 %1165 }
 0x144   : > { %2261 = vrot.lane.b32.xlu1 %v2232_v10, %s15581_s12  ;;  %2043 = vrot.lane.b32.xlu0 %v2013_v11, %s15567_s30  ;;  %v9178_v10 = vld [vmem:[%s15868_s1 + $0x158] sm:$0x3]  ;;  %v2011_v11 = vmul.f32 %v10731_v48, %v10600_v55  ;;  %15897 = vst [vmem:[#allocation32_spill] sm:$0xff] %v10983_v54 }
 0x146   : > { %v10968_v60 = vpop.permute.xlu0 %939 }
 0x147   : > { %15895 = vst [vmem:[#allocation30_spill] sm:$0xff] %v10968_v60 }
 0x148   : > { %2265 = vrot.lane.b32.xlu1 %v2234_v29, %s15581_s12  ;;  %2047 = vrot.lane.b32.xlu0 %v2015_v39, %s15567_s30  ;;  %v2342_v29 = vmul.f32 %v10680_v21, %v10570_v42  ;;  %v2123_v39 = vmul.f32 %v10666_v15, %v10565_v41 }
 0x14a   : > { %v10979_v53 = vpop.permute.xlu0 %1053 }
 0x14b   : > { %15896 = vst [vmem:[#allocation31_spill] sm:$0xff] %v10979_v53 }
 0x14c   : > { %2668 = vperm.xlu1 %10181, %v9178_v10   ;;  %2039 = vrot.lane.b32.xlu0 %v2011_v11, %s15567_s30  ;;  %v2344_v10 = vmul.f32 %v10680_v21, %v10587_v51  ;;  %v2125_v11 = vmul.f32 %v10666_v15, %v10584_v50  ;;  %s15593_s30 = smov 40  }
 0x14e   : > { %v10986_v47 = vpop.permute.xlu0 %1057 }
 0x14f   : > { %15898 = vst [vmem:[#allocation33_spill] sm:$0xff] %v10986_v47  ;;  %v10992_v60 = vpop.permute.xlu1 %1568 }
 0x150   : > { %2371 = vrot.lane.b32.xlu1 %v2342_v29, %s15606_s29  ;;  %2153 = vrot.lane.b32.xlu0 %v2123_v39, %s15574_s24  ;;  %v9180_v29 = vld [vmem:[%s15868_s1 + $0x168] sm:$0x3]  ;;  %v2121_v39 = vmul.f32 %v10666_v15, %v10600_v55 }
 0x152   : > { %v10996_v53 = vpop.permute.xlu0 %1049 }
 0x153   : > { %15899 = vst [vmem:[#allocation34_spill] sm:$0xff] %v10996_v53  ;;  %v11002_v54 = vpop.permute.xlu1 %1271 }
 0x154   : > { %15900 = vst [vmem:[#allocation35_spill] sm:$0xff] %v11002_v54  ;;  %2375 = vrot.lane.b32.xlu1 %v2344_v10, %s15606_s29  ;;  %2157 = vrot.lane.b32.xlu0 %v2125_v11, %s15574_s24  ;;  %v2452_v10 = vmul.f32 %v10757_v1, %v10570_v42  ;;  %v2233_v11 = vmul.f32 %v10742_v57, %v10565_v41 }
 0x156   : > { %v11009_v47 = vpop.permute.xlu0 %1163 }
 0x157   : > { %15901 = vst [vmem:[#allocation36_spill] sm:$0xff] %v11009_v47  ;;  %v11013_v53 = vpop.permute.xlu1 %1275 }
 0x158   : > { %15902 = vst [vmem:[#allocation37_spill] sm:$0xff] %v11013_v53  ;;  %2793 = vperm.xlu1 %10181, %v9180_v29   ;;  %2149 = vrot.lane.b32.xlu0 %v2121_v39, %s15574_s24  ;;  %v2454_v29 = vmul.f32 %v10757_v1, %v10587_v51  ;;  %v2235_v39 = vmul.f32 %v10742_v57, %v10584_v50  ;;  %s15600_s24 = smov 16  }
 0x15a   : > { %v11016_v19 = vpop.permute.xlu0 %1167 }
 0x15b   : > { %15903 = vst [vmem:[#allocation38_spill] sm:$0xff] %v11016_v19  ;;  %v11022_v54 = vpop.permute.xlu1 %1678 }
 0x15c   : > { %2481 = vrot.lane.b32.xlu1 %v2452_v10, %s15593_s30  ;;  %2263 = vrot.lane.b32.xlu0 %v2233_v11, %s15581_s12  ;;  %v9182_v10 = vld [vmem:[%s15868_s1 + $0x178] sm:$0x3]  ;;  %v2231_v11 = vmul.f32 %v10742_v57, %v10600_v55 }
 0x15e   : > { %v11026_v47 = vpop.permute.xlu0 %1159 }
 0x15f   : > { %15904 = vst [vmem:[#allocation39_spill] sm:$0xff] %v11026_v47  ;;  %v11032_v53 = vpop.permute.xlu1 %1381 }
 0x160   : > { %15905 = vst [vmem:[#allocation40_spill] sm:$0xff] %v11032_v53  ;;  %2485 = vrot.lane.b32.xlu1 %v2454_v29, %s15593_s30  ;;  %2267 = vrot.lane.b32.xlu0 %v2235_v39, %s15581_s12  ;;  %v2562_v29 = vmul.f32 %v10692_v25, %v10570_v42  ;;  %v2343_v39 = vmul.f32 %v10680_v21, %v10565_v41 }
 0x162   : > { %v11039_v19 = vpop.permute.xlu0 %1273 }
 0x163   : > { %15906 = vst [vmem:[#allocation41_spill] sm:$0xff] %v11039_v19  ;;  %v11043_v47 = vpop.permute.xlu1 %1385 }
 0x164   : > { %15907 = vst [vmem:[#allocation42_spill] sm:$0xff] %v11043_v47  ;;  %2913 = vperm.xlu1 %10181, %v9182_v10   ;;  %2259 = vrot.lane.b32.xlu0 %v2231_v11, %s15581_s12  ;;  %v2564_v10 = vmul.f32 %v10692_v25, %v10587_v51  ;;  %v2345_v11 = vmul.f32 %v10680_v21, %v10584_v50  ;;  %s15604_s12 = smov 15  }
 0x166   : > { %v11046_v26 = vpop.permute.xlu0 %1277 }
 0x167   : > { %15908 = vst [vmem:[#allocation43_spill] sm:$0xff] %v11046_v26  ;;  %v11052_v53 = vpop.permute.xlu1 %1788 }
 0x168   : > { %2591 = vrot.lane.b32.xlu1 %v2562_v29, %s15600_s24  ;;  %2373 = vrot.lane.b32.xlu0 %v2343_v39, %s15606_s29  ;;  %v9184_v29 = vld [vmem:[%s15868_s1 + $0x188] sm:$0x3]  ;;  %v2341_v39 = vmul.f32 %v10680_v21, %v10600_v55 }
 0x16a   : > { %v11056_v19 = vpop.permute.xlu0 %1269 }
 0x16b   : > { %15909 = vst [vmem:[#allocation44_spill] sm:$0xff] %v11056_v19  ;;  %v11062_v47 = vpop.permute.xlu1 %1491 }
 0x16c   : > { %15910 = vst [vmem:[#allocation45_spill] sm:$0xff] %v11062_v47  ;;  %2595 = vrot.lane.b32.xlu1 %v2564_v10, %s15600_s24  ;;  %2377 = vrot.lane.b32.xlu0 %v2345_v11, %s15606_s29  ;;  %v2677_v10 = vmul.f32 %v10768_v7, %v10570_v42  ;;  %v2453_v11 = vmul.f32 %v10757_v1, %v10565_v41 }
 0x16e   : > { %v11069_v26 = vpop.permute.xlu0 %1383 }
 0x16f   : > { %15911 = vst [vmem:[#allocation46_spill] sm:$0xff] %v11069_v26  ;;  %v11073_v19 = vpop.permute.xlu1 %1495 }
 0x170   : > { %15912 = vst [vmem:[#allocation47_spill] sm:$0xff] %v11073_v19  ;;  %3033 = vperm.xlu1 %10181, %v9184_v29   ;;  %2369 = vrot.lane.b32.xlu0 %v2341_v39, %s15606_s29  ;;  %v2679_v29 = vmul.f32 %v10768_v7, %v10587_v51  ;;  %v2455_v39 = vmul.f32 %v10757_v1, %v10584_v50  ;;  %s15951_s29 = smov 124  }
 0x172   : > { %v11076_v38 = vpop.permute.xlu0 %1387 }
 0x173   : > { %15913 = vst [vmem:[#allocation48_spill] sm:$0xff] %v11076_v38  ;;  %v11082_v47 = vpop.permute.xlu1 %1898 }
 0x174   : > { %2710 = vrot.lane.b32.xlu1 %v2677_v10, %s15604_s12  ;;  %2483 = vrot.lane.b32.xlu0 %v2453_v11, %s15593_s30  ;;  %v2676_v10 = vmul.f32 %v10768_v7, %v10600_v55  ;;  %v2451_v11 = vmul.f32 %v10757_v1, %v10600_v55 }
 0x176   : > { %v11086_v26 = vpop.permute.xlu0 %1379 }
 0x177   : > { %15914 = vst [vmem:[#allocation49_spill] sm:$0xff] %v11086_v26  ;;  %v11092_v19 = vpop.permute.xlu1 %1601 }
 0x178   : > { %15915 = vst [vmem:[#allocation50_spill] sm:$0xff] %v11092_v19  ;;  %2714 = vrot.lane.b32.xlu1 %v2679_v29, %s15604_s12  ;;  %2487 = vrot.lane.b32.xlu0 %v2455_v39, %s15593_s30  ;;  %v2798_v29 = vmul.f32 %v10707_v31, %v10565_v41  ;;  %v2563_v39 = vmul.f32 %v10692_v25, %v10565_v41 }
 0x17a   : > { %v11096_v38 = vpop.permute.xlu0 %1493 }
 0x17b   : > { %15916 = vst [vmem:[#allocation51_spill] sm:$0xff] %v11096_v38  ;;  %v11102_v26 = vpop.permute.xlu1 %1605 }
 0x17c   : > { %15917 = vst [vmem:[#allocation52_spill] sm:$0xff] %v11102_v26  ;;  %2708 = vrot.lane.b32.xlu1 %v2676_v10, %s15604_s12  ;;  %2479 = vrot.lane.b32.xlu0 %v2451_v11, %s15593_s30  ;;  %v2800_v10 = vmul.f32 %v10707_v31, %v10584_v50  ;;  %v2565_v11 = vmul.f32 %v10692_v25, %v10584_v50  ;;  %s10312_s30 = smov 13  }
 0x17e   : > { %v11106_v18 = vpop.permute.xlu0 %1497 }
 0x17f   : > { %15918 = vst [vmem:[#allocation53_spill] sm:$0xff] %v11106_v18  ;;  %v11112_v38 = vpop.permute.xlu1 %2008 }
 0x180   : > { %2832 = vrot.lane.b32.xlu1 %v2798_v29, %s10311_s13  ;;  %2593 = vrot.lane.b32.xlu0 %v2563_v39, %s15600_s24  ;;  %v2917_v29 = vmul.f32 %v10783_v16, %v10570_v42  ;;  %v2561_v39 = vmul.f32 %v10692_v25, %v10600_v55 }
 0x182   : > { %v11116_v26 = vpop.permute.xlu0 %1489 }
 0x183   : > { %15919 = vst [vmem:[#allocation54_spill] sm:$0xff] %v11116_v26  ;;  %v11122_v18 = vpop.permute.xlu1 %1711 }
 0x184   : > { %15920 = vst [vmem:[#allocation55_spill] sm:$0xff] %v11122_v18  ;;  %2836 = vrot.lane.b32.xlu1 %v2800_v10, %s10311_s13  ;;  %2597 = vrot.lane.b32.xlu0 %v2565_v11, %s15600_s24  ;;  %v2919_v10 = vmul.f32 %v10783_v16, %v10587_v51  ;;  %v2678_v11 = vmul.f32 %v10768_v7, %v10565_v41 }
 0x186   : > { %v11126_v19 = vpop.permute.xlu0 %1603 }
 0x187   : > { %15921 = vst [vmem:[#allocation56_spill] sm:$0xff] %v11126_v19  ;;  %v11132_v26 = vpop.permute.xlu1 %1715 }
 0x188   : > { %15922 = vst [vmem:[#allocation57_spill] sm:$0xff] %v11132_v26  ;;  %2950 = vrot.lane.b32.xlu1 %v2917_v29, %s10312_s30  ;;  %2589 = vrot.lane.b32.xlu0 %v2561_v39, %s15600_s24  ;;  %v2916_v29 = vmul.f32 %v10783_v16, %v10600_v55  ;;  %v2680_v39 = vmul.f32 %v10768_v7, %v10584_v50  ;;  %s15672_s24 = smov 12  }
 0x18a   : > { %v11136_v18 = vpop.permute.xlu0 %1607 }
 0x18b   : > { %15923 = vst [vmem:[#allocation58_spill] sm:$0xff] %v11136_v18  ;;  %v11142_v19 = vpop.permute.xlu1 %2118 }
 0x18c   : > { %2954 = vrot.lane.b32.xlu1 %v2919_v10, %s10312_s30  ;;  %2712 = vrot.lane.b32.xlu0 %v2678_v11, %s15604_s12  ;;  %v3038_v10 = vmul.f32 %v10718_v35, %v10565_v41  ;;  %v2797_v11 = vmul.f32 %v10707_v31, %v10570_v42 }
 0x18e   : > { %v11146_v26 = vpop.permute.xlu0 %1599 }
 0x18f   : > { %15924 = vst [vmem:[#allocation59_spill] sm:$0xff] %v11146_v26  ;;  %v11152_v18 = vpop.permute.xlu1 %1821 }
 0x190   : > { %15925 = vst [vmem:[#allocation60_spill] sm:$0xff] %v11152_v18  ;;  %2948 = vrot.lane.b32.xlu1 %v2916_v29, %s10312_s30  ;;  %2716 = vrot.lane.b32.xlu0 %v2680_v39, %s15604_s12  ;;  %v3040_v29 = vmul.f32 %v10718_v35, %v10584_v50  ;;  %v2799_v39 = vmul.f32 %v10707_v31, %v10587_v51  ;;  %s15960_s12 = smov 100  }
 0x192   : > { %v11156_v36 = vpop.permute.xlu0 %1713 }
 0x193   : > { %15926 = vst [vmem:[#allocation61_spill] sm:$0xff] %v11156_v36  ;;  %v11162_v26 = vpop.permute.xlu1 %1825 }
 0x194   : > { %15927 = vst [vmem:[#allocation62_spill] sm:$0xff] %v11162_v26  ;;  %3072 = vrot.lane.b32.xlu1 %v3038_v10, %s15672_s24  ;;  %2830 = vrot.lane.b32.xlu0 %v2797_v11, %s10311_s13  ;;  %v383_v10 = vld [vmem:[%s15868_s1 + $0x8] sm:$0x3]  ;;  %v2796_v11 = vmul.f32 %v10707_v31, %v10600_v55 }
 0x196   : > { %v11166_v18 = vpop.permute.xlu0 %1717 }
 0x197   : > { %15928 = vst [vmem:[#allocation63_spill] sm:$0xff] %v11166_v18  ;;  %v11172_v36 = vpop.permute.xlu1 %2228 }
 0x198   : > { %3076 = vrot.lane.b32.xlu1 %v3040_v29, %s15672_s24  ;;  %2834 = vrot.lane.b32.xlu0 %v2799_v39, %s10311_s13  ;;  %v480_v29 = vmul.f32 %v10794_v22, %v10565_v41  ;;  %v2918_v39 = vmul.f32 %v10783_v16, %v10565_v41 }
 0x19a   : > { %v11179_v26 = vpop.permute.xlu0 %1709 }
 0x19b   : > { %15929 = vst [vmem:[#allocation64_spill] sm:$0xff] %v11179_v26  ;;  %v11183_v18 = vpop.permute.xlu1 %1931 }
 0x19c   : > { %15930 = vst [vmem:[#allocation65_spill] sm:$0xff] %v11183_v18  ;;  %391 = vperm.xlu1 %10181, %v383_v10   ;;  %2828 = vrot.lane.b32.xlu0 %v2796_v11, %s10311_s13  ;;  %v482_v10 = vmul.f32 %v10794_v22, %v10584_v50  ;;  %v2920_v11 = vmul.f32 %v10783_v16, %v10584_v50 }
 0x19e   : > { %v11186_v27 = vpop.permute.xlu0 %1823 }
 0x19f   : > { %15931 = vst [vmem:[#allocation66_spill] sm:$0xff] %v11186_v27  ;;  %v11193_v0 = vpop.permute.xlu1 %1935  ;;  %v11204_v27 = vrot.slane %v10562_v40, %v417_v28 }
 0x1a0   : > { %15932 = vst [vmem:[#allocation67_spill] sm:$0xff] %v11193_v0  ;;  %517 = vrot.lane.b32.xlu1 %v480_v29, %s15642_s15  ;;  %2952 = vrot.lane.b32.xlu0 %v2918_v39, %s10312_s30  ;;  %v3037_v0 = vmul.f32 %v10718_v35, %v10570_v42 }
 0x1a1   : > { %v476_v39 = vmul.f32 %v10576_v46, %v11204_v27 }
 0x1a2   : > { %v11197_v18 = vpop.permute.xlu0 %1827 }
 0x1a3   : > { %15933 = vst [vmem:[#allocation68_spill] sm:$0xff] %v11197_v18  ;;  %v11206_v26 = vpop.permute.xlu1 %2338 }
 0x1a4   : > { %521 = vrot.lane.b32.xlu1 %v482_v10, %s15642_s15  ;;  %2956 = vrot.lane.b32.xlu0 %v2920_v11, %s10312_s30  ;;  %v589_v10 = vmul.f32 %v10809_v32, %v10570_v42  ;;  %v3039_v11 = vmul.f32 %v10718_v35, %v10587_v51 }
 0x1a6   : > { %v11210_v29 = vpop.permute.xlu0 %1819 }
 0x1a7   : > { %15934 = vst [vmem:[#allocation69_spill] sm:$0xff] %v11210_v29  ;;  %v11216_v18 = vpop.permute.xlu1 %2041 }
 0x1a8   : > { %15935 = vst [vmem:[#allocation70_spill] sm:$0xff] %v11216_v18  ;;  %509 = vrot.lane.b32.xlu1 %v476_v39, %s15642_s15  ;;  %3070 = vrot.lane.b32.xlu0 %v3037_v0, %s15672_s24  ;;  %v591_v39 = vmul.f32 %v10809_v32, %v10587_v51  ;;  %v3036_v0 = vmul.f32 %v10718_v35, %v10600_v55 }
 0x1aa   : > { %v11220_v28 = vpop.permute.xlu0 %1933 }
 0x1ab   : > { %15936 = vst [vmem:[#allocation71_spill] sm:$0xff] %v11220_v28  ;;  %v11226_v29 = vpop.permute.xlu1 %2045 }
 0x1ac   : > { %15937 = vst [vmem:[#allocation72_spill] sm:$0xff] %v11226_v29  ;;  %625 = vrot.lane.b32.xlu1 %v589_v10, %s15650_s16  ;;  %3074 = vrot.lane.b32.xlu0 %v3039_v11, %s15672_s24  ;;  %v421_v29 = vsub.s32 6, %v10552_v37  ;;  %v588_v10 = vmul.f32 %v10809_v32, %v10600_v55  ;;  %v479_v11 = vmul.f32 %v10794_v22, %v10570_v42 }
 0x1ae   : > { %v11230_v13 = vpop.permute.xlu0 %1937 }
 0x1af   : > { %15938 = vst [vmem:[#allocation73_spill] sm:$0xff] %v11230_v13  ;;  %v11236_v28 = vpop.permute.xlu1 %2448 }
 0x1b0   : > { %629 = vrot.lane.b32.xlu1 %v591_v39, %s15650_s16  ;;  %3068 = vrot.lane.b32.xlu0 %v3036_v0, %s15672_s24  ;;  %v11252_v39 = vrot.slane %v10562_v40, %v421_v29  ;;  %v700_v40 = vmul.f32 %v10744_v58, %v10565_v41  ;;  %v478_v29 = vmul.f32 %v10794_v22, %v10600_v55  ;;  %s15999_s24 = smov 72  }
 0x1b2   : > { %v11241_v18 = vpop.permute.xlu0 %1929 }
 0x1b3   : > { %15939 = vst [vmem:[#allocation74_spill] sm:$0xff] %v11241_v18  ;;  %v11247_v13 = vpop.permute.xlu1 %2151  ;;  %v587_v18 = vmul.f32 %v10602_v56, %v11252_v39 }
 0x1b4   : > { %15940 = vst [vmem:[#allocation75_spill] sm:$0xff] %v11247_v13  ;;  %623 = vrot.lane.b32.xlu1 %v588_v10, %s15650_s16  ;;  %515 = vrot.lane.b32.xlu0 %v479_v11, %s15642_s15 }
 0x1b6   : > { %v11254_v0 = vpop.permute.xlu0 %2043 }
 0x1b7   : > { %15941 = vst [vmem:[#allocation76_spill] sm:$0xff] %v11254_v0  ;;  %v11260_v5 = vpop.permute.xlu1 %2155 }
 0x1b8   : > { %15942 = vst [vmem:[#allocation77_spill] sm:$0xff] %v11260_v5  ;;  %621 = vrot.lane.b32.xlu1 %v587_v18, %s15650_s16  ;;  %519 = vrot.lane.b32.xlu0 %v481_v4, %s15642_s15  ;;  %v702_v18 = vmul.f32 %v10744_v58, %v10584_v50  ;;  %v477_v4 = vmul.f32 %v10576_v46, %v11252_v39 }
 0x1ba   : > { %v11264_v10 = vpop.permute.xlu0 %2047 }
 0x1bb   : > { %15943 = vst [vmem:[#allocation78_spill] sm:$0xff] %v11264_v10  ;;  %v11270_v11 = vpop.permute.xlu1 %2558 }
 0x1bc   : > { %737 = vrot.lane.b32.xlu1 %v700_v40, %s15657_s22  ;;  %513 = vrot.lane.b32.xlu0 %v478_v29, %s15642_s15  ;;  %v483_v40 = vmul.f32 %v10794_v22, %v11204_v27  ;;  %v590_v29 = vmul.f32 %v10809_v32, %v10565_v41 }
 0x1be   : > { %v11274_v0 = vpop.permute.xlu0 %2039 }
 0x1bf   : > { %15944 = vst [vmem:[#allocation79_spill] sm:$0xff] %v11274_v0  ;;  %v11280_v5 = vpop.permute.xlu1 %2261 }
 0x1c0   : > { %15945 = vst [vmem:[#allocation80_spill] sm:$0xff] %v11280_v5  ;;  %741 = vrot.lane.b32.xlu1 %v702_v18, %s15657_s22  ;;  %511 = vrot.lane.b32.xlu0 %v477_v4, %s15642_s15  ;;  %v696_v18 = vmul.f32 %v10574_v45, %v11204_v27  ;;  %v592_v4 = vmul.f32 %v10809_v32, %v10584_v50 }
 0x1c2   : > { %v11284_v10 = vpop.permute.xlu0 %2153 }
 0x1c3   : > { %15946 = vst [vmem:[#allocation81_spill] sm:$0xff] %v11284_v10  ;;  %v11290_v13 = vpop.permute.xlu1 %2265 }
 0x1c4   : > { %15947 = vst [vmem:[#allocation82_spill] sm:$0xff] %v11290_v13  ;;  %523 = vrot.lane.b32.xlu1 %v483_v40, %s15642_s15  ;;  %627 = vrot.lane.b32.xlu0 %v590_v29, %s15650_s16  ;;  %v809_v40 = vmul.f32 %v10820_v43, %v10570_v42  ;;  %v586_v29 = vmul.f32 %v10602_v56, %v11204_v27 }
 0x1c6   : > { %v11294_v46 = vpop.permute.xlu0 %2157 }
 0x1c7   : > { %15948 = vst [vmem:[#allocation83_spill] sm:$0xff] %v11294_v46  ;;  %v11300_v10 = vpop.permute.xlu1 %2668 }
 0x1c8   : > { %729 = vrot.lane.b32.xlu1 %v696_v18, %s15657_s22  ;;  %631 = vrot.lane.b32.xlu0 %v592_v4, %s15650_s16  ;;  %v811_v18 = vmul.f32 %v10820_v43, %v10587_v51  ;;  %v699_v4 = vmul.f32 %v10744_v58, %v10570_v42 }
 0x1ca   : > { %v11304_v5 = vpop.permute.xlu0 %2149 }
 0x1cb   : > { %15949 = vst [vmem:[#allocation84_spill] sm:$0xff] %v11304_v5  ;;  %v11310_v13 = vpop.permute.xlu1 %2371 }
 0x1cc   : > { %15950 = vst [vmem:[#allocation85_spill] sm:$0xff] %v11310_v13  ;;  %845 = vrot.lane.b32.xlu1 %v809_v40, %s15951_s29  ;;  %619 = vrot.lane.b32.xlu0 %v586_v29, %s15650_s16  ;;  %v808_v40 = vmul.f32 %v10820_v43, %v10600_v55  ;;  %v701_v29 = vmul.f32 %v10744_v58, %v10587_v51 }
 0x1ce   : > { %v11314_v46 = vpop.permute.xlu0 %2263 }
 0x1cf   : > { %15952 = vst [vmem:[#allocation86_spill] sm:$0xff] %v11314_v46  ;;  %v11320_v5 = vpop.permute.xlu1 %2375 }
 0x1d0   : > { %15953 = vst [vmem:[#allocation87_spill] sm:$0xff] %v11320_v5  ;;  %849 = vrot.lane.b32.xlu1 %v811_v18, %s15951_s29  ;;  %735 = vrot.lane.b32.xlu0 %v699_v4, %s15657_s22  ;;  %v594_v18 = vmul.f32 %v10809_v32, %v11252_v39  ;;  %v698_v4 = vmul.f32 %v10744_v58, %v10600_v55 }
 0x1d2   : > { %v11324_v56 = vpop.permute.xlu0 %2267 }
 0x1d3   : > { %15954 = vst [vmem:[#allocation88_spill] sm:$0xff] %v11324_v56  ;;  %v11330_v46 = vpop.permute.xlu1 %2793 }
 0x1d4   : > { %843 = vrot.lane.b32.xlu1 %v808_v40, %s15951_s29  ;;  %739 = vrot.lane.b32.xlu0 %v701_v29, %s15657_s22  ;;  %v807_v40 = vmul.f32 %v10591_v52, %v11252_v39  ;;  %v484_v29 = vmul.f32 %v10794_v22, %v11252_v39 }
 0x1d6   : > { %v11334_v13 = vpop.permute.xlu0 %2259 }
 0x1d7   : > { %15955 = vst [vmem:[#allocation89_spill] sm:$0xff] %v11334_v13  ;;  %v11340_v5 = vpop.permute.xlu1 %2481 }
 0x1d8   : > { %15956 = vst [vmem:[#allocation90_spill] sm:$0xff] %v11340_v5  ;;  %635 = vrot.lane.b32.xlu1 %v594_v18, %s15650_s16  ;;  %733 = vrot.lane.b32.xlu0 %v698_v4, %s15657_s22  ;;  %v920_v18 = vmul.f32 %v10759_v2, %v10565_v41  ;;  %v697_v4 = vmul.f32 %v10574_v45, %v11252_v39 }
 0x1da   : > { %v11344_v56 = vpop.permute.xlu0 %2373 }
 0x1db   : > { %15957 = vst [vmem:[#allocation91_spill] sm:$0xff] %v11344_v56  ;;  %v11350_v13 = vpop.permute.xlu1 %2485 }
 0x1dc   : > { %15958 = vst [vmem:[#allocation92_spill] sm:$0xff] %v11350_v13  ;;  %841 = vrot.lane.b32.xlu1 %v807_v40, %s15951_s29  ;;  %525 = vrot.lane.b32.xlu0 %v484_v29, %s15642_s15  ;;  %v922_v40 = vmul.f32 %v10759_v2, %v10584_v50  ;;  %v810_v29 = vmul.f32 %v10820_v43, %v10565_v41  ;;  %s15966_s15 = smov 99  }
 0x1de   : > { %v11354_v0 = vpop.permute.xlu0 %2377 }
 0x1df   : > { %15959 = vst [vmem:[#allocation93_spill] sm:$0xff] %v11354_v0  ;;  %v11360_v56 = vpop.permute.xlu1 %2913 }
 0x1e0   : > { %957 = vrot.lane.b32.xlu1 %v920_v18, %s15960_s12  ;;  %731 = vrot.lane.b32.xlu0 %v697_v4, %s15657_s22  ;;  %v703_v18 = vmul.f32 %v10744_v58, %v11204_v27  ;;  %v812_v4 = vmul.f32 %v10820_v43, %v10584_v50 }
 0x1e2   : > { %v11364_v22 = vpop.permute.xlu0 %2369 }
 0x1e3   : > { %v11370_v13 = vpop.permute.xlu1 %2591 }
 0x1e4   : > { %15961 = vst [vmem:[#allocation94_spill] sm:$0xff] %v11370_v13  ;;  %961 = vrot.lane.b32.xlu1 %v922_v40, %s15960_s12  ;;  %847 = vrot.lane.b32.xlu0 %v810_v29, %s15951_s29  ;;  %v916_v40 = vmul.f32 %v10648_v9, %v11204_v27  ;;  %v593_v29 = vmul.f32 %v10809_v32, %v11204_v27 }
 0x1e6   : > { %v11374_v45 = vpop.permute.xlu0 %2483 }
 0x1e7   : > { %15962 = vst [vmem:[#allocation95_spill] sm:$0xff] %v11374_v45  ;;  %v11380_v0 = vpop.permute.xlu1 %2595 }
 0x1e8   : > { %15963 = vst [vmem:[#allocation96_spill] sm:$0xff] %v11380_v0  ;;  %743 = vrot.lane.b32.xlu1 %v703_v18, %s15657_s22  ;;  %851 = vrot.lane.b32.xlu0 %v812_v4, %s15951_s29  ;;  %v1029_v18 = vmul.f32 %v10770_v8, %v10570_v42  ;;  %v806_v4 = vmul.f32 %v10591_v52, %v11204_v27 }
 0x1ea   : > { %v11384_v5 = vpop.permute.xlu0 %2487 }
 0x1eb   : > { %15964 = vst [vmem:[#allocation97_spill] sm:$0xff] %v11384_v5  ;;  %v11390_v45 = vpop.permute.xlu1 %3033 }
 0x1ec   : > { %949 = vrot.lane.b32.xlu1 %v916_v40, %s15960_s12  ;;  %633 = vrot.lane.b32.xlu0 %v593_v29, %s15650_s16  ;;  %v1031_v40 = vmul.f32 %v10770_v8, %v10587_v51  ;;  %v919_v29 = vmul.f32 %v10759_v2, %v10570_v42  ;;  %s15977_s16 = smov 98  }
 0x1ee   : > { %v11394_v13 = vpop.permute.xlu0 %2479 }
 0x1ef   : > { %v11400_v0 = vpop.permute.xlu1 %2710 }
 0x1f0   : > { %15965 = vst [vmem:[#allocation98_spill] sm:$0xff] %v11400_v0  ;;  %1065 = vrot.lane.b32.xlu1 %v1029_v18, %s15966_s15  ;;  %839 = vrot.lane.b32.xlu0 %v806_v4, %s15951_s29  ;;  %v1028_v18 = vmul.f32 %v10770_v8, %v10600_v55  ;;  %v921_v4 = vmul.f32 %v10759_v2, %v10587_v51 }
 0x1f2   : > { %v11404_v32 = vpop.permute.xlu0 %2593 }
 0x1f3   : > { %15967 = vst [vmem:[#allocation99_spill] sm:$0xff] %v11404_v32  ;;  %v11410_v5 = vpop.permute.xlu1 %2714 }
 0x1f4   : > { %15968 = vst [vmem:[#allocation100_spill] sm:$0xff] %v11410_v5  ;;  %1069 = vrot.lane.b32.xlu1 %v1031_v40, %s15966_s15  ;;  %955 = vrot.lane.b32.xlu0 %v919_v29, %s15960_s12  ;;  %v814_v40 = vmul.f32 %v10820_v43, %v11252_v39  ;;  %v918_v29 = vmul.f32 %v10759_v2, %v10600_v55 }
 0x1f6   : > { %v11414_v52 = vpop.permute.xlu0 %2597 }
 0x1f7   : > { %15969 = vst [vmem:[#allocation101_spill] sm:$0xff] %v11414_v52  ;;  %v11420_v32 = vpop.permute.xlu1 %2708 }
 0x1f8   : > { %15970 = vst [vmem:[#allocation102_spill] sm:$0xff] %v11420_v32  ;;  %1063 = vrot.lane.b32.xlu1 %v1028_v18, %s15966_s15  ;;  %959 = vrot.lane.b32.xlu0 %v921_v4, %s15960_s12  ;;  %v1027_v18 = vmul.f32 %v10610_v59, %v11252_v39  ;;  %v704_v4 = vmul.f32 %v10744_v58, %v11252_v39 }
 0x1fa   : > { %v11424_v0 = vpop.permute.xlu0 %2589 }
 0x1fb   : > { %15971 = vst [vmem:[#allocation103_spill] sm:$0xff] %v11424_v0  ;;  %v11430_v5 = vpop.permute.xlu1 %2832 }
 0x1fc   : > { %15972 = vst [vmem:[#allocation104_spill] sm:$0xff] %v11430_v5  ;;  %855 = vrot.lane.b32.xlu1 %v814_v40, %s15951_s29  ;;  %953 = vrot.lane.b32.xlu0 %v918_v29, %s15960_s12  ;;  %v1140_v40 = vmul.f32 %v10785_v17, %v10565_v41  ;;  %v917_v29 = vmul.f32 %v10648_v9, %v11252_v39 }
 0x1fe   : > { %v11434_v52 = vpop.permute.xlu0 %2712 }
 0x1ff   : > { %15973 = vst [vmem:[#allocation105_spill] sm:$0xff] %v11434_v52  ;;  %v11440_v32 = vpop.permute.xlu1 %2836 }
 0x200   : > { %15974 = vst [vmem:[#allocation106_spill] sm:$0xff] %v11440_v32  ;;  %1061 = vrot.lane.b32.xlu1 %v1027_v18, %s15966_s15  ;;  %745 = vrot.lane.b32.xlu0 %v704_v4, %s15657_s22  ;;  %v1142_v18 = vmul.f32 %v10785_v17, %v10584_v50  ;;  %v1030_v4 = vmul.f32 %v10770_v8, %v10565_v41  ;;  %s15984_s22 = smov 97  }
 0x202   : > { %v11444_v0 = vpop.permute.xlu0 %2716 }
 0x203   : > { %15975 = vst [vmem:[#allocation107_spill] sm:$0xff] %v11444_v0  ;;  %v11450_v5 = vpop.permute.xlu1 %2950 }
 0x204   : > { %15976 = vst [vmem:[#allocation108_spill] sm:$0xff] %v11450_v5  ;;  %1177 = vrot.lane.b32.xlu1 %v1140_v40, %s15977_s16  ;;  %951 = vrot.lane.b32.xlu0 %v917_v29, %s15960_s12  ;;  %v923_v40 = vmul.f32 %v10759_v2, %v11204_v27  ;;  %v1032_v29 = vmul.f32 %v10770_v8, %v10584_v50 }
 0x206   : > { %v11454_v58 = vpop.permute.xlu0 %2830 }
 0x207   : > { %v11460_v52 = vpop.permute.xlu1 %2954 }
 0x208   : > { %15978 = vst [vmem:[#allocation109_spill] sm:$0xff] %v11460_v52  ;;  %1181 = vrot.lane.b32.xlu1 %v1142_v18, %s15977_s16  ;;  %1067 = vrot.lane.b32.xlu0 %v1030_v4, %s15966_s15  ;;  %v1136_v18 = vmul.f32 %v10678_v20, %v11204_v27  ;;  %v813_v4 = vmul.f32 %v10820_v43, %v11204_v27 }
 0x20a   : > { %v11464_v9 = vpop.permute.xlu0 %2834 }
 0x20b   : > { %15979 = vst [vmem:[#allocation110_spill] sm:$0xff] %v11464_v9  ;;  %v11470_v5 = vpop.permute.xlu1 %2948 }
 0x20c   : > { %15980 = vst [vmem:[#allocation111_spill] sm:$0xff] %v11470_v5  ;;  %963 = vrot.lane.b32.xlu1 %v923_v40, %s15960_s12  ;;  %1071 = vrot.lane.b32.xlu0 %v1032_v29, %s15966_s15  ;;  %v1249_v40 = vmul.f32 %v10796_v23, %v10570_v42  ;;  %v1026_v29 = vmul.f32 %v10610_v59, %v11204_v27 }
 0x20e   : > { %v11474_v32 = vpop.permute.xlu0 %2828 }
 0x20f   : > { %v11480_v52 = vpop.permute.xlu1 %3072 }
 0x210   : > { %15981 = vst [vmem:[#allocation112_spill] sm:$0xff] %v11480_v52  ;;  %1169 = vrot.lane.b32.xlu1 %v1136_v18, %s15977_s16  ;;  %853 = vrot.lane.b32.xlu0 %v813_v4, %s15951_s29  ;;  %v1251_v18 = vmul.f32 %v10796_v23, %v10587_v51  ;;  %v1139_v4 = vmul.f32 %v10785_v17, %v10570_v42 }
 0x212   : > { %v11484_v9 = vpop.permute.xlu0 %2952 }
 0x213   : > { %15982 = vst [vmem:[#allocation113_spill] sm:$0xff] %v11484_v9  ;;  %v11490_v5 = vpop.permute.xlu1 %3076 }
 0x214   : > { %15983 = vst [vmem:[#allocation114_spill] sm:$0xff] %v11490_v5  ;;  %1285 = vrot.lane.b32.xlu1 %v1249_v40, %s15984_s22  ;;  %1059 = vrot.lane.b32.xlu0 %v1026_v29, %s15966_s15  ;;  %v1248_v40 = vmul.f32 %v10796_v23, %v10600_v55  ;;  %v1141_v29 = vmul.f32 %v10785_v17, %v10587_v51 }
 0x216   : > { %v11494_v43 = vpop.permute.xlu0 %2956 }
 0x217   : > { %15985 = vst [vmem:[#allocation115_spill] sm:$0xff] %v11494_v43  ;;  %v11500_v52 = vpop.permute.xlu1 %391 }
 0x218   : > { %15986 = vst [vmem:[#allocation116_spill] sm:$0xff] %v11500_v52  ;;  %1289 = vrot.lane.b32.xlu1 %v1251_v18, %s15984_s22  ;;  %1175 = vrot.lane.b32.xlu0 %v1139_v4, %s15977_s16  ;;  %v1034_v18 = vmul.f32 %v10770_v8, %v11252_v39  ;;  %v1138_v4 = vmul.f32 %v10785_v17, %v10600_v55 }
 0x21a   : > { %v11504_v59 = vpop.permute.xlu0 %3070 }
 0x21b   : > { %15987 = vst [vmem:[#allocation117_spill] sm:$0xff] %v11504_v59  ;;  %v11510_v9 = vpop.permute.xlu1 %517 }
 0x21c   : > { %15988 = vst [vmem:[#allocation118_spill] sm:$0xff] %v11510_v9  ;;  %1283 = vrot.lane.b32.xlu1 %v1248_v40, %s15984_s22  ;;  %1179 = vrot.lane.b32.xlu0 %v1141_v29, %s15977_s16  ;;  %v1247_v40 = vmul.f32 %v10622_v63, %v11252_v39  ;;  %v924_v29 = vmul.f32 %v10759_v2, %v11252_v39 }
 0x21e   : > { %v11514_v5 = vpop.permute.xlu0 %3074 }
 0x21f   : > { %15989 = vst [vmem:[#allocation119_spill] sm:$0xff] %v11514_v5  ;;  %v11520_v52 = vpop.permute.xlu1 %521 }
 0x220   : > { %15990 = vst [vmem:[#allocation120_spill] sm:$0xff] %v11520_v52  ;;  %1075 = vrot.lane.b32.xlu1 %v1034_v18, %s15966_s15  ;;  %1173 = vrot.lane.b32.xlu0 %v1138_v4, %s15977_s16  ;;  %v1360_v18 = vmul.f32 %v10811_v33, %v10565_v41  ;;  %v1137_v4 = vmul.f32 %v10678_v20, %v11252_v39 }
 0x222   : > { %v11524_v59 = vpop.permute.xlu0 %3068 }
 0x223   : > { %v11530_v9 = vpop.permute.xlu1 %509 }
 0x224   : > { %15991 = vst [vmem:[#allocation121_spill] sm:$0xff] %v11530_v9  ;;  %1281 = vrot.lane.b32.xlu1 %v1247_v40, %s15984_s22  ;;  %965 = vrot.lane.b32.xlu0 %v924_v29, %s15960_s12  ;;  %v1362_v40 = vmul.f32 %v10811_v33, %v10584_v50  ;;  %v1250_v29 = vmul.f32 %v10796_v23, %v10565_v41 }
 0x226   : > { %v11534_v5 = vpop.permute.xlu0 %515 }
 0x227   : > { %v11540_v52 = vpop.permute.xlu1 %625 }
 0x228   : > { %15992 = vst [vmem:[#allocation122_spill] sm:$0xff] %v11540_v52  ;;  %1397 = vrot.lane.b32.xlu1 %v1360_v18, %s10298_s25  ;;  %1171 = vrot.lane.b32.xlu0 %v1137_v4, %s15977_s16  ;;  %v1143_v18 = vmul.f32 %v10785_v17, %v11204_v27  ;;  %v1252_v4 = vmul.f32 %v10796_v23, %v10584_v50 }
 0x22a   : > { %v11544_v2 = vpop.permute.xlu0 %519 }
 0x22b   : > { %15993 = vst [vmem:[#allocation123_spill] sm:$0xff] %v11544_v2  ;;  %v11550_v9 = vpop.permute.xlu1 %629 }
 0x22c   : > { %15994 = vst [vmem:[#allocation124_spill] sm:$0xff] %v11550_v9  ;;  %1401 = vrot.lane.b32.xlu1 %v1362_v40, %s10298_s25  ;;  %1287 = vrot.lane.b32.xlu0 %v1250_v29, %s15984_s22  ;;  %v1356_v40 = vmul.f32 %v10690_v24, %v11204_v27  ;;  %v1033_v29 = vmul.f32 %v10770_v8, %v11204_v27 }
 0x22e   : > { %v11554_v20 = vpop.permute.xlu0 %513 }
 0x22f   : > { %15995 = vst [vmem:[#allocation125_spill] sm:$0xff] %v11554_v20  ;;  %v11560_v52 = vpop.permute.xlu1 %623 }
 0x230   : > { %1183 = vrot.lane.b32.xlu1 %v1143_v18, %s15977_s16  ;;  %1291 = vrot.lane.b32.xlu0 %v1252_v4, %s15984_s22  ;;  %v1469_v18 = vmul.f32 %v10822_v44, %v10570_v42  ;;  %v1246_v4 = vmul.f32 %v10622_v63, %v11204_v27 }
 0x232   : > { %v11564_v2 = vpop.permute.xlu0 %511 }
 0x233   : > { %15996 = vst [vmem:[#allocation126_spill] sm:$0xff] %v11564_v2  ;;  %v11570_v9 = vpop.permute.xlu1 %621 }
 0x234   : > { %15997 = vst [vmem:[#allocation127_spill] sm:$0xff] %v11570_v9  ;;  %1389 = vrot.lane.b32.xlu1 %v1356_v40, %s10298_s25  ;;  %1073 = vrot.lane.b32.xlu0 %v1033_v29, %s15966_s15  ;;  %v1471_v40 = vmul.f32 %v10822_v44, %v10587_v51  ;;  %v1359_v29 = vmul.f32 %v10811_v33, %v10570_v42  ;;  %s16009_s15 = smov 71  }
 0x236   : > { %v11574_v20 = vpop.permute.xlu0 %627 }
 0x237   : > { %v11580_v2 = vpop.permute.xlu1 %737 }
 0x238   : > { %15998 = vst [vmem:[#allocation128_spill] sm:$0xff] %v11580_v2  ;;  %1505 = vrot.lane.b32.xlu1 %v1469_v18, %s15999_s24  ;;  %1279 = vrot.lane.b32.xlu0 %v1246_v4, %s15984_s22  ;;  %v1468_v18 = vmul.f32 %v10822_v44, %v10600_v55  ;;  %v1361_v4 = vmul.f32 %v10811_v33, %v10587_v51 }
 0x23a   : > { %v11584_v8 = vpop.permute.xlu0 %631 }
 0x23b   : > { %16000 = vst [vmem:[#allocation129_spill] sm:$0xff] %v11584_v8  ;;  %v11590_v9 = vpop.permute.xlu1 %741 }
 0x23c   : > { %16001 = vst [vmem:[#allocation130_spill] sm:$0xff] %v11590_v9  ;;  %1509 = vrot.lane.b32.xlu1 %v1471_v40, %s15999_s24  ;;  %1395 = vrot.lane.b32.xlu0 %v1359_v29, %s10298_s25  ;;  %v1254_v40 = vmul.f32 %v10796_v23, %v11252_v39  ;;  %v1358_v29 = vmul.f32 %v10811_v33, %v10600_v55 }
 0x23e   : > { %v11594_v63 = vpop.permute.xlu0 %619 }
 0x23f   : > { %16002 = vst [vmem:[#allocation131_spill] sm:$0xff] %v11594_v63  ;;  %v11600_v2 = vpop.permute.xlu1 %523 }
 0x240   : > { %16003 = vst [vmem:[#allocation132_spill] sm:$0xff] %v11600_v2  ;;  %1503 = vrot.lane.b32.xlu1 %v1468_v18, %s15999_s24  ;;  %1399 = vrot.lane.b32.xlu0 %v1361_v4, %s10298_s25  ;;  %v1467_v18 = vmul.f32 %v10632_v3, %v11252_v39  ;;  %v1144_v4 = vmul.f32 %v10785_v17, %v11252_v39 }
 0x242   : > { %v11604_v8 = vpop.permute.xlu0 %735 }
 0x243   : > { %16004 = vst [vmem:[#allocation133_spill] sm:$0xff] %v11604_v8  ;;  %v11610_v9 = vpop.permute.xlu1 %729 }
 0x244   : > { %1295 = vrot.lane.b32.xlu1 %v1254_v40, %s15984_s22  ;;  %1393 = vrot.lane.b32.xlu0 %v1358_v29, %s10298_s25  ;;  %v1580_v40 = vmul.f32 %v10992_v60, %v10565_v41  ;;  %v1357_v29 = vmul.f32 %v10690_v24, %v11252_v39 }
 0x246   : > { %v11614_v63 = vpop.permute.xlu0 %739 }
 0x247   : > { %16005 = vst [vmem:[#allocation134_spill] sm:$0xff] %v11614_v63  ;;  %v11620_v8 = vpop.permute.xlu1 %845 }
 0x248   : > { %16006 = vst [vmem:[#allocation135_spill] sm:$0xff] %v11620_v8  ;;  %1501 = vrot.lane.b32.xlu1 %v1467_v18, %s15999_s24  ;;  %1185 = vrot.lane.b32.xlu0 %v1144_v4, %s15977_s16  ;;  %v1582_v18 = vmul.f32 %v10992_v60, %v10584_v50  ;;  %v1470_v4 = vmul.f32 %v10822_v44, %v10565_v41  ;;  %s16018_s16 = smov 70  }
 0x24a   : > { %v11624_v2 = vpop.permute.xlu0 %733 }
 0x24b   : > { %16007 = vst [vmem:[#allocation136_spill] sm:$0xff] %v11624_v2  ;;  %v11630_v63 = vpop.permute.xlu1 %849 }
 0x24c   : > { %16008 = vst [vmem:[#allocation137_spill] sm:$0xff] %v11630_v63  ;;  %1617 = vrot.lane.b32.xlu1 %v1580_v40, %s16009_s15  ;;  %1391 = vrot.lane.b32.xlu0 %v1357_v29, %s10298_s25  ;;  %v1363_v40 = vmul.f32 %v10811_v33, %v11204_v27  ;;  %v1472_v29 = vmul.f32 %v10822_v44, %v10584_v50 }
 0x24e   : > { %v11634_v17 = vpop.permute.xlu0 %525 }
 0x24f   : > { %16010 = vst [vmem:[#allocation138_spill] sm:$0xff] %v11634_v17  ;;  %v11640_v8 = vpop.permute.xlu1 %843 }
 0x250   : > { %16011 = vst [vmem:[#allocation139_spill] sm:$0xff] %v11640_v8  ;;  %1621 = vrot.lane.b32.xlu1 %v1582_v18, %s16009_s15  ;;  %1507 = vrot.lane.b32.xlu0 %v1470_v4, %s15999_s24  ;;  %v1576_v18 = vmul.f32 %v10705_v30, %v11204_v27  ;;  %v1253_v4 = vmul.f32 %v10796_v23, %v11204_v27 }
 0x252   : > { %v11644_v24 = vpop.permute.xlu0 %731 }
 0x253   : > { %16012 = vst [vmem:[#allocation140_spill] sm:$0xff] %v11644_v24  ;;  %v11650_v63 = vpop.permute.xlu1 %635 }
 0x254   : > { %16013 = vst [vmem:[#allocation141_spill] sm:$0xff] %v11650_v63  ;;  %1403 = vrot.lane.b32.xlu1 %v1363_v40, %s10298_s25  ;;  %1511 = vrot.lane.b32.xlu0 %v1472_v29, %s15999_s24  ;;  %v1689_v40 = vmul.f32 %v11022_v54, %v10570_v42  ;;  %v1466_v29 = vmul.f32 %v10632_v3, %v11204_v27 }
 0x256   : > { %v11654_v17 = vpop.permute.xlu0 %847 }
 0x257   : > { %16014 = vst [vmem:[#allocation142_spill] sm:$0xff] %v11654_v17  ;;  %v11660_v24 = vpop.permute.xlu1 %841 }
 0x258   : > { %16015 = vst [vmem:[#allocation143_spill] sm:$0xff] %v11660_v24  ;;  %1609 = vrot.lane.b32.xlu1 %v1576_v18, %s16009_s15  ;;  %1293 = vrot.lane.b32.xlu0 %v1253_v4, %s15984_s22  ;;  %v1691_v18 = vmul.f32 %v11022_v54, %v10587_v51  ;;  %v1579_v4 = vmul.f32 %v10992_v60, %v10570_v42  ;;  %s16029_s22 = smov 69  }
 0x25a   : > { %v11664_v8 = vpop.permute.xlu0 %851 }
 0x25b   : > { %16016 = vst [vmem:[#allocation144_spill] sm:$0xff] %v11664_v8  ;;  %v11670_v63 = vpop.permute.xlu1 %957 }
 0x25c   : > { %16017 = vst [vmem:[#allocation145_spill] sm:$0xff] %v11670_v63  ;;  %1725 = vrot.lane.b32.xlu1 %v1689_v40, %s16018_s16  ;;  %1499 = vrot.lane.b32.xlu0 %v1466_v29, %s15999_s24  ;;  %v1688_v40 = vmul.f32 %v11022_v54, %v10600_v55  ;;  %v1581_v29 = vmul.f32 %v10992_v60, %v10587_v51 }
 0x25e   : > { %v11674_v23 = vpop.permute.xlu0 %633 }
 0x25f   : > { %16019 = vst [vmem:[#allocation146_spill] sm:$0xff] %v11674_v23  ;;  %v11680_v24 = vpop.permute.xlu1 %961 }
 0x260   : > { %16020 = vst [vmem:[#allocation147_spill] sm:$0xff] %v11680_v24  ;;  %1729 = vrot.lane.b32.xlu1 %v1691_v18, %s16018_s16  ;;  %1615 = vrot.lane.b32.xlu0 %v1579_v4, %s16009_s15  ;;  %v1474_v18 = vmul.f32 %v10822_v44, %v11252_v39  ;;  %v1578_v4 = vmul.f32 %v10992_v60, %v10600_v55 }
 0x262   : > { %v11684_v3 = vpop.permute.xlu0 %839 }
 0x263   : > { %16021 = vst [vmem:[#allocation148_spill] sm:$0xff] %v11684_v3  ;;  %v11690_v63 = vpop.permute.xlu1 %743 }
 0x264   : > { %16022 = vst [vmem:[#allocation149_spill] sm:$0xff] %v11690_v63  ;;  %1723 = vrot.lane.b32.xlu1 %v1688_v40, %s16018_s16  ;;  %1619 = vrot.lane.b32.xlu0 %v1581_v29, %s16009_s15  ;;  %v1687_v40 = vmul.f32 %v10642_v6, %v11252_v39  ;;  %v1364_v29 = vmul.f32 %v10811_v33, %v11252_v39 }
 0x266   : > { %v11694_v23 = vpop.permute.xlu0 %955 }
 0x267   : > { %16023 = vst [vmem:[#allocation150_spill] sm:$0xff] %v11694_v23  ;;  %v11700_v24 = vpop.permute.xlu1 %949 }
 0x268   : > { %16024 = vst [vmem:[#allocation151_spill] sm:$0xff] %v11700_v24  ;;  %1515 = vrot.lane.b32.xlu1 %v1474_v18, %s15999_s24  ;;  %1613 = vrot.lane.b32.xlu0 %v1578_v4, %s16009_s15  ;;  %v1800_v18 = vmul.f32 %v11052_v53, %v10565_v41  ;;  %v1577_v4 = vmul.f32 %v10705_v30, %v11252_v39  ;;  %v16153_v24 = vld [vmem:[#allocation34_spill] sm:$0xff] }
 0x26a   : > { %v11704_v3 = vpop.permute.xlu0 %959 }
 0x26b   : > { %16025 = vst [vmem:[#allocation152_spill] sm:$0xff] %v11704_v3  ;;  %v11710_v23 = vpop.permute.xlu1 %1065 }
 0x26c   : > { %16026 = vst [vmem:[#allocation153_spill] sm:$0xff] %v11710_v23  ;;  %1721 = vrot.lane.b32.xlu1 %v1687_v40, %s16018_s16  ;;  %1405 = vrot.lane.b32.xlu0 %v1364_v29, %s10298_s25  ;;  %v1802_v40 = vmul.f32 %v11052_v53, %v10584_v50  ;;  %v1690_v29 = vmul.f32 %v11022_v54, %v10565_v41  ;;  %s16038_s25 = smov 68  }
 0x26e   : > { %v11714_v63 = vpop.permute.xlu0 %953 }
 0x26f   : > { %16027 = vst [vmem:[#allocation154_spill] sm:$0xff] %v11714_v63  ;;  %v11720_v3 = vpop.permute.xlu1 %1069 }
 0x270   : > { %16028 = vst [vmem:[#allocation155_spill] sm:$0xff] %v11720_v3  ;;  %1837 = vrot.lane.b32.xlu1 %v1800_v18, %s16029_s22  ;;  %1611 = vrot.lane.b32.xlu0 %v1577_v4, %s16009_s15  ;;  %v1583_v18 = vmul.f32 %v10992_v60, %v11204_v27  ;;  %v1692_v4 = vmul.f32 %v11022_v54, %v10584_v50 }
 0x272   : > { %v11724_v33 = vpop.permute.xlu0 %745 }
 0x273   : > { %16030 = vst [vmem:[#allocation156_spill] sm:$0xff] %v11724_v33  ;;  %v11730_v23 = vpop.permute.xlu1 %1063 }
 0x274   : > { %16031 = vst [vmem:[#allocation157_spill] sm:$0xff] %v11730_v23  ;;  %1841 = vrot.lane.b32.xlu1 %v1802_v40, %s16029_s22  ;;  %1727 = vrot.lane.b32.xlu0 %v1690_v29, %s16018_s16  ;;  %v1796_v40 = vmul.f32 %v10716_v34, %v11204_v27  ;;  %v1473_v29 = vmul.f32 %v10822_v44, %v11204_v27 }
 0x276   : > { %v11734_v30 = vpop.permute.xlu0 %951 }
 0x277   : > { %16032 = vst [vmem:[#allocation158_spill] sm:$0xff] %v11734_v30  ;;  %v11740_v3 = vpop.permute.xlu1 %855 }
 0x278   : > { %16033 = vst [vmem:[#allocation159_spill] sm:$0xff] %v11740_v3  ;;  %1623 = vrot.lane.b32.xlu1 %v1583_v18, %s16009_s15  ;;  %1731 = vrot.lane.b32.xlu0 %v1692_v4, %s16018_s16  ;;  %v1909_v18 = vmul.f32 %v11082_v47, %v10570_v42  ;;  %v1686_v4 = vmul.f32 %v10642_v6, %v11204_v27 }
 0x27a   : > { %v11744_v33 = vpop.permute.xlu0 %1067 }
 0x27b   : > { %16034 = vst [vmem:[#allocation160_spill] sm:$0xff] %v11744_v33  ;;  %v11750_v30 = vpop.permute.xlu1 %1061 }
 0x27c   : > { %16035 = vst [vmem:[#allocation161_spill] sm:$0xff] %v11750_v30  ;;  %1829 = vrot.lane.b32.xlu1 %v1796_v40, %s16029_s22  ;;  %1513 = vrot.lane.b32.xlu0 %v1473_v29, %s15999_s24  ;;  %v1911_v40 = vmul.f32 %v11082_v47, %v10587_v51  ;;  %v1799_v29 = vmul.f32 %v11052_v53, %v10570_v42  ;;  %s16049_s24 = smov 44  }
 0x27e   : > { %v11754_v23 = vpop.permute.xlu0 %1071 }
 0x27f   : > { %16036 = vst [vmem:[#allocation162_spill] sm:$0xff] %v11754_v23  ;;  %v11760_v3 = vpop.permute.xlu1 %1177 }
 0x280   : > { %16037 = vst [vmem:[#allocation163_spill] sm:$0xff] %v11760_v3  ;;  %1945 = vrot.lane.b32.xlu1 %v1909_v18, %s16038_s25  ;;  %1719 = vrot.lane.b32.xlu0 %v1686_v4, %s16018_s16  ;;  %v1908_v18 = vmul.f32 %v11082_v47, %v10600_v55  ;;  %v1801_v4 = vmul.f32 %v11052_v53, %v10587_v51 }
 0x282   : > { %v11764_v44 = vpop.permute.xlu0 %853 }
 0x283   : > { %16039 = vst [vmem:[#allocation164_spill] sm:$0xff] %v11764_v44  ;;  %v11770_v30 = vpop.permute.xlu1 %1181 }
 0x284   : > { %16040 = vst [vmem:[#allocation165_spill] sm:$0xff] %v11770_v30  ;;  %1949 = vrot.lane.b32.xlu1 %v1911_v40, %s16038_s25  ;;  %1835 = vrot.lane.b32.xlu0 %v1799_v29, %s16029_s22  ;;  %v1694_v40 = vmul.f32 %v11022_v54, %v11252_v39  ;;  %v1798_v29 = vmul.f32 %v11052_v53, %v10600_v55 }
 0x286   : > { %v11774_v6 = vpop.permute.xlu0 %1059 }
 0x287   : > { %16041 = vst [vmem:[#allocation166_spill] sm:$0xff] %v11774_v6  ;;  %v11780_v3 = vpop.permute.xlu1 %963 }
 0x288   : > { %16042 = vst [vmem:[#allocation167_spill] sm:$0xff] %v11780_v3  ;;  %1943 = vrot.lane.b32.xlu1 %v1908_v18, %s16038_s25  ;;  %1839 = vrot.lane.b32.xlu0 %v1801_v4, %s16029_s22  ;;  %v1907_v18 = vmul.f32 %v10656_v12, %v11252_v39  ;;  %v1584_v4 = vmul.f32 %v10992_v60, %v11252_v39 }
 0x28a   : > { %v11784_v44 = vpop.permute.xlu0 %1175 }
 0x28b   : > { %16043 = vst [vmem:[#allocation168_spill] sm:$0xff] %v11784_v44  ;;  %v11790_v30 = vpop.permute.xlu1 %1169 }
 0x28c   : > { %16044 = vst [vmem:[#allocation169_spill] sm:$0xff] %v11790_v30  ;;  %1735 = vrot.lane.b32.xlu1 %v1694_v40, %s16018_s16  ;;  %1833 = vrot.lane.b32.xlu0 %v1798_v29, %s16029_s22  ;;  %v2020_v40 = vmul.f32 %v11112_v38, %v10565_v41  ;;  %v1797_v29 = vmul.f32 %v10716_v34, %v11252_v39  ;;  %v16135_v30 = vld [vmem:[#allocation9_spill] sm:$0xff] }
 0x28e   : > { %v11794_v6 = vpop.permute.xlu0 %1179 }
 0x28f   : > { %16045 = vst [vmem:[#allocation170_spill] sm:$0xff] %v11794_v6  ;;  %v11800_v44 = vpop.permute.xlu1 %1285 }
 0x290   : > { %16046 = vst [vmem:[#allocation171_spill] sm:$0xff] %v11800_v44  ;;  %1941 = vrot.lane.b32.xlu1 %v1907_v18, %s16038_s25  ;;  %1625 = vrot.lane.b32.xlu0 %v1584_v4, %s16009_s15  ;;  %v2022_v18 = vmul.f32 %v11112_v38, %v10584_v50  ;;  %v1910_v4 = vmul.f32 %v11082_v47, %v10565_v41  ;;  %s16058_s15 = smov 43  }
 0x292   : > { %v11804_v3 = vpop.permute.xlu0 %1173 }
 0x293   : > { %16047 = vst [vmem:[#allocation172_spill] sm:$0xff] %v11804_v3  ;;  %v11810_v6 = vpop.permute.xlu1 %1289  ;;  %v16134_v3 = vld [vmem:[#allocation10_spill] sm:$0xff] }
 0x294   : > { %16048 = vst [vmem:[#allocation173_spill] sm:$0xff] %v11810_v6  ;;  %2057 = vrot.lane.b32.xlu1 %v2020_v40, %s16049_s24  ;;  %1831 = vrot.lane.b32.xlu0 %v1797_v29, %s16029_s22  ;;  %v1803_v40 = vmul.f32 %v11052_v53, %v11204_v27  ;;  %v1912_v29 = vmul.f32 %v11082_v47, %v10584_v50 }
 0x295   : > { %v640_v23 = vsel %vm15808_vm1, %v16134_v3, %v16135_v30 }
 0x296   : > { %v11814_v60 = vpop.permute.xlu0 %965 }
 0x297   : > { %16050 = vst [vmem:[#allocation174_spill] sm:$0xff] %v11814_v60  ;;  %v11820_v44 = vpop.permute.xlu1 %1283 }
 0x298   : > { %16051 = vst [vmem:[#allocation175_spill] sm:$0xff] %v11820_v44  ;;  %2061 = vrot.lane.b32.xlu1 %v2022_v18, %s16049_s24  ;;  %1947 = vrot.lane.b32.xlu0 %v1910_v4, %s16038_s25  ;;  %v2016_v18 = vmul.f32 %v10731_v48, %v11204_v27  ;;  %v1693_v4 = vmul.f32 %v11022_v54, %v11204_v27 }
 0x29a   : > { %v11824_v34 = vpop.permute.xlu0 %1171 }
 0x29b   : > { %16052 = vst [vmem:[#allocation176_spill] sm:$0xff] %v11824_v34  ;;  %v11830_v6 = vpop.permute.xlu1 %1075 }
 0x29c   : > { %16053 = vst [vmem:[#allocation177_spill] sm:$0xff] %v11830_v6  ;;  %1843 = vrot.lane.b32.xlu1 %v1803_v40, %s16029_s22  ;;  %1951 = vrot.lane.b32.xlu0 %v1912_v29, %s16038_s25  ;;  %v2129_v40 = vmul.f32 %v11142_v19, %v10570_v42  ;;  %v1906_v29 = vmul.f32 %v10656_v12, %v11204_v27 }
 0x29e   : > { %v11834_v60 = vpop.permute.xlu0 %1287 }
 0x29f   : > { %16054 = vst [vmem:[#allocation178_spill] sm:$0xff] %v11834_v60  ;;  %v11840_v34 = vpop.permute.xlu1 %1281 }
 0x2a0   : > { %16055 = vst [vmem:[#allocation179_spill] sm:$0xff] %v11840_v34  ;;  %2049 = vrot.lane.b32.xlu1 %v2016_v18, %s16049_s24  ;;  %1733 = vrot.lane.b32.xlu0 %v1693_v4, %s16018_s16  ;;  %v2131_v18 = vmul.f32 %v11142_v19, %v10587_v51  ;;  %v2019_v4 = vmul.f32 %v11112_v38, %v10570_v42  ;;  %s16069_s16 = smov 42  }
 0x2a2   : > { %v11844_v44 = vpop.permute.xlu0 %1291 }
 0x2a3   : > { %16056 = vst [vmem:[#allocation180_spill] sm:$0xff] %v11844_v44  ;;  %v11850_v6 = vpop.permute.xlu1 %1397 }
 0x2a4   : > { %16057 = vst [vmem:[#allocation181_spill] sm:$0xff] %v11850_v6  ;;  %2165 = vrot.lane.b32.xlu1 %v2129_v40, %s16058_s15  ;;  %1939 = vrot.lane.b32.xlu0 %v1906_v29, %s16038_s25  ;;  %v2128_v40 = vmul.f32 %v11142_v19, %v10600_v55  ;;  %v2021_v29 = vmul.f32 %v11112_v38, %v10587_v51 }
 0x2a6   : > { %v11854_v54 = vpop.permute.xlu0 %1073 }
 0x2a7   : > { %16059 = vst [vmem:[#allocation182_spill] sm:$0xff] %v11854_v54  ;;  %v11860_v34 = vpop.permute.xlu1 %1401 }
 0x2a8   : > { %16060 = vst [vmem:[#allocation183_spill] sm:$0xff] %v11860_v34  ;;  %2169 = vrot.lane.b32.xlu1 %v2131_v18, %s16058_s15  ;;  %2055 = vrot.lane.b32.xlu0 %v2019_v4, %s16049_s24  ;;  %v1914_v18 = vmul.f32 %v11082_v47, %v11252_v39  ;;  %v2018_v4 = vmul.f32 %v11112_v38, %v10600_v55 }
 0x2aa   : > { %v11864_v12 = vpop.permute.xlu0 %1279 }
 0x2ab   : > { %16061 = vst [vmem:[#allocation184_spill] sm:$0xff] %v11864_v12  ;;  %v11870_v6 = vpop.permute.xlu1 %1183 }
 0x2ac   : > { %16062 = vst [vmem:[#allocation185_spill] sm:$0xff] %v11870_v6  ;;  %2163 = vrot.lane.b32.xlu1 %v2128_v40, %s16058_s15  ;;  %2059 = vrot.lane.b32.xlu0 %v2021_v29, %s16049_s24  ;;  %v2127_v40 = vmul.f32 %v10666_v15, %v11252_v39  ;;  %v1804_v29 = vmul.f32 %v11052_v53, %v11252_v39 }
 0x2ae   : > { %v11874_v54 = vpop.permute.xlu0 %1395 }
 0x2af   : > { %16063 = vst [vmem:[#allocation186_spill] sm:$0xff] %v11874_v54  ;;  %v11880_v34 = vpop.permute.xlu1 %1389 }
 0x2b0   : > { %16064 = vst [vmem:[#allocation187_spill] sm:$0xff] %v11880_v34  ;;  %1955 = vrot.lane.b32.xlu1 %v1914_v18, %s16038_s25  ;;  %2053 = vrot.lane.b32.xlu0 %v2018_v4, %s16049_s24  ;;  %v2240_v18 = vmul.f32 %v11172_v36, %v10565_v41  ;;  %v2017_v4 = vmul.f32 %v10731_v48, %v11252_v39  ;;  %v16131_v34 = vld [vmem:[#allocation8_spill] sm:$0xff] }
 0x2b2   : > { %v11884_v12 = vpop.permute.xlu0 %1399 }
 0x2b3   : > { %16065 = vst [vmem:[#allocation188_spill] sm:$0xff] %v11884_v12  ;;  %v11890_v54 = vpop.permute.xlu1 %1505 }
 0x2b4   : > { %16066 = vst [vmem:[#allocation189_spill] sm:$0xff] %v11890_v54  ;;  %2161 = vrot.lane.b32.xlu1 %v2127_v40, %s16058_s15  ;;  %1845 = vrot.lane.b32.xlu0 %v1804_v29, %s16029_s22  ;;  %v2242_v40 = vmul.f32 %v11172_v36, %v10584_v50  ;;  %v2130_v29 = vmul.f32 %v11142_v19, %v10565_v41  ;;  %s16078_s22 = smov 41  }
 0x2b6   : > { %v11894_v6 = vpop.permute.xlu0 %1393 }
 0x2b7   : > { %16067 = vst [vmem:[#allocation190_spill] sm:$0xff] %v11894_v6  ;;  %v11900_v12 = vpop.permute.xlu1 %1509  ;;  %v16130_v6 = vld [vmem:[#allocation6_spill] sm:$0xff] }
 0x2b8   : > { %16068 = vst [vmem:[#allocation191_spill] sm:$0xff] %v11900_v12  ;;  %2277 = vrot.lane.b32.xlu1 %v2240_v18, %s16069_s16  ;;  %2051 = vrot.lane.b32.xlu0 %v2017_v4, %s16049_s24  ;;  %v2023_v18 = vmul.f32 %v11112_v38, %v11204_v27  ;;  %v2132_v4 = vmul.f32 %v11142_v19, %v10584_v50 }
 0x2ba   : > { %v11904_v53 = vpop.permute.xlu0 %1185 }
 0x2bb   : > { %16070 = vst [vmem:[#allocation192_spill] sm:$0xff] %v11904_v53  ;;  %v11910_v54 = vpop.permute.xlu1 %1503 }
 0x2bc   : > { %16071 = vst [vmem:[#allocation193_spill] sm:$0xff] %v11910_v54  ;;  %2281 = vrot.lane.b32.xlu1 %v2242_v40, %s16069_s16  ;;  %2167 = vrot.lane.b32.xlu0 %v2130_v29, %s16058_s15  ;;  %v2236_v40 = vmul.f32 %v10742_v57, %v11204_v27  ;;  %v1913_v29 = vmul.f32 %v11082_v47, %v11204_v27 }
 0x2be   : > { %v11914_v48 = vpop.permute.xlu0 %1391 }
 0x2bf   : > { %16072 = vst [vmem:[#allocation194_spill] sm:$0xff] %v11914_v48  ;;  %v11920_v12 = vpop.permute.xlu1 %1295 }
 0x2c0   : > { %16073 = vst [vmem:[#allocation195_spill] sm:$0xff] %v11920_v12  ;;  %2063 = vrot.lane.b32.xlu1 %v2023_v18, %s16049_s24  ;;  %2171 = vrot.lane.b32.xlu0 %v2132_v4, %s16058_s15  ;;  %v2349_v18 = vmul.f32 %v11206_v26, %v10570_v42  ;;  %v2126_v4 = vmul.f32 %v10666_v15, %v11204_v27 }
 0x2c2   : > { %v11924_v53 = vpop.permute.xlu0 %1507 }
 0x2c3   : > { %16074 = vst [vmem:[#allocation196_spill] sm:$0xff] %v11924_v53  ;;  %v11930_v48 = vpop.permute.xlu1 %1501  ;;  %v433_v53 = vmul.f32 %v10587_v51, %v10733_v49 }
 0x2c4   : > { %16075 = vst [vmem:[#allocation197_spill] sm:$0xff] %v11930_v48  ;;  %2269 = vrot.lane.b32.xlu1 %v2236_v40, %s16069_s16  ;;  %1953 = vrot.lane.b32.xlu0 %v1913_v29, %s16038_s25  ;;  %v2351_v40 = vmul.f32 %v11206_v26, %v10587_v51  ;;  %v2239_v29 = vmul.f32 %v11172_v36, %v10570_v42  ;;  %s16089_s25 = smov 40  }
 0x2c6   : > { %v11934_v54 = vpop.permute.xlu0 %1511 }
 0x2c7   : > { %16076 = vst [vmem:[#allocation198_spill] sm:$0xff] %v11934_v54  ;;  %v11940_v12 = vpop.permute.xlu1 %1617  ;;  %v2464_v54 = vmul.f32 %v11236_v28, %v11252_v39 }
 0x2c8   : > { %16077 = vst [vmem:[#allocation199_spill] sm:$0xff] %v11940_v12  ;;  %2385 = vrot.lane.b32.xlu1 %v2349_v18, %s16078_s22  ;;  %2159 = vrot.lane.b32.xlu0 %v2126_v4, %s16058_s15  ;;  %v2348_v18 = vmul.f32 %v11206_v26, %v10600_v55  ;;  %v2241_v4 = vmul.f32 %v11172_v36, %v10587_v51 }
 0x2ca   : > { %v11944_v47 = vpop.permute.xlu0 %1293 }
 0x2cb   : > { %16079 = vst [vmem:[#allocation200_spill] sm:$0xff] %v11944_v47  ;;  %v11950_v48 = vpop.permute.xlu1 %1621 }
 0x2cc   : > { %16080 = vst [vmem:[#allocation201_spill] sm:$0xff] %v11950_v48  ;;  %2389 = vrot.lane.b32.xlu1 %v2351_v40, %s16078_s22  ;;  %2275 = vrot.lane.b32.xlu0 %v2239_v29, %s16069_s16  ;;  %v2134_v40 = vmul.f32 %v11142_v19, %v11252_v39  ;;  %v2238_v29 = vmul.f32 %v11172_v36, %v10600_v55 }
 0x2ce   : > { %v11954_v15 = vpop.permute.xlu0 %1499 }
 0x2cf   : > { %16081 = vst [vmem:[#allocation202_spill] sm:$0xff] %v11954_v15  ;;  %v11960_v12 = vpop.permute.xlu1 %1403 }
 0x2d0   : > { %16082 = vst [vmem:[#allocation203_spill] sm:$0xff] %v11960_v12  ;;  %2383 = vrot.lane.b32.xlu1 %v2348_v18, %s16078_s22  ;;  %2279 = vrot.lane.b32.xlu0 %v2241_v4, %s16069_s16  ;;  %v2347_v18 = vmul.f32 %v10680_v21, %v11252_v39  ;;  %v2024_v4 = vmul.f32 %v11112_v38, %v11252_v39 }
 0x2d2   : > { %v11964_v47 = vpop.permute.xlu0 %1615 }
 0x2d3   : > { %16083 = vst [vmem:[#allocation204_spill] sm:$0xff] %v11964_v47  ;;  %v11970_v48 = vpop.permute.xlu1 %1609 }
 0x2d4   : > { %16084 = vst [vmem:[#allocation205_spill] sm:$0xff] %v11970_v48  ;;  %2175 = vrot.lane.b32.xlu1 %v2134_v40, %s16058_s15  ;;  %2273 = vrot.lane.b32.xlu0 %v2238_v29, %s16069_s16  ;;  %v2460_v40 = vmul.f32 %v11236_v28, %v10565_v41  ;;  %v2237_v29 = vmul.f32 %v10742_v57, %v11252_v39 }
 0x2d5   : > { %v430_v48 = vmul.f32 %v10600_v55, %v10733_v49 }
 0x2d6   : > { %v11974_v15 = vpop.permute.xlu0 %1619 }
 0x2d7   : > { %16085 = vst [vmem:[#allocation206_spill] sm:$0xff] %v11974_v15  ;;  %v11980_v47 = vpop.permute.xlu1 %1725 }
 0x2d8   : > { %16086 = vst [vmem:[#allocation207_spill] sm:$0xff] %v11980_v47  ;;  %2381 = vrot.lane.b32.xlu1 %v2347_v18, %s16078_s22  ;;  %2065 = vrot.lane.b32.xlu0 %v2024_v4, %s16049_s24  ;;  %v2462_v18 = vmul.f32 %v11236_v28, %v10584_v50  ;;  %v2350_v4 = vmul.f32 %v11206_v26, %v10565_v41  ;;  %s16098_s24 = smov 16  }
 0x2da   : > { %v11984_v12 = vpop.permute.xlu0 %1613 }
 0x2db   : > { %16087 = vst [vmem:[#allocation208_spill] sm:$0xff] %v11984_v12  ;;  %v11990_v15 = vpop.permute.xlu1 %1729 }
 0x2dc   : > { %16088 = vst [vmem:[#allocation209_spill] sm:$0xff] %v11990_v15  ;;  %2497 = vrot.lane.b32.xlu1 %v2460_v40, %s16089_s25  ;;  %2271 = vrot.lane.b32.xlu0 %v2237_v29, %s16069_s16  ;;  %v2243_v40 = vmul.f32 %v11172_v36, %v11204_v27  ;;  %v2352_v29 = vmul.f32 %v11206_v26, %v10584_v50 }
 0x2de   : > { %v11994_v38 = vpop.permute.xlu0 %1405 }
 0x2df   : > { %16090 = vst [vmem:[#allocation210_spill] sm:$0xff] %v11994_v38  ;;  %v12000_v47 = vpop.permute.xlu1 %1723 }
 0x2e0   : > { %16091 = vst [vmem:[#allocation211_spill] sm:$0xff] %v12000_v47  ;;  %2501 = vrot.lane.b32.xlu1 %v2462_v18, %s16089_s25  ;;  %2387 = vrot.lane.b32.xlu0 %v2350_v4, %s16078_s22  ;;  %v2456_v18 = vmul.f32 %v10757_v1, %v11204_v27  ;;  %v2133_v4 = vmul.f32 %v11142_v19, %v11204_v27 }
 0x2e2   : > { %v12004_v57 = vpop.permute.xlu0 %1611 }
 0x2e3   : > { %16092 = vst [vmem:[#allocation212_spill] sm:$0xff] %v12004_v57  ;;  %v12010_v15 = vpop.permute.xlu1 %1515 }
 0x2e4   : > { %16093 = vst [vmem:[#allocation213_spill] sm:$0xff] %v12010_v15  ;;  %2283 = vrot.lane.b32.xlu1 %v2243_v40, %s16069_s16  ;;  %2391 = vrot.lane.b32.xlu0 %v2352_v29, %s16078_s22  ;;  %v2569_v40 = vmul.f32 %v11270_v11, %v10570_v42  ;;  %v2346_v29 = vmul.f32 %v10680_v21, %v11204_v27 }
 0x2e6   : > { %v12014_v38 = vpop.permute.xlu0 %1727 }
 0x2e7   : > { %16094 = vst [vmem:[#allocation214_spill] sm:$0xff] %v12014_v38  ;;  %v12020_v57 = vpop.permute.xlu1 %1721  ;;  %v16128_v38 = vld [vmem:[#allocation7_spill] sm:$0xff] }
 0x2e8   : > { %16095 = vst [vmem:[#allocation215_spill] sm:$0xff] %v12020_v57  ;;  %2489 = vrot.lane.b32.xlu1 %v2456_v18, %s16089_s25  ;;  %2173 = vrot.lane.b32.xlu0 %v2133_v4, %s16058_s15  ;;  %v2571_v18 = vmul.f32 %v11270_v11, %v10587_v51  ;;  %v2459_v4 = vmul.f32 %v11236_v28, %v10570_v42  ;;  %s16109_s15 = smov 15  }
 0x2e9   : > { %v530_v12 = vsel %vm15809_vm0, %v10833_v61, %v16128_v38 }
 0x2ea   : > { %v12024_v47 = vpop.permute.xlu0 %1731 }
 0x2eb   : > { %16096 = vst [vmem:[#allocation216_spill] sm:$0xff] %v12024_v47  ;;  %v12030_v15 = vpop.permute.xlu1 %1837  ;;  %v12204_v47 = vmul.f32 %v10783_v16, %v11252_v39 }
 0x2ec   : > { %16097 = vst [vmem:[#allocation217_spill] sm:$0xff] %v12030_v15  ;;  %2605 = vrot.lane.b32.xlu1 %v2569_v40, %s16098_s24  ;;  %2379 = vrot.lane.b32.xlu0 %v2346_v29, %s16078_s22  ;;  %v2568_v40 = vmul.f32 %v11270_v11, %v10600_v55  ;;  %v2461_v29 = vmul.f32 %v11236_v28, %v10587_v51 }
 0x2ee   : > { %v12034_v19 = vpop.permute.xlu0 %1513 }
 0x2ef   : > { %16099 = vst [vmem:[#allocation218_spill] sm:$0xff] %v12034_v19  ;;  %v12040_v57 = vpop.permute.xlu1 %1841 }
 0x2f0   : > { %16100 = vst [vmem:[#allocation219_spill] sm:$0xff] %v12040_v57  ;;  %2609 = vrot.lane.b32.xlu1 %v2571_v18, %s16098_s24  ;;  %2495 = vrot.lane.b32.xlu0 %v2459_v4, %s16089_s25  ;;  %v2354_v18 = vmul.f32 %v11206_v26, %v11252_v39  ;;  %v2458_v4 = vmul.f32 %v11236_v28, %v10600_v55 }
 0x2f2   : > { %v12044_v21 = vpop.permute.xlu0 %1719 }
 0x2f3   : > { %16101 = vst [vmem:[#allocation220_spill] sm:$0xff] %v12044_v21  ;;  %v12050_v15 = vpop.permute.xlu1 %1623 }
 0x2f4   : > { %16102 = vst [vmem:[#allocation221_spill] sm:$0xff] %v12050_v15  ;;  %2603 = vrot.lane.b32.xlu1 %v2568_v40, %s16098_s24  ;;  %2499 = vrot.lane.b32.xlu0 %v2461_v29, %s16089_s25  ;;  %v2567_v40 = vmul.f32 %v10692_v25, %v11252_v39  ;;  %v2244_v29 = vmul.f32 %v11172_v36, %v11252_v39 }
 0x2f6   : > { %v12054_v19 = vpop.permute.xlu0 %1835 }
 0x2f7   : > { %16103 = vst [vmem:[#allocation222_spill] sm:$0xff] %v12054_v19  ;;  %v12060_v57 = vpop.permute.xlu1 %1829 }
 0x2f8   : > { %16104 = vst [vmem:[#allocation223_spill] sm:$0xff] %v12060_v57  ;;  %2395 = vrot.lane.b32.xlu1 %v2354_v18, %s16078_s22  ;;  %2493 = vrot.lane.b32.xlu0 %v2458_v4, %s16089_s25  ;;  %v2686_v18 = vmul.f32 %v11300_v10, %v10565_v41  ;;  %v2457_v4 = vmul.f32 %v10757_v1, %v11252_v39 }
 0x2f9   : > { %v431_v57 = vmul.f32 %v10570_v42, %v10733_v49 }
 0x2fa   : > { %v12064_v21 = vpop.permute.xlu0 %1839 }
 0x2fb   : > { %16105 = vst [vmem:[#allocation224_spill] sm:$0xff] %v12064_v21  ;;  %v12070_v19 = vpop.permute.xlu1 %1945 }
 0x2fc   : > { %16106 = vst [vmem:[#allocation225_spill] sm:$0xff] %v12070_v19  ;;  %2601 = vrot.lane.b32.xlu1 %v2567_v40, %s16098_s24  ;;  %2285 = vrot.lane.b32.xlu0 %v2244_v29, %s16069_s16  ;;  %v2688_v40 = vmul.f32 %v11300_v10, %v10584_v50  ;;  %v2570_v29 = vmul.f32 %v11270_v11, %v10565_v41  ;;  %s16602_s16 = smov 126  }
 0x2fe   : > { %v12074_v15 = vpop.permute.xlu0 %1833 }
 0x2ff   : > { %16107 = vst [vmem:[#allocation226_spill] sm:$0xff] %v12074_v15  ;;  %v12080_v21 = vpop.permute.xlu1 %1949 }
 0x300   : > { %16108 = vst [vmem:[#allocation227_spill] sm:$0xff] %v12080_v21  ;;  %2728 = vrot.lane.b32.xlu1 %v2686_v18, %s16109_s15  ;;  %2491 = vrot.lane.b32.xlu0 %v2457_v4, %s16089_s25  ;;  %v2463_v18 = vmul.f32 %v11236_v28, %v11204_v27  ;;  %v2572_v4 = vmul.f32 %v11270_v11, %v10584_v50 }
 0x301   : > { %v639_v28 = vsel %vm15808_vm1, %v16131_v34, %v16134_v3 }
 0x302   : > { %v12084_v36 = vpop.permute.xlu0 %1625 }
 0x303   : > { %16110 = vst [vmem:[#allocation228_spill] sm:$0xff] %v12084_v36  ;;  %v12090_v19 = vpop.permute.xlu1 %1943 }
 0x304   : > { %16111 = vst [vmem:[#allocation229_spill] sm:$0xff] %v12090_v19  ;;  %2732 = vrot.lane.b32.xlu1 %v2688_v40, %s16109_s15  ;;  %2607 = vrot.lane.b32.xlu0 %v2570_v29, %s16098_s24  ;;  %v2681_v40 = vmul.f32 %v10768_v7, %v11204_v27  ;;  %v2353_v29 = vmul.f32 %v11206_v26, %v11204_v27 }
 0x306   : > { %v12094_v1 = vpop.permute.xlu0 %1831 }
 0x307   : > { %16112 = vst [vmem:[#allocation230_spill] sm:$0xff] %v12094_v1  ;;  %v12100_v21 = vpop.permute.xlu1 %1735 }
 0x308   : > { %16113 = vst [vmem:[#allocation231_spill] sm:$0xff] %v12100_v21  ;;  %2503 = vrot.lane.b32.xlu1 %v2463_v18, %s16089_s25  ;;  %2611 = vrot.lane.b32.xlu0 %v2572_v4, %s16098_s24  ;;  %v2805_v18 = vmul.f32 %v11330_v46, %v10570_v42  ;;  %v2566_v4 = vmul.f32 %v10692_v25, %v11204_v27  ;;  %v3399_v25 = vld [vmem:[%s15524_s5] sm:$0x3] }
 0x30a   : > { %v12104_v36 = vpop.permute.xlu0 %1947 }
 0x30b   : > { %16114 = vst [vmem:[#allocation232_spill] sm:$0xff] %v12104_v36  ;;  %v12110_v1 = vpop.permute.xlu1 %1941 }
 0x30c   : > { %16115 = vst [vmem:[#allocation233_spill] sm:$0xff] %v12110_v1  ;;  %2718 = vrot.lane.b32.xlu1 %v2681_v40, %s16109_s15  ;;  %2393 = vrot.lane.b32.xlu0 %v2353_v29, %s16078_s22  ;;  %v2807_v40 = vmul.f32 %v11330_v46, %v10587_v51  ;;  %v2685_v29 = vmul.f32 %v11300_v10, %v10570_v42  ;;  %s16603_s22 = smov 125  }
 0x30e   : > { %v12114_v19 = vpop.permute.xlu0 %1951 }
 0x30f   : > { %16116 = vst [vmem:[#allocation234_spill] sm:$0xff] %v12114_v19  ;;  %v12120_v21 = vpop.permute.xlu1 %2057  ;;  %v2673_v19 = vsub.s32 7, %v10552_v37 }
 0x310   : > { %16117 = vst [vmem:[#allocation235_spill] sm:$0xff] %v12120_v21  ;;  %2846 = vrot.lane.b32.xlu1 %v2805_v18, %s10311_s13  ;;  %2599 = vrot.lane.b32.xlu0 %v2566_v4, %s16098_s24  ;;  %v2804_v4 = vmul.f32 %v11330_v46, %v10600_v55  ;;  %v2687_v21 = vmul.f32 %v11300_v10, %v10587_v51 }
 0x312   : > { %v12124_v26 = vpop.permute.xlu0 %1733 }
 0x313   : > { %16118 = vst [vmem:[#allocation236_spill] sm:$0xff] %v12124_v26  ;;  %v12130_v1 = vpop.permute.xlu1 %2061 }
 0x314   : > { %16119 = vst [vmem:[#allocation237_spill] sm:$0xff] %v12130_v1  ;;  %2850 = vrot.lane.b32.xlu1 %v2807_v40, %s10311_s13  ;;  %2726 = vrot.lane.b32.xlu0 %v2685_v29, %s16109_s15  ;;  %v10226_v1 = vld [vmem:[%s10557_s14] sm:$0xff]  ;;  %v16122_v40 = vsub.s32 1, %v10552_v37  ;;  %s16200_s14 = smov 12  }
 0x315   : > { %v12147_v36 = vrot.slane %v10226_v1, %v2673_v19  ;;  %v2574_v19 = vmul.f32 %v11270_v11, %v11252_v39 }
 0x316   : > { %v12138_v18 = vpop.permute.xlu0 %1939  ;;  %v12153_v29 = vrot.slane %v3399_v25, %v16122_v40  ;;  %v12177_v40 = vmul.f32 %v10707_v31, %v11252_v39 }
 0x317   : > { %16120 = vst [vmem:[#allocation238_spill] sm:$0xff] %v12138_v18  ;;  %v12144_v26 = vpop.permute.xlu1 %1843  ;;  %v16124_v18 = vsub.s32 0, %v10552_v37  ;;  %v16152_v37 = vld [vmem:[#allocation24_spill] sm:$0xff] }
 0x318   : > { %16121 = vst [vmem:[#allocation239_spill] sm:$0xff] %v12144_v26  ;;  %2844 = vrot.lane.b32.xlu1 %v2804_v4, %s10311_s13  ;;  %2730 = vrot.lane.b32.xlu0 %v2687_v21, %s16109_s15  ;;  %16123 = vst [vmem:[#allocation240_spill] sm:$0xff] %v12153_v29  ;;  %v2684_v21 = vmul.f32 %v11300_v10, %v10600_v55  ;;  %v2801_v4 = vmul.f32 %v10707_v31, %v11204_v27 }
 0x319   : > { %v12157_v15 = vrot.slane %v3399_v25, %v16124_v18  ;;  %v2682_v25 = vmul.f32 %v10768_v7, %v11252_v39  ;;  %v12173_v18 = vmul.f32 %v12147_v36, %v10768_v7  ;;  %v12191_v7 = vmul.f32 %v10707_v31, %v12147_v36 }
 0x31a   : > { %v12159_v26 = vpop.permute.xlu0 %2055  ;;  %v529_v31 = vsel %vm15809_vm0, %v10835_v62, %v10833_v61  ;;  %v16132_v61 = vld [vmem:[#allocation14_spill] sm:$0xff] }
 0x31b   : > { %16125 = vst [vmem:[#allocation241_spill] sm:$0xff] %v12157_v15  ;;  %16126 = vst [vmem:[#allocation242_spill] sm:$0xff] %v12159_v26  ;;  %v12165_v1 = vpop.permute.xlu1 %2049  ;;  %v12187_v26 = vmul.f32 %v10783_v16, %v12147_v36  ;;  %v638_v44 = vsel %vm15808_vm1, %v16132_v61, %v16131_v34  ;;  %v16136_v15 = vld [vmem:[#allocation11_spill] sm:$0xff]  ;;  %v16137_v61 = vld [vmem:[#allocation20_spill] sm:$0xff] }
 0x31c   : > { %16127 = vst [vmem:[#allocation243_spill] sm:$0xff] %v12165_v1  ;;  %2615 = vrot.lane.b32.xlu1 %v2574_v19, %s16098_s24  ;;  %2724 = vrot.lane.b32.xlu0 %v2684_v21, %s16109_s15  ;;  %v12183_v1 = vmul.f32 %v10783_v16, %v11204_v27  ;;  %v528_v19 = vsel %vm15809_vm0, %v10852_v14, %v10835_v62 }
 0x31d   : > { %v12200_v21 = vmul.f32 %v10718_v35, %v11252_v39  ;;  %v432_v16 = vmul.f32 %v10565_v41, %v10733_v49  ;;  %v531_v62 = vsel %vm15809_vm0, %v16128_v38, %v16130_v6  ;;  %v555_v38 = vadd.f32 %v529_v31, %v431_v57 }
 0x31e   : > { %v12214_v14 = vpop.permute.xlu0 %2059 }
 0x31f   : > { %16129 = vst [vmem:[#allocation7_spill] sm:$0xff] %v12214_v14  ;;  %v12228_v60 = vpop.permute.xlu1 %2165  ;;  %v554_v14 = vadd.f32 %v528_v19, %v430_v48  ;;  %v556_v33 = vadd.f32 %v530_v12, %v432_v16  ;;  %v557_v48 = vadd.f32 %v531_v62, %v433_v53  ;;  %v16138_v19 = vld [vmem:[#allocation12_spill] sm:$0xff]  ;;  %v16141_v16 = vld [vmem:[#allocation15_spill] sm:$0xff] }
 0x320   : > { %16133 = vst [vmem:[#allocation6_spill] sm:$0xff] %v12228_v60  ;;  %2838 = vrot.lane.b32.xlu1 %v2801_v4, %s10311_s13  ;;  %2505 = vrot.lane.b32.xlu0 %v2464_v54, %s16089_s25  ;;  %v748_v60 = vsel %vm15815_vm2, %v16137_v61, %v16136_v15  ;;  %v641_v34 = vsel %vm15808_vm1, %v16135_v30, %v16138_v19  ;;  %v16140_v12 = vld [vmem:[#allocation16_spill] sm:$0xff]  ;;  %v16142_v61 = vld [vmem:[#allocation25_spill] sm:$0xff]  ;;  %s16261_s25 = smov 127  }
 0x321   : > { %v664_v29 = vadd.f32 %v638_v44, %v554_v14  ;;  %v2925_v4 = vmul.f32 %v11360_v56, %v10570_v42  ;;  %v665_v54 = vadd.f32 %v639_v28, %v555_v38  ;;  %v666_v57 = vadd.f32 %v640_v23, %v556_v33  ;;  %v16144_v30 = vld [vmem:[#allocation13_spill] sm:$0xff]  ;;  %v16145_v14 = vld [vmem:[#allocation18_spill] sm:$0xff] }
 0x322   : > { %v12244_v3 = vpop.permute.xlu0 %2053  ;;  %v749_v31 = vsel %vm15815_vm2, %v16136_v15, %v16140_v12  ;;  %v858_v53 = vsel %vm15827_vm3, %v16142_v61, %v16141_v16  ;;  %v750_v44 = vsel %vm15815_vm2, %v16140_v12, %v16144_v30  ;;  %v667_v23 = vadd.f32 %v641_v34, %v557_v48  ;;  %v16146_v33 = vld [vmem:[#allocation21_spill] sm:$0xff]  ;;  %v16148_v12 = vld [vmem:[#allocation19_spill] sm:$0xff] }
 0x323   : > { %16139 = vst [vmem:[#allocation8_spill] sm:$0xff] %v12244_v3  ;;  %v12254_v62 = vpop.permute.xlu1 %2169  ;;  %v751_v3 = vsel %vm15815_vm2, %v16144_v30, %v16145_v14  ;;  %v774_v28 = vadd.f32 %v748_v60, %v664_v29  ;;  %v859_v15 = vsel %vm15827_vm3, %v16141_v16, %v16146_v33  ;;  %v16147_v38 = vld [vmem:[#allocation17_spill] sm:$0xff]  ;;  %v16150_v30 = vld [vmem:[#allocation23_spill] sm:$0xff]  ;;  %v2927_v48 = vmul.f32 %v11360_v56, %v10587_v51 }
 0x324   : > { %16143 = vst [vmem:[#allocation14_spill] sm:$0xff] %v12254_v62  ;;  %2966 = vrot.lane.b32.xlu1 %v2925_v4, %s10312_s30  ;;  %2720 = vrot.lane.b32.xlu0 %v2682_v25, %s16109_s15  ;;  %v860_v61 = vsel %vm15827_vm3, %v16146_v33, %v16147_v38  ;;  %v16149_v62 = vld [vmem:[#allocation30_spill] sm:$0xff]  ;;  %v861_v60 = vsel %vm15827_vm3, %v16147_v38, %v16150_v30 }
 0x325   : > { %v968_v63 = vsel %vm15829_vm4, %v16149_v62, %v16148_v12  ;;  %v884_v29 = vadd.f32 %v858_v53, %v774_v28  ;;  %v2806_v34 = vmul.f32 %v11330_v46, %v10565_v41  ;;  %v775_v4 = vadd.f32 %v749_v31, %v665_v54  ;;  %v16155_v38 = vld [vmem:[#allocation26_spill] sm:$0xff]  ;;  %v16158_v31 = vld [vmem:[#allocation39_spill] sm:$0xff] }
 0x326   : > { %v12276_v25 = vpop.permute.xlu0 %1845  ;;  %v776_v16 = vadd.f32 %v750_v44, %v666_v57  ;;  %v777_v33 = vadd.f32 %v751_v3, %v667_v23  ;;  %v1078_v62 = vsel %vm1077_vm5, %v16153_v24, %v16152_v37  ;;  %v969_v53 = vsel %vm15829_vm4, %v16148_v12, %v16155_v38  ;;  %v16156_v28 = vld [vmem:[#allocation22_spill] sm:$0xff]  ;;  %v16157_v24 = vld [vmem:[#allocation29_spill] sm:$0xff]  ;;  %v16159_v23 = vld [vmem:[#allocation28_spill] sm:$0xff] }
 0x327   : > { %16151 = vst [vmem:[#allocation10_spill] sm:$0xff] %v12276_v25  ;;  %v12285_v8 = vpop.permute.xlu1 %2163  ;;  %v970_v25 = vsel %vm15829_vm4, %v16155_v38, %v16156_v28  ;;  %v994_v30 = vadd.f32 %v968_v63, %v884_v29  ;;  %v885_v3 = vadd.f32 %v859_v15, %v775_v4  ;;  %v1188_v44 = vsel %vm1187_vm6, %v16158_v31, %v16157_v24  ;;  %v16161_v29 = vld [vmem:[#allocation31_spill] sm:$0xff]  ;;  %v16163_v4 = vld [vmem:[#allocation44_spill] sm:$0xff] }
 0x328   : > { %16154 = vst [vmem:[#allocation9_spill] sm:$0xff] %v12285_v8  ;;  %2970 = vrot.lane.b32.xlu1 %v2927_v48, %s10312_s30  ;;  %2848 = vrot.lane.b32.xlu0 %v2806_v34, %s10311_s13  ;;  %v886_v54 = vadd.f32 %v860_v61, %v776_v16  ;;  %v887_v57 = vadd.f32 %v861_v60, %v777_v33  ;;  %v16162_v34 = vld [vmem:[#allocation35_spill] sm:$0xff] }
 0x329   : > { %v971_v12 = vsel %vm15829_vm4, %v16156_v28, %v16159_v23  ;;  %v1104_v8 = vadd.f32 %v1078_v62, %v994_v30  ;;  %v2924_v63 = vmul.f32 %v11360_v56, %v10600_v55  ;;  %v2808_v15 = vmul.f32 %v11330_v46, %v10584_v50  ;;  %v16165_v33 = vld [vmem:[#allocation27_spill] sm:$0xff]  ;;  %v16166_v28 = vld [vmem:[#allocation33_spill] sm:$0xff]  ;;  %v16174_v23 = vld [vmem:[#allocation54_spill] sm:$0xff] }
 0x32a   : > { %v12301_v38 = vpop.permute.xlu0 %2051  ;;  %v995_v61 = vadd.f32 %v969_v53, %v885_v3  ;;  %v996_v60 = vadd.f32 %v970_v25, %v886_v54  ;;  %v1079_v48 = vsel %vm1077_vm5, %v16152_v37, %v16161_v29  ;;  %v1298_v16 = vsel %vm15789_vm7, %v16163_v4, %v16162_v34  ;;  %v16167_v25 = vld [vmem:[#allocation36_spill] sm:$0xff] }
 0x32b   : > { %16160 = vst [vmem:[#allocation11_spill] sm:$0xff] %v12301_v38  ;;  %v12313_v30 = vpop.permute.xlu1 %1955  ;;  %v1080_v62 = vsel %vm1077_vm5, %v16161_v29, %v16165_v33  ;;  %v1081_v31 = vsel %vm1077_vm5, %v16165_v33, %v16166_v28  ;;  %v1214_v53 = vadd.f32 %v1188_v44, %v1104_v8  ;;  %v997_v37 = vadd.f32 %v971_v12, %v887_v57  ;;  %v16168_v54 = vld [vmem:[#allocation32_spill] sm:$0xff]  ;;  %v16171_v33 = vld [vmem:[#allocation38_spill] sm:$0xff]  ;;  %v16173_v28 = vld [vmem:[#allocation45_spill] sm:$0xff] }
 0x32c   : > { %16164 = vst [vmem:[#allocation20_spill] sm:$0xff] %v12313_v30  ;;  %2964 = vrot.lane.b32.xlu1 %v2924_v63, %s10312_s30  ;;  %2852 = vrot.lane.b32.xlu0 %v2808_v15, %s10311_s13  ;;  %v1189_v3 = vsel %vm1187_vm6, %v16157_v24, %v16167_v25  ;;  %v1190_v4 = vsel %vm1187_vm6, %v16167_v25, %v16168_v54  ;;  %v16169_v29 = vld [vmem:[#allocation40_spill] sm:$0xff]  ;;  %v16170_v30 = vld [vmem:[#allocation49_spill] sm:$0xff] }
 0x32d   : > { %v1408_v38 = vsel %vm1407_vm8, %v16170_v30, %v16169_v29  ;;  %v1191_v8 = vsel %vm1187_vm6, %v16168_v54, %v16171_v33  ;;  %v1324_v44 = vadd.f32 %v1298_v16, %v1214_v53  ;;  %v2690_v57 = vmul.f32 %v11300_v10, %v11252_v39  ;;  %v16176_v54 = vld [vmem:[#allocation41_spill] sm:$0xff]  ;;  %v16177_v53 = vld [vmem:[#allocation43_spill] sm:$0xff] }
 0x32e   : > { %v12335_v63 = vpop.permute.xlu0 %2167  ;;  %v2573_v24 = vmul.f32 %v11270_v11, %v11204_v27  ;;  %v1105_v12 = vadd.f32 %v1079_v48, %v995_v61  ;;  %v1106_v15 = vadd.f32 %v1080_v62, %v996_v60  ;;  %v1107_v25 = vadd.f32 %v1081_v31, %v997_v37  ;;  %v16180_v48 = vld [vmem:[#allocation59_spill] sm:$0xff]  ;;  %v16181_v31 = vld [vmem:[#allocation46_spill] sm:$0xff]  ;;  %v16182_v37 = vld [vmem:[#allocation48_spill] sm:$0xff] }
 0x32f   : > { %16172 = vst [vmem:[#allocation12_spill] sm:$0xff] %v12335_v63  ;;  %v1518_v30 = vsel %vm15792_vm9, %v16174_v23, %v16173_v28  ;;  %v12344_v17 = vpop.permute.xlu1 %2161  ;;  %v1299_v16 = vsel %vm15789_vm7, %v16162_v34, %v16176_v54  ;;  %v16178_v63 = vld [vmem:[#allocation37_spill] sm:$0xff]  ;;  %v1434_v2 = vadd.f32 %v1408_v38, %v1324_v44  ;;  %v16179_v23 = vld [vmem:[#allocation50_spill] sm:$0xff]  ;;  %v1409_v38 = vsel %vm1407_vm8, %v16169_v29, %v16181_v31  ;;  %v16188_v29 = vld [vmem:[#allocation51_spill] sm:$0xff] }
 0x330   : > { %16175 = vst [vmem:[#allocation16_spill] sm:$0xff] %v12344_v17  ;;  %v1301_v33 = vsel %vm15789_vm7, %v16178_v63, %v16177_v53  ;;  %2736 = vrot.lane.b32.xlu1 %v2690_v57, %s16109_s15  ;;  %2613 = vrot.lane.b32.xlu0 %v2573_v24, %s16098_s24  ;;  %v1215_v11 = vadd.f32 %v1189_v3, %v1105_v12  ;;  %v16183_v44 = vld [vmem:[#allocation42_spill] sm:$0xff]  ;;  %s10320_s24 = smov 112  }
 0x331   : > { %v1216_v61 = vadd.f32 %v1190_v4, %v1106_v15  ;;  %v1217_v60 = vadd.f32 %v1191_v8, %v1107_v25  ;;  %v1628_v62 = vsel %vm15796_vm10, %v16180_v48, %v16179_v23  ;;  %v1300_v34 = vsel %vm15789_vm7, %v16176_v54, %v16178_v63  ;;  %v16185_v15 = vld [vmem:[#allocation55_spill] sm:$0xff]  ;;  %v16186_v63 = vld [vmem:[#allocation64_spill] sm:$0xff] }
 0x332   : > { %v1411_v57 = vsel %vm1407_vm8, %v16183_v44, %v16182_v37  ;;  %v1544_v24 = vadd.f32 %v1518_v30, %v1434_v2  ;;  %v12366_v3 = vpop.permute.xlu0 %2171  ;;  %v1325_v4 = vadd.f32 %v1299_v16, %v1215_v11  ;;  %v1410_v12 = vsel %vm1407_vm8, %v16181_v31, %v16183_v44  ;;  %v16189_v2 = vld [vmem:[#allocation53_spill] sm:$0xff]  ;;  %v16190_v30 = vld [vmem:[#allocation47_spill] sm:$0xff]  ;;  %v16191_v31 = vld [vmem:[#allocation60_spill] sm:$0xff] }
 0x333   : > { %16184 = vst [vmem:[#allocation15_spill] sm:$0xff] %v12366_v3  ;;  %v1327_v8 = vadd.f32 %v1301_v33, %v1217_v60  ;;  %v1738_v25 = vsel %vm15799_vm11, %v16186_v63, %v16185_v15  ;;  %v12374_v54 = vpop.permute.xlu1 %2277  ;;  %v1519_v48 = vsel %vm15792_vm9, %v16173_v28, %v16188_v29  ;;  %v1521_v17 = vsel %vm15792_vm9, %v16190_v30, %v16189_v2  ;;  %v16192_v44 = vld [vmem:[#allocation69_spill] sm:$0xff] }
 0x334   : > { %16187 = vst [vmem:[#allocation25_spill] sm:$0xff] %v12374_v54  ;;  %v1654_v16 = vadd.f32 %v1628_v62, %v1544_v24  ;;  %vm15806_vm7 = vcmask 343040   ;;  %2958 = vrot.lane.b32.xlu1 %v12183_v1, %s10312_s30  ;;  %2722 = vrot.lane.b32.xlu0 %v12173_v18, %s16109_s15  ;;  %v1326_v33 = vadd.f32 %v1300_v34, %v1216_v61  ;;  %v16193_v54 = vld [vmem:[#allocation58_spill] sm:$0xff]  ;;  %v16194_v62 = vld [vmem:[#allocation52_spill] sm:$0xff] }
 0x335   : > { %v1435_v11 = vadd.f32 %v1409_v38, %v1325_v4  ;;  %v1437_v60 = vadd.f32 %v1411_v57, %v1327_v8  ;;  %v1848_v63 = vsel %vm1847_vm12, %v16192_v44, %v16191_v31  ;;  %v1520_v28 = vsel %vm15792_vm9, %v16188_v29, %v16190_v30  ;;  %v16196_v57 = vld [vmem:[#allocation65_spill] sm:$0xff]  ;;  %v16197_v4 = vld [vmem:[#allocation74_spill] sm:$0xff]  ;;  %v16199_v29 = vld [vmem:[#allocation56_spill] sm:$0xff] }
 0x336   : > { %v1631_v24 = vsel %vm15796_vm10, %v16194_v62, %v16193_v54  ;;  %v1764_v3 = vadd.f32 %v1738_v25, %v1654_v16  ;;  %v12395_v1 = vpop.permute.xlu0 %1953  ;;  %v3045_v18 = vmul.f32 %v11390_v45, %v10570_v42  ;;  %v1436_v61 = vadd.f32 %v1410_v12, %v1326_v33  ;;  %v16202_v33 = vld [vmem:[#allocation57_spill] sm:$0xff] }
 0x337   : > { %16195 = vst [vmem:[#allocation13_spill] sm:$0xff] %v12395_v1  ;;  %v1545_v34 = vadd.f32 %v1519_v48, %v1435_v11  ;;  %v1547_v38 = vadd.f32 %v1521_v17, %v1437_v60  ;;  %v1958_v8 = vsel %vm15804_vm13, %v16197_v4, %v16196_v57  ;;  %v12402_v44 = vpop.permute.xlu1 %2281  ;;  %v1629_v30 = vsel %vm15796_vm10, %v16179_v23, %v16199_v29  ;;  %v16201_v48 = vld [vmem:[#allocation63_spill] sm:$0xff]  ;;  %v16203_v60 = vld [vmem:[#allocation70_spill] sm:$0xff]  ;;  %v16210_v1 = vld [vmem:[#allocation84_spill] sm:$0xff] }
 0x338   : > { %16198 = vst [vmem:[#allocation18_spill] sm:$0xff] %v12402_v44  ;;  %v1630_v25 = vsel %vm15796_vm10, %v16199_v29, %v16194_v62  ;;  %v1874_v16 = vadd.f32 %v1848_v63, %v1764_v3  ;;  %vm2397_vm9 = vcmask 334848   ;;  %3086 = vrot.lane.b32.xlu1 %v3045_v18, %s16200_s14  ;;  %2840 = vrot.lane.b32.xlu0 %v12177_v40, %s10311_s13  ;;  %v16204_v4 = vld [vmem:[#allocation79_spill] sm:$0xff]  ;;  %v16205_v44 = vld [vmem:[#allocation61_spill] sm:$0xff]  ;;  %vm2507_vm10 = vcmask 326656  }
 0x339   : > { %v1546_v17 = vadd.f32 %v1520_v28, %v1436_v61  ;;  %v1657_v12 = vadd.f32 %v1631_v24, %v1547_v38  ;;  %v1741_v11 = vsel %vm15799_vm11, %v16202_v33, %v16201_v48  ;;  %v2068_v23 = vsel %vm15803_vm14, %v16204_v4, %v16203_v60  ;;  %v16207_v61 = vld [vmem:[#allocation68_spill] sm:$0xff]  ;;  %v16208_v38 = vld [vmem:[#allocation62_spill] sm:$0xff]  ;;  %v16209_v4 = vld [vmem:[#allocation75_spill] sm:$0xff] }
 0x33a   : > { %v1739_v3 = vsel %vm15799_vm11, %v16185_v15, %v16205_v44  ;;  %v1984_v63 = vadd.f32 %v1958_v8, %v1874_v16  ;;  %v12422_v62 = vpop.permute.xlu0 %2159  ;;  %v3047_v40 = vmul.f32 %v11390_v45, %v10587_v51  ;;  %v2926_v28 = vmul.f32 %v11360_v56, %v10565_v41  ;;  %v16216_v54 = vld [vmem:[#allocation89_spill] sm:$0xff] }
 0x33b   : > { %16206 = vst [vmem:[#allocation21_spill] sm:$0xff] %v12422_v62  ;;  %v1655_v24 = vadd.f32 %v1629_v30, %v1545_v34  ;;  %v1656_v18 = vadd.f32 %v1630_v25, %v1546_v17  ;;  %v1851_v29 = vsel %vm1847_vm12, %v16208_v38, %v16207_v61  ;;  %v2178_v48 = vsel %vm15805_vm15, %v16210_v1, %v16209_v4  ;;  %v12434_v15 = vpop.permute.xlu1 %2063  ;;  %v16212_v30 = vld [vmem:[#allocation66_spill] sm:$0xff]  ;;  %v16213_v17 = vld [vmem:[#allocation73_spill] sm:$0xff]  ;;  %v16214_v1 = vld [vmem:[#allocation67_spill] sm:$0xff] }
 0x33c   : > { %16211 = vst [vmem:[#allocation17_spill] sm:$0xff] %v12434_v15  ;;  %v1740_v8 = vsel %vm15799_vm11, %v16205_v44, %v16202_v33  ;;  %v1767_v16 = vadd.f32 %v1741_v11, %v1657_v12  ;;  %v2094_v62 = vadd.f32 %v2068_v23, %v1984_v63  ;;  %3090 = vrot.lane.b32.xlu1 %v3047_v40, %s16200_s14  ;;  %v16215_v61 = vld [vmem:[#allocation80_spill] sm:$0xff]  ;;  %v16218_v40 = vld [vmem:[#allocation78_spill] sm:$0xff]  ;;  %vm2617_vm11 = vcmask 130048  }
 0x33d   : > { %2968 = vrot.lane.b32.xlu0 %v2926_v28, %s10312_s30  ;;  %v1765_v34 = vadd.f32 %v1739_v3, %v1655_v24  ;;  %v1849_v25 = vsel %vm1847_vm12, %v16191_v31, %v16212_v30  ;;  %v1961_v15 = vsel %vm15804_vm13, %v16214_v1, %v16213_v17  ;;  %v2288_v44 = vsel %vm15806_vm7, %v16216_v54, %v16215_v61  ;;  %v16219_v28 = vld [vmem:[#allocation72_spill] sm:$0xff]  ;;  %v16220_v54 = vld [vmem:[#allocation85_spill] sm:$0xff] }
 0x33e   : > { %v1877_v12 = vadd.f32 %v1851_v29, %v1767_v16  ;;  %v2204_v33 = vadd.f32 %v2178_v48, %v2094_v62  ;;  %v12450_v11 = vpop.permute.xlu0 %2275  ;;  %v3044_v23 = vmul.f32 %v11390_v45, %v10600_v55  ;;  %v2928_v3 = vmul.f32 %v11360_v56, %v10584_v50  ;;  %v16233_v17 = vld [vmem:[#allocation93_spill] sm:$0xff] }
 0x33f   : > { %16217 = vst [vmem:[#allocation19_spill] sm:$0xff] %v12450_v11  ;;  %v1766_v63 = vadd.f32 %v1740_v8, %v1656_v18  ;;  %v1850_v31 = vsel %vm1847_vm12, %v16212_v30, %v16208_v38  ;;  %v2071_v24 = vsel %vm15803_vm14, %v16219_v28, %v16218_v40  ;;  %v2398_v48 = vsel %vm2397_vm9, %v11364_v22, %v16220_v54  ;;  %v12465_v62 = vpop.permute.xlu1 %2269  ;;  %v16222_v18 = vld [vmem:[#allocation71_spill] sm:$0xff]  ;;  %v16224_v22 = vld [vmem:[#allocation77_spill] sm:$0xff] }
 0x340   : > { %16221 = vst [vmem:[#allocation30_spill] sm:$0xff] %v12465_v62  ;;  %v1875_v29 = vadd.f32 %v1849_v25, %v1765_v34  ;;  %v1987_v16 = vadd.f32 %v1961_v15, %v1877_v12  ;;  %v2314_v11 = vadd.f32 %v2288_v44, %v2204_v33  ;;  %3084 = vrot.lane.b32.xlu1 %v3044_v23, %s16200_s14  ;;  %v16223_v30 = vld [vmem:[#allocation83_spill] sm:$0xff]  ;;  %v16225_v34 = vld [vmem:[#allocation90_spill] sm:$0xff] }
 0x341   : > { %2972 = vrot.lane.b32.xlu0 %v2928_v3, %s10312_s30  ;;  %v1959_v38 = vsel %vm15804_vm13, %v16196_v57, %v16222_v18  ;;  %v1960_v8 = vsel %vm15804_vm13, %v16222_v18, %v16214_v1  ;;  %v2181_v62 = vsel %vm15805_vm15, %v16224_v22, %v16223_v30  ;;  %v2508_v15 = vsel %vm2507_vm10, %v11394_v13, %v16225_v34  ;;  %v16227_v1 = vld [vmem:[#allocation76_spill] sm:$0xff]  ;;  %v16229_v30 = vld [vmem:[#allocation82_spill] sm:$0xff] }
 0x342   : > { %v2097_v25 = vadd.f32 %v2071_v24, %v1987_v16  ;;  %v2424_v44 = vadd.f32 %v2398_v48, %v2314_v11  ;;  %v12481_v12 = vpop.permute.xlu0 %2279  ;;  %v2809_v33 = vmul.f32 %v11330_v46, %v11204_v27  ;;  %v2689_v57 = vmul.f32 %v11300_v10, %v11204_v27  ;;  %v16228_v18 = vld [vmem:[#allocation88_spill] sm:$0xff]  ;;  %v16230_v13 = vld [vmem:[#allocation94_spill] sm:$0xff]  ;;  %v16231_v24 = vld [vmem:[#allocation103_spill] sm:$0xff] }
 0x343   : > { %16226 = vst [vmem:[#allocation24_spill] sm:$0xff] %v12481_v12  ;;  %v1876_v23 = vadd.f32 %v1850_v31, %v1766_v63  ;;  %v2069_v3 = vsel %vm15803_vm14, %v16203_v60, %v16227_v1  ;;  %v2291_v40 = vsel %vm15806_vm7, %v16229_v30, %v16228_v18  ;;  %v2618_v11 = vsel %vm2617_vm11, %v16231_v24, %v16230_v13  ;;  %v12496_v48 = vpop.permute.xlu1 %2385  ;;  %v16234_v18 = vld [vmem:[#allocation87_spill] sm:$0xff] }
 0x344   : > { %16232 = vst [vmem:[#allocation34_spill] sm:$0xff] %v12496_v48  ;;  %v2070_v16 = vsel %vm15803_vm14, %v16227_v1, %v16219_v28  ;;  %v2207_v12 = vadd.f32 %v2181_v62, %v2097_v25  ;;  %v2534_v63 = vadd.f32 %v2508_v15, %v2424_v44  ;;  %2854 = vrot.lane.b32.xlu1 %v2809_v33, %s10311_s13  ;;  %v16235_v48 = vld [vmem:[#allocation81_spill] sm:$0xff]  ;;  %vm2740_vm14 = vcmask 121856  }
 0x345   : > { %2734 = vrot.lane.b32.xlu0 %v2689_v57, %s16109_s15  ;;  %v1985_v60 = vadd.f32 %v1959_v38, %v1875_v29  ;;  %v1986_v31 = vadd.f32 %v1960_v8, %v1876_v23  ;;  %v2401_v2 = vsel %vm2397_vm9, %v16234_v18, %v16233_v17  ;;  %v12508_v24 = vmul.f32 %v10584_v50, %v10733_v49  ;;  %v16236_v38 = vld [vmem:[#allocation97_spill] sm:$0xff]  ;;  %v16237_v8 = vld [vmem:[#allocation92_spill] sm:$0xff] }
 0x346   : > { %v2179_v28 = vsel %vm15805_vm15, %v16209_v4, %v16235_v48  ;;  %v2317_v62 = vadd.f32 %v2291_v40, %v2207_v12  ;;  %v2644_v15 = vadd.f32 %v2618_v11, %v2534_v63  ;;  %v12513_v25 = vpop.permute.xlu0 %2273  ;;  %v2511_v33 = vsel %vm2507_vm10, %v16237_v8, %v16236_v38  ;;  %v16238_v40 = vld [vmem:[#allocation86_spill] sm:$0xff]  ;;  %v16239_v11 = vld [vmem:[#allocation101_spill] sm:$0xff] }
 0x347   : > { %v2095_v44 = vadd.f32 %v2069_v3, %v1985_v60  ;;  %v2096_v29 = vadd.f32 %v2070_v16, %v1986_v31  ;;  %v12518_v57 = vpop.permute.xlu1 %2389  ;;  %v12522_v23 = vmul.f32 %v10718_v35, %v12147_v36  ;;  %v2180_v4 = vsel %vm15805_vm15, %v16235_v48, %v16224_v22  ;;  %v16240_v16 = vld [vmem:[#allocation96_spill] sm:$0xff]  ;;  %v16241_v60 = vld [vmem:[#allocation98_spill] sm:$0xff] }
 0x348   : > { %v2289_v12 = vsel %vm15806_vm7, %v16215_v61, %v16238_v40  ;;  %v2427_v1 = vadd.f32 %v2401_v2, %v2317_v62  ;;  %vm2860_vm13 = vcmask 113664   ;;  %2962 = vrot.lane.b32.xlu1 %v12187_v26, %s10312_s30  ;;  %v2621_v63 = vsel %vm2617_vm11, %v16240_v16, %v16239_v11  ;;  %v16242_v31 = vld [vmem:[#allocation102_spill] sm:$0xff]  ;;  %v16243_v61 = vld [vmem:[#allocation91_spill] sm:$0xff] }
 0x349   : > { %2842 = vrot.lane.b32.xlu0 %v12191_v7, %s10311_s13  ;;  %v2205_v3 = vadd.f32 %v2179_v28, %v2095_v44  ;;  %v2741_v22 = vsel %vm2740_vm14, %v16242_v31, %v16241_v60  ;;  %v2861_v2 = vsel %vm2860_vm13, %v11474_v32, %v11454_v58  ;;  %v2290_v26 = vsel %vm15806_vm7, %v16238_v40, %v16229_v30  ;;  %v16244_v31 = vld [vmem:[#allocation100_spill] sm:$0xff] }
 0x34a   : > { %v2399_v7 = vsel %vm2397_vm9, %v16220_v54, %v16243_v61  ;;  %v2537_v48 = vadd.f32 %v2511_v33, %v2427_v1  ;;  %v2769_v28 = vadd.f32 %v2741_v22, %v2644_v15  ;;  %v12549_v62 = vpop.permute.xlu0 %2065  ;;  %v2206_v44 = vadd.f32 %v2180_v4, %v2096_v29  ;;  %v16245_v29 = vld [vmem:[#allocation106_spill] sm:$0xff]  ;;  %v16247_v1 = vld [vmem:[#allocation95_spill] sm:$0xff]  ;;  %v16248_v22 = vld [vmem:[#allocation108_spill] sm:$0xff] }
 0x34b   : > { %v2315_v11 = vadd.f32 %v2289_v12, %v2205_v3  ;;  %v2744_v38 = vsel %vm2740_vm14, %v16244_v31, %v11444_v0  ;;  %vm15811_vm15 = vcmask 105472   ;;  %v12554_v32 = vpop.permute.xlu1 %2383  ;;  %v2400_v30 = vsel %vm2397_vm9, %v16243_v61, %v16234_v18  ;;  %v16246_v33 = vld [vmem:[#allocation110_spill] sm:$0xff]  ;;  %v16250_v61 = vld [vmem:[#allocation109_spill] sm:$0xff] }
 0x34c   : > { %v2647_v40 = vadd.f32 %v2621_v63, %v2537_v48  ;;  %v2889_v17 = vadd.f32 %v2861_v2, %v2769_v28  ;;  %vm15810_vm7 = vcmask 97280   ;;  %3080 = vrot.lane.b32.xlu1 %v12200_v21, %s16200_s14  ;;  %v2316_v54 = vadd.f32 %v2290_v26, %v2206_v44  ;;  %v16249_v2 = vld [vmem:[#allocation111_spill] sm:$0xff] }
 0x34d   : > { %2960 = vrot.lane.b32.xlu0 %v12204_v47, %s10312_s30  ;;  %v2425_v15 = vadd.f32 %v2399_v7, %v2315_v11  ;;  %v2864_v4 = vsel %vm2860_vm13, %v16246_v33, %v16245_v29  ;;  %v2929_v12 = vmul.f32 %v11360_v56, %v11204_v27  ;;  %v2509_v18 = vsel %vm2507_vm10, %v16225_v34, %v16247_v1  ;;  %v16251_v34 = vld [vmem:[#allocation117_spill] sm:$0xff] }
 0x34e   : > { %v2510_v21 = vsel %vm2507_vm10, %v16247_v1, %v16237_v8  ;;  %v2772_v3 = vadd.f32 %v2744_v38, %v2647_v40  ;;  %v12574_v63 = vpop.permute.xlu0 %2271  ;;  %v3046_v47 = vmul.f32 %v11390_v45, %v10565_v41  ;;  %v2426_v11 = vadd.f32 %v2400_v30, %v2316_v54  ;;  %v16252_v38 = vld [vmem:[#allocation99_spill] sm:$0xff]  ;;  %v16255_v29 = vld [vmem:[#allocation105_spill] sm:$0xff] }
 0x34f   : > { %v2981_v26 = vsel %vm15811_vm15, %v16249_v2, %v16248_v22  ;;  %v2984_v7 = vsel %vm15811_vm15, %v16250_v61, %v11494_v43  ;;  %v3101_v48 = vsel %vm15810_vm7, %v11524_v59, %v16251_v34  ;;  %v12587_v8 = vpop.permute.xlu1 %2175  ;;  %v2620_v28 = vsel %vm2617_vm11, %v16252_v38, %v16240_v16  ;;  %v16253_v2 = vld [vmem:[#allocation114_spill] sm:$0xff]  ;;  %v16254_v59 = vld [vmem:[#allocation119_spill] sm:$0xff] }
 0x350   : > { %v2892_v44 = vadd.f32 %v2864_v4, %v2772_v3  ;;  %v3009_v30 = vadd.f32 %v2981_v26, %v2889_v17  ;;  %2974 = vrot.lane.b32.xlu1 %v2929_v12, %s10312_s30  ;;  %v2535_v40 = vadd.f32 %v2509_v18, %v2425_v15  ;;  %v2536_v54 = vadd.f32 %v2510_v21, %v2426_v11  ;;  %v16257_v11 = vld [vmem:[#allocation104_spill] sm:$0xff] }
 0x351   : > { %3088 = vrot.lane.b32.xlu0 %v3046_v47, %s16200_s14  ;;  %v2619_v1 = vsel %vm2617_vm11, %v16230_v13, %v16252_v38  ;;  %v3104_v43 = vsel %vm15810_vm7, %v16254_v59, %v16253_v2  ;;  %v2743_v16 = vsel %vm2740_vm14, %v16255_v29, %v16244_v31  ;;  %v3048_v15 = vmul.f32 %v11390_v45, %v10584_v50  ;;  %v16337_v2 = vld [vmem:[#allocation172_spill] sm:$0xff] }
 0x352   : > { %v3012_v4 = vadd.f32 %v2984_v7, %v2892_v44  ;;  %v12603_v17 = vadd.f32 %v3101_v48, %v3009_v30  ;;  %v12605_v12 = vpop.permute.xlu0 %2387  ;;  %v2646_v18 = vadd.f32 %v2620_v28, %v2536_v54  ;;  %v2742_v13 = vsel %vm2740_vm14, %v16241_v60, %v16255_v29  ;;  %v16260_v54 = vld [vmem:[#allocation112_spill] sm:$0xff] }
 0x353   : > { %v12614_v21 = vmul.f32 %v11204_v27, %v10733_v49  ;;  %v436_v31 = vmul.f32 %v11252_v39, %v10733_v49  ;;  %v12618_v3 = vpop.permute.xlu1 %2381  ;;  %v2645_v47 = vadd.f32 %v2619_v1, %v2535_v40  ;;  %v2863_v26 = vsel %vm2860_vm13, %v16257_v11, %v16246_v33 }
 0x354   : > { %16256 = vst [vmem:[#allocation26_spill] sm:$0xff] %v12603_v17  ;;  %v12623_v7 = vadd.f32 %v3104_v43, %v3012_v4  ;;  %3082 = vrot.lane.b32.xlu1 %v12522_v23, %s16200_s14  ;;  %v2771_v60 = vadd.f32 %v2743_v16, %v2646_v18  ;;  %v2862_v29 = vsel %vm2860_vm13, %v11454_v58, %v16257_v11  ;;  %v16259_v43 = vld [vmem:[#allocation113_spill] sm:$0xff] }
 0x355   : > { %3092 = vrot.lane.b32.xlu0 %v3048_v15, %s16200_s14  ;;  %v2691_v49 = vmul.f32 %v12147_v36, %v11300_v10  ;;  %v3041_v48 = vmul.f32 %v10718_v35, %v11204_v27  ;;  %v2770_v38 = vadd.f32 %v2742_v13, %v2645_v47  ;;  %v2983_v33 = vsel %vm15811_vm15, %v16259_v43, %v16250_v61  ;;  %v16262_v13 = vld [vmem:[#allocation116_spill] sm:$0xff]  ;;  %v16263_v47 = vld [vmem:[#allocation125_spill] sm:$0xff] }
 0x356   : > { %16258 = vst [vmem:[#allocation22_spill] sm:$0xff] %v12623_v7  ;;  %v10187_v23 = vpack.i.bf16 %v12603_v17, %v12623_v7  ;;  %v12640_v28 = vpop.permute.xlu0 %2391  ;;  %v2810_v44 = vmul.f32 %v11330_v46, %v11252_v39  ;;  %v2891_v58 = vadd.f32 %v2863_v26, %v2771_v60  ;;  %v2982_v10 = vsel %vm15811_vm15, %v16248_v22, %v16259_v43 }
 0x357   : > { %v12647_v30 = vpop.permute.xlu1 %2497  ;;  %v12651_v35 = vmul.f32 %v11330_v46, %v12147_v36  ;;  %v12655_v61 = vmul.f32 %v11360_v56, %v11252_v39  ;;  %v2890_v40 = vadd.f32 %v2862_v29, %v2770_v38  ;;  %v3103_v1 = vsel %vm15810_vm7, %v16260_v54, %v16254_v59  ;;  %v16266_v38 = vld [vmem:[#allocation118_spill] sm:$0xff] }
 0x358   : > { %10188 = vrot.lane.b32.xlu1 %v10187_v23, %s16261_s25  ;;  %v12664_v22 = vmul.f32 %v11360_v56, %v12147_v36  ;;  %v3011_v16 = vadd.f32 %v2983_v33, %v2891_v58  ;;  %v3049_v46 = vmul.f32 %v11390_v45, %v11204_v27  ;;  %v3051_v4 = vmul.f32 %v11390_v45, %v12147_v36  ;;  %v16269_v58 = vld [vmem:[#allocation120_spill] sm:$0xff] }
 0x359   : > { %2738 = vrot.lane.b32.xlu0 %v2691_v49, %s16109_s15  ;;  %v12672_v15 = vmul.f32 %v11390_v45, %v11252_v39  ;;  %v3010_v59 = vadd.f32 %v2982_v10, %v2890_v40  ;;  %v3102_v18 = vsel %vm15810_vm7, %v16251_v34, %v16260_v54  ;;  %v438_v56 = vmul.f32 %v10570_v42, %v16262_v13  ;;  %v16265_v42 = vld [vmem:[#allocation121_spill] sm:$0xff]  ;;  %v16270_v10 = vld [vmem:[#allocation122_spill] sm:$0xff]  ;;  %s10321_s15 = smov 104  }
 0x35a   : > { %v534_v11 = vsel %vm15809_vm0, %v16263_v47, %v11534_v5  ;;  %v12682_v26 = vpop.permute.xlu0 %2173  ;;  %v12684_v60 = vadd.f32 %v3103_v1, %v3011_v16  ;;  %v439_v45 = vmul.f32 %v10565_v41, %v16262_v13  ;;  %v440_v36 = vmul.f32 %v10587_v51, %v16262_v13  ;;  %v16268_v51 = vld [vmem:[#allocation123_spill] sm:$0xff] }
 0x35b   : > { %v437_v34 = vmul.f32 %v10600_v55, %v16262_v13  ;;  %v12692_v29 = vpop.permute.xlu1 %2501  ;;  %v532_v49 = vsel %vm15809_vm0, %v16130_v6, %v16265_v42  ;;  %v535_v43 = vsel %vm15809_vm0, %v11534_v5, %v16266_v38  ;;  %v441_v33 = vmul.f32 %v10584_v50, %v16262_v13 }
 0x35c   : > { %16264 = vst [vmem:[#allocation29_spill] sm:$0xff] %v12684_v60  ;;  %3094 = vrot.lane.b32.xlu1 %v3049_v46, %s16200_s14  ;;  %v12704_v41 = vadd.f32 %v3102_v18, %v3010_v59  ;;  %v536_v55 = vsel %vm15809_vm0, %v16266_v38, %v16268_v51  ;;  %v442_v6 = vmul.f32 %v11204_v27, %v16262_v13 }
 0x35d   : > { %2856 = vrot.lane.b32.xlu0 %v2810_v44, %s10311_s13  ;;  %v561_v23 = vadd.f32 %v534_v11, %v437_v34  ;;  %v537_v5 = vsel %vm15809_vm0, %v16268_v51, %v16269_v58  ;;  %v644_v50 = vsel %vm15808_vm1, %v11560_v52, %v16270_v10  ;;  %v16271_v44 = vld [vmem:[#allocation126_spill] sm:$0xff]  ;;  %v558_v27 = vadd.f32 %v532_v49, %v12508_v24  ;;  %v16272_v11 = vld [vmem:[#allocation124_spill] sm:$0xff]  ;;  %v16275_v49 = vld [vmem:[#allocation129_spill] sm:$0xff] }
 0x35e   : > { %16267 = vst [vmem:[#allocation39_spill] sm:$0xff] %v12704_v41  ;;  %v533_v40 = vsel %vm15809_vm0, %v16265_v42, %v16271_v44  ;;  %v560_v54 = vadd.f32 %v16271_v44, %v436_v31  ;;  %v12721_v1 = vpop.permute.xlu0 %2379  ;;  %v10182_v16 = vpack.i.bf16 %v12684_v60, %v12704_v41  ;;  %v562_v46 = vadd.f32 %v535_v43, %v438_v56  ;;  %v16277_v51 = vld [vmem:[#allocation128_spill] sm:$0xff]  ;;  %v16332_v41 = vld [vmem:[#allocation169_spill] sm:$0xff] }
 0x35f   : > { %v443_v59 = vmul.f32 %v11252_v39, %v16262_v13  ;;  %v12728_v18 = vpop.permute.xlu1 %2283  ;;  %v563_v52 = vadd.f32 %v536_v55, %v439_v45  ;;  %v645_v47 = vsel %vm15808_vm1, %v16270_v10, %v11574_v20  ;;  %v646_v31 = vsel %vm15808_vm1, %v11574_v20, %v16272_v11  ;;  %v16273_v39 = vld [vmem:[#allocation131_spill] sm:$0xff] }
 0x360   : > { %3098 = vrot.lane.b32.xlu1 %v3051_v4, %s16200_s14  ;;  %v564_v24 = vadd.f32 %v537_v5, %v440_v36  ;;  %v671_v56 = vadd.f32 %v644_v50, %v561_v23  ;;  %v559_v34 = vadd.f32 %v533_v40, %v12614_v21  ;;  %v642_v13 = vsel %vm15808_vm1, %v16138_v19, %v16273_v39  ;;  %v16274_v45 = vld [vmem:[#allocation127_spill] sm:$0xff]  ;;  %v16278_v19 = vld [vmem:[#allocation133_spill] sm:$0xff]  ;;  %v16279_v50 = vld [vmem:[#allocation134_spill] sm:$0xff] }
 0x361   : > { %3078 = vrot.lane.b32.xlu0 %v3041_v48, %s16200_s14  ;;  %v670_v42 = vadd.f32 %v16274_v45, %v560_v54  ;;  %v647_v38 = vsel %vm15808_vm1, %v16272_v11, %v16275_v49  ;;  %v643_v20 = vsel %vm15808_vm1, %v16273_v39, %v16274_v45  ;;  %v16276_v48 = vld [vmem:[#allocation132_spill] sm:$0xff]  ;;  %v672_v21 = vadd.f32 %v645_v47, %v562_v46  ;;  %v16282_v11 = vld [vmem:[#allocation138_spill] sm:$0xff]  ;;  %v16284_v45 = vld [vmem:[#allocation139_spill] sm:$0xff] }
 0x362   : > { %v538_v4 = vsel %vm15809_vm0, %v16269_v58, %v16276_v48  ;;  %v12752_v36 = vpop.permute.xlu0 %2495  ;;  %v673_v43 = vadd.f32 %v646_v31, %v563_v52  ;;  %v755_v55 = vsel %vm15815_vm2, %v16278_v19, %v16277_v51  ;;  %v752_v23 = vsel %vm15815_vm2, %v16145_v14, %v11610_v9  ;;  %v16280_v58 = vld [vmem:[#allocation130_spill] sm:$0xff]  ;;  %v16281_v54 = vld [vmem:[#allocation136_spill] sm:$0xff] }
 0x363   : > { %v12760_v5 = vpop.permute.xlu1 %2489  ;;  %v668_v10 = vadd.f32 %v642_v13, %v558_v27  ;;  %v756_v44 = vsel %vm15815_vm2, %v16277_v51, %v16279_v50  ;;  %v757_v40 = vsel %vm15815_vm2, %v16279_v50, %v16280_v58  ;;  %v754_v46 = vsel %vm15815_vm2, %v16281_v54, %v16278_v19  ;;  %v16283_v13 = vld [vmem:[#allocation135_spill] sm:$0xff]  ;;  %v16285_v50 = vld [vmem:[#allocation140_spill] sm:$0xff] }
 0x364   : > { %v674_v52 = vadd.f32 %v647_v38, %v564_v24  ;;  %v669_v14 = vadd.f32 %v643_v20, %v559_v34  ;;  %v565_v47 = vadd.f32 %v538_v4, %v441_v33  ;;  %v539_v27 = vsel %vm15809_vm0, %v16276_v48, %v16282_v11  ;;  %v16286_v48 = vld [vmem:[#allocation142_spill] sm:$0xff] }
 0x365   : > { %2858 = vrot.lane.b32.xlu0 %v12651_v35, %s10311_s13  ;;  %v782_v31 = vadd.f32 %v755_v55, %v672_v21  ;;  %v778_v39 = vadd.f32 %v752_v23, %v668_v10  ;;  %v864_v51 = vsel %vm15827_vm3, %v16284_v45, %v16283_v13  ;;  %v753_v19 = vsel %vm15815_vm2, %v11610_v9, %v16285_v50  ;;  %v16287_v21 = vld [vmem:[#allocation137_spill] sm:$0xff]  ;;  %v16288_v23 = vld [vmem:[#allocation144_spill] sm:$0xff]  ;;  %s10319_s13 = smov 113  }
 0x366   : > { %v12782_v54 = vpop.permute.xlu0 %2499  ;;  %v783_v35 = vadd.f32 %v756_v44, %v673_v43  ;;  %v784_v24 = vadd.f32 %v757_v40, %v674_v52  ;;  %v781_v34 = vadd.f32 %v754_v46, %v671_v56  ;;  %v567_v33 = vadd.f32 %v16282_v11, %v443_v59  ;;  %v16290_v44 = vld [vmem:[#allocation141_spill] sm:$0xff]  ;;  %v16291_v52 = vld [vmem:[#allocation148_spill] sm:$0xff]  ;;  %v16292_v11 = vld [vmem:[#allocation23_spill] sm:$0xff] }
 0x367   : > { %v12785_v38 = vpop.permute.xlu1 %2605  ;;  %v566_v20 = vadd.f32 %v539_v27, %v442_v6  ;;  %v865_v4 = vsel %vm15827_vm3, %v16283_v13, %v16286_v48  ;;  %v866_v55 = vsel %vm15827_vm3, %v16286_v48, %v16287_v21  ;;  %v867_v9 = vsel %vm15827_vm3, %v16287_v21, %v16288_v23  ;;  %v16289_v6 = vld [vmem:[#allocation146_spill] sm:$0xff]  ;;  %v16293_v13 = vld [vmem:[#allocation143_spill] sm:$0xff]  ;;  %v16295_v48 = vld [vmem:[#allocation145_spill] sm:$0xff] }
 0x368   : > { %v891_v56 = vadd.f32 %v864_v51, %v781_v34  ;;  %v779_v59 = vadd.f32 %v753_v19, %v669_v14  ;;  %v780_v43 = vadd.f32 %v16285_v50, %v670_v42  ;;  %v648_v10 = vsel %vm15808_vm1, %v16275_v49, %v16289_v6  ;;  %v16294_v34 = vld [vmem:[#allocation149_spill] sm:$0xff]  ;;  %v16296_v21 = vld [vmem:[#allocation150_spill] sm:$0xff] }
 0x369   : > { %2976 = vrot.lane.b32.xlu0 %v12655_v61, %s10312_s30  ;;  %v677_v40 = vadd.f32 %v16290_v44, %v567_v33  ;;  %v649_v46 = vsel %vm15808_vm1, %v16289_v6, %v16290_v44  ;;  %v862_v27 = vsel %vm15827_vm3, %v16292_v11, %v16291_v52  ;;  %v863_v61 = vsel %vm15827_vm3, %v16291_v52, %v16293_v13  ;;  %v16297_v44 = vld [vmem:[#allocation151_spill] sm:$0xff]  ;;  %v16298_v52 = vld [vmem:[#allocation28_spill] sm:$0xff] }
 0x36a   : > { %v12812_v14 = vpop.permute.xlu0 %2493  ;;  %v892_v42 = vadd.f32 %v865_v4, %v782_v31  ;;  %v893_v45 = vadd.f32 %v866_v55, %v783_v35  ;;  %v890_v49 = vadd.f32 %v16293_v13, %v780_v43  ;;  %v894_v51 = vadd.f32 %v867_v9, %v784_v24  ;;  %v16299_v24 = vld [vmem:[#allocation152_spill] sm:$0xff]  ;;  %v16301_v55 = vld [vmem:[#allocation5_spill] sm:$0xff] }
 0x36b   : > { %v12815_v50 = vpop.permute.xlu1 %2609  ;;  %v675_v19 = vadd.f32 %v648_v10, %v565_v47  ;;  %v758_v33 = vsel %vm15815_vm2, %v16280_v58, %v16294_v34  ;;  %v975_v6 = vsel %vm15829_vm4, %v16296_v21, %v16295_v48  ;;  %v972_v11 = vsel %vm15829_vm4, %v16298_v52, %v16297_v44 }
 0x36c   : > { %v676_v31 = vadd.f32 %v649_v46, %v566_v20  ;;  %v888_v35 = vadd.f32 %v862_v27, %v778_v39  ;;  %v889_v47 = vadd.f32 %v863_v61, %v779_v59  ;;  %v976_v58 = vsel %vm15829_vm4, %v16295_v48, %v16299_v24  ;;  %v16305_v20 = vld [vmem:[#allocation147_spill] sm:$0xff]  ;;  %v16306_v27 = vld [vmem:[#allocation154_spill] sm:$0xff]  ;;  %v16307_v48 = vld [vmem:[#allocation240_spill] sm:$0xff] }
 0x36d   : > { %10183 = vrot.lane.b32.xlu0 %v10182_v16, %s16261_s25  ;;  %v12836_v9 = vadd.s32 120, %v16301_v55  ;;  %v12839_v43 = vadd.s32 112, %v16301_v55  ;;  %v12842_v10 = vadd.s32 104, %v16301_v55  ;;  %v12844_v13 = vadd.f32 %v758_v33, %v675_v19  ;;  %v16308_v19 = vld [vmem:[#allocation241_spill] sm:$0xff] }
 0x36e   : > { %v12833_v4 = vpop.permute.xlu0 %2285  ;;  %v1002_v16 = vadd.f32 %v975_v6, %v892_v42  ;;  %v12846_v39 = vadd.f32 %v972_v11, %v888_v35  ;;  %v977_v59 = vsel %vm15829_vm4, %v16299_v24, %v16305_v20  ;;  %v974_v61 = vsel %vm15829_vm4, %v16306_v27, %v16296_v21  ;;  %v16310_v6 = vld [vmem:[#allocation156_spill] sm:$0xff]  ;;  %v16312_v21 = vld [vmem:[#allocation157_spill] sm:$0xff]  ;;  %v16313_v24 = vld [vmem:[#allocation158_spill] sm:$0xff] }
 0x36f   : > { %16300 = vst [vmem:[#allocation31_spill] sm:$0xff] %v12833_v4  ;;  %16302 = vst [vmem:[#allocation35_spill] sm:$0xff] %v12836_v9  ;;  %v12851_v46 = vpop.permute.xlu1 %2603  ;;  %vm3439_vm1 = vcmp.eq.s32.totalorder %v12836_v9, %v16307_v48  ;;  %vm3438_vm0 = vcmp.eq.s32.totalorder %v12836_v9, %v16308_v19  ;;  %v12863_v42 = vadd.s32 96, %v16301_v55  ;;  %v1003_v33 = vadd.f32 %v976_v58, %v893_v45 }
 0x370   : > { %16303 = vst [vmem:[#allocation44_spill] sm:$0xff] %v12839_v43  ;;  %16304 = vst [vmem:[#allocation27_spill] sm:$0xff] %v12842_v10  ;;  %v759_v52 = vsel %vm15815_vm2, %v16294_v34, %v16310_v6  ;;  %v15842_v11 = vmov 1.0   ;;  %vm3437_vm7 = vcmp.eq.s32.totalorder %v12839_v43, %v16307_v48  ;;  %vm3436_vm15 = vcmp.eq.s32.totalorder %v12839_v43, %v16308_v19 }
 0x371   : > { %2978 = vrot.lane.b32.xlu0 %v12664_v22, %s10312_s30  ;;  %16309 = vst [vmem:[#allocation36_spill] sm:$0xff] %v12863_v42  ;;  %9375 = vmatprep.subr.msk.mxu0 %vm3439_vm1, %v15842_v11  ;;  %v16311_v22 = vld [vmem:[#allocation153_spill] sm:$0xff]  ;;  %v973_v45 = vsel %vm15829_vm4, %v16297_v44, %v16313_v24  ;;  %vm3435_vm1 = vcmp.eq.s32.totalorder %v12842_v10, %v16307_v48  ;;  %v12885_v34 = vadd.s32 88, %v16301_v55  ;;  %s10317_s30 = smov 115  }
 0x372   : > { %v1084_v35 = vsel %vm1077_vm5, %v16312_v21, %v16311_v22  ;;  %v12879_v58 = vpop.permute.xlu0 %2491  ;;  %9376 = vmatpush1.msk.msra.mxu0 %vm3438_vm0, %v15842_v11  ;;  %v1004_v27 = vadd.f32 %v977_v59, %v894_v51  ;;  %v1001_v9 = vadd.f32 %v974_v61, %v891_v56  ;;  %v787_v7 = vadd.f32 %v16310_v6, %v677_v40  ;;  %v16316_v21 = vld [vmem:[#allocation160_spill] sm:$0xff]  ;;  %v16319_v61 = vld [vmem:[#allocation162_spill] sm:$0xff] }
 0x373   : > { %16314 = vst [vmem:[#allocation32_spill] sm:$0xff] %v12885_v34  ;;  %v12888_v17 = vpop.permute.xlu1 %2395  ;;  %9377 = vmatprep.subr.msk.mxu0 %vm3437_vm7, %v15842_v11  ;;  %vm3434_vm2 = vcmp.eq.s32.totalorder %v12842_v10, %v16308_v19  ;;  %v786_v44 = vadd.f32 %v759_v52, %v676_v31  ;;  %v1085_v60 = vsel %vm1077_vm5, %v16311_v22, %v16316_v21  ;;  %v12905_v56 = vadd.s32 80, %v16301_v55 }
 0x374   : > { %16315 = vst [vmem:[#allocation40_spill] sm:$0xff] %v12888_v17  ;;  %9378 = vmatpush1.msk.msra.mxu0 %vm3436_vm15, %v15842_v11  ;;  %vm3433_vm0 = vcmp.eq.s32.totalorder %v12863_v42, %v16307_v48  ;;  %v12907_v40 = vadd.f32 %v1084_v35, %v1001_v9  ;;  %v999_v51 = vadd.f32 %v973_v45, %v889_v47  ;;  %v16321_v47 = vld [vmem:[#allocation159_spill] sm:$0xff]  ;;  %v16322_v35 = vld [vmem:[#allocation164_spill] sm:$0xff]  ;;  %v16333_v17 = vld [vmem:[#allocation38_spill] sm:$0xff] }
 0x375   : > { %3096 = vrot.lane.b32.xlu0 %v12672_v15, %s16200_s14  ;;  %16317 = vst [vmem:[#allocation49_spill] sm:$0xff] %v12905_v56  ;;  %v1000_v31 = vadd.f32 %v16313_v24, %v890_v49  ;;  %9379 = vmatprep.subr.msk.mxu0 %vm3435_vm1, %v15842_v11  ;;  %vm3432_vm7 = vcmp.eq.s32.totalorder %v12863_v42, %v16308_v19  ;;  %v16318_v15 = vld [vmem:[#allocation155_spill] sm:$0xff]  ;;  %v12928_v49 = vadd.s32 72, %v16301_v55  ;;  %v16327_v42 = vld [vmem:[#allocation161_spill] sm:$0xff]  ;;  %s10316_s14 = smov 116  }
 0x376   : > { %v1086_v59 = vsel %vm1077_vm5, %v16316_v21, %v16318_v15  ;;  %v1087_v9 = vsel %vm1077_vm5, %v16318_v15, %v16319_v61  ;;  %v12922_v6 = vpop.permute.xlu0 %2607  ;;  %9380 = vmatpush1.msk.msra.mxu0 %vm3434_vm2, %v15842_v11  ;;  %vm3431_vm15 = vcmp.eq.s32.totalorder %v12885_v34, %v16307_v48  ;;  %v897_v52 = vadd.f32 %v16321_v47, %v787_v7  ;;  %v16324_v7 = vld [vmem:[#allocation166_spill] sm:$0xff] }
 0x377   : > { %16320 = vst [vmem:[#allocation45_spill] sm:$0xff] %v12928_v49  ;;  %v1112_v22 = vadd.f32 %v1085_v60, %v1002_v16  ;;  %v868_v24 = vsel %vm15827_vm3, %v16288_v23, %v16322_v35  ;;  %v12934_v45 = vpop.permute.xlu1 %2601  ;;  %9381 = vmatprep.subr.msk.mxu0 %vm3433_vm0, %v15842_v11  ;;  %vm3430_vm2 = vcmp.eq.s32.totalorder %v12885_v34, %v16308_v19  ;;  %v16325_v60 = vld [vmem:[#allocation33_spill] sm:$0xff]  ;;  %v12952_v23 = vadd.s32 64, %v16301_v55 }
 0x378   : > { %16323 = vst [vmem:[#allocation54_spill] sm:$0xff] %v12934_v45  ;;  %v869_v21 = vsel %vm15827_vm3, %v16322_v35, %v16321_v47  ;;  %v1082_v16 = vsel %vm1077_vm5, %v16325_v60, %v16324_v7  ;;  %9382 = vmatpush1.msk.msra.mxu0 %vm3432_vm7, %v15842_v11  ;;  %vm3429_vm1 = vcmp.eq.s32.totalorder %v12905_v56, %v16307_v48  ;;  %v16328_v35 = vld [vmem:[#allocation167_spill] sm:$0xff] }
 0x379   : > { %16326 = vst [vmem:[#allocation41_spill] sm:$0xff] %v12952_v23  ;;  %v1113_v15 = vadd.f32 %v1086_v59, %v1003_v33  ;;  %v1110_v10 = vadd.f32 %v16327_v42, %v1000_v31  ;;  %v1114_v43 = vadd.f32 %v1087_v9, %v1004_v27  ;;  %9383 = vmatprep.subr.msk.mxu0 %vm3431_vm15, %v15842_v11  ;;  %v12973_v27 = vadd.s32 56, %v16301_v55 }
 0x37a   : > { %vm3428_vm0 = vcmp.eq.s32.totalorder %v12905_v56, %v16308_v19  ;;  %v1083_v47 = vsel %vm1077_vm5, %v16324_v7, %v16327_v42  ;;  %v978_v60 = vsel %vm15829_vm4, %v16305_v20, %v16328_v35  ;;  %v12967_v33 = vpop.permute.xlu0 %2611  ;;  %9384 = vmatpush1.msk.msra.mxu0 %vm3430_vm2, %v15842_v11  ;;  %vm3427_vm7 = vcmp.eq.s32.totalorder %v12928_v49, %v16307_v48  ;;  %v16330_v20 = vld [vmem:[#allocation163_spill] sm:$0xff]  ;;  %v16331_v7 = vld [vmem:[#allocation168_spill] sm:$0xff] }
 0x37b   : > { %16329 = vst [vmem:[#allocation43_spill] sm:$0xff] %v12973_v27  ;;  %v895_v31 = vadd.f32 %v868_v24, %v12844_v13  ;;  %v896_v59 = vadd.f32 %v869_v21, %v786_v44  ;;  %v1108_v9 = vadd.f32 %v1082_v16, %v12846_v39  ;;  %v12977_v42 = vpop.permute.xlu1 %2728  ;;  %9385 = vmatprep.subr.msk.mxu0 %vm3429_vm1, %v15842_v11  ;;  %v12995_v39 = vadd.s32 48, %v16301_v55  ;;  %v16335_v21 = vld [vmem:[#allocation170_spill] sm:$0xff] }
 0x37c   : > { %vm3426_vm15 = vcmp.eq.s32.totalorder %v12928_v49, %v16308_v19  ;;  %v1195_v34 = vsel %vm1187_vm6, %v16331_v7, %v16330_v20  ;;  %v1192_v13 = vsel %vm1187_vm6, %v16333_v17, %v16332_v41  ;;  %9386 = vmatpush1.msk.msra.mxu0 %vm3428_vm0, %v15842_v11  ;;  %vm3425_vm2 = vcmp.eq.s32.totalorder %v12952_v23, %v16307_v48  ;;  %v16336_v17 = vld [vmem:[#allocation165_spill] sm:$0xff]  ;;  %v16340_v49 = vld [vmem:[#allocation174_spill] sm:$0xff] }
 0x37d   : > { %16334 = vst [vmem:[#allocation37_spill] sm:$0xff] %v12995_v39  ;;  %v1109_v44 = vadd.f32 %v1083_v47, %v999_v51  ;;  %v1005_v24 = vadd.f32 %v978_v60, %v895_v31  ;;  %v1196_v16 = vsel %vm1187_vm6, %v16330_v20, %v16335_v21  ;;  %9387 = vmatprep.subr.msk.mxu0 %vm3427_vm7, %v15842_v11  ;;  %v13018_v60 = vadd.s32 40, %v16301_v55 }
 0x37e   : > { %vm3424_vm1 = vcmp.eq.s32.totalorder %v12952_v23, %v16308_v19  ;;  %v1197_v56 = vsel %vm1187_vm6, %v16335_v21, %v16336_v17  ;;  %v1194_v51 = vsel %vm1187_vm6, %v16337_v2, %v16331_v7  ;;  %v13012_v47 = vpop.permute.xlu0 %2393  ;;  %9388 = vmatpush1.msk.msra.mxu0 %vm3426_vm15, %v15842_v11  ;;  %vm3423_vm0 = vcmp.eq.s32.totalorder %v12973_v27, %v16307_v48  ;;  %v16341_v7 = vld [vmem:[#allocation171_spill] sm:$0xff] }
 0x37f   : > { %16338 = vst [vmem:[#allocation50_spill] sm:$0xff] %v13012_v47  ;;  %16339 = vst [vmem:[#allocation59_spill] sm:$0xff] %v13018_v60  ;;  %v1222_v31 = vadd.f32 %v1195_v34, %v1112_v22  ;;  %v1218_v20 = vadd.f32 %v1192_v13, %v1108_v9  ;;  %v979_v21 = vsel %vm15829_vm4, %v16328_v35, %v16340_v49  ;;  %v13023_v4 = vpop.permute.xlu1 %2732  ;;  %9389 = vmatprep.subr.msk.mxu0 %vm3425_vm2, %v15842_v11  ;;  %v16342_v47 = vld [vmem:[#allocation175_spill] sm:$0xff]  ;;  %vm16343_vm15 = vcmask 793600  }
 0x380   : > { %vm3422_vm7 = vcmp.eq.s32.totalorder %v12973_v27, %v16308_v19  ;;  %v1223_v2 = vadd.f32 %v1196_v16, %v1113_v15  ;;  %v1304_v34 = vsel %vm16343_vm15, %v16342_v47, %v16341_v7  ;;  %9390 = vmatpush1.msk.msra.mxu0 %vm3424_vm1, %v15842_v11  ;;  %vm3421_vm3 = vcmp.eq.s32.totalorder %v12995_v39, %v16307_v48  ;;  %v16345_v16 = vld [vmem:[#allocation176_spill] sm:$0xff]  ;;  %v16357_v27 = vld [vmem:[#allocation182_spill] sm:$0xff] }
 0x381   : > { %v13038_v22 = vadd.s32 32, %v16301_v55  ;;  %v1224_v35 = vadd.f32 %v1197_v56, %v1114_v43  ;;  %v1221_v9 = vadd.f32 %v1194_v51, %v12907_v40  ;;  %v1007_v13 = vadd.f32 %v16340_v49, %v897_v52  ;;  %9391 = vmatprep.subr.msk.mxu0 %vm3423_vm0, %v15842_v11  ;;  %v16348_v40 = vld [vmem:[#allocation178_spill] sm:$0xff]  ;;  %vm16349_vm0 = vmmov %vm16343_vm15  ;;  %v16350_v52 = vld [vmem:[#allocation173_spill] sm:$0xff] }
 0x382   : > { %vm3420_vm2 = vcmp.eq.s32.totalorder %v12995_v39, %v16308_v19  ;;  %v1006_v15 = vadd.f32 %v979_v21, %v896_v59  ;;  %v1193_v47 = vsel %vm1187_vm6, %v16332_v41, %v16345_v16  ;;  %v13051_v23 = vpop.permute.xlu0 %2599  ;;  %9392 = vmatpush1.msk.msra.mxu0 %vm3422_vm7, %v15842_v11  ;;  %vm3419_vm1 = vcmp.eq.s32.totalorder %v13018_v60, %v16307_v48  ;;  %vm16351_vm15 = vmmov %vm16349_vm0  ;;  %v16353_v21 = vld [vmem:[#allocation180_spill] sm:$0xff] }
 0x383   : > { %16344 = vst [vmem:[#allocation46_spill] sm:$0xff] %v13038_v22  ;;  %16346 = vst [vmem:[#allocation48_spill] sm:$0xff] %v13051_v23  ;;  %v13057_v43 = vadd.s32 24, %v16301_v55  ;;  %v1331_v56 = vadd.f32 %v1304_v34, %v1221_v9  ;;  %v1305_v49 = vsel %vm16349_vm0, %v16341_v7, %v16348_v40  ;;  %v1306_v59 = vsel %vm16351_vm15, %v16348_v40, %v16350_v52  ;;  %v13065_v41 = vpop.permute.xlu1 %2503  ;;  %v16356_v40 = vld [vmem:[#allocation177_spill] sm:$0xff] }
 0x384   : > { %16352 = vst [vmem:[#allocation55_spill] sm:$0xff] %v13065_v41  ;;  %9393 = vmatprep.subr.msk.mxu0 %vm3421_vm3, %v15842_v11  ;;  %vm3418_vm7 = vcmp.eq.s32.totalorder %v13018_v60, %v16308_v19  ;;  %v1220_v51 = vadd.f32 %v16345_v16, %v1110_v10  ;;  %vm16354_vm4 = vmmov %vm16349_vm0  ;;  %vm3417_vm0 = vcmp.eq.s32.totalorder %v13038_v22, %v16307_v48  ;;  %v13081_v34 = vadd.s32 16, %v16301_v55  ;;  %v16369_v60 = vld [vmem:[#allocation183_spill] sm:$0xff]  ;;  %v16370_v55 = vld [vmem:[#allocation192_spill] sm:$0xff] }
 0x385   : > { %16347 = vst [vmem:[#allocation42_spill] sm:$0xff] %v13057_v43  ;;  %v1307_v7 = vsel %vm16354_vm4, %v16350_v52, %v16353_v21  ;;  %9394 = vmatpush1.msk.msra.mxu0 %vm3420_vm2, %v15842_v11  ;;  %v1219_v9 = vadd.f32 %v1193_v47, %v1109_v44  ;;  %v1117_v39 = vadd.f32 %v16356_v40, %v1007_v13  ;;  %v16358_v52 = vld [vmem:[#allocation179_spill] sm:$0xff]  ;;  %v16359_v13 = vld [vmem:[#allocation184_spill] sm:$0xff]  ;;  %vm16360_vm2 = vmmov %vm16351_vm15 }
 0x386   : > { %16355 = vst [vmem:[#allocation64_spill] sm:$0xff] %v13081_v34  ;;  %v1088_v41 = vsel %vm1077_vm5, %v16319_v61, %v16357_v27  ;;  %9395 = vmatprep.subr.msk.mxu0 %vm3419_vm1, %v15842_v11  ;;  %vm3416_vm3 = vcmp.eq.s32.totalorder %v13038_v22, %v16308_v19  ;;  %v1332_v10 = vadd.f32 %v1305_v49, %v1222_v31  ;;  %v13094_v45 = vpop.permute.xlu0 %2726  ;;  %vm16362_vm15 = vmmov %vm16360_vm2 }
 0x387   : > { %v1333_v16 = vadd.f32 %v1306_v59, %v1223_v2  ;;  %v1330_v0 = vadd.f32 %v16358_v52, %v1220_v51  ;;  %9396 = vmatpush1.msk.msra.mxu0 %vm3418_vm7, %v15842_v11  ;;  %vm3415_vm4 = vcmp.eq.s32.totalorder %v13057_v43, %v16307_v48  ;;  %v1334_v61 = vadd.f32 %v1307_v7, %v1224_v35  ;;  %v13105_v31 = vpop.permute.xlu1 %2718  ;;  %v16365_v59 = vld [vmem:[#allocation186_spill] sm:$0xff] }
 0x388   : > { %v1089_v44 = vsel %vm1077_vm5, %v16357_v27, %v16356_v40  ;;  %v1302_v47 = vsel %vm16360_vm2, %v16177_v53, %v16359_v13  ;;  %16361 = vst [vmem:[#allocation51_spill] sm:$0xff] %v13105_v31  ;;  %9397 = vmatprep.subr.msk.mxu0 %vm3417_vm0, %v15842_v11  ;;  %vm3414_vm1 = vcmp.eq.s32.totalorder %v13057_v43, %v16308_v19  ;;  %v16363_v27 = vld [vmem:[#allocation185_spill] sm:$0xff]  ;;  %v16367_v7 = vld [vmem:[#allocation190_spill] sm:$0xff]  ;;  %vm16373_vm0 = vcmask 588800  }
 0x389   : > { %v1115_v2 = vadd.f32 %v1088_v41, %v1005_v24  ;;  %v1303_v35 = vsel %vm16362_vm15, %v16359_v13, %v16358_v52  ;;  %v1198_v49 = vsel %vm1187_vm6, %v16336_v17, %v16363_v27  ;;  %9398 = vmatpush1.msk.msra.mxu0 %vm3416_vm3, %v15842_v11  ;;  %vm3413_vm5 = vcmp.eq.s32.totalorder %v13081_v34, %v16307_v48  ;;  %v16364_v53 = vld [vmem:[#allocation181_spill] sm:$0xff]  ;;  %v16366_v41 = vld [vmem:[#allocation187_spill] sm:$0xff]  ;;  %v16368_v13 = vld [vmem:[#allocation188_spill] sm:$0xff] }
 0x38a   : > { %v1415_v24 = vsel %vm1407_vm8, %v16365_v59, %v16364_v53  ;;  %v1412_v51 = vsel %vm1407_vm8, %v16182_v37, %v16366_v41  ;;  %v1414_v17 = vsel %vm1407_vm8, %v16367_v7, %v16365_v59  ;;  %9399 = vmatprep.subr.msk.mxu0 %vm3415_vm4, %v15842_v11  ;;  %vm3412_vm7 = vcmp.eq.s32.totalorder %v13081_v34, %v16308_v19  ;;  %v13143_v37 = vpop.permute.xlu0 %2730  ;;  %vm16379_vm3 = vmmov %vm16373_vm0  ;;  %v16396_v34 = vld [vmem:[#allocation58_spill] sm:$0xff]  ;;  %v16398_v19 = vld [vmem:[#allocation208_spill] sm:$0xff] }
 0x38b   : > { %v1116_v40 = vadd.f32 %v1089_v44, %v1006_v15  ;;  %v1328_v52 = vadd.f32 %v1302_v47, %v1218_v20  ;;  %v1416_v22 = vsel %vm1407_vm8, %v16364_v53, %v16368_v13  ;;  %v1417_v31 = vsel %vm1407_vm8, %v16368_v13, %v16369_v60  ;;  %9400 = vmatpush1.msk.msra.mxu0 %vm3414_vm1, %v15842_v11  ;;  %v16371_v15 = vld [vmem:[#allocation189_spill] sm:$0xff]  ;;  %v13155_v53 = vpop.permute.xlu1 %2846  ;;  %vm16381_vm4 = vmmov %vm16373_vm0 }
 0x38c   : > { %v1329_v59 = vadd.f32 %v1303_v35, %v1219_v9  ;;  %v1225_v7 = vadd.f32 %v1198_v49, %v1115_v2  ;;  %v1199_v20 = vsel %vm1187_vm6, %v16363_v27, %v16370_v55  ;;  %v16372_v44 = vld [vmem:[#allocation193_spill] sm:$0xff]  ;;  %16374 = vst [vmem:[#allocation47_spill] sm:$0xff] %v13155_v53  ;;  %9401 = vmatprep.subr.msk.mxu0 %vm3413_vm5, %v15842_v11  ;;  %v16375_v9 = vld [vmem:[#allocation194_spill] sm:$0xff]  ;;  %vm16377_vm6 = vmmov %vm16373_vm0 }
 0x38d   : > { %v1524_v47 = vsel %vm16373_vm0, %v16372_v44, %v16371_v15  ;;  %v1442_v13 = vadd.f32 %v1415_v24, %v1332_v10  ;;  %v1438_v43 = vadd.f32 %v1412_v51, %v1328_v52  ;;  %v1441_v23 = vadd.f32 %v1414_v17, %v1331_v56  ;;  %9402 = vmatpush1.msk.msra.mxu0 %vm3412_vm7, %v15842_v11  ;;  %v16376_v44 = vld [vmem:[#allocation196_spill] sm:$0xff]  ;;  %v16378_v56 = vld [vmem:[#allocation191_spill] sm:$0xff]  ;;  %vm16385_vm1 = vmmov %vm16360_vm2 }
 0x38e   : > { %v1413_v2 = vsel %vm1407_vm8, %v16366_v41, %v16375_v9  ;;  %v1443_v35 = vadd.f32 %v1416_v22, %v1333_v16  ;;  %v1444_v27 = vadd.f32 %v1417_v31, %v1334_v61  ;;  %v1227_v49 = vadd.f32 %v16370_v55, %v1117_v39  ;;  %v16380_v41 = vld [vmem:[#allocation198_spill] sm:$0xff]  ;;  %v13178_v52 = vpop.permute.xlu0 %2724  ;;  %v16382_v55 = vld [vmem:[#allocation195_spill] sm:$0xff]  ;;  %v16383_v61 = vld [vmem:[#allocation200_spill] sm:$0xff] }
 0x38f   : > { %v1525_v48 = vsel %vm16377_vm6, %v16371_v15, %v16376_v44  ;;  %v1226_v10 = vadd.f32 %v1199_v20, %v1116_v40  ;;  %v1551_v24 = vadd.f32 %v1524_v47, %v1441_v23  ;;  %v1526_v51 = vsel %vm16379_vm3, %v16376_v44, %v16378_v56  ;;  %v13185_v23 = vpop.permute.xlu1 %2850  ;;  %v16386_v15 = vld [vmem:[#allocation202_spill] sm:$0xff]  ;;  %v16387_v47 = vld [vmem:[#allocation53_spill] sm:$0xff]  ;;  %vm16388_vm15 = vmmov %vm16373_vm0 }
 0x390   : > { %v1527_v17 = vsel %vm16381_vm4, %v16378_v56, %v16380_v41  ;;  %v1439_v22 = vadd.f32 %v1413_v2, %v1329_v59  ;;  %v1440_v16 = vadd.f32 %v16375_v9, %v1330_v0  ;;  %v1337_v39 = vadd.f32 %v16382_v55, %v1227_v49  ;;  %16384 = vst [vmem:[#allocation60_spill] sm:$0xff] %v13185_v23  ;;  %v16389_v59 = vld [vmem:[#allocation197_spill] sm:$0xff]  ;;  %vm16390_vm5 = vmmov %vm16373_vm0  ;;  %v16392_v56 = vld [vmem:[#allocation199_spill] sm:$0xff] }
 0x391   : > { %v1308_v31 = vsel %vm16360_vm2, %v16353_v21, %v16383_v61  ;;  %v1552_v40 = vadd.f32 %v1525_v48, %v1442_v13  ;;  %v1309_v20 = vsel %vm16385_vm1, %v16383_v61, %v16382_v55  ;;  %v1522_v44 = vsel %vm16388_vm15, %v16387_v47, %v16386_v15  ;;  %v16391_v21 = vld [vmem:[#allocation203_spill] sm:$0xff]  ;;  %v16393_v11 = vld [vmem:[#allocation204_spill] sm:$0xff]  ;;  %v16395_v61 = vld [vmem:[#allocation205_spill] sm:$0xff] }
 0x392   : > { %v1523_v0 = vsel %vm16390_vm5, %v16386_v15, %v16389_v59  ;;  %v1553_v9 = vadd.f32 %v1526_v51, %v1443_v35  ;;  %v1550_v2 = vadd.f32 %v16389_v59, %v1440_v16  ;;  %v1554_v49 = vadd.f32 %v1527_v17, %v1444_v27  ;;  %v13209_v51 = vpop.permute.xlu0 %2505  ;;  %v16401_v15 = vld [vmem:[#allocation206_spill] sm:$0xff]  ;;  %v16404_v59 = vld [vmem:[#allocation201_spill] sm:$0xff] }
 0x393   : > { %v1418_v48 = vsel %vm1407_vm8, %v16369_v60, %v16391_v21  ;;  %v1335_v13 = vadd.f32 %v1308_v31, %v1225_v7  ;;  %vm16394_vm7 = vcmask 580608   ;;  %16400 = vst [vmem:[#allocation69_spill] sm:$0xff] %v13209_v51  ;;  %v1336_v27 = vadd.f32 %v1309_v20, %v1226_v10  ;;  %v13214_v7 = vpop.permute.xlu1 %2844  ;;  %v16406_v23 = vld [vmem:[#allocation210_spill] sm:$0xff]  ;;  %v16408_v51 = vld [vmem:[#allocation211_spill] sm:$0xff] }
 0x394   : > { %v1635_v55 = vsel %vm16394_vm7, %v16393_v11, %v16392_v56  ;;  %vm16397_vm0 = vmmov %vm16394_vm7  ;;  %v1548_v17 = vadd.f32 %v1522_v44, %v1438_v43  ;;  %v1549_v16 = vadd.f32 %v1523_v0, %v1439_v22  ;;  %16403 = vst [vmem:[#allocation52_spill] sm:$0xff] %v13214_v7  ;;  %vm16409_vm2 = vcmask 572416   ;;  %v16410_v44 = vld [vmem:[#allocation212_spill] sm:$0xff]  ;;  %v16414_v7 = vld [vmem:[#allocation209_spill] sm:$0xff] }
 0x395   : > { %v1632_v47 = vsel %vm16397_vm0, %v16396_v34, %v16395_v61  ;;  %vm16399_vm6 = vmmov %vm16397_vm0  ;;  %v1445_v31 = vadd.f32 %v1418_v48, %v1335_v13  ;;  %v1662_v10 = vadd.f32 %v1635_v55, %v1552_v40  ;;  %v1447_v13 = vadd.f32 %v16406_v23, %v1337_v39 }
 0x396   : > { %v1634_v35 = vsel %vm16399_vm6, %v16398_v19, %v16393_v11  ;;  %vm16402_vm3 = vmmov %vm16397_vm0  ;;  %v1419_v19 = vsel %vm1407_vm8, %v16391_v21, %v16406_v23  ;;  %v16407_v11 = vld [vmem:[#allocation207_spill] sm:$0xff]  ;;  %v1658_v22 = vadd.f32 %v1632_v47, %v1548_v17  ;;  %v13235_v53 = vpop.permute.xlu0 %2720  ;;  %v16417_v47 = vld [vmem:[#allocation216_spill] sm:$0xff]  ;;  %v1660_v23 = vadd.f32 %v16410_v44, %v1550_v2 }
 0x397   : > { %v1636_v60 = vsel %vm16402_vm3, %v16392_v56, %v16401_v15  ;;  %vm16405_vm4 = vmmov %vm16397_vm0  ;;  %v1744_v43 = vsel %vm16409_vm2, %v16408_v51, %v16407_v11  ;;  %v1661_v20 = vadd.f32 %v1634_v35, %v1551_v24  ;;  %v16412_v56 = vld [vmem:[#allocation214_spill] sm:$0xff]  ;;  %16416 = vst [vmem:[#allocation65_spill] sm:$0xff] %v13235_v53  ;;  %v1446_v55 = vadd.f32 %v1419_v19, %v1336_v27  ;;  %v16420_v35 = vld [vmem:[#allocation213_spill] sm:$0xff] }
 0x398   : > { %v1637_v34 = vsel %vm16405_vm4, %v16401_v15, %v16404_v59  ;;  %vm16411_vm1 = vmmov %vm16397_vm0  ;;  %v1663_v48 = vadd.f32 %v1636_v60, %v1553_v9  ;;  %v13240_v9 = vpop.permute.xlu1 %2615  ;;  %v1557_v51 = vadd.f32 %v16420_v35, %v1447_v13  ;;  %v16421_v17 = vld [vmem:[#allocation218_spill] sm:$0xff]  ;;  %vm16422_vm7 = vcmask 588800   ;;  %v16424_v27 = vld [vmem:[#allocation220_spill] sm:$0xff] }
 0x399   : > { %v1633_v0 = vsel %vm16411_vm1, %v16395_v61, %v16410_v44  ;;  %vm16413_vm15 = vmmov %vm16409_vm2  ;;  %v1664_v40 = vadd.f32 %v1637_v34, %v1554_v49  ;;  %v1771_v24 = vadd.f32 %v1744_v43, %v1661_v20  ;;  %16419 = vst [vmem:[#allocation74_spill] sm:$0xff] %v13240_v9  ;;  %v1528_v60 = vsel %vm16422_vm7, %v16380_v41, %v16421_v17  ;;  %v16425_v34 = vld [vmem:[#allocation63_spill] sm:$0xff]  ;;  %v16429_v20 = vld [vmem:[#allocation221_spill] sm:$0xff] }
 0x39a   : > { %v1745_v15 = vsel %vm16413_vm15, %v16407_v11, %v16412_v56  ;;  %vm16415_vm8 = vmmov %vm16409_vm2  ;;  %v1659_v39 = vadd.f32 %v1633_v0, %v1549_v16  ;;  %v16427_v19 = vld [vmem:[#allocation215_spill] sm:$0xff]  ;;  %v1555_v44 = vadd.f32 %v1528_v60, %v1445_v31  ;;  %v16432_v0 = vld [vmem:[#allocation217_spill] sm:$0xff] }
 0x39b   : > { %v1746_v21 = vsel %vm16415_vm8, %v16412_v56, %v16414_v7  ;;  %vm16418_vm5 = vmmov %vm16409_vm2  ;;  %v1772_v11 = vadd.f32 %v1745_v15, %v1662_v10  ;;  %v1770_v16 = vadd.f32 %v16427_v19, %v1660_v23  ;;  %v13260_v10 = vpop.permute.xlu0 %2848  ;;  %v16434_v15 = vld [vmem:[#allocation223_spill] sm:$0xff]  ;;  %v16440_v53 = vld [vmem:[#allocation228_spill] sm:$0xff] }
 0x39c   : > { %v1747_v61 = vsel %vm16418_vm5, %v16414_v7, %v16417_v47  ;;  %v1773_v56 = vadd.f32 %v1746_v21, %v1663_v48  ;;  %vm16423_vm0 = vmmov %vm16422_vm7  ;;  %16431 = vst [vmem:[#allocation56_spill] sm:$0xff] %v13260_v10  ;;  %v16433_v48 = vld [vmem:[#allocation222_spill] sm:$0xff]  ;;  %v16435_v21 = vld [vmem:[#allocation68_spill] sm:$0xff] }
 0x39d   : > { %v1529_v49 = vsel %vm16423_vm0, %v16421_v17, %v16420_v35  ;;  %vm16426_vm6 = vmmov %vm16409_vm2  ;;  %v1774_v43 = vadd.f32 %v1747_v61, %v1664_v40  ;;  %v1855_v13 = vsel %vm1847_vm12, %v16433_v48, %v16432_v0  ;;  %v1852_v23 = vsel %vm1847_vm12, %v16435_v21, %v16434_v15  ;;  %v16436_v40 = vld [vmem:[#allocation226_spill] sm:$0xff]  ;;  %v13271_v35 = vpop.permute.xlu1 %2838  ;;  %v16439_v60 = vld [vmem:[#allocation219_spill] sm:$0xff] }
 0x39e   : > { %v1742_v7 = vsel %vm16426_vm6, %v16425_v34, %v16424_v27  ;;  %vm16428_vm3 = vmmov %vm16409_vm2  ;;  %v1854_v61 = vsel %vm1847_vm12, %v16436_v40, %v16433_v48  ;;  %16437 = vst [vmem:[#allocation57_spill] sm:$0xff] %v13271_v35  ;;  %v1556_v17 = vadd.f32 %v1529_v49, %v1446_v55  ;;  %v16442_v10 = vld [vmem:[#allocation225_spill] sm:$0xff]  ;;  %v1882_v55 = vadd.f32 %v1855_v13, %v1772_v11  ;;  %v16450_v13 = vld [vmem:[#allocation227_spill] sm:$0xff] }
 0x39f   : > { %v1743_v2 = vsel %vm16428_vm3, %v16424_v27, %v16427_v19  ;;  %vm16430_vm4 = vmmov %vm16411_vm1  ;;  %v1768_v27 = vadd.f32 %v1742_v7, %v1658_v22  ;;  %v16443_v48 = vld [vmem:[#allocation229_spill] sm:$0xff]  ;;  %v1881_v49 = vadd.f32 %v1854_v61, %v1771_v24  ;;  %v16445_v7 = vld [vmem:[#allocation230_spill] sm:$0xff]  ;;  %v13288_v35 = vpop.permute.xlu0 %2852 }
 0x3a0   : > { %v1638_v41 = vsel %vm16430_vm4, %v16404_v59, %v16429_v20  ;;  %v16438_v59 = vld [vmem:[#allocation224_spill] sm:$0xff]  ;;  %v1769_v19 = vadd.f32 %v1743_v2, %v1659_v39  ;;  %vm16441_vm2 = vmmov %vm16411_vm1  ;;  %vm16444_vm1 = vcmask 556032   ;;  %16446 = vst [vmem:[#allocation70_spill] sm:$0xff] %v13288_v35  ;;  %v1667_v2 = vadd.f32 %v16440_v53, %v1557_v51  ;;  %v16480_v35 = vld [vmem:[#allocation9_spill] sm:$0xff] }
 0x3a1   : > { %v1856_v31 = vsel %vm1847_vm12, %v16432_v0, %v16438_v59  ;;  %v1857_v34 = vsel %vm1847_vm12, %v16438_v59, %v16439_v60  ;;  %v1665_v9 = vadd.f32 %v1638_v41, %v1555_v44  ;;  %v1639_v21 = vsel %vm16441_vm2, %v16429_v20, %v16440_v53  ;;  %v16447_v41 = vld [vmem:[#allocation232_spill] sm:$0xff]  ;;  %vm16448_vm15 = vmmov %vm16444_vm1  ;;  %v13294_v44 = vpop.permute.xlu1 %2966  ;;  %v16454_v53 = vld [vmem:[#allocation231_spill] sm:$0xff] }
 0x3a2   : > { %v1964_v40 = vsel %vm16444_vm1, %v16443_v48, %v16442_v10  ;;  %v1878_v22 = vadd.f32 %v1852_v23, %v1768_v27  ;;  %v1853_v0 = vsel %vm1847_vm12, %v16434_v15, %v16445_v7  ;;  %v1883_v59 = vadd.f32 %v1856_v31, %v1773_v56  ;;  %16449 = vst [vmem:[#allocation79_spill] sm:$0xff] %v13294_v44  ;;  %vm16451_vm8 = vmmov %vm16444_vm1  ;;  %v16452_v23 = vld [vmem:[#allocation234_spill] sm:$0xff]  ;;  %v16455_v61 = vld [vmem:[#allocation236_spill] sm:$0xff] }
 0x3a3   : > { %v1884_v39 = vadd.f32 %v1857_v34, %v1774_v43  ;;  %v1965_v20 = vsel %vm16448_vm15, %v16442_v10, %v16447_v41  ;;  %v1666_v48 = vadd.f32 %v1639_v21, %v1556_v17  ;;  %v1991_v11 = vadd.f32 %v1964_v40, %v1881_v49  ;;  %vm16453_vm5 = vmmov %vm16444_vm1  ;;  %v16458_v31 = vld [vmem:[#allocation238_spill] sm:$0xff]  ;;  %v16459_v34 = vld [vmem:[#allocation73_spill] sm:$0xff] }
 0x3a4   : > { %v1966_v24 = vsel %vm16451_vm8, %v16447_v41, %v16450_v13  ;;  %v1967_v15 = vsel %vm16453_vm5, %v16450_v13, %v16452_v23  ;;  %v1879_v56 = vadd.f32 %v1853_v0, %v1769_v19  ;;  %v1880_v43 = vadd.f32 %v16445_v7, %v1770_v16  ;;  %vm16456_vm7 = vmmov %vm16428_vm3  ;;  %v16461_v40 = vld [vmem:[#allocation233_spill] sm:$0xff]  ;;  %v13316_v16 = vpop.permute.xlu0 %2613  ;;  %v16467_v13 = vld [vmem:[#allocation242_spill] sm:$0xff] }
 0x3a5   : > { %v1777_v51 = vadd.f32 %v16454_v53, %v1667_v2  ;;  %v1748_v10 = vsel %vm16456_vm7, %v16417_v47, %v16455_v61  ;;  %v1992_v27 = vadd.f32 %v1965_v20, %v1882_v55  ;;  %vm16457_vm0 = vmmov %vm16428_vm3  ;;  %16463 = vst [vmem:[#allocation61_spill] sm:$0xff] %v13316_v16  ;;  %v1993_v49 = vadd.f32 %v1966_v24, %v1883_v59  ;;  %v16464_v47 = vld [vmem:[#allocation239_spill] sm:$0xff]  ;;  %v13322_v2 = vpop.permute.xlu1 %2970  ;;  %v16472_v59 = vld [vmem:[#allocation8_spill] sm:$0xff] }
 0x3a6   : > { %v1749_v17 = vsel %vm16457_vm0, %v16455_v61, %v16454_v53  ;;  %vm16460_vm6 = vmmov %vm16444_vm1  ;;  %v1990_v7 = vadd.f32 %v16461_v40, %v1880_v43  ;;  %v1994_v0 = vadd.f32 %v1967_v15, %v1884_v39  ;;  %v1858_v55 = vsel %vm1847_vm12, %v16439_v60, %v16464_v47  ;;  %16465 = vst [vmem:[#allocation62_spill] sm:$0xff] %v13322_v2  ;;  %v16466_v20 = vld [vmem:[#allocation235_spill] sm:$0xff]  ;;  %v16478_v2 = vld [vmem:[#allocation10_spill] sm:$0xff] }
 0x3a7   : > { %v1962_v21 = vsel %vm16460_vm6, %v16459_v34, %v16458_v31  ;;  %vm16462_vm3 = vmmov %vm16444_vm1  ;;  %v1775_v41 = vadd.f32 %v1748_v10, %v1665_v9  ;;  %vm16468_vm4 = vcmask 359424   ;;  %v16469_v61 = vld [vmem:[#allocation243_spill] sm:$0xff]  ;;  %v16470_v34 = vld [vmem:[#allocation78_spill] sm:$0xff]  ;;  %v1776_v39 = vadd.f32 %v1749_v17, %v1666_v48 }
 0x3a8   : > { %v1963_v19 = vsel %vm16462_vm3, %v16458_v31, %v16461_v40  ;;  %v2075_v53 = vsel %vm16468_vm4, %v16467_v13, %v16466_v20  ;;  %vm16471_vm2 = vmmov %vm16468_vm4  ;;  %v1988_v15 = vadd.f32 %v1962_v21, %v1878_v22  ;;  %v16474_v40 = vld [vmem:[#allocation7_spill] sm:$0xff]  ;;  %v16476_v10 = vld [vmem:[#allocation237_spill] sm:$0xff]  ;;  %vm16481_vm5 = vcmask 351232   ;;  %v13345_v48 = vpop.permute.xlu0 %2722 }
 0x3a9   : > { %v2072_v31 = vsel %vm16471_vm2, %v16470_v34, %v16469_v61  ;;  %vm16473_vm1 = vmmov %vm16471_vm2  ;;  %v1989_v43 = vadd.f32 %v1963_v19, %v1879_v56  ;;  %v1885_v9 = vadd.f32 %v1858_v55, %v1775_v41  ;;  %v1859_v34 = vsel %vm1847_vm12, %v16464_v47, %v16478_v2  ;;  %v16479_v44 = vld [vmem:[#allocation6_spill] sm:$0xff]  ;;  %16482 = vst [vmem:[#allocation75_spill] sm:$0xff] %v13345_v48  ;;  %v16483_v21 = vld [vmem:[#allocation11_spill] sm:$0xff]  ;;  %v13350_v55 = vpop.permute.xlu1 %2964 }
 0x3aa   : > { %v2074_v24 = vsel %vm16473_vm1, %v16472_v59, %v16467_v13  ;;  %vm16475_vm15 = vmmov %vm16473_vm1  ;;  %v2184_v13 = vsel %vm16481_vm5, %v16480_v35, %v16479_v44  ;;  %v2102_v22 = vadd.f32 %v2075_v53, %v1992_v27  ;;  %v2098_v56 = vadd.f32 %v2072_v31, %v1988_v15  ;;  %v16485_v59 = vld [vmem:[#allocation12_spill] sm:$0xff]  ;;  %v16490_v48 = vld [vmem:[#allocation15_spill] sm:$0xff] }
 0x3ab   : > { %v2076_v60 = vsel %vm16475_vm15, %v16466_v20, %v16474_v40  ;;  %vm16477_vm8 = vmmov %vm16473_vm1  ;;  %v2101_v17 = vadd.f32 %v2074_v24, %v1991_v11  ;;  %v1887_v20 = vadd.f32 %v16478_v2, %v1777_v51  ;;  %v1886_v53 = vadd.f32 %v1859_v34, %v1776_v39  ;;  %v16498_v34 = vld [vmem:[#allocation16_spill] sm:$0xff] }
 0x3ac   : > { %v2077_v16 = vsel %vm16477_vm8, %v16474_v40, %v16476_v10  ;;  %vm16484_vm7 = vmmov %vm16473_vm1  ;;  %v2103_v41 = vadd.f32 %v2076_v60, %v1993_v49  ;;  %v16487_v40 = vld [vmem:[#allocation14_spill] sm:$0xff]  ;;  %v2100_v31 = vadd.f32 %v16483_v21, %v1990_v7  ;;  %v16492_v49 = vld [vmem:[#allocation13_spill] sm:$0xff]  ;;  %v13367_v2 = vpop.permute.xlu0 %2840  ;;  %vm16504_vm8 = vcmask 343040  }
 0x3ad   : > { %v2073_v19 = vsel %vm16484_vm7, %v16469_v61, %v16483_v21  ;;  %vm16486_vm12 = vmmov %vm16481_vm5  ;;  %v2104_v27 = vadd.f32 %v2077_v16, %v1994_v0  ;;  %v2211_v11 = vadd.f32 %v2184_v13, %v2101_v17  ;;  %v16489_v61 = vld [vmem:[#allocation20_spill] sm:$0xff]  ;;  %v16494_v7 = vld [vmem:[#allocation21_spill] sm:$0xff] }
 0x3ae   : > { %v2185_v47 = vsel %vm16486_vm12, %v16479_v44, %v16485_v59  ;;  %vm16488_vm0 = vmmov %vm16481_vm5  ;;  %v2099_v24 = vadd.f32 %v2073_v19, %v1989_v43  ;;  %v1997_v15 = vadd.f32 %v16489_v61, %v1887_v20  ;;  %v1968_v44 = vsel %vm16462_vm3, %v16452_v23, %v16492_v49  ;;  %v16495_v0 = vld [vmem:[#allocation83_spill] sm:$0xff]  ;;  %v13375_v43 = vpop.permute.xlu1 %2736  ;;  %v16500_v17 = vld [vmem:[#allocation17_spill] sm:$0xff] }
 0x3af   : > { %v2186_v35 = vsel %vm16488_vm0, %v16485_v59, %v16487_v40  ;;  %vm16491_vm6 = vmmov %vm16488_vm0  ;;  %v2212_v60 = vadd.f32 %v2185_v47, %v2102_v22  ;;  %16497 = vst [vmem:[#allocation84_spill] sm:$0xff] %v13375_v43  ;;  %v2210_v13 = vadd.f32 %v16498_v34, %v2100_v31  ;;  %v16502_v21 = vld [vmem:[#allocation25_spill] sm:$0xff]  ;;  %v16503_v19 = vld [vmem:[#allocation19_spill] sm:$0xff]  ;;  %v1995_v47 = vadd.f32 %v1968_v44, %v1885_v9 }
 0x3b0   : > { %v2187_v51 = vsel %vm16491_vm6, %v16487_v40, %v16490_v48  ;;  %v2213_v59 = vadd.f32 %v2186_v35, %v2103_v41  ;;  %vm16493_vm4 = vmmov %vm16462_vm3  ;;  %v2295_v41 = vsel %vm16504_vm8, %v16503_v19, %v16502_v21  ;;  %v16505_v40 = vld [vmem:[#allocation30_spill] sm:$0xff]  ;;  %v16506_v35 = vld [vmem:[#allocation88_spill] sm:$0xff] }
 0x3b1   : > { %v1969_v16 = vsel %vm16493_vm4, %v16492_v49, %v16489_v61  ;;  %vm16496_vm2 = vmmov %vm16488_vm0  ;;  %v2214_v20 = vadd.f32 %v2187_v51, %v2104_v27  ;;  %v16508_v49 = vld [vmem:[#allocation24_spill] sm:$0xff]  ;;  %v13399_v27 = vpop.permute.xlu0 %2968  ;;  %v2322_v44 = vadd.f32 %v2295_v41, %v2212_v60  ;;  %v2107_v60 = vadd.f32 %v12549_v62, %v1997_v15 }
 0x3b2   : > { %v2182_v39 = vsel %vm16496_vm2, %v16495_v0, %v16494_v7  ;;  %vm16499_vm1 = vmmov %vm16488_vm0  ;;  %v1996_v0 = vadd.f32 %v1969_v16, %v1886_v53  ;;  %v16514_v16 = vld [vmem:[#allocation34_spill] sm:$0xff] }
 0x3b3   : > { %v2183_v23 = vsel %vm16499_vm1, %v16494_v7, %v16498_v34  ;;  %vm16501_vm15 = vmmov %vm16484_vm7  ;;  %v2208_v7 = vadd.f32 %v2182_v39, %v2098_v56  ;;  %v16510_v34 = vld [vmem:[#allocation18_spill] sm:$0xff]  ;;  %v2404_v39 = vsel %vm2397_vm9, %v12554_v32, %v16514_v16  ;;  %v2407_v32 = vsel %vm2397_vm9, %v12518_v57, %v12640_v28 }
 0x3b4   : > { %v2078_v22 = vsel %vm16501_vm15, %v16476_v10, %v16500_v17  ;;  %vm16507_vm5 = vmmov %vm16504_vm8  ;;  %v2209_v9 = vadd.f32 %v2183_v23, %v2099_v24  ;;  %v2405_v23 = vsel %vm2397_vm9, %v16514_v16, %v12605_v12 }
 0x3b5   : > { %v2292_v61 = vsel %vm16507_vm5, %v16506_v35, %v16505_v40  ;;  %vm16509_vm7 = vmmov %vm16507_vm5  ;;  %v2105_v51 = vadd.f32 %v2078_v22, %v1995_v47  ;;  %v16518_v47 = vld [vmem:[#allocation93_spill] sm:$0xff] }
 0x3b6   : > { %v2296_v31 = vsel %vm16509_vm7, %v16502_v21, %v16508_v49  ;;  %vm16511_vm12 = vmmov %vm16507_vm5  ;;  %v13404_v21 = vpop.permute.xlu1 %2958  ;;  %v2318_v56 = vadd.f32 %v2292_v61, %v2208_v7 }
 0x3b7   : > { %v2297_v10 = vsel %vm16511_vm12, %v16508_v49, %v16510_v34  ;;  %vm16512_vm0 = vmmov %vm16507_vm5  ;;  %v2323_v53 = vadd.f32 %v2296_v31, %v2213_v59  ;;  %v2406_v59 = vsel %vm2397_vm9, %v12605_v12, %v12518_v57  ;;  %v13434_v12 = vadd.f32 %v12587_v8, %v2107_v60 }
 0x3b8   : > { %v2294_v43 = vsel %vm16512_vm0, %v12513_v25, %v16503_v19  ;;  %vm16513_vm6 = vmmov %vm16501_vm15  ;;  %v2324_v19 = vadd.f32 %v2297_v10, %v2214_v20  ;;  %v2432_v57 = vadd.f32 %v2405_v23, %v2322_v44  ;;  %v2516_v31 = vsel %vm2507_vm10, %v12647_v30, %v12782_v54  ;;  %v16519_v10 = vld [vmem:[#allocation97_spill] sm:$0xff] }
 0x3b9   : > { %v2079_v35 = vsel %vm16513_vm6, %v16500_v17, %v12549_v62  ;;  %vm16515_vm3 = vmmov %vm16512_vm0  ;;  %v2321_v24 = vadd.f32 %v2294_v43, %v2211_v11  ;;  %v13425_v11 = vpop.permute.xlu0 %2972  ;;  %v2320_v43 = vadd.f32 %v12574_v63, %v2210_v13  ;;  %v2433_v61 = vadd.f32 %v2406_v59, %v2323_v53  ;;  %v16521_v59 = vld [vmem:[#allocation56_spill] sm:$0xff] }
 0x3ba   : > { %v2293_v25 = vsel %vm16515_vm3, %v16505_v40, %v12574_v63  ;;  %v2106_v17 = vadd.f32 %v2079_v35, %v1996_v0  ;;  %vm16516_vm4 = vmmov %vm16499_vm1  ;;  %v13431_v20 = vpop.permute.xlu1 %3086  ;;  %v2403_v40 = vsel %vm2397_vm9, %v12721_v1, %v12618_v3  ;;  %v2434_v13 = vadd.f32 %v2407_v32, %v2324_v19  ;;  %v16522_v32 = vld [vmem:[#allocation47_spill] sm:$0xff] }
 0x3bb   : > { %v2188_v22 = vsel %vm16516_vm4, %v16490_v48, %v12682_v26  ;;  %v2431_v62 = vadd.f32 %v2404_v39, %v2321_v24  ;;  %v2319_v15 = vadd.f32 %v2293_v25, %v2209_v9  ;;  %vm16517_vm2 = vmmov %vm16499_vm1  ;;  %v2402_v48 = vsel %vm2397_vm9, %v16518_v47, %v12721_v1 }
 0x3bc   : > { %v2189_v41 = vsel %vm16517_vm2, %v12682_v26, %v12587_v8  ;;  %v13443_v63 = vadd.f32 %v12618_v3, %v2320_v43  ;;  %v13445_v26 = vadd.f32 %v2188_v22, %v2105_v51  ;;  %v2515_v8 = vsel %vm2507_vm10, %v12752_v36, %v12647_v30  ;;  %vm16520_vm1 = vmmov %vm16512_vm0 }
 0x3bd   : > { %v13447_v49 = vadd.f32 %v2189_v41, %v2106_v17  ;;  %v2514_v1 = vsel %vm2507_vm10, %v12812_v14, %v12752_v36  ;;  %v13458_v0 = vpop.permute.xlu0 %2734  ;;  %v2428_v3 = vadd.f32 %v2402_v48, %v2318_v56  ;;  %v13460_v7 = vadd.f32 %v2403_v40, %v2319_v15  ;;  %v16524_v15 = vld [vmem:[#allocation101_spill] sm:$0xff]  ;;  %v16528_v40 = vld [vmem:[#allocation79_spill] sm:$0xff] }
 0x3be   : > { %v2512_v9 = vsel %vm2507_vm10, %v16519_v10, %v12760_v5  ;;  %v2517_v51 = vsel %vm2507_vm10, %v12782_v54, %v12692_v29  ;;  %v13468_v44 = vpop.permute.xlu1 %3090  ;;  %v13473_v30 = vsel %vm16520_vm1, %v16510_v34, %v12728_v18  ;;  %v2624_v36 = vsel %vm2617_vm11, %v12851_v46, %v12785_v38 }
 0x3bf   : > { %v2625_v14 = vsel %vm2617_vm11, %v12785_v38, %v12922_v6  ;;  %v2626_v35 = vsel %vm2617_vm11, %v12922_v6, %v12815_v50  ;;  %v2542_v54 = vadd.f32 %v2515_v8, %v2432_v57  ;;  %v2543_v56 = vadd.f32 %v2516_v31, %v2433_v61  ;;  %v16525_v57 = vld [vmem:[#allocation60_spill] sm:$0xff]  ;;  %v16530_v8 = vld [vmem:[#allocation5_spill] sm:$0xff] }
 0x3c0   : > { %v2541_v53 = vadd.f32 %v2514_v1, %v2431_v62  ;;  %v2627_v34 = vsel %vm2617_vm11, %v12815_v50, %v12967_v33  ;;  %v13487_v16 = vadd.f32 %v2512_v9, %v2428_v3  ;;  %v2544_v39 = vadd.f32 %v2517_v51, %v2434_v13  ;;  %v16523_v62 = vld [vmem:[#allocation48_spill] sm:$0xff]  ;;  %v16532_v9 = vld [vmem:[#allocation62_spill] sm:$0xff] }
 0x3c1   : > { %v2749_v46 = vsel %vm2740_vm14, %v13094_v45, %v12977_v42  ;;  %v2750_v38 = vsel %vm2740_vm14, %v12977_v42, %v13143_v37  ;;  %v13495_v25 = vpop.permute.xlu0 %2842  ;;  %v13500_v19 = vsel %vm2507_vm10, %v12760_v5, %v12879_v58  ;;  %v2652_v50 = vadd.f32 %v2625_v14, %v2542_v54  ;;  %v16535_v54 = vld [vmem:[#allocation241_spill] sm:$0xff] }
 0x3c2   : > { %v2651_v6 = vadd.f32 %v2624_v36, %v2541_v53  ;;  %v2653_v24 = vadd.f32 %v2626_v35, %v2543_v56  ;;  %v3085_v60 = vpop.permute.xlu1 %3084  ;;  %v2654_v23 = vadd.f32 %v2627_v34, %v2544_v39  ;;  %v2751_v17 = vsel %vm2740_vm14, %v13143_v37, %v13023_v4  ;;  %v16526_v37 = vld [vmem:[#allocation52_spill] sm:$0xff] }
 0x3c3   : > { %v2748_v42 = vsel %vm2740_vm14, %v13178_v52, %v13094_v45  ;;  %v2869_v22 = vsel %vm2860_vm13, %v16522_v32, %v16521_v59  ;;  %v13514_v5 = vsel %vm2617_vm11, %v16524_v15, %v16523_v62  ;;  %v2777_v43 = vadd.f32 %v2749_v46, %v2652_v50  ;;  %v16527_v45 = vld [vmem:[#allocation70_spill] sm:$0xff]  ;;  %v16534_v35 = vld [vmem:[#allocation240_spill] sm:$0xff] }
 0x3c4   : > { %v2778_v41 = vadd.f32 %v2750_v38, %v2653_v24  ;;  %v2870_v47 = vsel %vm2860_vm13, %v16521_v59, %v16525_v57  ;;  %v2868_v48 = vsel %vm2860_vm13, %v16526_v37, %v16522_v32  ;;  %v2871_v52 = vsel %vm2860_vm13, %v16525_v57, %v16527_v45 }
 0x3c5   : > { %vm16529_vm15 = vcmask 105472   ;;  %v13528_v13 = vpop.permute.xlu0 %2960  ;;  %v13531_v31 = vadd.s32 8, %v16530_v8  ;;  %v2779_v1 = vadd.f32 %v2751_v17, %v2654_v23  ;;  %v2776_v3 = vadd.f32 %v2748_v42, %v2651_v6 }
 0x3c6   : > { %v2989_v61 = vsel %vm16529_vm15, %v16528_v40, %v13399_v27  ;;  %v2897_v10 = vadd.f32 %v2869_v22, %v2777_v43  ;;  %vm16533_vm8 = vmmov %vm16529_vm15  ;;  %v13536_v36 = vpop.permute.xlu1 %2854  ;;  %v2898_v14 = vadd.f32 %v2870_v47, %v2778_v41  ;;  %vm3409_vm12 = vcmp.eq.s32.totalorder %v16530_v8, %v16534_v35 }
 0x3c7   : > { %16531 = vst [vmem:[#allocation66_spill] sm:$0xff] %v13531_v31  ;;  %v2990_v51 = vsel %vm16533_vm8, %v13399_v27, %v16532_v9  ;;  %vm3411_vm5 = vcmp.eq.s32.totalorder %v13531_v31, %v16534_v35  ;;  %vm3410_vm7 = vcmp.eq.s32.totalorder %v13531_v31, %v16535_v54  ;;  %v2896_v56 = vadd.f32 %v2868_v48, %v2776_v3  ;;  %vm16537_vm6 = vmmov %vm16533_vm8  ;;  %v16545_v3 = vld [vmem:[#allocation107_spill] sm:$0xff] }
 0x3c8   : > { %v2899_v53 = vadd.f32 %v2871_v52, %v2779_v1  ;;  %v3017_v34 = vadd.f32 %v2989_v61, %v2897_v10  ;;  %v16536_v39 = vmov 1.0   ;;  %vm3408_vm0 = vcmp.eq.s32.totalorder %v16530_v8, %v16535_v54  ;;  %vm16538_vm3 = vmmov %vm16537_vm6  ;;  %v16544_v1 = vld [vmem:[#allocation51_spill] sm:$0xff] }
 0x3c9   : > { %9403 = vmatprep.subr.msk.mxu0 %vm3411_vm5, %v16536_v39  ;;  %v3018_v27 = vadd.f32 %v2990_v51, %v2898_v14  ;;  %v3089_v46 = vpop.permute.xlu0 %3088  ;;  %v3335_v38 = vadd.s32 248, %v16530_v8  ;;  %v3334_v6 = vadd.s32 240, %v16530_v8  ;;  %v3333_v50 = vadd.s32 232, %v16530_v8  ;;  %v16546_v51 = vld [vmem:[#allocation65_spill] sm:$0xff] }
 0x3ca   : > { %9404 = vmatpush1.msk.msra.mxu0 %vm3410_vm7, %v16536_v39  ;;  %v2988_v24 = vsel %vm16537_vm6, %v13350_v55, %v16528_v40  ;;  %v2991_v23 = vsel %vm16538_vm3, %v16532_v9, %v13425_v11  ;;  %vm16539_vm4 = vcmask 97280   ;;  %v13561_v59 = vpop.permute.xlu1 %2962  ;;  %v3332_v22 = vadd.s32 224, %v16530_v8 }
 0x3cb   : > { %v3109_v17 = vsel %vm16539_vm4, %v13431_v20, %v3089_v46  ;;  %vm16540_vm2 = vmmov %vm16539_vm4  ;;  %9405 = vmatprep.subr.msk.mxu0 %vm3409_vm12, %v16536_v39  ;;  %vm3471_vm1 = vcmp.eq.s32.totalorder %v3335_v38, %v16534_v35  ;;  %vm3470_vm8 = vcmp.eq.s32.totalorder %v3335_v38, %v16535_v54  ;;  %vm3469_vm5 = vcmp.eq.s32.totalorder %v3334_v6, %v16534_v35  ;;  %v16550_v38 = vld [vmem:[#allocation106_spill] sm:$0xff] }
 0x3cc   : > { %v3110_v42 = vsel %vm16540_vm2, %v3089_v46, %v13468_v44  ;;  %v13567_v32 = vadd.f32 %v3109_v17, %v3017_v34  ;;  %9406 = vmatpush1.msk.msra.mxu0 %vm3408_vm0, %v16536_v39  ;;  %vm16541_vm15 = vmmov %vm16540_vm2  ;;  %vm3468_vm7 = vcmp.eq.s32.totalorder %v3334_v6, %v16535_v54  ;;  %v3016_v43 = vadd.f32 %v2988_v24, %v2896_v56  ;;  %v16549_v46 = vld [vmem:[#allocation57_spill] sm:$0xff]  ;;  %v16552_v24 = vld [vmem:[#allocation115_spill] sm:$0xff] }
 0x3cd   : > { %v13569_v55 = vadd.f32 %v3110_v42, %v3018_v27  ;;  %v3108_v15 = vsel %vm16541_vm15, %v3085_v60, %v13431_v20  ;;  %9407 = vmatprep.subr.msk.mxu0 %vm3471_vm1, %v16536_v39  ;;  %v3019_v41 = vadd.f32 %v2991_v23, %v2899_v53  ;;  %v13582_v47 = vpop.permute.xlu0 %3092  ;;  %vm3467_vm12 = vcmp.eq.s32.totalorder %v3333_v50, %v16534_v35  ;;  %v16542_v20 = vld [vmem:[#allocation54_spill] sm:$0xff]  ;;  %vm16543_vm0 = vmmov %vm16540_vm2 }
 0x3ce   : > { %9408 = vmatpush2.msk.msra.mxu0 %vm3470_vm8, %v16536_v39  ;;  %v2623_v60 = vsel %vm2617_vm11, %v16523_v62, %v16542_v20  ;;  %v3111_v37 = vsel %vm16543_vm0, %v13468_v44, %v13582_v47  ;;  %v13592_v48 = vpop.permute.xlu1 %3080  ;;  %vm3466_vm6 = vcmp.eq.s32.totalorder %v3333_v50, %v16535_v54  ;;  %v3331_v52 = vadd.s32 216, %v16530_v8  ;;  %v16551_v50 = vld [vmem:[#allocation75_spill] sm:$0xff] }
 0x3cf   : > { %v10192_v57 = vpack.i.bf16 %v13569_v55, %v13567_v32  ;;  %9409 = vmatprep.subr.msk.mxu0 %vm3469_vm5, %v16536_v39  ;;  %v13597_v40 = vadd.f32 %v3108_v15, %v3016_v43  ;;  %v13599_v61 = vadd.f32 %v3111_v37, %v3019_v41  ;;  %vm3465_vm3 = vcmp.eq.s32.totalorder %v3332_v22, %v16534_v35  ;;  %v16555_v41 = vld [vmem:[#allocation50_spill] sm:$0xff] }
 0x3d0   : > { %9410 = vmatpush2.msk.msra.mxu0 %vm3468_vm7, %v16536_v39  ;;  %v13608_v44 = vadd.f32 %v13473_v30, %v13445_v26  ;;  %v2539_v62 = vadd.f32 %v13500_v19, %v13460_v7  ;;  %v2745_v10 = vsel %vm2740_vm14, %v16545_v3, %v16544_v1  ;;  %vm3464_vm4 = vcmp.eq.s32.totalorder %v3332_v22, %v16535_v54  ;;  %v16547_v7 = vld [vmem:[#allocation31_spill] sm:$0xff] }
 0x3d1   : > { %10193 = vrot.lane.b32.xlu0 %v10192_v57, %s16261_s25  ;;  %9411 = vmatprep.subr.msk.mxu0 %vm3467_vm12, %v16536_v39  ;;  %v2648_v9 = vadd.f32 %v13514_v5, %v13487_v16  ;;  %v2746_v14 = vsel %vm2740_vm14, %v16544_v1, %v16546_v51  ;;  %v10197_v26 = vpack.i.bf16 %v13597_v40, %v13599_v61  ;;  %v13624_v30 = vpop.permute.xlu0 %2738  ;;  %vm16548_vm1 = vcmask 343040  }
 0x3d2   : > { %9412 = vmatpush2.msk.msra.mxu0 %vm3466_vm6, %v16536_v39  ;;  %vm3463_vm2 = vcmp.eq.s32.totalorder %v3331_v52, %v16534_v35  ;;  %v2299_v19 = vsel %vm16548_vm1, %v12728_v18, %v16547_v7  ;;  %v13635_v16 = vadd.f32 %v16547_v7, %v13434_v12  ;;  %v2649_v5 = vadd.f32 %v2623_v60, %v2539_v62  ;;  %v13641_v34 = vpop.permute.xlu1 %2974 }
 0x3d3   : > { %9413 = vmatprep.subr.msk.mxu0 %vm3465_vm3, %v16536_v39  ;;  %vm3462_vm15 = vcmp.eq.s32.totalorder %v3331_v52, %v16535_v54  ;;  %v2540_v56 = vadd.f32 %v12879_v58, %v13443_v63  ;;  %v2773_v53 = vadd.f32 %v2745_v10, %v2648_v9  ;;  %10198 = vrot.lane.b32.xlu1 %v10197_v26, %s16261_s25  ;;  %v3330_v18 = vadd.s32 208, %v16530_v8 }
 0x3d4   : > { %9414 = vmatpush2.msk.msra.mxu0 %vm3464_vm4, %v16536_v39  ;;  %v3329_v12 = vadd.s32 200, %v16530_v8  ;;  %v2774_v27 = vadd.f32 %v2746_v14, %v2649_v5  ;;  %v2865_v6 = vsel %vm2860_vm13, %v16550_v38, %v16549_v46  ;;  %v2747_v58 = vsel %vm2740_vm14, %v16546_v51, %v16551_v50  ;;  %v16564_v50 = vld [vmem:[#allocation61_spill] sm:$0xff] }
 0x3d5   : > { %v2866_v63 = vsel %vm2860_vm13, %v16549_v46, %v13367_v2  ;;  %9415 = vmatprep.subr.msk.mxu0 %vm3463_vm2, %v16536_v39  ;;  %vm16553_vm8 = vcmask 105472   ;;  %v13664_v17 = vpop.permute.xlu0 %2856  ;;  %vm3461_vm5 = vcmp.eq.s32.totalorder %v3330_v18, %v16534_v35  ;;  %vm3460_vm7 = vcmp.eq.s32.totalorder %v3330_v18, %v16535_v54 }
 0x3d6   : > { %v2985_v23 = vsel %vm16553_vm8, %v16552_v24, %v13404_v21  ;;  %9416 = vmatpush2.msk.msra.mxu0 %vm3462_vm15, %v16536_v39  ;;  %vm3459_vm12 = vcmp.eq.s32.totalorder %v3329_v12, %v16534_v35  ;;  %vm16554_vm0 = vmmov %vm16553_vm8  ;;  %vm3458_vm6 = vcmp.eq.s32.totalorder %v3329_v12, %v16535_v54  ;;  %v3328_v22 = vadd.s32 192, %v16530_v8 }
 0x3d7   : > { %v2986_v42 = vsel %vm16554_vm0, %v13404_v21, %v13528_v13  ;;  %9417 = vmatprep.subr.msk.mxu0 %vm3461_vm5, %v16536_v39  ;;  %v3327_v15 = vadd.s32 184, %v16530_v8  ;;  %v2650_v43 = vadd.f32 %v16542_v20, %v2540_v56  ;;  %v2408_v57 = vsel %vm2397_vm9, %v12640_v28, %v16555_v41  ;;  %v3083_v28 = vpop.permute.xlu1 %3082  ;;  %vm16556_vm1 = vmmov %vm16554_vm0 }
 0x3d8   : > { %v2893_v60 = vadd.f32 %v2865_v6, %v2773_v53  ;;  %v2894_v37 = vadd.f32 %v2866_v63, %v2774_v27  ;;  %9418 = vmatpush2.msk.msra.mxu0 %vm3460_vm7, %v16536_v39  ;;  %v2867_v21 = vsel %vm2860_vm13, %v13367_v2, %v13495_v25  ;;  %vm3457_vm3 = vcmp.eq.s32.totalorder %v3328_v22, %v16534_v35  ;;  %v16557_v25 = vld [vmem:[#allocation114_spill] sm:$0xff]  ;;  %v16562_v27 = vld [vmem:[#allocation55_spill] sm:$0xff] }
 0x3d9   : > { %9419 = vmatprep.subr.msk.mxu0 %vm3459_vm12, %v16536_v39  ;;  %vm3456_vm4 = vcmp.eq.s32.totalorder %v3328_v22, %v16535_v54  ;;  %v3326_v20 = vadd.s32 176, %v16530_v8  ;;  %v2775_v52 = vadd.f32 %v2747_v58, %v2650_v43  ;;  %v3079_v3 = vpop.permute.xlu0 %3078  ;;  %vm3455_vm2 = vcmp.eq.s32.totalorder %v3327_v15, %v16534_v35 }
 0x3da   : > { %v3013_v62 = vadd.f32 %v2985_v23, %v2893_v60  ;;  %v3014_v1 = vadd.f32 %v2986_v42, %v2894_v37  ;;  %9420 = vmatpush2.msk.msra.mxu0 %vm3458_vm6, %v16536_v39  ;;  %v2987_v2 = vsel %vm16556_vm1, %v13528_v13, %v13561_v59  ;;  %vm16558_vm15 = vcmask 97280   ;;  %v16560_v13 = vld [vmem:[#allocation40_spill] sm:$0xff] }
 0x3db   : > { %v3105_v10 = vsel %vm16558_vm15, %v16557_v25, %v3079_v3  ;;  %vm16559_vm8 = vmmov %vm16558_vm15  ;;  %9421 = vmatprep.subr.msk.mxu0 %vm3457_vm3, %v16536_v39  ;;  %v3325_v51 = vadd.s32 168, %v16530_v8  ;;  %v2895_v14 = vadd.f32 %v2867_v21, %v2775_v52  ;;  %vm3454_vm5 = vcmp.eq.s32.totalorder %v3327_v15, %v16535_v54  ;;  %v13765_v15 = vpop.permute.xlu1 %10188  ;;  %v16566_v37 = vld [vmem:[#allocation84_spill] sm:$0xff] }
 0x3dc   : > { %v3106_v9 = vsel %vm16559_vm8, %v3079_v3, %v13592_v48  ;;  %v13702_v26 = vadd.f32 %v3105_v10, %v3013_v62  ;;  %9422 = vmatpush2.msk.msra.mxu0 %vm3456_vm4, %v16536_v39  ;;  %v2409_v59 = vsel %vm2397_vm9, %v16555_v41, %v16560_v13  ;;  %vm16561_vm7 = vmmov %vm16559_vm8  ;;  %vm3453_vm12 = vcmp.eq.s32.totalorder %v3326_v20, %v16534_v35 }
 0x3dd   : > { %v13704_v7 = vadd.f32 %v3106_v9, %v3014_v1  ;;  %v3107_v5 = vsel %vm16561_vm7, %v13592_v48, %v3083_v28  ;;  %9423 = vmatprep.subr.msk.mxu0 %vm3455_vm2, %v16536_v39  ;;  %v3324_v56 = vadd.s32 160, %v16530_v8  ;;  %v2326_v53 = vadd.f32 %v2299_v19, %v13447_v49  ;;  %v13721_v12 = vpop.permute.xlu0 %2858 }
 0x3de   : > { %v3015_v18 = vadd.f32 %v2987_v2, %v2895_v14  ;;  %3165 = vrot.lane.b32.xlu0 %v13702_v26, %s16261_s25  ;;  %vm3452_vm9 = vcmp.eq.s32.totalorder %v3326_v20, %v16535_v54  ;;  %v2437_v48 = vadd.f32 %v16560_v13, %v13635_v16  ;;  %v2518_v46 = vsel %vm2507_vm10, %v12692_v29, %v16562_v27  ;;  %v16563_v16 = vld [vmem:[#allocation69_spill] sm:$0xff]  ;;  %v16571_v13 = vld [vmem:[#allocation39_spill] sm:$0xff] }
 0x3df   : > { %3167 = vrot.lane.b32.xlu1 %v13704_v7, %s16261_s25  ;;  %9424 = vmatpush2.msk.msra.mxu0 %vm3454_vm5, %v16536_v39  ;;  %vm3451_vm0 = vcmp.eq.s32.totalorder %v3325_v51, %v16534_v35  ;;  %v3323_v49 = vadd.s32 152, %v16530_v8  ;;  %v2435_v19 = vadd.f32 %v2408_v57, %v13608_v44  ;;  %v2436_v38 = vadd.f32 %v2409_v59, %v2326_v53 }
 0x3e0   : > { %v13735_v6 = vadd.f32 %v3107_v5, %v3015_v18  ;;  %9425 = vmatprep.subr.msk.mxu0 %vm3453_vm12, %v16536_v39  ;;  %vm3450_vm6 = vcmp.eq.s32.totalorder %v3325_v51, %v16535_v54  ;;  %v2519_v29 = vsel %vm2507_vm10, %v16562_v27, %v16563_v16  ;;  %v2628_v58 = vsel %vm2617_vm11, %v12967_v33, %v16564_v50  ;;  %v16565_v33 = vld [vmem:[#allocation74_spill] sm:$0xff]  ;;  %v16572_v5 = vld [vmem:[#allocation29_spill] sm:$0xff] }
 0x3e1   : > { %9426 = vmatpush2.msk.msra.mxu0 %vm3452_vm9, %v16536_v39  ;;  %vm3449_vm3 = vcmp.eq.s32.totalorder %v3324_v56, %v16534_v35  ;;  %v3322_v44 = vadd.s32 144, %v16530_v8  ;;  %v2545_v63 = vadd.f32 %v2518_v46, %v2435_v19  ;;  %v2547_v24 = vadd.f32 %v16563_v16, %v2437_v48  ;;  %v13753_v23 = vpop.permute.xlu0 %2976  ;;  %v16573_v18 = vld [vmem:[#allocation26_spill] sm:$0xff] }
 0x3e2   : > { %3169 = vrot.lane.b32.xlu0 %v13735_v6, %s16261_s25  ;;  %9427 = vmatprep.subr.msk.mxu0 %vm3451_vm0, %v16536_v39  ;;  %vm3448_vm10 = vcmp.eq.s32.totalorder %v3324_v56, %v16535_v54  ;;  %v2629_v42 = vsel %vm2617_vm11, %v16564_v50, %v16565_v33  ;;  %v2752_v22 = vsel %vm2740_vm14, %v13023_v4, %v13458_v0  ;;  %v3321_v43 = vadd.s32 136, %v16530_v8 }
 0x3e3   : > { %9428 = vmatpush2.msk.msra.mxu0 %vm3450_vm6, %v16536_v39  ;;  %vm3447_vm4 = vcmp.eq.s32.totalorder %v3323_v49, %v16534_v35  ;;  %v2546_v41 = vadd.f32 %v2519_v29, %v2436_v38  ;;  %v2655_v57 = vadd.f32 %v2628_v58, %v2545_v63  ;;  %vm3446_vm2 = vcmp.eq.s32.totalorder %v3323_v49, %v16535_v54 }
 0x3e4   : > { %9429 = vmatprep.subr.msk.mxu0 %vm3449_vm3, %v16536_v39  ;;  %v2657_v60 = vadd.f32 %v16565_v33, %v2547_v24  ;;  %v2753_v4 = vsel %vm2740_vm14, %v13458_v0, %v16566_v37  ;;  %vm3445_vm1 = vcmp.eq.s32.totalorder %v3322_v44, %v16534_v35  ;;  %v10191_v52 = vunpack.i.h.bf16 %v13765_v15 }
 0x3e5   : > { %9430 = vmatpush2.msk.msra.mxu0 %vm3448_vm10, %v16536_v39  ;;  %v2656_v21 = vadd.f32 %v2629_v42, %v2546_v41  ;;  %v2780_v20 = vadd.f32 %v2752_v22, %v2655_v57  ;;  %v10184_v62 = vpop.permute.xlu0 %10183  ;;  %vm3444_vm15 = vcmp.eq.s32.totalorder %v3322_v44, %v16535_v54  ;;  %v10190_v1 = vunpack.i.l.bf16 %v13765_v15 }
 0x3e6   : > { %9431 = vmatprep.subr.msk.mxu0 %vm3447_vm4, %v16536_v39  ;;  %v10186_v28 = vunpack.i.h.bf16 %v10184_v62  ;;  %v10185_v3 = vunpack.i.l.bf16 %v10184_v62  ;;  %vm3443_vm8 = vcmp.eq.s32.totalorder %v3321_v43, %v16534_v35  ;;  %v2872_v2 = vsel %vm2860_vm13, %v16527_v45, %v13536_v36  ;;  %v3095_v45 = vpop.permute.xlu1 %3094 }
 0x3e7   : > { %9432 = vmatpush2.msk.msra.mxu0 %vm3446_vm2, %v16536_v39  ;;  %v2781_v0 = vadd.f32 %v2753_v4, %v2656_v21  ;;  %vm3442_vm5 = vcmp.eq.s32.totalorder %v3321_v43, %v16535_v54  ;;  %v13792_v25 = vadd.s32 128, %v16530_v8  ;;  %v2873_v10 = vsel %vm2860_vm13, %v13536_v36, %v13664_v17 }
 0x3e8   : > { %9433 = vmatprep.subr.msk.mxu0 %vm3445_vm1, %v16536_v39  ;;  %vm16568_vm7 = vcmask 1039360   ;;  %v2754_v48 = vsel %vm2740_vm14, %v16566_v37, %v13624_v30  ;;  %vm16574_vm6 = vcmask 105472   ;;  %v2900_v49 = vadd.f32 %v2872_v2, %v2780_v20 }
 0x3e9   : > { %16567 = vst [vmem:[#allocation67_spill] sm:$0xff] %v13792_v25  ;;  %v3185_v9 = vsel %vm16568_vm7, %v10191_v52, %v10185_v3  ;;  %vm16569_vm12 = vmmov %vm16568_vm7  ;;  %9434 = vmatpush2.msk.msra.mxu0 %vm3444_vm15, %v16536_v39  ;;  %v2979_v53 = vpop.permute.xlu0 %2978  ;;  %vm3441_vm0 = vcmp.eq.s32.totalorder %v13792_v25, %v16534_v35  ;;  %v2992_v27 = vsel %vm16574_vm6, %v13425_v11, %v13641_v34  ;;  %vm16576_vm14 = vcmask 97280  }
 0x3ea   : > { %v3186_v51 = vsel %vm16569_vm12, %v10185_v3, %v10186_v28  ;;  %vm16570_vm9 = vmmov %vm16568_vm7  ;;  %v13810_v36 = vmax.f32 %v16573_v18, %v3185_v9  ;;  %9435 = vmatprep.subr.msk.mxu0 %vm3443_vm8, %v16536_v39  ;;  %vm3440_vm10 = vcmp.eq.s32.totalorder %v13792_v25, %v16535_v54  ;;  %v2901_v19 = vadd.f32 %v2873_v10, %v2781_v0 }
 0x3eb   : > { %v3187_v14 = vsel %vm16570_vm9, %v10186_v28, %v10190_v1  ;;  %v13804_v59 = vmax.f32 %v16571_v13, %v3186_v51  ;;  %vm16575_vm3 = vmmov %vm16574_vm6  ;;  %9436 = vmatpush2.msk.msra.mxu0 %vm3442_vm5, %v16536_v39  ;;  %v2874_v11 = vsel %vm2860_vm13, %v13664_v17, %v13721_v12  ;;  %v2782_v38 = vadd.f32 %v2754_v48, %v2657_v60  ;;  %v3099_v17 = vpop.permute.xlu1 %3098 }
 0x3ec   : > { %v13807_v56 = vmax.f32 %v16572_v5, %v3187_v14  ;;  %v2993_v46 = vsel %vm16575_vm3, %v13641_v34, %v13753_v23  ;;  %3239 = vrot.lane.b32.xlu0 %v13810_v36, %s15960_s12  ;;  %9437 = vmatprep.subr.msk.mxu0 %vm3441_vm0, %v16536_v39  ;;  %v3112_v34 = vsel %vm16576_vm14, %v13582_v47, %v3095_v45  ;;  %vm16577_vm4 = vmmov %vm16575_vm3  ;;  %v3350_v22 = vadd.s32 368, %v16530_v8 }
 0x3ed   : > { %9438 = vmatpush2.msk.msra.mxu0 %vm3440_vm10, %v16536_v39  ;;  %v3020_v16 = vadd.f32 %v2992_v27, %v2900_v49  ;;  %v3021_v29 = vadd.f32 %v2993_v46, %v2901_v19  ;;  %v3097_v50 = vpop.permute.xlu0 %3096  ;;  %v2994_v58 = vsel %vm16577_vm4, %v13753_v23, %v2979_v53  ;;  %vm16578_vm2 = vmmov %vm16576_vm14  ;;  %v2902_v63 = vadd.f32 %v2874_v11, %v2782_v38 }
 0x3ee   : > { %v10202_v30 = vpack.i.bf16 %v13807_v56, %v13804_v59  ;;  %v3113_v44 = vsel %vm16578_vm2, %v3095_v45, %v3097_v50  ;;  %vm16579_vm13 = vmmov %vm16578_vm2  ;;  %v3351_v23 = vadd.s32 376, %v16530_v8  ;;  %v3349_v43 = vadd.s32 360, %v16530_v8 }
 0x3ef   : > { %v13846_v24 = vadd.f32 %v3112_v34, %v3020_v16  ;;  %v13848_v12 = vadd.f32 %v3113_v44, %v3021_v29  ;;  %v3114_v47 = vsel %vm16579_vm13, %v3097_v50, %v3099_v17  ;;  %v3022_v33 = vadd.f32 %v2994_v58, %v2902_v63  ;;  %v16584_v58 = vld [vmem:[#allocation22_spill] sm:$0xff] }
 0x3f0   : > { %10203 = vrot.lane.b32.xlu1 %v10202_v30, %s15960_s12  ;;  %v13863_v41 = vadd.s32 632, %v16530_v8  ;;  %vm3503_vm1 = vcmp.eq.s32.totalorder %v3351_v23, %v16534_v35  ;;  %vm3502_vm15 = vcmp.eq.s32.totalorder %v3351_v23, %v16535_v54  ;;  %vm3501_vm8 = vcmp.eq.s32.totalorder %v3350_v22, %v16534_v35 }
 0x3f1   : > { %3181 = vrot.lane.b32.xlu0 %v13848_v12, %s16261_s25  ;;  %v13855_v42 = vadd.f32 %v3114_v47, %v3022_v33  ;;  %v3348_v57 = vadd.s32 352, %v16530_v8  ;;  %9439 = vmatprep.subr.msk.mxu1 %vm3503_vm1, %v16536_v39  ;;  %vm3500_vm5 = vcmp.eq.s32.totalorder %v3350_v22, %v16535_v54  ;;  %vm3499_vm12 = vcmp.eq.s32.totalorder %v3349_v43, %v16534_v35 }
 0x3f2   : > { %vm3567_vm7 = vcmp.eq.s32.totalorder %v13863_v41, %v16534_v35  ;;  %9440 = vmatpush1.msk.msra.mxu1 %vm3502_vm15, %v16536_v39  ;;  %v3347_v60 = vadd.s32 344, %v16530_v8  ;;  %vm3498_vm9 = vcmp.eq.s32.totalorder %v3349_v43, %v16535_v54  ;;  %v3346_v37 = vadd.s32 336, %v16530_v8 }
 0x3f3   : > { %9503 = vmatprep.subr.msk.mxu0 %vm3567_vm7, %v16536_v39  ;;  %9441 = vmatprep.subr.msk.mxu1 %vm3501_vm8, %v16536_v39  ;;  %vm3497_vm0 = vcmp.eq.s32.totalorder %v3348_v57, %v16534_v35  ;;  %vm3496_vm6 = vcmp.eq.s32.totalorder %v3348_v57, %v16535_v54  ;;  %v3345_v4 = vadd.s32 328, %v16530_v8  ;;  %v3344_v21 = vadd.s32 320, %v16530_v8 }
 0x3f4   : > { %3179 = vrot.lane.b32.xlu1 %v13846_v24, %s16261_s25  ;;  %9442 = vmatpush1.msk.msra.mxu1 %vm3500_vm5, %v16536_v39  ;;  %vm3495_vm3 = vcmp.eq.s32.totalorder %v3347_v60, %v16534_v35  ;;  %vm3494_vm10 = vcmp.eq.s32.totalorder %v3347_v60, %v16535_v54  ;;  %vm3493_vm14 = vcmp.eq.s32.totalorder %v3346_v37, %v16534_v35  ;;  %v3343_v20 = vadd.s32 312, %v16530_v8 }
 0x3f5   : > { %9443 = vmatprep.subr.msk.mxu1 %vm3499_vm12, %v16536_v39  ;;  %vm3492_vm4 = vcmp.eq.s32.totalorder %v3346_v37, %v16535_v54  ;;  %vm3491_vm2 = vcmp.eq.s32.totalorder %v3345_v4, %v16534_v35  ;;  %vm3490_vm13 = vcmp.eq.s32.totalorder %v3345_v4, %v16535_v54  ;;  %vm3489_vm1 = vcmp.eq.s32.totalorder %v3344_v21, %v16534_v35 }
 0x3f6   : > { %9444 = vmatpush1.msk.msra.mxu1 %vm3498_vm9, %v16536_v39  ;;  %v3342_v52 = vadd.s32 304, %v16530_v8  ;;  %vm3488_vm15 = vcmp.eq.s32.totalorder %v3344_v21, %v16535_v54  ;;  %vm3487_vm8 = vcmp.eq.s32.totalorder %v3343_v20, %v16534_v35  ;;  %v3341_v62 = vadd.s32 296, %v16530_v8 }
 0x3f7   : > { %9445 = vmatprep.subr.msk.mxu1 %vm3497_vm0, %v16536_v39  ;;  %vm3486_vm5 = vcmp.eq.s32.totalorder %v3343_v20, %v16535_v54  ;;  %v3340_v28 = vadd.s32 288, %v16530_v8  ;;  %v3339_v3 = vadd.s32 280, %v16530_v8  ;;  %v3338_v0 = vadd.s32 272, %v16530_v8 }
 0x3f8   : > { %3183 = vrot.lane.b32.xlu1 %v13855_v42, %s16261_s25  ;;  %9446 = vmatpush1.msk.msra.mxu1 %vm3496_vm6, %v16536_v39  ;;  %vm3485_vm7 = vcmp.eq.s32.totalorder %v3342_v52, %v16534_v35  ;;  %vm3484_vm12 = vcmp.eq.s32.totalorder %v3342_v52, %v16535_v54  ;;  %vm3483_vm9 = vcmp.eq.s32.totalorder %v3341_v62, %v16534_v35  ;;  %v3337_v2 = vadd.s32 264, %v16530_v8 }
 0x3f9   : > { %9447 = vmatprep.subr.msk.mxu1 %vm3495_vm3, %v16536_v39  ;;  %vm3482_vm0 = vcmp.eq.s32.totalorder %v3341_v62, %v16535_v54  ;;  %vm3481_vm6 = vcmp.eq.s32.totalorder %v3340_v28, %v16534_v35  ;;  %vm3480_vm3 = vcmp.eq.s32.totalorder %v3340_v28, %v16535_v54  ;;  %v3336_v10 = vadd.s32 256, %v16530_v8 }
 0x3fa   : > { %9448 = vmatpush1.msk.msra.mxu1 %vm3494_vm10, %v16536_v39  ;;  %vm3479_vm10 = vcmp.eq.s32.totalorder %v3339_v3, %v16534_v35  ;;  %v3367_v9 = vadd.s32 504, %v16530_v8  ;;  %v3366_v14 = vadd.s32 496, %v16530_v8  ;;  %v3365_v48 = vadd.s32 488, %v16530_v8 }
 0x3fb   : > { %9449 = vmatprep.subr.msk.mxu1 %vm3493_vm14, %v16536_v39  ;;  %vm3478_vm14 = vcmp.eq.s32.totalorder %v3339_v3, %v16535_v54  ;;  %v3364_v30 = vadd.s32 480, %v16530_v8  ;;  %v3363_v11 = vadd.s32 472, %v16530_v8  ;;  %v3361_v38 = vadd.s32 456, %v16530_v8 }
 0x3fc   : > { %9450 = vmatpush1.msk.msra.mxu1 %vm3492_vm4, %v16536_v39  ;;  %vm3477_vm4 = vcmp.eq.s32.totalorder %v3338_v0, %v16534_v35  ;;  %v3360_v29 = vadd.s32 448, %v16530_v8  ;;  %v3359_v15 = vadd.s32 440, %v16530_v8  ;;  %v3357_v23 = vadd.s32 424, %v16530_v8 }
 0x3fd   : > { %9451 = vmatprep.subr.msk.mxu1 %vm3491_vm2, %v16536_v39  ;;  %vm3476_vm2 = vcmp.eq.s32.totalorder %v3338_v0, %v16535_v54  ;;  %v3356_v43 = vadd.s32 416, %v16530_v8  ;;  %v3354_v37 = vadd.s32 400, %v16530_v8  ;;  %v3353_v4 = vadd.s32 392, %v16530_v8 }
 0x3fe   : > { %9452 = vmatpush1.msk.msra.mxu1 %vm3490_vm13, %v16536_v39  ;;  %vm3475_vm13 = vcmp.eq.s32.totalorder %v3337_v2, %v16534_v35  ;;  %v3382_v52 = vadd.s32 624, %v16530_v8  ;;  %v3381_v62 = vadd.s32 616, %v16530_v8 }
 0x3ff   : > { %9453 = vmatprep.subr.msk.mxu1 %vm3489_vm1, %v16536_v39  ;;  %vm3474_vm1 = vcmp.eq.s32.totalorder %v3337_v2, %v16535_v54 }
 0x400   : > { %9454 = vmatpush1.msk.msra.mxu1 %vm3488_vm15, %v16536_v39  ;;  %vm3473_vm15 = vcmp.eq.s32.totalorder %v3336_v10, %v16534_v35 }
 0x401   : > { %9455 = vmatprep.subr.msk.mxu1 %vm3487_vm8, %v16536_v39  ;;  %vm3472_vm8 = vcmp.eq.s32.totalorder %v3336_v10, %v16535_v54 }
 0x402   : > { %9456 = vmatpush1.msk.msra.mxu1 %vm3486_vm5, %v16536_v39  ;;  %vm3535_vm5 = vcmp.eq.s32.totalorder %v3367_v9, %v16534_v35 }
 0x403   : > { %9457 = vmatprep.subr.msk.mxu1 %vm3485_vm7, %v16536_v39  ;;  %vm3534_vm7 = vcmp.eq.s32.totalorder %v3367_v9, %v16535_v54 }
 0x404   : > { %9458 = vmatpush1.msk.msra.mxu1 %vm3484_vm12, %v16536_v39  ;;  %vm3533_vm12 = vcmp.eq.s32.totalorder %v3366_v14, %v16534_v35 }
 0x405   : > { %9459 = vmatprep.subr.msk.mxu1 %vm3483_vm9, %v16536_v39  ;;  %vm3532_vm9 = vcmp.eq.s32.totalorder %v3366_v14, %v16535_v54 }
 0x406   : > { %9460 = vmatpush1.msk.msra.mxu1 %vm3482_vm0, %v16536_v39  ;;  %vm16580_vm0 = vcmask 1039360  }
 0x407   : > { %9461 = vmatprep.subr.msk.mxu1 %vm3481_vm6, %v16536_v39  ;;  %vm16581_vm6 = vmmov %vm16580_vm0 }
 0x408   : > { %9462 = vmatpush1.msk.msra.mxu1 %vm3480_vm3, %v16536_v39  ;;  %vm3531_vm3 = vcmp.eq.s32.totalorder %v3365_v48, %v16534_v35 }
 0x409   : > { %9463 = vmatprep.subr.msk.mxu1 %vm3479_vm10, %v16536_v39  ;;  %vm3530_vm10 = vcmp.eq.s32.totalorder %v3365_v48, %v16535_v54  ;;  %v3377_v48 = vadd.s32 584, %v16530_v8 }
 0x40a   : > { %9464 = vmatpush1.msk.msra.mxu1 %vm3478_vm14, %v16536_v39  ;;  %vm3529_vm14 = vcmp.eq.s32.totalorder %v3364_v30, %v16534_v35 }
 0x40b   : > { %9465 = vmatprep.subr.msk.mxu1 %vm3477_vm4, %v16536_v39  ;;  %vm3528_vm4 = vcmp.eq.s32.totalorder %v3364_v30, %v16535_v54 }
 0x40c   : > { %9466 = vmatpush1.msk.msra.mxu1 %vm3476_vm2, %v16536_v39  ;;  %vm3527_vm2 = vcmp.eq.s32.totalorder %v3363_v11, %v16534_v35 }
 0x40d   : > { %9467 = vmatprep.subr.msk.mxu1 %vm3475_vm13, %v16536_v39  ;;  %vm3526_vm13 = vcmp.eq.s32.totalorder %v3363_v11, %v16535_v54  ;;  %v3375_v11 = vadd.s32 568, %v16530_v8 }
 0x40e   : > { %9468 = vmatpush1.msk.msra.mxu1 %vm3474_vm1, %v16536_v39  ;;  %vm16582_vm1 = vmmov %vm16580_vm0 }
 0x40f   : > { %9469 = vmatprep.subr.msk.mxu1 %vm3473_vm15, %v16536_v39 }
 0x410   : > { %9470 = vmatpush1.msk.msra.mxu1 %vm3472_vm8, %v16536_v39 }
 0x411   : > { %9471 = vmatprep.subr.msk.mxu1 %vm3535_vm5, %v16536_v39  ;;  %vm16583_vm5 = vmmov %vm16580_vm0 }
 0x412   : > { %9472 = vmatpush2.msk.msra.mxu1 %vm3534_vm7, %v16536_v39  ;;  %vm3523_vm7 = vcmp.eq.s32.totalorder %v3361_v38, %v16534_v35 }
 0x413   : > { %9473 = vmatprep.subr.msk.mxu1 %vm3533_vm12, %v16536_v39  ;;  %vm3522_vm12 = vcmp.eq.s32.totalorder %v3361_v38, %v16535_v54  ;;  %v3371_v38 = vadd.s32 536, %v16530_v8 }
 0x414   : > { %9474 = vmatpush2.msk.msra.mxu1 %vm3532_vm9, %v16536_v39  ;;  %vm3521_vm9 = vcmp.eq.s32.totalorder %v3360_v29, %v16534_v35 }
 0x415   : > { %9475 = vmatprep.subr.msk.mxu1 %vm3531_vm3, %v16536_v39  ;;  %vm3519_vm3 = vcmp.eq.s32.totalorder %v3359_v15, %v16534_v35 }
 0x416   : > { %9476 = vmatpush2.msk.msra.mxu1 %vm3530_vm10, %v16536_v39  ;;  %vm3518_vm10 = vcmp.eq.s32.totalorder %v3359_v15, %v16535_v54  ;;  %v3397_v15 = vadd.s32 744, %v16530_v8 }
 0x417   : > { %9477 = vmatprep.subr.msk.mxu1 %vm3529_vm14, %v16536_v39 }
 0x418   : > { %9478 = vmatpush2.msk.msra.mxu1 %vm3528_vm4, %v16536_v39 }
 0x419   : > { %9479 = vmatprep.subr.msk.mxu1 %vm3527_vm2, %v16536_v39  ;;  %vm3515_vm2 = vcmp.eq.s32.totalorder %v3357_v23, %v16534_v35 }
 0x41a   : > { %9480 = vmatpush2.msk.msra.mxu1 %vm3526_vm13, %v16536_v39  ;;  %vm3514_vm13 = vcmp.eq.s32.totalorder %v3357_v23, %v16535_v54  ;;  %v3394_v23 = vadd.s32 720, %v16530_v8 }
 0x443   : > { %v10194_v51 = vpop.permute.xlu0 %10193 }
 0x444   : > { %v10196_v45 = vunpack.i.h.bf16 %v10194_v51  ;;  %v10195_v13 = vunpack.i.l.bf16 %v10194_v51 }
 0x445   : > { %v13950_v5 = vpop.permute.xlu1 %10198 }
 0x446   : > { %v3192_v53 = vsel %vm16580_vm0, %v10195_v13, %v10196_v45  ;;  %v10200_v18 = vunpack.i.l.bf16 %v13950_v5  ;;  %v10201_v19 = vunpack.i.h.bf16 %v13950_v5  ;;  %vm3520_vm0 = vcmp.eq.s32.totalorder %v3360_v29, %v16535_v54 }
 0x447   : > { %v13965_v46 = vmax.f32 %v13567_v32, %v3192_v53  ;;  %v3362_v32 = vadd.s32 464, %v16530_v8  ;;  %v3380_v5 = vadd.s32 608, %v16530_v8  ;;  %v3369_v29 = vadd.s32 520, %v16530_v8 }
 0x448   : > { %v3193_v27 = vsel %vm16581_vm6, %v10196_v45, %v10200_v18  ;;  %vm16585_vm6 = vmmov %vm16582_vm1 }
 0x449   : > { %v13968_v49 = vmax.f32 %v13569_v55, %v3193_v27  ;;  %v3191_v55 = vsel %vm16582_vm1, %v10201_v19, %v10195_v13  ;;  %vm3525_vm15 = vcmp.eq.s32.totalorder %v3362_v32, %v16534_v35  ;;  %vm3524_vm8 = vcmp.eq.s32.totalorder %v3362_v32, %v16535_v54  ;;  %v3978_v19 = vld [vmem:[%s15521_s2] sm:$0xff] }
 0x44a   : > { %v14001_v63 = vmax.f32 %v13597_v40, %v3191_v55  ;;  %9481 = vmatprep.subr.msk.mxu1 %vm3525_vm15, %v16536_v39  ;;  %v3358_v40 = vadd.s32 432, %v16530_v8  ;;  %vm3513_vm1 = vcmp.eq.s32.totalorder %v3356_v43, %v16534_v35  ;;  %vm3512_vm15 = vcmp.eq.s32.totalorder %v3356_v43, %v16535_v54 }
 0x44b   : > { %v10207_v34 = vpack.i.bf16 %v13968_v49, %v13965_v46  ;;  %9482 = vmatpush2.msk.msra.mxu1 %vm3524_vm8, %v16536_v39  ;;  %v3373_v32 = vadd.s32 552, %v16530_v8  ;;  %v3372_v55 = vadd.s32 544, %v16530_v8  ;;  %v3393_v43 = vadd.s32 712, %v16530_v8 }
 0x44c   : > { %9483 = vmatprep.subr.msk.mxu1 %vm3523_vm7, %v16536_v39  ;;  %vm3517_vm14 = vcmp.eq.s32.totalorder %v3358_v40, %v16534_v35  ;;  %vm3516_vm4 = vcmp.eq.s32.totalorder %v3358_v40, %v16535_v54  ;;  %vm3509_vm7 = vcmp.eq.s32.totalorder %v3354_v37, %v16534_v35 }
 0x44d   : > { %10208 = vrot.lane.b32.xlu0 %v10207_v34, %s15960_s12  ;;  %9484 = vmatpush2.msk.msra.mxu1 %vm3522_vm12, %v16536_v39  ;;  %vm3508_vm12 = vcmp.eq.s32.totalorder %v3354_v37, %v16535_v54  ;;  %v3979_v34 = vld [vmem:[%s15521_s2 + $0x8] sm:$0x3]  ;;  %v3390_v37 = vadd.s32 688, %v16530_v8 }
 0x44e   : > { %9485 = vmatprep.subr.msk.mxu1 %vm3521_vm9, %v16536_v39  ;;  %vm16586_vm9 = vmmov %vm16585_vm6 }
 0x44f   : > { %9486 = vmatpush2.msk.msra.mxu1 %vm3520_vm0, %v16536_v39  ;;  %vm16587_vm0 = vcmask 818176  }
 0x450   : > { %v3166_v16 = vpop.permute.xlu0 %3165  ;;  %9487 = vmatprep.subr.msk.mxu1 %vm3519_vm3, %v16536_v39  ;;  %vm3507_vm3 = vcmp.eq.s32.totalorder %v3353_v4, %v16534_v35 }
 0x451   : > { %v3188_v50 = vsel %vm16583_vm5, %v10190_v1, %v3166_v16  ;;  %v3168_v17 = vpop.permute.xlu1 %3167  ;;  %9488 = vmatpush2.msk.msra.mxu1 %vm3518_vm10, %v16536_v39  ;;  %vm3566_vm10 = vcmp.eq.s32.totalorder %v13863_v41, %v16535_v54  ;;  %v3378_v41 = vadd.s32 592, %v16530_v8 }
 0x452   : > { %v13998_v44 = vmax.f32 %v16584_v58, %v3188_v50  ;;  %9489 = vmatprep.subr.msk.mxu1 %vm3517_vm14, %v16536_v39  ;;  %v3189_v28 = vsel %vm16586_vm9, %v3166_v16, %v3168_v17  ;;  %vm3506_vm14 = vcmp.eq.s32.totalorder %v3353_v4, %v16535_v54  ;;  %v3370_v16 = vadd.s32 528, %v16530_v8 }
 0x453   : > { %9490 = vmatpush2.msk.msra.mxu1 %vm3516_vm4, %v16536_v39  ;;  %vm16589_vm4 = vmmov %vm16586_vm9  ;;  %vm3560_vm9 = vcmp.eq.s32.totalorder %v3380_v5, %v16535_v54  ;;  %v3398_v50 = vadd.s32 752, %v16530_v8  ;;  %v3368_v58 = vadd.s32 512, %v16530_v8  ;;  %v3389_v4 = vadd.s32 680, %v16530_v8 }
 0x454   : > { %v10212_v1 = vpack.i.bf16 %v13998_v44, %v14001_v63  ;;  %v14010_v47 = vpop.permute.xlu0 %3169  ;;  %9491 = vmatprep.subr.msk.mxu1 %vm3515_vm2, %v16536_v39  ;;  %vm16590_vm2 = vmmov %vm16589_vm4 }
 0x455   : > { %v3190_v33 = vsel %vm16585_vm6, %v3168_v17, %v14010_v47  ;;  %9492 = vmatpush2.msk.msra.mxu1 %vm3514_vm13, %v16536_v39  ;;  %vm16588_vm6 = vmmov %vm16587_vm0  ;;  %vm3565_vm13 = vcmp.eq.s32.totalorder %v3382_v52, %v16534_v35 }
 0x456   : > { %10213 = vrot.lane.b32.xlu1 %v10212_v1, %s15960_s12  ;;  %v14026_v22 = vmax.f32 %v13704_v7, %v3190_v33  ;;  %v3355_v7 = vadd.s32 408, %v16530_v8  ;;  %9493 = vmatprep.subr.msk.mxu1 %vm3513_vm1, %v16536_v39  ;;  %vm3564_vm1 = vcmp.eq.s32.totalorder %v3382_v52, %v16535_v54  ;;  %v15858_v1 = vmov 0.0  }
 0x457   : > { %9494 = vmatpush2.msk.msra.mxu1 %vm3512_vm15, %v16536_v39  ;;  %v3395_v33 = vadd.s32 728, %v16530_v8  ;;  %v3387_v52 = vadd.s32 664, %v16530_v8 }
 0x458   : > { %vm3511_vm8 = vcmp.eq.s32.totalorder %v3355_v7, %v16534_v35  ;;  %vm3510_vm5 = vcmp.eq.s32.totalorder %v3355_v7, %v16535_v54  ;;  %v3392_v7 = vadd.s32 704, %v16530_v8 }
 0x459   : > { %9495 = vmatprep.subr.msk.mxu1 %vm3511_vm8, %v16536_v39  ;;  %vm3563_vm8 = vcmp.eq.s32.totalorder %v3381_v62, %v16534_v35 }
 0x45a   : > { %3249 = vrot.lane.b32.xlu1 %v14026_v22, %s15960_s12  ;;  %9496 = vmatpush2.msk.msra.mxu1 %vm3510_vm5, %v16536_v39 }
 0x45b   : > { %9497 = vmatprep.subr.msk.mxu1 %vm3509_vm7, %v16536_v39  ;;  %vm3562_vm7 = vcmp.eq.s32.totalorder %v3381_v62, %v16535_v54  ;;  %v3386_v62 = vadd.s32 656, %v16530_v8 }
 0x45c   : > { %9498 = vmatpush2.msk.msra.mxu1 %vm3508_vm12, %v16536_v39  ;;  %vm3561_vm12 = vcmp.eq.s32.totalorder %v3380_v5, %v16534_v35 }
 0x45d   : > { %9499 = vmatprep.subr.msk.mxu1 %vm3507_vm3, %v16536_v39 }
 0x45e   : > { %v3240_v57 = vpop.permute.xlu0 %3239  ;;  %9500 = vmatpush2.msk.msra.mxu1 %vm3506_vm14, %v16536_v39  ;;  %vm3556_vm14 = vcmp.eq.s32.totalorder %v3378_v41, %v16535_v54 }
 0x462   : > { %v14047_v60 = vpop.permute.xlu1 %10203 }
 0x463   : > { %v10206_v21 = vunpack.i.h.bf16 %v14047_v60  ;;  %v10205_v20 = vunpack.i.l.bf16 %v14047_v60  ;;  %v3182_v2 = vpop.permute.xlu0 %3181 }
 0x465   : > { %v3268_v3 = vsel %vm16587_vm0, %v10205_v20, %v10206_v21  ;;  %v3267_v0 = vsel %vm16588_vm6, %v3240_v57, %v10205_v20  ;;  %vm16591_vm6 = vmmov %vm16590_vm2  ;;  %v3391_v57 = vadd.s32 696, %v16530_v8  ;;  %v3388_v20 = vadd.s32 672, %v16530_v8 }
 0x466   : > { %v3180_v10 = vpop.permute.xlu1 %3179  ;;  %v3292_v9 = vmax.f32 %v13804_v59, %v3268_v3  ;;  %v3291_v51 = vmax.f32 %v13810_v36, %v3267_v0  ;;  %v3352_v59 = vadd.s32 384, %v16530_v8  ;;  %v14080_v36 = vmax.f32 %v13702_v26, %v3189_v28 }
 0x467   : > { %v3194_v14 = vsel %vm16589_vm4, %v10200_v18, %v3180_v10  ;;  %v3195_v45 = vsel %vm16590_vm2, %v3180_v10, %v3182_v2  ;;  %vm3555_vm4 = vcmp.eq.s32.totalorder %v3377_v48, %v16534_v35  ;;  %vm3554_vm2 = vcmp.eq.s32.totalorder %v3377_v48, %v16535_v54 }
 0x468   : > { %v14083_v13 = vmax.f32 %v13599_v61, %v3194_v14  ;;  %v14086_v53 = vmax.f32 %v13846_v24, %v3195_v45  ;;  %4068 = vmatprep.mubr.f32.mxu0 %v3292_v9  ;;  %vm3505_vm15 = vcmp.eq.s32.totalorder %v3352_v59, %v16534_v35  ;;  %v3379_v24 = vadd.s32 600, %v16530_v8 }
 0x469   : > { %4069 = vmatmul.mubr.f32.vlgmr.msra.gmra.mxu0 %v3291_v51  ;;  %vm3504_vm5 = vcmp.eq.s32.totalorder %v3352_v59, %v16535_v54  ;;  %9501 = vmatprep.subr.msk.mxu1 %vm3505_vm15, %v16536_v39  ;;  %vm3551_vm15 = vcmp.eq.s32.totalorder %v3375_v11, %v16534_v35  ;;  %v3385_v28 = vadd.s32 648, %v16530_v8  ;;  %v3384_v3 = vadd.s32 640, %v16530_v8 }
 0x46a   : > { %v10217_v26 = vpack.i.bf16 %v14083_v13, %v14080_v36  ;;  %3261 = vrot.lane.b32.xlu1 %v14086_v53, %s15960_s12  ;;  %v3184_v61 = vpop.permute.xlu1 %3183  ;;  %9504 = vmatpush1.msk.msra.mxu0 %vm3566_vm10, %v16536_v39  ;;  %vm3559_vm0 = vcmp.eq.s32.totalorder %v3379_v24, %v16534_v35  ;;  %vm3558_vm3 = vcmp.eq.s32.totalorder %v3379_v24, %v16535_v54 }
 0x46b   : > { %v3224_v18 = vmax.f32 %v13855_v42, %v3184_v61  ;;  %9505 = vmatprep.subr.msk.mxu0 %vm3565_vm13, %v16536_v39  ;;  %9502 = vmatpush2.msk.msra.mxu1 %vm3504_vm5, %v16536_v39  ;;  %v3217_v42 = vmax.f32 %v13735_v6, %v14010_v47  ;;  %v3196_v27 = vsel %vm16591_vm6, %v3182_v2, %v3184_v61  ;;  %v3376_v6 = vadd.s32 576, %v16530_v8 }
 0x46c   : > { %10218 = vrot.lane.b32.xlu0 %v10217_v26, %s15960_s12  ;;  %9506 = vmatpush1.msk.msra.mxu0 %vm3564_vm1, %v16536_v39  ;;  %vm3557_vm10 = vcmp.eq.s32.totalorder %v3378_v41, %v16534_v35  ;;  %v14135_v30 = vmax.f32 %v13848_v12, %v3196_v27  ;;  %v3374_v12 = vadd.s32 560, %v16530_v8  ;;  %vm3544_vm6 = vcmp.eq.s32.totalorder %v3372_v55, %v16535_v54 }
 0x46d   : > { %9507 = vmatprep.subr.msk.mxu0 %vm3563_vm8, %v16536_v39  ;;  %vm3553_vm13 = vcmp.eq.s32.totalorder %v3376_v6, %v16534_v35  ;;  %vm3552_vm1 = vcmp.eq.s32.totalorder %v3376_v6, %v16535_v54  ;;  %vm3550_vm8 = vcmp.eq.s32.totalorder %v3375_v11, %v16535_v54  ;;  %v3396_v47 = vadd.s32 736, %v16530_v8 }
 0x46e   : > { %3265 = vrot.lane.b32.xlu1 %v3224_v18, %s15960_s12  ;;  %9508 = vmatpush1.msk.msra.mxu0 %vm3562_vm7, %v16536_v39  ;;  %vm3549_vm5 = vcmp.eq.s32.totalorder %v3374_v12, %v16534_v35  ;;  %vm3548_vm7 = vcmp.eq.s32.totalorder %v3374_v12, %v16535_v54 }
 0x46f   : > { %9509 = vmatprep.subr.msk.mxu0 %vm3561_vm12, %v16536_v39  ;;  %vm3547_vm12 = vcmp.eq.s32.totalorder %v3373_v32, %v16534_v35 }
 0x470   : > { %3251 = vrot.lane.b32.xlu0 %v3217_v42, %s15960_s12  ;;  %9510 = vmatpush1.msk.msra.mxu0 %vm3560_vm9, %v16536_v39  ;;  %vm3546_vm9 = vcmp.eq.s32.totalorder %v3373_v32, %v16535_v54 }
 0x471   : > { %9511 = vmatprep.subr.msk.mxu0 %vm3559_vm0, %v16536_v39  ;;  %vm3545_vm0 = vcmp.eq.s32.totalorder %v3372_v55, %v16534_v35 }
 0x472   : > { %3982 = vperm.xlu1 %10181, %v3978_v19   ;;  %9512 = vmatpush1.msk.msra.mxu0 %vm3558_vm3, %v16536_v39  ;;  %vm3543_vm3 = vcmp.eq.s32.totalorder %v3371_v38, %v16534_v35 }
 0x473   : > { %9513 = vmatprep.subr.msk.mxu0 %vm3557_vm10, %v16536_v39  ;;  %vm3542_vm10 = vcmp.eq.s32.totalorder %v3371_v38, %v16535_v54 }
 0x474   : > { %3263 = vrot.lane.b32.xlu0 %v14135_v30, %s15960_s12  ;;  %9514 = vmatpush1.msk.msra.mxu0 %vm3556_vm14, %v16536_v39  ;;  %vm3541_vm14 = vcmp.eq.s32.totalorder %v3370_v16, %v16534_v35 }
 0x475   : > { %9515 = vmatprep.subr.msk.mxu0 %vm3555_vm4, %v16536_v39  ;;  %vm3540_vm4 = vcmp.eq.s32.totalorder %v3370_v16, %v16535_v54 }
 0x476   : > { %9516 = vmatpush1.msk.msra.mxu0 %vm3554_vm2, %v16536_v39  ;;  %vm3539_vm2 = vcmp.eq.s32.totalorder %v3369_v29, %v16534_v35 }
 0x477   : > { %9517 = vmatprep.subr.msk.mxu0 %vm3553_vm13, %v16536_v39  ;;  %vm3538_vm13 = vcmp.eq.s32.totalorder %v3369_v29, %v16535_v54 }
 0x478   : > { %3987 = vperm.xlu0 %10180, %v3979_v34   ;;  %9518 = vmatpush1.msk.msra.mxu0 %vm3552_vm1, %v16536_v39  ;;  %vm3597_vm1 = vcmp.eq.s32.totalorder %v3398_v50, %v16534_v35 }
 0x479   : > { %9519 = vmatprep.subr.msk.mxu0 %vm3551_vm15, %v16536_v39  ;;  %vm3537_vm15 = vcmp.eq.s32.totalorder %v3368_v58, %v16534_v35  ;;  %v9374_v17 = vsel %vm3597_vm1, 1.0, %v15858_v1  ;;  %vm3585_vm1 = vcmp.eq.s32.totalorder %v3392_v7, %v16534_v35 }
 0x47a   : > { %9520 = vmatpush1.msk.msra.mxu0 %vm3550_vm8, %v16536_v39  ;;  %vm3596_vm8 = vcmp.eq.s32.totalorder %v3398_v50, %v16535_v54 }
 0x47b   : > { %9521 = vmatprep.subr.msk.mxu0 %vm3549_vm5, %v16536_v39  ;;  %vm3536_vm5 = vcmp.eq.s32.totalorder %v3368_v58, %v16535_v54  ;;  %v9373_v40 = vsel %vm3596_vm8, 1.0, %v15858_v1  ;;  %vm3583_vm8 = vcmp.eq.s32.totalorder %v3391_v57, %v16534_v35 }
 0x47c   : > { %9522 = vmatpush1.msk.msra.mxu0 %vm3548_vm7, %v16536_v39  ;;  %vm3997_vm7 = vcmask 1042432  }
 0x47d   : > { %9523 = vmatprep.subr.msk.mxu0 %vm3547_vm12, %v16536_v39  ;;  %vm3595_vm12 = vcmp.eq.s32.totalorder %v3397_v15, %v16534_v35 }
 0x47e   : > { %9524 = vmatpush1.msk.msra.mxu0 %vm3546_vm9, %v16536_v39  ;;  %vm3594_vm9 = vcmp.eq.s32.totalorder %v3397_v15, %v16535_v54 }
 0x47f   : > { %9525 = vmatprep.subr.msk.mxu0 %vm3545_vm0, %v16536_v39  ;;  %vm3593_vm0 = vcmp.eq.s32.totalorder %v3396_v47, %v16534_v35 }
 0x480   : > { %9526 = vmatpush1.msk.msra.mxu0 %vm3544_vm6, %v16536_v39  ;;  %vm3592_vm6 = vcmp.eq.s32.totalorder %v3396_v47, %v16535_v54 }
 0x481   : > { %9527 = vmatprep.subr.msk.mxu0 %vm3543_vm3, %v16536_v39  ;;  %vm3591_vm3 = vcmp.eq.s32.totalorder %v3395_v33, %v16534_v35 }
 0x482   : > { %9528 = vmatpush1.msk.msra.mxu0 %vm3542_vm10, %v16536_v39  ;;  %vm3590_vm10 = vcmp.eq.s32.totalorder %v3395_v33, %v16535_v54 }
 0x483   : > { %9529 = vmatprep.subr.msk.mxu0 %vm3541_vm14, %v16536_v39  ;;  %vm3589_vm14 = vcmp.eq.s32.totalorder %v3394_v23, %v16534_v35 }
 0x484   : > { %9530 = vmatpush1.msk.msra.mxu0 %vm3540_vm4, %v16536_v39  ;;  %vm3588_vm4 = vcmp.eq.s32.totalorder %v3394_v23, %v16535_v54 }
 0x485   : > { %9531 = vmatprep.subr.msk.mxu0 %vm3539_vm2, %v16536_v39  ;;  %vm3587_vm2 = vcmp.eq.s32.totalorder %v3393_v43, %v16534_v35 }
 0x486   : > { %9532 = vmatpush1.msk.msra.mxu0 %vm3538_vm13, %v16536_v39  ;;  %vm3586_vm13 = vcmp.eq.s32.totalorder %v3393_v43, %v16535_v54 }
 0x487   : > { %9533 = vmatprep.subr.msk.mxu0 %vm3537_vm15, %v16536_v39  ;;  %vm3584_vm15 = vcmp.eq.s32.totalorder %v3392_v7, %v16535_v54 }
 0x488   : > { %9534 = vmatpush1.msk.msra.mxu0 %vm3536_vm5, %v16536_v39  ;;  %vm3582_vm5 = vcmp.eq.s32.totalorder %v3391_v57, %v16535_v54 }
 0x489   : > { %9535 = vmatprep.subr.msk.mxu0 %vm3997_vm7, %v9374_v17 }
 0x48a   : > { %9536 = vmatpush2.msk.msra.mxu0 %vm3997_vm7, %v9373_v40 }
 0x48b   : > { %9537 = vmatprep.subr.msk.mxu0 %vm3595_vm12, %v16536_v39  ;;  %vm3581_vm12 = vcmp.eq.s32.totalorder %v3390_v37, %v16534_v35 }
 0x48c   : > { %9538 = vmatpush2.msk.msra.mxu0 %vm3594_vm9, %v16536_v39  ;;  %vm3580_vm9 = vcmp.eq.s32.totalorder %v3390_v37, %v16535_v54 }
 0x48d   : > { %9539 = vmatprep.subr.msk.mxu0 %vm3593_vm0, %v16536_v39  ;;  %vm3579_vm0 = vcmp.eq.s32.totalorder %v3389_v4, %v16534_v35 }
 0x48e   : > { %9540 = vmatpush2.msk.msra.mxu0 %vm3592_vm6, %v16536_v39  ;;  %vm3578_vm6 = vcmp.eq.s32.totalorder %v3389_v4, %v16535_v54 }
 0x48f   : > { %9541 = vmatprep.subr.msk.mxu0 %vm3591_vm3, %v16536_v39  ;;  %vm3577_vm3 = vcmp.eq.s32.totalorder %v3388_v20, %v16534_v35 }
 0x490   : > { %9542 = vmatpush2.msk.msra.mxu0 %vm3590_vm10, %v16536_v39  ;;  %vm3576_vm10 = vcmp.eq.s32.totalorder %v3388_v20, %v16535_v54 }
 0x491   : > { %9543 = vmatprep.subr.msk.mxu0 %vm3589_vm14, %v16536_v39  ;;  %vm3575_vm14 = vcmp.eq.s32.totalorder %v3387_v52, %v16534_v35 }
 0x492   : > { %9544 = vmatpush2.msk.msra.mxu0 %vm3588_vm4, %v16536_v39  ;;  %vm3574_vm4 = vcmp.eq.s32.totalorder %v3387_v52, %v16535_v54 }
 0x493   : > { %9545 = vmatprep.subr.msk.mxu0 %vm3587_vm2, %v16536_v39  ;;  %vm3573_vm2 = vcmp.eq.s32.totalorder %v3386_v62, %v16534_v35 }
 0x494   : > { %9546 = vmatpush2.msk.msra.mxu0 %vm3586_vm13, %v16536_v39  ;;  %vm3572_vm13 = vcmp.eq.s32.totalorder %v3386_v62, %v16535_v54 }
 0x495   : > { %9547 = vmatprep.subr.msk.mxu0 %vm3585_vm1, %v16536_v39  ;;  %vm3571_vm1 = vcmp.eq.s32.totalorder %v3385_v28, %v16534_v35 }
 0x496   : > { %9548 = vmatpush2.msk.msra.mxu0 %vm3584_vm15, %v16536_v39  ;;  %vm3570_vm15 = vcmp.eq.s32.totalorder %v3385_v28, %v16535_v54 }
 0x497   : > { %9549 = vmatprep.subr.msk.mxu0 %vm3583_vm8, %v16536_v39  ;;  %vm3569_vm8 = vcmp.eq.s32.totalorder %v3384_v3, %v16534_v35 }
 0x498   : > { %9550 = vmatpush2.msk.msra.mxu0 %vm3582_vm5, %v16536_v39  ;;  %vm3568_vm5 = vcmp.eq.s32.totalorder %v3384_v3, %v16535_v54 }
 0x499   : > { %9551 = vmatprep.subr.msk.mxu0 %vm3581_vm12, %v16536_v39  ;;  %vm16592_vm12 = vcmask 818176  }
 0x49a   : > { %9552 = vmatpush2.msk.msra.mxu0 %vm3580_vm9, %v16536_v39  ;;  %vm16593_vm9 = vmmov %vm16592_vm12 }
 0x49b   : > { %9553 = vmatprep.subr.msk.mxu0 %vm3579_vm0, %v16536_v39  ;;  %vm16594_vm0 = vmmov %vm16593_vm9 }
 0x49c   : > { %9554 = vmatpush2.msk.msra.mxu0 %vm3578_vm6, %v16536_v39  ;;  %vm16595_vm6 = vmmov %vm16594_vm0 }
 0x49d   : > { %9555 = vmatprep.subr.msk.mxu0 %vm3577_vm3, %v16536_v39  ;;  %vm16596_vm3 = vmmov %vm16594_vm0 }
 0x49e   : > { %9556 = vmatpush2.msk.msra.mxu0 %vm3576_vm10, %v16536_v39  ;;  %vm16597_vm10 = vmmov %vm16594_vm0 }
 0x49f   : > { %9557 = vmatprep.subr.msk.mxu0 %vm3575_vm14, %v16536_v39  ;;  %vm16598_vm14 = vmmov %vm16594_vm0 }
 0x4a0   : > { %9558 = vmatpush2.msk.msra.mxu0 %vm3574_vm4, %v16536_v39  ;;  %vm3990_vm4 = vcmask 941056  }
 0x4a1   : > { %9559 = vmatprep.subr.msk.mxu0 %vm3573_vm2, %v16536_v39  ;;  %vm16599_vm2 = vmmov %vm16594_vm0 }
 0x4a2   : > { %9560 = vmatpush2.msk.msra.mxu0 %vm3572_vm13, %v16536_v39  ;;  %vm16600_vm13 = vmmov %vm16594_vm0 }
 0x4a3   : > { %9561 = vmatprep.subr.msk.mxu0 %vm3571_vm1, %v16536_v39  ;;  %vm16601_vm1 = vmmov %vm16594_vm0 }
 0x4a4   : > { %9562 = vmatpush2.msk.msra.mxu0 %vm3570_vm15, %v16536_v39  ;;  %vm4272_vm15 = vcmask 1041408  }
 0x4a5   : > { %9563 = vmatprep.subr.msk.mxu0 %vm3569_vm8, %v16536_v39  ;;  %vm16604_vm8 = vcmask 1039360  }
 0x4a6   : > { %9564 = vmatpush2.msk.msra.mxu0 %vm3568_vm5, %v16536_v39  ;;  %vm4262_vm5 = vcmask 80896  }
 0x4bf   : > { %v10209_v0 = vpop.permute.xlu0 %10208 }
 0x4c0   : > { %v10211_v2 = vunpack.i.h.bf16 %v10209_v0  ;;  %v10210_v10 = vunpack.i.l.bf16 %v10209_v0 }
 0x4c2   : > { %v3274_v9 = vsel %vm16592_vm12, %v10210_v10, %v10211_v2  ;;  %vm16605_vm12 = vmmov %vm16604_vm8 }
 0x4c3   : > { %v3298_v51 = vmax.f32 %v13965_v46, %v3274_v9 }
 0x4c5   : > { %4074 = vmatprep.mubr.f32.mxu0 %v3298_v51 }
 0x4c8   : > { %v10214_v14 = vpop.permute.xlu1 %10213 }
 0x4c9   : > { %v10215_v35 = vunpack.i.l.bf16 %v10214_v14  ;;  %v10216_v59 = vunpack.i.h.bf16 %v10214_v14 }
 0x4cb   : > { %v3273_v45 = vsel %vm16593_vm9, %v10215_v35, %v10210_v10  ;;  %v3269_v41 = vsel %vm16594_vm0, %v10206_v21, %v10216_v59  ;;  %vm16606_vm9 = vcmask 1031168  }
 0x4cc   : > { %v3297_v54 = vmax.f32 %v14001_v63, %v3273_v45  ;;  %v3250_v5 = vpop.permute.xlu1 %3249  ;;  %v3293_v6 = vmax.f32 %v13807_v56, %v3269_v41  ;;  %vm16607_vm0 = vmmov %vm16606_vm9 }
 0x4ce   : > { %4075 = vmatmul.mubr.f32.gmra.mxu0 %v3297_v54 }
 0x4dc   : > { %v3262_v18 = vpop.permute.xlu1 %3261 }
 0x4de   : > { %v10219_v26 = vpop.permute.xlu0 %10218 }
 0x4df   : > { %v10221_v61 = vunpack.i.h.bf16 %v10219_v26  ;;  %v10220_v24 = vunpack.i.l.bf16 %v10219_v26 }
 0x4e0   : > { %v3266_v34 = vpop.permute.xlu1 %3265 }
 0x4e1   : > { %v3270_v46 = vsel %vm16595_vm6, %v10216_v59, %v10220_v24  ;;  %v3276_v42 = vsel %vm16596_vm3, %v10221_v61, %v3262_v18  ;;  %v3271_v48 = vsel %vm16597_vm10, %v10220_v24, %v3250_v5  ;;  %v3275_v21 = vsel %vm16599_vm2, %v10211_v2, %v10221_v61 }
 0x4e2   : > { %v3252_v27 = vpop.permute.xlu0 %3251  ;;  %v3294_v63 = vmax.f32 %v13998_v44, %v3270_v46  ;;  %v3300_v60 = vmax.f32 %v14083_v13, %v3276_v42  ;;  %v3295_v12 = vmax.f32 %v14080_v36, %v3271_v48  ;;  %v9569_v42 = vld [vmem:[%s15522_s3 + $0x28] sm:$0xf]  ;;  %vm16608_vm6 = vcmask 1022976  }
 0x4e3   : > { %v3272_v19 = vsel %vm16598_vm14, %v3250_v5, %v3252_v27  ;;  %v9567_v5 = vld [vmem:[%s15522_s3 + $0x18] sm:$0xff]  ;;  %vm16609_vm3 = vmmov %vm16608_vm6  ;;  %vm16610_vm10 = vcmask 1014784   ;;  %vm5178_vm2 = vcmask 924672  }
 0x4e4   : > { %v3296_v11 = vmax.f32 %v14026_v22, %v3272_v19  ;;  %4145 = vmatprep.mubr.f32.mxu1 %v3294_v63  ;;  %v3299_v22 = vmax.f32 %v13968_v49, %v3275_v21  ;;  %v4239_v63 = vld [vmem:[%s15522_s3] sm:$0xff]  ;;  %vm16611_vm14 = vmmov %vm16610_vm10 }
 0x4e5   : > { %4146 = vmatmul.mubr.f32.vlgmr.msra.gmra.mxu1 %v3293_v6 }
 0x4e6   : > { %v3264_v32 = vpop.permute.xlu0 %3263  ;;  %4151 = vmatprep.mubr.f32.mxu1 %v3300_v60  ;;  %9565 = vmatprep.mubr.msk.f32.mxu0 %vm3990_vm4, %v3296_v11  ;;  %v4240_v60 = vld [vmem:[%s15522_s3 + $0x8] sm:$0xff] }
 0x4e7   : > { %v3277_v44 = vsel %vm16600_vm13, %v3262_v18, %v3264_v32  ;;  %v3278_v56 = vsel %vm16601_vm1, %v3264_v32, %v3266_v34  ;;  %4223 = vmatmul.mubr.f32.vlgmr.msra.gmra.mxu0 %v3295_v12  ;;  %v9568_v18 = vld [vmem:[%s15522_s3 + $0x20] sm:$0xff]  ;;  %v4241_v32 = vld [vmem:[%s15522_s3 + $0x10] sm:$0xf]  ;;  %vm5416_vm13 = vcmask 850944   ;;  %vm5059_vm1 = vcmask 932864  }
 0x4e8   : > { %v3302_v55 = vmax.f32 %v14135_v30, %v3278_v56  ;;  %v3301_v13 = vmax.f32 %v14086_v53, %v3277_v44 }
 0x4e9   : > { %4152 = vmatmul.mubr.f32.gmra.mxu1 %v3299_v22  ;;  %v9580_v22 = vld [vmem:[%s15522_s3 + $0x30] sm:$0xff] }
 0x4ea   : > { %9566 = vmatprep.mubr.msk.f32.mxu0 %vm3990_vm4, %v3302_v55  ;;  %4341 = vmatprep.mubr.f32.mxu1 %v15858_v1 }
 0x4eb   : > { %4229 = vmatmul.mubr.f32.gmra.mxu0 %v3301_v13 }
 0x4ec   : > { %5022 = vmatprep.mubr.f32.mxu0 %v15858_v1 }
 0x4ed   : > { %v3983_v58 = vpop.permute.xlu1 %3982 }
 0x4f3   : > { %v3988_v15 = vpop.permute.xlu0 %3987 }
 0x529   : > { %v4070_v36 = vpop.f32.mrf.mxu0 }
 0x52a   : > { %v4071_v30 = vadd.f32 %v4070_v36, %v3983_v58 }
 0x52b   : > { %v4072_v38 = vpop.f32.mrf.mxu0 }
 0x52c   : > { %v4073_v33 = vadd.f32 %v4072_v38, %v3983_v58  ;;  %v9581_v38 = vld [vmem:[%s15522_s3 + $0x38] sm:$0xff]  ;;  %v9582_v58 = vld [vmem:[%s15522_s3 + $0x40] sm:$0xf] }
 0x58e   : > { %v4076_v16 = vpop.f32.mrf.mxu0 }
 0x58f   : > { %v4077_v47 = vadd.f32 %v4076_v16, %v3988_v15 }
 0x590   : > { %v4078_v29 = vpop.f32.mrf.mxu0 }
 0x591   : > { %v4079_v23 = vadd.f32 %v4078_v29, %v3988_v15 }
 0x5a5   : > { %v4147_v50 = vpop.f32.mrf.mxu1 }
 0x5a6   : > { %v4148_v43 = vadd.f32 %v4147_v50, %v4071_v30 }
 0x5a7   : > { %v4149_v49 = vpop.f32.mrf.mxu1  ;;  %v4224_v17 = vpop.f32.mrf.mxu0 }
 0x5a8   : > { %v4150_v4 = vadd.f32 %v4149_v49, %v4073_v33  ;;  %v4225_v28 = vadd.f32 %v4224_v17, %v4148_v43  ;;  %v9588_v17 = vld [vmem:[%s15522_s3 + $0x48] sm:$0xff]  ;;  %v9589_v43 = vld [vmem:[%s15522_s3 + $0x50] sm:$0xff] }
 0x5a9   : > { %v4153_v53 = vpop.f32.mrf.mxu1  ;;  %v4226_v40 = vpop.f32.mrf.mxu0 }
 0x5aa   : > { %v4154_v7 = vadd.f32 %v4153_v53, %v4077_v47  ;;  %v4227_v2 = vadd.f32 %v4226_v40, %v4150_v4  ;;  %v14302_v9 = vmax.f32 %v4225_v28, 0.0  ;;  %v9590_v4 = vld [vmem:[%s15522_s3 + $0x58] sm:$0xf] }
 0x5ab   : > { %v4155_v57 = vpop.f32.mrf.mxu1  ;;  %v4230_v37 = vpop.f32.mrf.mxu0 }
 0x5ac   : > { %v4156_v20 = vadd.f32 %v4155_v57, %v4079_v23  ;;  %v4231_v52 = vadd.f32 %v4230_v37, %v4154_v7  ;;  %v14306_v51 = vmax.f32 %v4227_v2, 0.0  ;;  %v9612_v57 = vld [vmem:[%s15522_s3 + $0x90] sm:$0xff] }
 0x5ad   : > { %v4232_v62 = vpop.f32.mrf.mxu0 }
 0x5ae   : > { %v14296_v3 = vmax.f32 %v4231_v52, 0.0  ;;  %v4233_v0 = vadd.f32 %v4232_v62, %v4156_v20  ;;  %v9596_v62 = vld [vmem:[%s15522_s3 + $0x60] sm:$0xff] }
 0x5b0   : > { %v14298_v10 = vmax.f32 %v4233_v0, 0.0  ;;  %4254 = vrot.lane.b32.xlu0 %v14296_v3, %s16261_s25 }
 0x5b2   : > { %4256 = vrot.lane.b32.xlu1 %v14298_v10, %s16261_s25 }
 0x5b4   : > { %4250 = vrot.lane.b32.xlu0 %v14302_v9, %s16261_s25 }
 0x5b6   : > { %4252 = vrot.lane.b32.xlu1 %v14306_v51, %s16261_s25 }
 0x5b8   : > { %4464 = vrot.lane.b32.xlu0 %v14296_v3, %s16602_s16 }
 0x5ba   : > { %4466 = vrot.lane.b32.xlu1 %v14298_v10, %s16602_s16 }
 0x5bc   : > { %4460 = vrot.lane.b32.xlu0 %v14302_v9, %s16602_s16 }
 0x5be   : > { %4462 = vrot.lane.b32.xlu1 %v14306_v51, %s16602_s16  ;;  %s10322_s16 = smov 103  }
 0x5c0   : > { %4582 = vrot.lane.b32.xlu0 %v14296_v3, %s16603_s22 }
 0x5c2   : > { %4584 = vrot.lane.b32.xlu1 %v14298_v10, %s16603_s22 }
 0x5c4   : > { %4578 = vrot.lane.b32.xlu0 %v14302_v9, %s16603_s22 }
 0x5c6   : > { %4580 = vrot.lane.b32.xlu1 %v14306_v51, %s16603_s22  ;;  %s10323_s22 = smov 102  }
 0x5c8   : > { %4700 = vrot.lane.b32.xlu0 %v14296_v3, %s15951_s29 }
 0x5ca   : > { %4702 = vrot.lane.b32.xlu1 %v14298_v10, %s15951_s29 }
 0x5cc   : > { %4696 = vrot.lane.b32.xlu0 %v14302_v9, %s15951_s29 }
 0x5ce   : > { %4698 = vrot.lane.b32.xlu1 %v14306_v51, %s15951_s29  ;;  %s10318_s29 = smov 114  }
 0x5d0   : > { %4818 = vrot.lane.b32.xlu0 %v14296_v3, %s10316_s14 }
 0x5d2   : > { %4820 = vrot.lane.b32.xlu1 %v14298_v10, %s10316_s14 }
 0x5d4   : > { %4814 = vrot.lane.b32.xlu0 %v14302_v9, %s10316_s14 }
 0x5d6   : > { %4816 = vrot.lane.b32.xlu1 %v14306_v51, %s10316_s14 }
 0x5d8   : > { %4937 = vrot.lane.b32.xlu0 %v14296_v3, %s10317_s30 }
 0x5da   : > { %4939 = vrot.lane.b32.xlu1 %v14298_v10, %s10317_s30 }
 0x5dc   : > { %4933 = vrot.lane.b32.xlu0 %v14302_v9, %s10317_s30 }
 0x5de   : > { %4935 = vrot.lane.b32.xlu1 %v14306_v51, %s10317_s30  ;;  %s10324_s30 = smov 101  }
 0x5e0   : > { %5055 = vrot.lane.b32.xlu0 %v14296_v3, %s10318_s29 }
 0x5e2   : > { %5057 = vrot.lane.b32.xlu1 %v14298_v10, %s10318_s29 }
 0x5e4   : > { %5051 = vrot.lane.b32.xlu0 %v14302_v9, %s10318_s29 }
 0x5e6   : > { %5053 = vrot.lane.b32.xlu1 %v14306_v51, %s10318_s29  ;;  %s10325_s29 = smov 92  }
 0x5e8   : > { %5174 = vrot.lane.b32.xlu0 %v14296_v3, %s10319_s13 }
 0x5ea   : > { %5176 = vrot.lane.b32.xlu1 %v14298_v10, %s10319_s13 }
 0x5ec   : > { %5170 = vrot.lane.b32.xlu0 %v14302_v9, %s10319_s13 }
 0x5ee   : > { %5172 = vrot.lane.b32.xlu1 %v14306_v51, %s10319_s13  ;;  %s10331_s13 = smov 79  }
 0x5f0   : > { %5293 = vrot.lane.b32.xlu0 %v14296_v3, %s10320_s24 }
 0x5f2   : > { %5295 = vrot.lane.b32.xlu1 %v14298_v10, %s10320_s24 }
 0x5f4   : > { %5289 = vrot.lane.b32.xlu0 %v14302_v9, %s10320_s24 }
 0x5f6   : > { %5291 = vrot.lane.b32.xlu1 %v14306_v51, %s10320_s24  ;;  %s10328_s24 = smov 89  }
 0x5f8   : > { %5412 = vrot.lane.b32.xlu0 %v14296_v3, %s10321_s15 }
 0x5fa   : > { %5414 = vrot.lane.b32.xlu1 %v14298_v10, %s10321_s15 }
 0x5fc   : > { %5408 = vrot.lane.b32.xlu0 %v14302_v9, %s10321_s15 }
 0x5fe   : > { %5410 = vrot.lane.b32.xlu1 %v14306_v51, %s10321_s15 }
 0x600   : > { %5531 = vrot.lane.b32.xlu0 %v14296_v3, %s10322_s16 }
 0x602   : > { %5533 = vrot.lane.b32.xlu1 %v14298_v10, %s10322_s16 }
 0x604   : > { %5527 = vrot.lane.b32.xlu0 %v14302_v9, %s10322_s16 }
 0x606   : > { %5529 = vrot.lane.b32.xlu1 %v14306_v51, %s10322_s16  ;;  %s10330_s16 = smov 80  }
 0x608   : > { %5650 = vrot.lane.b32.xlu0 %v14296_v3, %s10323_s22 }
 0x60a   : > { %5652 = vrot.lane.b32.xlu1 %v14298_v10, %s10323_s22 }
 0x60c   : > { %5646 = vrot.lane.b32.xlu0 %v14302_v9, %s10323_s22 }
 0x60e   : > { %5648 = vrot.lane.b32.xlu1 %v14306_v51, %s10323_s22  ;;  %s10327_s22 = smov 90  }
 0x610   : > { %5769 = vrot.lane.b32.xlu0 %v14296_v3, %s10324_s30 }
 0x612   : > { %5771 = vrot.lane.b32.xlu1 %v14298_v10, %s10324_s30 }
 0x614   : > { %5765 = vrot.lane.b32.xlu0 %v14302_v9, %s10324_s30 }
 0x616   : > { %5767 = vrot.lane.b32.xlu1 %v14306_v51, %s10324_s30  ;;  %s9862_s30 = sshll.u32 %s10418_s21, 4 }
 0x618   : > { %5888 = vrot.lane.b32.xlu0 %v14296_v3, %s15960_s12 }
 0x61a   : > { %5890 = vrot.lane.b32.xlu1 %v14298_v10, %s15960_s12 }
 0x61c   : > { %5884 = vrot.lane.b32.xlu0 %v14302_v9, %s15960_s12 }
 0x61e   : > { %5886 = vrot.lane.b32.xlu1 %v14306_v51, %s15960_s12  ;;  %s10326_s12 = smov 91  }
 0x620   : > { %6006 = vrot.lane.b32.xlu0 %v14296_v3, %s10325_s29 }
 0x622   : > { %v4255_v14 = vpop.permute.xlu0 %4254  ;;  %6008 = vrot.lane.b32.xlu1 %v14298_v10, %s10325_s29 }
 0x624   : > { %v4257_v35 = vpop.permute.xlu1 %4256  ;;  %6002 = vrot.lane.b32.xlu0 %v14302_v9, %s10325_s29 }
 0x625   : > { %v4259_v45 = vsel %vm16604_vm8, %v4255_v14, %v4257_v35  ;;  %9570 = vmatprep.subr.msk.mxu1 %vm4272_vm15, %v4257_v35  ;;  %vm5297_vm8 = vcmask 916480  }
 0x626   : > { %9571 = vmatpush1.msk.msra.mxu1 %vm4272_vm15, %v4259_v45  ;;  %6004 = vrot.lane.b32.xlu1 %v14306_v51, %s10325_s29  ;;  %v4251_v54 = vpop.permute.xlu0 %4250  ;;  %s10329_s29 = smov 88  }
 0x628   : > { %v4253_v59 = vpop.permute.xlu1 %4252  ;;  %6125 = vrot.lane.b32.xlu0 %v14296_v3, %s10326_s12 }
 0x629   : > { %4307 = vmatprep.subr.mxu1 %v4253_v59  ;;  %v4258_v26 = vsel %vm16605_vm12, %v4251_v54, %v4253_v59  ;;  %v9597_v54 = vld [vmem:[%s15522_s3 + $0x68] sm:$0xff]  ;;  %vm5654_vm12 = vcmask 834560  }
 0x62a   : > { %6127 = vrot.lane.b32.xlu1 %v14298_v10, %s10326_s12  ;;  %4308 = vmatpush1.msra.mxu1 %v4258_v26  ;;  %v4465_v61 = vpop.permute.xlu0 %4464 }
 0x62b   : > { %9572 = vmatmul.mubr.msk.f32.vlgmr.msra.gmra.mxu1 %vm4262_vm5, %v9567_v5  ;;  %9575 = vmatprep.subr.msk.mxu1 %vm4272_vm15, %v14298_v10 }
 0x62c   : > { %v4467_v24 = vpop.permute.xlu1 %4466  ;;  %6121 = vrot.lane.b32.xlu0 %v14302_v9, %s10326_s12  ;;  %9576 = vmatpush1.msk.msra.mxu1 %vm4272_vm15, %v14296_v3 }
 0x62d   : > { %4403 = vmatprep.subr.mxu1 %v14306_v51  ;;  %4347 = vmatprep.mubr.f32.mxu1 %v15858_v1  ;;  %v4469_v6 = vsel %vm16606_vm9, %v4465_v61, %v4467_v24  ;;  %v9598_v61 = vld [vmem:[%s15522_s3 + $0x70] sm:$0xf]  ;;  %vm5535_vm9 = vcmask 842752  }
 0x62e   : > { %6123 = vrot.lane.b32.xlu1 %v14306_v51, %s10326_s12  ;;  %4404 = vmatpush1.msra.mxu1 %v14302_v9  ;;  %v4461_v41 = vpop.permute.xlu0 %4460  ;;  %s10332_s12 = smov 78  }
 0x62f   : > { %9573 = vmatmul.mubr.msk.f32.gmra.mxu1 %vm4262_vm5, %v9568_v18  ;;  %9583 = vmatprep.subr.msk.mxu1 %vm4272_vm15, %v4467_v24  ;;  %v9628_v24 = vld [vmem:[%s15522_s3 + $0xc0] sm:$0xff] }
 0x630   : > { %v4463_v46 = vpop.permute.xlu1 %4462  ;;  %6244 = vrot.lane.b32.xlu0 %v14296_v3, %s10327_s22  ;;  %4353 = vmatprep.mubr.f32.mxu1 %v15858_v1 }
 0x631   : > { %v4468_v21 = vsel %vm16607_vm0, %v4461_v41, %v4463_v46  ;;  %vm16612_vm0 = vcmask 818176  }
 0x632   : > { %6246 = vrot.lane.b32.xlu1 %v14298_v10, %s10327_s22  ;;  %v4583_v48 = vpop.permute.xlu0 %4582 }
 0x633   : > { %9574 = vmatmul.mubr.msk.f32.gmra.mxu1 %vm4262_vm5, %v9569_v42  ;;  %v9629_v42 = vld [vmem:[%s15522_s3 + $0xc8] sm:$0xff] }
 0x634   : > { %v4585_v27 = vpop.permute.xlu1 %4584  ;;  %6240 = vrot.lane.b32.xlu0 %v14302_v9, %s10327_s22  ;;  %4437 = vmatprep.mubr.f32.mxu1 %v15858_v1 }
 0x635   : > { %v4587_v13 = vsel %vm16608_vm6, %v4583_v48, %v4585_v27  ;;  %vm16613_vm6 = vmmov %vm16612_vm0 }
 0x636   : > { %6242 = vrot.lane.b32.xlu1 %v14306_v51, %s10327_s22  ;;  %v4579_v19 = vpop.permute.xlu0 %4578  ;;  %s10333_s22 = smov 77  }
 0x637   : > { %9577 = vmatmul.mubr.msk.f32.vlgmr.msra.gmra.mxu1 %vm4262_vm5, %v4239_v63  ;;  %v9605_v63 = vld [vmem:[%s15522_s3 + $0x80] sm:$0xff] }
 0x638   : > { %9584 = vmatpush1.msk.msra.mxu1 %vm4272_vm15, %v4469_v6  ;;  %v4581_v11 = vpop.permute.xlu1 %4580  ;;  %6363 = vrot.lane.b32.xlu0 %v14296_v3, %s10328_s24 }
 0x639   : > { %4515 = vmatprep.subr.mxu1 %v4463_v46  ;;  %4443 = vmatprep.mubr.f32.mxu1 %v15858_v1  ;;  %v4586_v16 = vsel %vm16609_vm3, %v4579_v19, %v4581_v11  ;;  %v9604_v46 = vld [vmem:[%s15522_s3 + $0x78] sm:$0xff]  ;;  %vm5773_vm3 = vcmask 826368  }
 0x63a   : > { %4516 = vmatpush1.msra.mxu1 %v4468_v21  ;;  %6365 = vrot.lane.b32.xlu1 %v14298_v10, %s10328_s24  ;;  %v4701_v12 = vpop.permute.xlu0 %4700  ;;  %v9613_v21 = vld [vmem:[%s15522_s3 + $0x98] sm:$0xff] }
 0x63b   : > { %9591 = vmatprep.subr.msk.mxu1 %vm4272_vm15, %v4585_v27  ;;  %9578 = vmatmul.mubr.msk.f32.gmra.mxu1 %vm4262_vm5, %v4240_v60 }
 0x63c   : > { %v4703_v34 = vpop.permute.xlu1 %4702  ;;  %6359 = vrot.lane.b32.xlu0 %v14302_v9, %s10328_s24  ;;  %4449 = vmatprep.mubr.f32.mxu1 %v15858_v1 }
 0x63d   : > { %v4705_v53 = vsel %vm16610_vm10, %v4701_v12, %v4703_v34  ;;  %vm6129_vm10 = vcmask 744448  }
 0x63e   : > { %6361 = vrot.lane.b32.xlu1 %v14306_v51, %s10328_s24  ;;  %v4697_v44 = vpop.permute.xlu0 %4696 }
 0x63f   : > { %9579 = vmatmul.mubr.msk.f32.gmra.mxu1 %vm4262_vm5, %v4241_v32 }
 0x640   : > { %v4699_v56 = vpop.permute.xlu1 %4698  ;;  %6482 = vrot.lane.b32.xlu0 %v14296_v3, %s10329_s29  ;;  %4549 = vmatprep.mubr.f32.mxu1 %v15858_v1 }
 0x641   : > { %v4704_v33 = vsel %vm16611_vm14, %v4697_v44, %v4699_v56  ;;  %vm6010_vm14 = vcmask 752640  }
 0x642   : > { %6484 = vrot.lane.b32.xlu1 %v14298_v10, %s10329_s29  ;;  %v14450_v55 = vpop.permute.xlu0 %4818 }
 0x643   : > { %9585 = vmatmul.mubr.msk.f32.vlgmr.msra.gmra.mxu1 %vm4262_vm5, %v9580_v22 }
 0x644   : > { %9592 = vmatpush1.msk.msra.mxu1 %vm4272_vm15, %v4587_v13  ;;  %v14455_v36 = vpop.permute.xlu1 %4820  ;;  %6478 = vrot.lane.b32.xlu0 %v14302_v9, %s10329_s29  ;;  %v9645_v13 = vld [vmem:[%s15522_s3 + $0xf8] sm:$0xff] }
 0x645   : > { %4633 = vmatprep.subr.mxu1 %v4581_v11  ;;  %4555 = vmatprep.mubr.f32.mxu1 %v15858_v1 }
 0x646   : > { %4634 = vmatpush1.msra.mxu1 %v4586_v16  ;;  %6480 = vrot.lane.b32.xlu1 %v14306_v51, %s10329_s29  ;;  %v14464_v29 = vpop.permute.xlu0 %4814  ;;  %s10334_s29 = smov 76  }
 0x647   : > { %9599 = vmatprep.subr.msk.mxu1 %vm4272_vm15, %v4703_v34  ;;  %9586 = vmatmul.mubr.msk.f32.gmra.mxu1 %vm4262_vm5, %v9581_v38  ;;  %v9644_v34 = vld [vmem:[%s15522_s3 + $0xf0] sm:$0xff]  ;;  %v9620_v38 = vld [vmem:[%s15522_s3 + $0xa8] sm:$0xff] }
 0x648   : > { %v4817_v50 = vpop.permute.xlu1 %4816  ;;  %6601 = vrot.lane.b32.xlu0 %v14296_v3, %s10330_s16  ;;  %4561 = vmatprep.mubr.f32.mxu1 %v15858_v1 }
 0x64a   : > { %6603 = vrot.lane.b32.xlu1 %v14298_v10, %s10330_s16  ;;  %v4938_v15 = vpop.permute.xlu0 %4937 }
 0x64b   : > { %9587 = vmatmul.mubr.msk.f32.gmra.mxu1 %vm4262_vm5, %v9582_v58  ;;  %v9646_v58 = vld [vmem:[%s15522_s3 + $0x100] sm:$0xf] }
 0x64c   : > { %v4940_v49 = vpop.permute.xlu1 %4939  ;;  %6597 = vrot.lane.b32.xlu0 %v14302_v9, %s10330_s16  ;;  %4667 = vmatprep.mubr.f32.mxu1 %v15858_v1 }
 0x64d   : > { %v14481_v30 = vsel %vm3990_vm4, %v4938_v15, %v4940_v49  ;;  %9615 = vmatprep.subr.msk.mxu0 %vm4272_vm15, %v4940_v49 }
 0x64e   : > { %6599 = vrot.lane.b32.xlu1 %v14306_v51, %s10330_s16  ;;  %9616 = vmatpush1.msk.msra.mxu0 %vm4272_vm15, %v14481_v30  ;;  %v4934_v47 = vpop.permute.xlu0 %4933  ;;  %s375_s16 = sand.u32 1, %s10279_s18  }
 0x64f   : > { %9593 = vmatmul.mubr.msk.f32.vlgmr.msra.gmra.mxu1 %vm4262_vm5, %v9588_v17 }
 0x650   : > { %9600 = vmatpush1.msk.msra.mxu1 %vm4272_vm15, %v4705_v53  ;;  %v14490_v40 = vpop.permute.xlu1 %4935  ;;  %6720 = vrot.lane.b32.xlu0 %v14296_v3, %s10331_s13  ;;  %v9660_v53 = vld [vmem:[%s15522_s3 + $0x120] sm:$0xff] }
 0x651   : > { %4751 = vmatprep.subr.mxu1 %v4699_v56  ;;  %4988 = vmatprep.subr.mxu0 %v14490_v40  ;;  %v14497_v23 = vsel %vm3990_vm4, %v4934_v47, %v14490_v40  ;;  %vm4822_vm4 = vcmask 949248   ;;  %v9614_v56 = vld [vmem:[%s15522_s3 + $0xa0] sm:$0xf] }
 0x652   : > { %4752 = vmatpush1.msra.mxu1 %v4704_v33  ;;  %6722 = vrot.lane.b32.xlu1 %v14298_v10, %s10331_s13  ;;  %v14503_v7 = vpop.permute.xlu0 %5055  ;;  %v4824_v0 = vsel %vm4822_vm4, %v14450_v55, %v14455_v36  ;;  %v4823_v14 = vsel %vm4822_vm4, %v14464_v29, %v4817_v50  ;;  %v9622_v33 = vld [vmem:[%s15522_s3 + $0xb8] sm:$0xf] }
 0x653   : > { %4673 = vmatprep.mubr.f32.mxu1 %v15858_v1  ;;  %9607 = vmatprep.subr.msk.mxu1 %vm4272_vm15, %v14455_v36 }
 0x654   : > { %4989 = vmatpush1.msra.mxu0 %v14497_v23  ;;  %9594 = vmatmul.mubr.msk.f32.gmra.mxu1 %vm4262_vm5, %v9589_v43  ;;  %v14513_v37 = vpop.permute.xlu1 %5057  ;;  %v9661_v43 = vld [vmem:[%s15522_s3 + $0x128] sm:$0xff] }
 0x655   : > { %6716 = vrot.lane.b32.xlu0 %v14302_v9, %s10331_s13  ;;  %4679 = vmatprep.mubr.f32.mxu1 %v15858_v1  ;;  %v5061_v32 = vsel %vm5059_vm1, %v14503_v7, %v14513_v37 }
 0x656   : > { %6718 = vrot.lane.b32.xlu1 %v14306_v51, %s10331_s13  ;;  %v14521_v20 = vpop.permute.xlu0 %5051  ;;  %9617 = vmatmul.mubr.msk.f32.vlgmr.msra.gmra.mxu0 %vm4262_vm5, %v9612_v57  ;;  %v9636_v57 = vld [vmem:[%s15522_s3 + $0xd8] sm:$0xff]  ;;  %s10336_s13 = smov [#allocation2]  }
 0x657   : > { %5260 = vmatprep.mubr.f32.mxu0 %v15858_v1  ;;  %s10231_s0 = sshll.u32 %s10336_s13, 4  ;;  %s10232_s0 = int_to_ptr.vmem [resolvable:$false] %s10231_s0 }
 0x658   : > { %9595 = vmatmul.mubr.msk.f32.gmra.mxu1 %vm4262_vm5, %v9590_v4  ;;  %v14526_v52 = vpop.permute.xlu1 %5053  ;;  %s10233_s21 = scalar_lea.vmem %s10232_s0, 32 }
 0x659   : > { %6839 = vrot.lane.b32.xlu0 %v14296_v3, %s10332_s12  ;;  %4785 = vmatprep.mubr.f32.mxu1 %v15858_v1  ;;  %v5060_v22 = vsel %vm5059_vm1, %v14521_v20, %v14526_v52  ;;  %v9662_v20 = vld [vmem:[%s15522_s3 + $0x130] sm:$0xf]  ;;  %vm6486_vm1 = vcmask 719872  }
 0x65a   : > { %6841 = vrot.lane.b32.xlu1 %v14298_v10, %s10332_s12  ;;  %v5175_v28 = vpop.permute.xlu0 %5174 }
 0x65c   : > { %9601 = vmatmul.mubr.msk.f32.vlgmr.msra.gmra.mxu1 %vm4262_vm5, %v9596_v62  ;;  %v5177_v2 = vpop.permute.xlu1 %5176  ;;  %v9637_v62 = vld [vmem:[%s15522_s3 + $0xe0] sm:$0xff] }
 0x65d   : > { %9608 = vmatpush1.msk.msra.mxu1 %vm4272_vm15, %v4824_v0  ;;  %6835 = vrot.lane.b32.xlu0 %v14302_v9, %s10332_s12  ;;  %v5180_v35 = vsel %vm5178_vm2, %v5175_v28, %v5177_v2 }
 0x65e   : > { %4870 = vmatprep.subr.mxu1 %v4817_v50  ;;  %9631 = vmatprep.subr.msk.mxu0 %vm4272_vm15, %v5177_v2  ;;  %v5171_v45 = vpop.permute.xlu0 %5170 }
 0x65f   : > { %4871 = vmatpush1.msra.mxu1 %v4823_v14  ;;  %6837 = vrot.lane.b32.xlu1 %v14306_v51, %s10332_s12 }
 0x660   : > { %4791 = vmatprep.mubr.f32.mxu1 %v15858_v1  ;;  %10090 = vmatprep.subr.msk.mxu1 %vm4272_vm15, %v4940_v49  ;;  %v5173_v59 = vpop.permute.xlu1 %5172  ;;  %v9621_v49 = vld [vmem:[%s15522_s3 + $0xb0] sm:$0xff] }
 0x661   : > { %9632 = vmatpush1.msk.msra.mxu0 %vm4272_vm15, %v5180_v35  ;;  %9602 = vmatmul.mubr.msk.f32.gmra.mxu1 %vm4262_vm5, %v9597_v54  ;;  %v5179_v5 = vsel %vm5178_vm2, %v5171_v45, %v5173_v59  ;;  %v9638_v35 = vld [vmem:[%s15522_s3 + $0xe8] sm:$0xf]  ;;  %v9676_v54 = vld [vmem:[%s15522_s3 + $0x150] sm:$0xff]  ;;  %vm6248_vm2 = vcmask 736256  }
 0x662   : > { %6958 = vrot.lane.b32.xlu0 %v14296_v3, %s10333_s22  ;;  %5226 = vmatprep.subr.mxu0 %v5173_v59  ;;  %v14554_v26 = vpop.permute.xlu0 %5293 }
 0x663   : > { %6960 = vrot.lane.b32.xlu1 %v14298_v10, %s10333_s22  ;;  %4797 = vmatprep.mubr.f32.mxu1 %v15858_v1 }
 0x664   : > { %5227 = vmatpush1.msra.mxu0 %v5179_v5  ;;  %v14564_v18 = vpop.permute.xlu1 %5295 }
 0x665   : > { %9603 = vmatmul.mubr.msk.f32.gmra.mxu1 %vm4262_vm5, %v9598_v61  ;;  %9633 = vmatmul.mubr.msk.f32.vlgmr.msra.gmra.mxu0 %vm4262_vm5, %v9628_v24  ;;  %v5299_v29 = vsel %vm5297_vm8, %v14554_v26, %v14564_v18  ;;  %v9652_v26 = vld [vmem:[%s15522_s3 + $0x108] sm:$0xff]  ;;  %v9677_v24 = vld [vmem:[%s15522_s3 + $0x158] sm:$0xff] }
 0x666   : > { %6954 = vrot.lane.b32.xlu0 %v14302_v9, %s10333_s22  ;;  %4904 = vmatprep.mubr.f32.mxu1 %v15858_v1  ;;  %v14570_v41 = vpop.permute.xlu0 %5289 }
 0x667   : > { %6956 = vrot.lane.b32.xlu1 %v14306_v51, %s10333_s22  ;;  %5266 = vmatprep.mubr.f32.mxu0 %v15858_v1  ;;  %s9065_s22 = scalar_lea.sflag [#allocation3], %s375_s16 }
 0x668   : > { %v14580_v48 = vpop.permute.xlu1 %5291 }
 0x669   : > { %9609 = vmatmul.mubr.msk.f32.vlgmr.msra.gmra.mxu1 %vm4262_vm5, %v9604_v46  ;;  %9634 = vmatmul.mubr.msk.f32.gmra.mxu0 %vm4262_vm5, %v9629_v42  ;;  %v5298_v17 = vsel %vm5297_vm8, %v14570_v41, %v14580_v48  ;;  %v9653_v46 = vld [vmem:[%s15522_s3 + $0x110] sm:$0xff]  ;;  %vm6605_vm8 = vcmask 654336  }
 0x66a   : > { %10092 = vmatpush1.msk.msra.mxu1 %vm4272_vm15, %v14481_v30  ;;  %7077 = vrot.lane.b32.xlu0 %v14296_v3, %s10334_s29  ;;  %v5413_v27 = vpop.permute.xlu0 %5412 }
 0x66b   : > { %10091 = vmatprep.subr.mxu1 %v14490_v40  ;;  %7079 = vrot.lane.b32.xlu1 %v14298_v10, %s10334_s29  ;;  %v9606_v10 = vld [vmem:[%s15522_s3 + $0x88] sm:$0xf] }
 0x66c   : > { %10093 = vmatpush1.msra.mxu1 %v14497_v23  ;;  %4910 = vmatprep.mubr.f32.mxu1 %v15858_v1  ;;  %v5415_v19 = vpop.permute.xlu1 %5414 }
 0x66d   : > { %9623 = vmatprep.subr.msk.mxu1 %vm4272_vm15, %v14513_v37  ;;  %9610 = vmatmul.mubr.msk.f32.gmra.mxu1 %vm4262_vm5, %v9605_v63  ;;  %v5418_v3 = vsel %vm5416_vm13, %v5413_v27, %v5415_v19  ;;  %v9678_v27 = vld [vmem:[%s15522_s3 + $0x160] sm:$0xf] }
 0x66e   : > { %7073 = vrot.lane.b32.xlu0 %v14302_v9, %s10334_s29  ;;  %9647 = vmatprep.subr.msk.mxu0 %vm4272_vm15, %v5415_v19  ;;  %v5409_v6 = vpop.permute.xlu0 %5408  ;;  %v9630_v9 = vld [vmem:[%s15522_s3 + $0xd0] sm:$0xf]  ;;  %v9654_v19 = vld [vmem:[%s15522_s3 + $0x118] sm:$0xf] }
 0x66f   : > { %7075 = vrot.lane.b32.xlu1 %v14306_v51, %s10334_s29  ;;  %4916 = vmatprep.mubr.f32.mxu1 %v15858_v1 }
 0x670   : > { %9648 = vmatpush1.msk.msra.mxu0 %vm4272_vm15, %v5418_v3  ;;  %v5411_v11 = vpop.permute.xlu1 %5410  ;;  %5272 = vmatprep.mubr.f32.mxu0 %v15858_v1 }
 0x671   : > { %9611 = vmatmul.mubr.msk.f32.gmra.mxu1 %vm4262_vm5, %v9606_v10  ;;  %v5417_v60 = vsel %vm5416_vm13, %v5409_v6, %v5411_v11  ;;  %5464 = vmatprep.subr.mxu0 %v5411_v11  ;;  %v9668_v11 = vld [vmem:[%s15522_s3 + $0x138] sm:$0xff]  ;;  %vm6367_vm13 = vcmask 728064  }
 0x672   : > { %5028 = vmatprep.mubr.f32.mxu1 %v15858_v1  ;;  %5465 = vmatpush1.msra.mxu0 %v5417_v60  ;;  %v14613_v51 = vpop.permute.xlu0 %5531 }
 0x673   : > { %9635 = vmatmul.mubr.msk.f32.gmra.mxu0 %vm4262_vm5, %v9630_v9 }
 0x674   : > { %v14619_v12 = vpop.permute.xlu1 %5533  ;;  %5498 = vmatprep.mubr.f32.mxu0 %v15858_v1 }
 0x675   : > { %9618 = vmatmul.mubr.msk.f32.vlgmr.msra.gmra.mxu1 %vm4262_vm5, %v9613_v21  ;;  %v5537_v4 = vsel %vm5535_vm9, %v14613_v51, %v14619_v12  ;;  %v9692_v21 = vld [vmem:[%s15522_s3 + $0x180] sm:$0xff] }
 0x676   : > { %9624 = vmatpush1.msk.msra.mxu1 %vm4272_vm15, %v5061_v32  ;;  %5034 = vmatprep.mubr.f32.mxu1 %v15858_v1  ;;  %v14630_v44 = vpop.permute.xlu0 %5527 }
 0x677   : > { %5107 = vmatprep.subr.mxu1 %v14526_v52  ;;  %9649 = vmatmul.mubr.msk.f32.vlgmr.msra.gmra.mxu0 %vm4262_vm5, %v9644_v34  ;;  %v9669_v34 = vld [vmem:[%s15522_s3 + $0x140] sm:$0xff] }
 0x678   : > { %5108 = vmatpush1.msra.mxu1 %v5060_v22  ;;  %v5530_v55 = vpop.permute.xlu1 %5529  ;;  %5504 = vmatprep.mubr.f32.mxu0 %v15858_v1 }
 0x679   : > { %9639 = vmatprep.subr.msk.mxu1 %vm4272_vm15, %v14564_v18  ;;  %9619 = vmatmul.mubr.msk.f32.gmra.mxu1 %vm4262_vm5, %v9614_v56  ;;  %v5536_v28 = vsel %vm5535_vm9, %v14630_v44, %v5530_v55  ;;  %v9693_v56 = vld [vmem:[%s15522_s3 + $0x188] sm:$0xff]  ;;  %vm6843_vm9 = vcmask 637952  }
 0x67a   : > { %5141 = vmatprep.mubr.f32.mxu1 %v15858_v1  ;;  %v5651_v36 = vpop.permute.xlu0 %5650 }
 0x67b   : > { %9650 = vmatmul.mubr.msk.f32.gmra.mxu0 %vm4262_vm5, %v9645_v13 }
 0x67c   : > { %v5653_v16 = vpop.permute.xlu1 %5652  ;;  %5510 = vmatprep.mubr.f32.mxu0 %v15858_v1 }
 0x67d   : > { %9625 = vmatmul.mubr.msk.f32.vlgmr.msra.gmra.mxu1 %vm4262_vm5, %v9620_v38  ;;  %v5656_v50 = vsel %vm5654_vm12, %v5651_v36, %v5653_v16  ;;  %9663 = vmatprep.subr.msk.mxu0 %vm4272_vm15, %v5653_v16  ;;  %v9694_v36 = vld [vmem:[%s15522_s3 + $0x190] sm:$0xf]  ;;  %v9684_v16 = vld [vmem:[%s15522_s3 + $0x168] sm:$0xff] }
 0x67e   : > { %9640 = vmatpush1.msk.msra.mxu1 %vm4272_vm15, %v5299_v29  ;;  %5147 = vmatprep.mubr.f32.mxu1 %v15858_v1  ;;  %v5647_v15 = vpop.permute.xlu0 %5646 }
 0x67f   : > { %5345 = vmatprep.subr.mxu1 %v14580_v48  ;;  %9664 = vmatpush1.msk.msra.mxu0 %vm4272_vm15, %v5656_v50 }
 0x680   : > { %5346 = vmatpush1.msra.mxu1 %v5298_v17  ;;  %v5649_v30 = vpop.permute.xlu1 %5648  ;;  %9651 = vmatmul.mubr.msk.f32.gmra.mxu0 %vm4262_vm5, %v9646_v58 }
 0x681   : > { %9655 = vmatprep.subr.msk.mxu1 %vm4272_vm15, %v14619_v12  ;;  %9626 = vmatmul.mubr.msk.f32.gmra.mxu1 %vm4262_vm5, %v9621_v49  ;;  %v5655_v47 = vsel %vm5654_vm12, %v5647_v15, %v5649_v30  ;;  %v9685_v49 = vld [vmem:[%s15522_s3 + $0x170] sm:$0xff]  ;;  %vm6724_vm12 = vcmask 646144  }
 0x682   : > { %5702 = vmatprep.subr.mxu0 %v5649_v30  ;;  %5153 = vmatprep.mubr.f32.mxu1 %v15858_v1  ;;  %v5770_v40 = vpop.permute.xlu0 %5769 }
 0x683   : > { %5703 = vmatpush1.msra.mxu0 %v5655_v47  ;;  %5736 = vmatprep.mubr.f32.mxu0 %v15858_v1  ;;  %v9708_v47 = vld [vmem:[%s15522_s3 + $0x1b0] sm:$0xff] }
 0x684   : > { %v5772_v23 = vpop.permute.xlu1 %5771  ;;  %9665 = vmatmul.mubr.msk.f32.vlgmr.msra.gmra.mxu0 %vm4262_vm5, %v9660_v53 }
 0x685   : > { %9627 = vmatmul.mubr.msk.f32.gmra.mxu1 %vm4262_vm5, %v9622_v33  ;;  %5742 = vmatprep.mubr.f32.mxu0 %v15858_v1  ;;  %v5775_v18 = vsel %vm5773_vm3, %v5770_v40, %v5772_v23  ;;  %v9686_v33 = vld [vmem:[%s15522_s3 + $0x178] sm:$0xf] }
 0x686   : > { %5379 = vmatprep.mubr.f32.mxu1 %v15858_v1  ;;  %v5766_v7 = vpop.permute.xlu0 %5765 }
 0x688   : > { %v5768_v37 = vpop.permute.xlu1 %5767  ;;  %9666 = vmatmul.mubr.msk.f32.gmra.mxu0 %vm4262_vm5, %v9661_v43  ;;  %v9709_v43 = vld [vmem:[%s15522_s3 + $0x1b8] sm:$0xff] }
 0x689   : > { %9641 = vmatmul.mubr.msk.f32.vlgmr.msra.gmra.mxu1 %vm4262_vm5, %v9636_v57  ;;  %5748 = vmatprep.mubr.f32.mxu0 %v15858_v1  ;;  %v5774_v42 = vsel %vm5773_vm3, %v5766_v7, %v5768_v37  ;;  %v9700_v57 = vld [vmem:[%s15522_s3 + $0x198] sm:$0xff] }
 0x68a   : > { %9656 = vmatpush1.msk.msra.mxu1 %vm4272_vm15, %v5537_v4  ;;  %5385 = vmatprep.mubr.f32.mxu1 %v15858_v1  ;;  %v5889_v52 = vpop.permute.xlu0 %5888 }
 0x68b   : > { %5583 = vmatprep.subr.mxu1 %v5530_v55  ;;  %v9670_v55 = vld [vmem:[%s15522_s3 + $0x148] sm:$0xf] }
 0x68c   : > { %5584 = vmatpush1.msra.mxu1 %v5536_v28  ;;  %v5891_v0 = vpop.permute.xlu1 %5890  ;;  %9667 = vmatmul.mubr.msk.f32.gmra.mxu0 %vm4262_vm5, %v9662_v20  ;;  %v9710_v20 = vld [vmem:[%s15522_s3 + $0x1c0] sm:$0xf] }
 0x68d   : > { %9671 = vmatprep.subr.msk.mxu1 %vm4272_vm15, %v5772_v23  ;;  %9642 = vmatmul.mubr.msk.f32.gmra.mxu1 %vm4262_vm5, %v9637_v62  ;;  %v5893_v2 = vsel %vm16612_vm0, %v5889_v52, %v5891_v0  ;;  %v9701_v28 = vld [vmem:[%s15522_s3 + $0x1a0] sm:$0xff]  ;;  %vm6962_vm0 = vcmask 629760  }
 0x68e   : > { %9679 = vmatprep.subr.msk.mxu0 %vm4272_vm15, %v5891_v0  ;;  %5391 = vmatprep.mubr.f32.mxu1 %v15858_v1  ;;  %v5885_v14 = vpop.permute.xlu0 %5884 }
 0x68f   : > { %9680 = vmatpush1.msk.msra.mxu0 %vm4272_vm15, %v5893_v2  ;;  %5973 = vmatprep.mubr.f32.mxu0 %v15858_v1 }
 0x690   : > { %v5887_v45 = vpop.permute.xlu1 %5886 }
 0x691   : > { %9643 = vmatmul.mubr.msk.f32.gmra.mxu1 %vm4262_vm5, %v9638_v35  ;;  %v5892_v59 = vsel %vm16613_vm6, %v5885_v14, %v5887_v45  ;;  %5939 = vmatprep.subr.mxu0 %v5887_v45  ;;  %v9702_v35 = vld [vmem:[%s15522_s3 + $0x1a8] sm:$0xf]  ;;  %vm7081_vm6 = vcmask 621568  }
 0x692   : > { %5617 = vmatprep.mubr.f32.mxu1 %v15858_v1  ;;  %5940 = vmatpush1.msra.mxu0 %v5892_v59  ;;  %v6007_v5 = vpop.permute.xlu0 %6006 }
 0x693   : > { %9681 = vmatmul.mubr.msk.f32.vlgmr.msra.gmra.mxu0 %vm4262_vm5, %v9676_v54  ;;  %v9724_v54 = vld [vmem:[%s15522_s3 + $0x1e0] sm:$0xff] }
 0x694   : > { %v6009_v61 = vpop.permute.xlu1 %6008  ;;  %5979 = vmatprep.mubr.f32.mxu0 %v15858_v1 }
 0x695   : > { %9657 = vmatmul.mubr.msk.f32.vlgmr.msra.gmra.mxu1 %vm4262_vm5, %v9652_v26  ;;  %v6012_v60 = vsel %vm6010_vm14, %v6007_v5, %v6009_v61  ;;  %v9716_v26 = vld [vmem:[%s15522_s3 + $0x1c8] sm:$0xff] }
 0x696   : > { %9672 = vmatpush1.msk.msra.mxu1 %vm4272_vm15, %v5775_v18  ;;  %5623 = vmatprep.mubr.f32.mxu1 %v15858_v1  ;;  %v6003_v41 = vpop.permute.xlu0 %6002 }
 0x697   : > { %5821 = vmatprep.subr.mxu1 %v5768_v37  ;;  %9682 = vmatmul.mubr.msk.f32.gmra.mxu0 %vm4262_vm5, %v9677_v24  ;;  %v9725_v24 = vld [vmem:[%s15522_s3 + $0x1e8] sm:$0xff] }
 0x698   : > { %5822 = vmatpush1.msra.mxu1 %v5774_v42  ;;  %v6005_v48 = vpop.permute.xlu1 %6004  ;;  %5985 = vmatprep.mubr.f32.mxu0 %v15858_v1 }
 0x699   : > { %9687 = vmatprep.subr.msk.mxu1 %vm4272_vm15, %v6009_v61  ;;  %9658 = vmatmul.mubr.msk.f32.gmra.mxu1 %vm4262_vm5, %v9653_v46  ;;  %v6011_v32 = vsel %vm6010_vm14, %v6003_v41, %v6005_v48  ;;  %v9717_v41 = vld [vmem:[%s15522_s3 + $0x1d0] sm:$0xff] }
 0x69a   : > { %5629 = vmatprep.mubr.f32.mxu1 %v15858_v1  ;;  %v6126_v63 = vpop.permute.xlu0 %6125 }
 0x69b   : > { %9683 = vmatmul.mubr.msk.f32.gmra.mxu0 %vm4262_vm5, %v9678_v27 }
 0x69c   : > { %v6128_v3 = vpop.permute.xlu1 %6127  ;;  %6211 = vmatprep.mubr.f32.mxu0 %v15858_v1 }
 0x69d   : > { %9659 = vmatmul.mubr.msk.f32.gmra.mxu1 %vm4262_vm5, %v9654_v19  ;;  %v6131_v6 = vsel %vm6129_vm10, %v6126_v63, %v6128_v3  ;;  %9695 = vmatprep.subr.msk.mxu0 %vm4272_vm15, %v6128_v3  ;;  %v9718_v63 = vld [vmem:[%s15522_s3 + $0x1d8] sm:$0xf] }
 0x69e   : > { %5855 = vmatprep.mubr.f32.mxu1 %v15858_v1  ;;  %9696 = vmatpush1.msk.msra.mxu0 %vm4272_vm15, %v6131_v6  ;;  %v6122_v10 = vpop.permute.xlu0 %6121 }
 0x6a0   : > { %v6124_v9 = vpop.permute.xlu1 %6123 }
 0x6a1   : > { %9673 = vmatmul.mubr.msk.f32.vlgmr.msra.gmra.mxu1 %vm4262_vm5, %v9668_v11  ;;  %v6130_v51 = vsel %vm6129_vm10, %v6122_v10, %v6124_v9  ;;  %6177 = vmatprep.subr.mxu0 %v6124_v9  ;;  %v9732_v10 = vld [vmem:[%s15522_s3 + $0x1f8] sm:$0xff] }
 0x6a2   : > { %9688 = vmatpush1.msk.msra.mxu1 %vm4272_vm15, %v6012_v60  ;;  %5861 = vmatprep.mubr.f32.mxu1 %v15858_v1  ;;  %v6245_v12 = vpop.permute.xlu0 %6244  ;;  %v9740_v60 = vld [vmem:[%s15522_s3 + $0x210] sm:$0xff] }
 0x6a3   : > { %6058 = vmatprep.subr.mxu1 %v6005_v48  ;;  %6178 = vmatpush1.msra.mxu0 %v6130_v51  ;;  %v9726_v48 = vld [vmem:[%s15522_s3 + $0x1f0] sm:$0xf] }
 0x6a4   : > { %6059 = vmatpush1.msra.mxu1 %v6011_v32  ;;  %v6247_v44 = vpop.permute.xlu1 %6246  ;;  %9697 = vmatmul.mubr.msk.f32.vlgmr.msra.gmra.mxu0 %vm4262_vm5, %v9692_v21  ;;  %v9733_v21 = vld [vmem:[%s15522_s3 + $0x200] sm:$0xff]  ;;  %v9741_v32 = vld [vmem:[%s15522_s3 + $0x218] sm:$0xff] }
 0x6a5   : > { %9674 = vmatmul.mubr.msk.f32.gmra.mxu1 %vm4262_vm5, %v9669_v34  ;;  %9703 = vmatprep.subr.msk.mxu1 %vm4272_vm15, %v6247_v44  ;;  %v6250_v50 = vsel %vm6248_vm2, %v6245_v12, %v6247_v44 }
 0x6a6   : > { %5867 = vmatprep.mubr.f32.mxu1 %v15858_v1  ;;  %v6241_v22 = vpop.permute.xlu0 %6240  ;;  %6217 = vmatprep.mubr.f32.mxu0 %v15858_v1 }
 0x6a8   : > { %v6243_v13 = vpop.permute.xlu1 %6242  ;;  %9698 = vmatmul.mubr.msk.f32.gmra.mxu0 %vm4262_vm5, %v9693_v56  ;;  %v9734_v56 = vld [vmem:[%s15522_s3 + $0x208] sm:$0xf] }
 0x6a9   : > { %9675 = vmatmul.mubr.msk.f32.gmra.mxu1 %vm4262_vm5, %v9670_v55  ;;  %6223 = vmatprep.mubr.f32.mxu0 %v15858_v1  ;;  %v6249_v17 = vsel %vm6248_vm2, %v6241_v22, %v6243_v13 }
 0x6aa   : > { %6092 = vmatprep.mubr.f32.mxu1 %v15858_v1  ;;  %v6364_v38 = vpop.permute.xlu0 %6363 }
 0x6ac   : > { %v6366_v29 = vpop.permute.xlu1 %6365  ;;  %9699 = vmatmul.mubr.msk.f32.gmra.mxu0 %vm4262_vm5, %v9694_v36 }
 0x6ad   : > { %9689 = vmatmul.mubr.msk.f32.vlgmr.msra.gmra.mxu1 %vm4262_vm5, %v9684_v16  ;;  %v6369_v58 = vsel %vm6367_vm13, %v6364_v38, %v6366_v29  ;;  %9711 = vmatprep.subr.msk.mxu0 %vm4272_vm15, %v6366_v29  ;;  %v9748_v38 = vld [vmem:[%s15522_s3 + $0x228] sm:$0xff] }
 0x6ae   : > { %9704 = vmatpush1.msk.msra.mxu1 %vm4272_vm15, %v6250_v50  ;;  %6098 = vmatprep.mubr.f32.mxu1 %v15858_v1  ;;  %v6360_v15 = vpop.permute.xlu0 %6359 }
 0x6af   : > { %6296 = vmatprep.subr.mxu1 %v6243_v13  ;;  %9712 = vmatpush1.msk.msra.mxu0 %vm4272_vm15, %v6369_v58  ;;  %v9742_v13 = vld [vmem:[%s15522_s3 + $0x220] sm:$0xf]  ;;  %v9749_v58 = vld [vmem:[%s15522_s3 + $0x230] sm:$0xff] }
 0x6b0   : > { %6297 = vmatpush1.msra.mxu1 %v6249_v17  ;;  %v6362_v30 = vpop.permute.xlu1 %6361  ;;  %6449 = vmatprep.mubr.f32.mxu0 %v15858_v1  ;;  %v9756_v17 = vld [vmem:[%s15522_s3 + $0x240] sm:$0xff] }
 0x6b1   : > { %9690 = vmatmul.mubr.msk.f32.gmra.mxu1 %vm4262_vm5, %v9685_v49  ;;  %v6368_v53 = vsel %vm6367_vm13, %v6360_v15, %v6362_v30  ;;  %6415 = vmatprep.subr.mxu0 %v6362_v30 }
 0x6b2   : > { %6104 = vmatprep.mubr.f32.mxu1 %v15858_v1  ;;  %6416 = vmatpush1.msra.mxu0 %v6368_v53  ;;  %v6483_v40 = vpop.permute.xlu0 %6482  ;;  %v9757_v53 = vld [vmem:[%s15522_s3 + $0x248] sm:$0xff] }
 0x6b3   : > { %9713 = vmatmul.mubr.msk.f32.vlgmr.msra.gmra.mxu0 %vm4262_vm5, %v9708_v47  ;;  %v9750_v47 = vld [vmem:[%s15522_s3 + $0x238] sm:$0xf] }
 0x6b4   : > { %v6485_v23 = vpop.permute.xlu1 %6484  ;;  %6455 = vmatprep.mubr.f32.mxu0 %v15858_v1 }
 0x6b5   : > { %9691 = vmatmul.mubr.msk.f32.gmra.mxu1 %vm4262_vm5, %v9686_v33  ;;  %9719 = vmatprep.subr.msk.mxu1 %vm4272_vm15, %v6485_v23  ;;  %v6488_v37 = vsel %vm6486_vm1, %v6483_v40, %v6485_v23  ;;  %v9758_v40 = vld [vmem:[%s15522_s3 + $0x250] sm:$0xf] }
 0x6b6   : > { %6330 = vmatprep.mubr.f32.mxu1 %v15858_v1  ;;  %v6479_v7 = vpop.permute.xlu0 %6478 }
 0x6b7   : > { %9714 = vmatmul.mubr.msk.f32.gmra.mxu0 %vm4262_vm5, %v9709_v43 }
 0x6b8   : > { %v6481_v4 = vpop.permute.xlu1 %6480  ;;  %6461 = vmatprep.mubr.f32.mxu0 %v15858_v1 }
 0x6b9   : > { %9705 = vmatmul.mubr.msk.f32.vlgmr.msra.gmra.mxu1 %vm4262_vm5, %v9700_v57  ;;  %v6487_v52 = vsel %vm6486_vm1, %v6479_v7, %v6481_v4 }
 0x6ba   : > { %9720 = vmatpush1.msk.msra.mxu1 %vm4272_vm15, %v6488_v37  ;;  %6336 = vmatprep.mubr.f32.mxu1 %v15858_v1  ;;  %v6602_v62 = vpop.permute.xlu0 %6601 }
 0x6bb   : > { %6534 = vmatprep.subr.mxu1 %v6481_v4  ;;  %9715 = vmatmul.mubr.msk.f32.gmra.mxu0 %vm4262_vm5, %v9710_v20 }
 0x6bc   : > { %6535 = vmatpush1.msra.mxu1 %v6487_v52  ;;  %v6604_v0 = vpop.permute.xlu1 %6603  ;;  %6687 = vmatprep.mubr.f32.mxu0 %v15858_v1 }
 0x6bd   : > { %9706 = vmatmul.mubr.msk.f32.gmra.mxu1 %vm4262_vm5, %v9701_v28  ;;  %v6607_v2 = vsel %vm6605_vm8, %v6602_v62, %v6604_v0  ;;  %9727 = vmatprep.subr.msk.mxu0 %vm4272_vm15, %v6604_v0 }
 0x6be   : > { %6342 = vmatprep.mubr.f32.mxu1 %v15858_v1  ;;  %9728 = vmatpush1.msk.msra.mxu0 %vm4272_vm15, %v6607_v2  ;;  %v6598_v14 = vpop.permute.xlu0 %6597 }
 0x6c0   : > { %v6600_v45 = vpop.permute.xlu1 %6599 }
 0x6c1   : > { %9707 = vmatmul.mubr.msk.f32.gmra.mxu1 %vm4262_vm5, %v9702_v35  ;;  %v6606_v59 = vsel %vm6605_vm8, %v6598_v14, %v6600_v45  ;;  %6653 = vmatprep.subr.mxu0 %v6600_v45 }
 0x6c2   : > { %6568 = vmatprep.mubr.f32.mxu1 %v15858_v1  ;;  %6654 = vmatpush1.msra.mxu0 %v6606_v59  ;;  %v6721_v5 = vpop.permute.xlu0 %6720 }
 0x6c3   : > { %9729 = vmatmul.mubr.msk.f32.vlgmr.msra.gmra.mxu0 %vm4262_vm5, %v9724_v54 }
 0x6c4   : > { %v6723_v61 = vpop.permute.xlu1 %6722  ;;  %6693 = vmatprep.mubr.f32.mxu0 %v15858_v1 }
 0x6c5   : > { %9721 = vmatmul.mubr.msk.f32.vlgmr.msra.gmra.mxu1 %vm4262_vm5, %v9716_v26  ;;  %v6726_v18 = vsel %vm6724_vm12, %v6721_v5, %v6723_v61  ;;  %9735 = vmatprep.subr.msk.mxu1 %vm4272_vm15, %v6723_v61 }
 0x6c6   : > { %6574 = vmatprep.mubr.f32.mxu1 %v15858_v1  ;;  %9736 = vmatpush1.msk.msra.mxu1 %vm4272_vm15, %v6726_v18 }
 0x6c7   : > { %v6717_v46 = vpop.permute.xlu0 %6716  ;;  %9730 = vmatmul.mubr.msk.f32.gmra.mxu0 %vm4262_vm5, %v9725_v24 }
 0x6c8   : > { %v6719_v42 = vpop.permute.xlu1 %6718  ;;  %6699 = vmatprep.mubr.f32.mxu0 %v15858_v1 }
 0x6c9   : > { %9722 = vmatmul.mubr.msk.f32.gmra.mxu1 %vm4262_vm5, %v9717_v41  ;;  %v6725_v27 = vsel %vm6724_vm12, %v6717_v46, %v6719_v42  ;;  %6772 = vmatprep.subr.mxu1 %v6719_v42 }
 0x6ca   : > { %6580 = vmatprep.mubr.f32.mxu1 %v15858_v1  ;;  %6773 = vmatpush1.msra.mxu1 %v6725_v27 }
 0x6cb   : > { %v6840_v19 = vpop.permute.xlu0 %6839  ;;  %9731 = vmatmul.mubr.msk.f32.gmra.mxu0 %vm4262_vm5, %v9726_v48 }
 0x6cc   : > { %v6842_v3 = vpop.permute.xlu1 %6841  ;;  %6925 = vmatprep.mubr.f32.mxu0 %v15858_v1 }
 0x6cd   : > { %9723 = vmatmul.mubr.msk.f32.gmra.mxu1 %vm4262_vm5, %v9718_v63  ;;  %v6845_v6 = vsel %vm6843_vm9, %v6840_v19, %v6842_v3  ;;  %9743 = vmatprep.subr.msk.mxu0 %vm4272_vm15, %v6842_v3 }
 0x6ce   : > { %6806 = vmatprep.mubr.f32.mxu1 %v15858_v1  ;;  %9744 = vmatpush1.msk.msra.mxu0 %vm4272_vm15, %v6845_v6 }
 0x6cf   : > { %v6836_v11 = vpop.permute.xlu0 %6835 }
 0x6d1   : > { %9737 = vmatmul.mubr.msk.f32.vlgmr.msra.gmra.mxu1 %vm4262_vm5, %v9732_v10  ;;  %v6838_v9 = vpop.permute.xlu1 %6837 }
 0x6d2   : > { %v6844_v51 = vsel %vm6843_vm9, %v6836_v11, %v6838_v9  ;;  %6891 = vmatprep.subr.mxu0 %v6838_v9  ;;  %6812 = vmatprep.mubr.f32.mxu1 %v15858_v1 }
 0x6d3   : > { %6892 = vmatpush1.msra.mxu0 %v6844_v51 }
 0x6d4   : > { %v6959_v12 = vpop.permute.xlu0 %6958  ;;  %9745 = vmatmul.mubr.msk.f32.vlgmr.msra.gmra.mxu0 %vm4262_vm5, %v9740_v60 }
 0x6d5   : > { %9738 = vmatmul.mubr.msk.f32.gmra.mxu1 %vm4262_vm5, %v9733_v21  ;;  %v6961_v34 = vpop.permute.xlu1 %6960  ;;  %6931 = vmatprep.mubr.f32.mxu0 %v15858_v1 }
 0x6d6   : > { %v6964_v44 = vsel %vm6962_vm0, %v6959_v12, %v6961_v34  ;;  %9751 = vmatprep.subr.msk.mxu1 %vm4272_vm15, %v6961_v34  ;;  %6818 = vmatprep.mubr.f32.mxu1 %v15858_v1 }
 0x6d7   : > { %9752 = vmatpush1.msk.msra.mxu1 %vm4272_vm15, %v6964_v44 }
 0x6d8   : > { %v6955_v22 = vpop.permute.xlu0 %6954  ;;  %9746 = vmatmul.mubr.msk.f32.gmra.mxu0 %vm4262_vm5, %v9741_v32 }
 0x6d9   : > { %9739 = vmatmul.mubr.msk.f32.gmra.mxu1 %vm4262_vm5, %v9734_v56  ;;  %v6957_v55 = vpop.permute.xlu1 %6956  ;;  %6937 = vmatprep.mubr.f32.mxu0 %v15858_v1 }
 0x6da   : > { %v6963_v36 = vsel %vm6962_vm0, %v6955_v22, %v6957_v55  ;;  %7010 = vmatprep.subr.mxu1 %v6957_v55  ;;  %7044 = vmatprep.mubr.f32.mxu1 %v15858_v1 }
 0x6db   : > { %7011 = vmatpush1.msra.mxu1 %v6963_v36 }
 0x6dc   : > { %v7078_v16 = vpop.permute.xlu0 %7077  ;;  %9747 = vmatmul.mubr.msk.f32.gmra.mxu0 %vm4262_vm5, %v9742_v13  ;;  %7341 = vmatprep.subr.mxu1 %v15858_v1 }
 0x6dd   : > { %9753 = vmatmul.mubr.msk.f32.vlgmr.msra.gmra.mxu1 %vm4262_vm5, %v9748_v38  ;;  %v7080_v29 = vpop.permute.xlu1 %7079  ;;  %7163 = vmatprep.mubr.f32.mxu0 %v15858_v1 }
 0x6de   : > { %v7083_v50 = vsel %vm7081_vm6, %v7078_v16, %v7080_v29  ;;  %9759 = vmatprep.subr.msk.mxu0 %vm4272_vm15, %v7080_v29  ;;  %7050 = vmatprep.mubr.f32.mxu1 %v15858_v1 }
 0x6df   : > { %9760 = vmatpush1.msk.msra.mxu0 %vm4272_vm15, %v7083_v50 }
 0x6e0   : > { %v7074_v15 = vpop.permute.xlu0 %7073 }
 0x6e1   : > { %9754 = vmatmul.mubr.msk.f32.gmra.mxu1 %vm4262_vm5, %v9749_v58  ;;  %v7076_v49 = vpop.permute.xlu1 %7075 }
 0x6e2   : > { %v7082_v30 = vsel %vm7081_vm6, %v7074_v15, %v7076_v49  ;;  %7129 = vmatprep.subr.mxu0 %v7076_v49  ;;  %7056 = vmatprep.mubr.f32.mxu1 %v15858_v1 }
 0x6e3   : > { %7130 = vmatpush1.msra.mxu0 %v7082_v30 }
 0x6e4   : > { %9761 = vmatmul.mubr.msk.f32.vlgmr.msra.gmra.mxu0 %vm4262_vm5, %v9756_v17  ;;  %9933 = vmatprep.subr.mxu0 %v15858_v1 }
 0x6e5   : > { %9755 = vmatmul.mubr.msk.f32.gmra.mxu1 %vm4262_vm5, %v9750_v47  ;;  %7169 = vmatprep.mubr.f32.mxu0 %v15858_v1 }
 0x6e8   : > { %9762 = vmatmul.mubr.msk.f32.gmra.mxu0 %vm4262_vm5, %v9757_v53 }
 0x6e9   : > { %7175 = vmatprep.mubr.f32.mxu0 %v15858_v1 }
 0x6eb   : > { %v4343_v33 = vpop.f32.mrf.mxu1 }
 0x6ec   : > { %9763 = vmatmul.mubr.msk.f32.gmra.mxu0 %vm4262_vm5, %v9758_v40 }
 0x6ed   : > { %v4345_v23 = vpop.f32.mrf.mxu1 }
 0x6ef   : > { %v4349_v43 = vpop.f32.mrf.mxu1 }
 0x6f1   : > { %v4351_v7 = vpop.f32.mrf.mxu1 }
 0x6f3   : > { %v4355_v57 = vpop.f32.mrf.mxu1 }
 0x6f5   : > { %v4357_v37 = vpop.f32.mrf.mxu1 }
 0x6f7   : > { %v4439_v4 = vpop.f32.mrf.mxu1 }
 0x6f8   : > { %v4440_v20 = vadd.f32 %v4439_v4, %v4343_v33 }
 0x6f9   : > { %v4441_v52 = vpop.f32.mrf.mxu1 }
 0x6fa   : > { %v4442_v62 = vadd.f32 %v4441_v52, %v4345_v23 }
 0x6fb   : > { %v4445_v28 = vpop.f32.mrf.mxu1 }
 0x6fc   : > { %v4446_v0 = vadd.f32 %v4445_v28, %v4349_v43 }
 0x6fd   : > { %v4447_v2 = vpop.f32.mrf.mxu1 }
 0x6fe   : > { %v4448_v14 = vadd.f32 %v4447_v2, %v4351_v7 }
 0x6ff   : > { %v4451_v35 = vpop.f32.mrf.mxu1 }
 0x700   : > { %v4452_v45 = vadd.f32 %v4451_v35, %v4355_v57 }
 0x701   : > { %v4453_v54 = vpop.f32.mrf.mxu1 }
 0x702   : > { %v4454_v59 = vadd.f32 %v4453_v54, %v4357_v37 }
 0x703   : > { %v4551_v5 = vpop.f32.mrf.mxu1 }
 0x704   : > { %v4568_v26 = vadd.f32 %v4551_v5, %v4440_v20 }
 0x705   : > { %v4553_v61 = vpop.f32.mrf.mxu1 }
 0x706   : > { %v4569_v24 = vadd.f32 %v4553_v61, %v4442_v62 }
 0x707   : > { %v4557_v18 = vpop.f32.mrf.mxu1 }
 0x708   : > { %v4570_v41 = vadd.f32 %v4557_v18, %v4446_v0 }
 0x709   : > { %v4559_v46 = vpop.f32.mrf.mxu1 }
 0x70a   : > { %v4571_v42 = vadd.f32 %v4559_v46, %v4448_v14 }
 0x70b   : > { %v4563_v48 = vpop.f32.mrf.mxu1 }
 0x70c   : > { %v4572_v27 = vadd.f32 %v4563_v48, %v4452_v45 }
 0x70d   : > { %v4565_v63 = vpop.f32.mrf.mxu1 }
 0x70e   : > { %v4573_v19 = vadd.f32 %v4565_v63, %v4454_v59 }
 0x70f   : > { %v4669_v3 = vpop.f32.mrf.mxu1 }
 0x710   : > { %v4686_v6 = vadd.f32 %v4669_v3, %v4568_v26 }
 0x711   : > { %v4671_v10 = vpop.f32.mrf.mxu1 }
 0x712   : > { %v4687_v11 = vadd.f32 %v4671_v10, %v4569_v24 }
 0x714   : > { %v4675_v9 = vpop.f32.mrf.mxu1 }
 0x715   : > { %v4688_v60 = vadd.f32 %v4675_v9, %v4570_v41 }
 0x716   : > { %v4677_v51 = vpop.f32.mrf.mxu1  ;;  %v5024_v36 = vpop.f32.mrf.mxu0 }
 0x717   : > { %v4689_v21 = vadd.f32 %v4677_v51, %v4571_v42 }
 0x718   : > { %v4681_v12 = vpop.f32.mrf.mxu1  ;;  %v5026_v50 = vpop.f32.mrf.mxu0 }
 0x719   : > { %v4690_v34 = vadd.f32 %v4681_v12, %v4572_v27 }
 0x71a   : > { %v4683_v32 = vpop.f32.mrf.mxu1 }
 0x71b   : > { %v4691_v44 = vadd.f32 %v4683_v32, %v4573_v19 }
 0x71c   : > { %v4787_v56 = vpop.f32.mrf.mxu1 }
 0x71d   : > { %v4804_v22 = vadd.f32 %v4787_v56, %v4686_v6 }
 0x71e   : > { %v4789_v55 = vpop.f32.mrf.mxu1 }
 0x71f   : > { %v4805_v13 = vadd.f32 %v4789_v55, %v4687_v11 }
 0x721   : > { %v4793_v38 = vpop.f32.mrf.mxu1 }
 0x722   : > { %v4806_v16 = vadd.f32 %v4793_v38, %v4688_v60 }
 0x723   : > { %v4795_v29 = vpop.f32.mrf.mxu1 }
 0x724   : > { %v4807_v58 = vadd.f32 %v4795_v29, %v4689_v21 }
 0x725   : > { %v4799_v15 = vpop.f32.mrf.mxu1  ;;  %v5262_v49 = vpop.f32.mrf.mxu0 }
 0x726   : > { %v4808_v17 = vadd.f32 %v4799_v15, %v4690_v34 }
 0x727   : > { %v4801_v30 = vpop.f32.mrf.mxu1  ;;  %v5264_v47 = vpop.f32.mrf.mxu0 }
 0x728   : > { %v4809_v53 = vadd.f32 %v4801_v30, %v4691_v44 }
 0x729   : > { %v4906_v40 = vpop.f32.mrf.mxu1  ;;  %v5268_v43 = vpop.f32.mrf.mxu0 }
 0x72a   : > { %v4923_v33 = vadd.f32 %v4906_v40, %v4804_v22 }
 0x72b   : > { %v4908_v23 = vpop.f32.mrf.mxu1  ;;  %v5270_v62 = vpop.f32.mrf.mxu0 }
 0x72c   : > { %v4924_v7 = vadd.f32 %v4908_v23, %v4805_v13  ;;  %v5041_v57 = vadd.f32 %v5024_v36, %v4923_v33 }
 0x72d   : > { %v4912_v37 = vpop.f32.mrf.mxu1 }
 0x72e   : > { %v4925_v4 = vadd.f32 %v4912_v37, %v4806_v16  ;;  %v5042_v20 = vadd.f32 %v5026_v50, %v4924_v7 }
 0x72f   : > { %v4914_v52 = vpop.f32.mrf.mxu1 }
 0x730   : > { %v4926_v28 = vadd.f32 %v4914_v52, %v4807_v58 }
 0x731   : > { %v4918_v0 = vpop.f32.mrf.mxu1 }
 0x732   : > { %v4927_v2 = vadd.f32 %v4918_v0, %v4808_v17 }
 0x733   : > { %v4920_v14 = vpop.f32.mrf.mxu1  ;;  %v5274_v35 = vpop.f32.mrf.mxu0 }
 0x734   : > { %v4928_v45 = vadd.f32 %v4920_v14, %v4809_v53 }
 0x735   : > { %v5030_v54 = vpop.f32.mrf.mxu1  ;;  %v5276_v59 = vpop.f32.mrf.mxu0 }
 0x736   : > { %v5043_v5 = vadd.f32 %v5030_v54, %v4925_v4 }
 0x737   : > { %v5032_v26 = vpop.f32.mrf.mxu1  ;;  %v14948_v61 = vpop.f32.mrf.mxu0 }
 0x738   : > { %v5044_v24 = vadd.f32 %v5032_v26, %v4926_v28 }
 0x739   : > { %v5036_v18 = vpop.f32.mrf.mxu1  ;;  %v14950_v41 = vpop.f32.mrf.mxu0 }
 0x73a   : > { %v5045_v46 = vadd.f32 %v5036_v18, %v4927_v2 }
 0x73b   : > { %v5038_v42 = vpop.f32.mrf.mxu1  ;;  %v14952_v48 = vpop.f32.mrf.mxu0 }
 0x73c   : > { %v5046_v27 = vadd.f32 %v5038_v42, %v4928_v45 }
 0x73d   : > { %v5143_v63 = vpop.f32.mrf.mxu1  ;;  %v14954_v19 = vpop.f32.mrf.mxu0 }
 0x73e   : > { %v5160_v3 = vadd.f32 %v5143_v63, %v5041_v57 }
 0x73f   : > { %v5145_v6 = vpop.f32.mrf.mxu1 }
 0x740   : > { %v5161_v10 = vadd.f32 %v5145_v6, %v5042_v20  ;;  %v14956_v11 = vadd.f32 %v5262_v49, %v5160_v3  ;;  %v14958_v9 = vpop.f32.mrf.mxu0 }
 0x741   : > { %v5149_v60 = vpop.f32.mrf.mxu1 }
 0x742   : > { %v5162_v51 = vadd.f32 %v5149_v60, %v5043_v5  ;;  %v5280_v21 = vadd.f32 %v5264_v47, %v5161_v10  ;;  %v14960_v12 = vpop.f32.mrf.mxu0 }
 0x743   : > { %v5151_v34 = vpop.f32.mrf.mxu1 }
 0x744   : > { %v5163_v32 = vadd.f32 %v5151_v34, %v5044_v24  ;;  %v5281_v44 = vadd.f32 %v5268_v43, %v5162_v51  ;;  %v14962_v56 = vpop.f32.mrf.mxu0 }
 0x745   : > { %v5155_v22 = vpop.f32.mrf.mxu1 }
 0x746   : > { %v5164_v55 = vadd.f32 %v5155_v22, %v5045_v46  ;;  %v5282_v13 = vadd.f32 %v5270_v62, %v5163_v32  ;;  %v14964_v36 = vpop.f32.mrf.mxu0 }
 0x747   : > { %v5157_v38 = vpop.f32.mrf.mxu1 }
 0x748   : > { %v5165_v16 = vadd.f32 %v5157_v38, %v5046_v27  ;;  %v5283_v29 = vadd.f32 %v5274_v35, %v5164_v55  ;;  %v14966_v50 = vpop.f32.mrf.mxu0 }
 0x749   : > { %v5381_v58 = vpop.f32.mrf.mxu1 }
 0x74a   : > { %v5284_v15 = vadd.f32 %v5276_v59, %v5165_v16  ;;  %v14968_v49 = vpop.f32.mrf.mxu0  ;;  %v5398_v1 = vadd.f32 %v5381_v58, %v14956_v11 }
 0x74b   : > { %v5383_v17 = vpop.f32.mrf.mxu1 }
 0x74c   : > { %v14970_v30 = vpop.f32.mrf.mxu0  ;;  %v5399_v31 = vadd.f32 %v5383_v17, %v5280_v21 }
 0x74d   : > { %v5387_v47 = vpop.f32.mrf.mxu1 }
 0x74e   : > { %v14972_v40 = vpop.f32.mrf.mxu0 }
 0x74f   : > { %v5389_v53 = vpop.f32.mrf.mxu1 }
 0x751   : > { %v5393_v33 = vpop.f32.mrf.mxu1 }
 0x752   : > { %v5402_v11 = vadd.f32 %v5393_v33, %v5283_v29 }
 0x753   : > { %v5395_v23 = vpop.f32.mrf.mxu1  ;;  %v14974_v43 = vpop.f32.mrf.mxu0 }
 0x755   : > { %v5619_v7 = vpop.f32.mrf.mxu1  ;;  %v14976_v57 = vpop.f32.mrf.mxu0 }
 0x757   : > { %v5621_v37 = vpop.f32.mrf.mxu1  ;;  %v14978_v4 = vpop.f32.mrf.mxu0 }
 0x759   : > { %v5625_v20 = vpop.f32.mrf.mxu1  ;;  %v14980_v52 = vpop.f32.mrf.mxu0 }
 0x75b   : > { %v5627_v62 = vpop.f32.mrf.mxu1  ;;  %v14982_v28 = vpop.f32.mrf.mxu0 }
 0x75d   : > { %v5631_v0 = vpop.f32.mrf.mxu1  ;;  %v14984_v14 = vpop.f32.mrf.mxu0 }
 0x75f   : > { %v5633_v2 = vpop.f32.mrf.mxu1 }
 0x761   : > { %v5857_v35 = vpop.f32.mrf.mxu1 }
 0x763   : > { %v5859_v45 = vpop.f32.mrf.mxu1 }
 0x764   : > { %v14986_v54 = vpop.f32.mrf.mxu0 }
 0x765   : > { %v5863_v59 = vpop.f32.mrf.mxu1 }
 0x766   : > { %v14988_v5 = vpop.f32.mrf.mxu0 }
 0x767   : > { %v5865_v26 = vpop.f32.mrf.mxu1 }
 0x768   : > { %v14990_v24 = vpop.f32.mrf.mxu0 }
 0x769   : > { %v14992_v18 = vpop.f32.mrf.mxu1 }
 0x76a   : > { %v14994_v46 = vpop.f32.mrf.mxu0 }
 0x76b   : > { %16614 = vst [vmem:[#allocation80_spill] sm:$0xff] %v14994_v46  ;;  %v14996_v42 = vpop.f32.mrf.mxu1  ;;  %v5401_v46 = vadd.f32 %v5389_v53, %v5282_v13 }
 0x76c   : > { %v14998_v27 = vpop.f32.mrf.mxu0 }
 0x76d   : > { %16615 = vst [vmem:[#allocation89_spill] sm:$0xff] %v14998_v27  ;;  %v6094_v63 = vpop.f32.mrf.mxu1 }
 0x76e   : > { %v15000_v6 = vpop.f32.mrf.mxu0 }
 0x76f   : > { %v6096_v3 = vpop.f32.mrf.mxu1  ;;  %16616 = vst [vmem:[#allocation72_spill] sm:$0xff] %v15000_v6  ;;  %v5517_v6 = vadd.f32 %v14948_v61, %v5398_v1  ;;  %v5403_v1 = vadd.f32 %v5395_v23, %v5284_v15  ;;  %v5520_v61 = vadd.f32 %v14954_v19, %v5401_v46 }
 0x771   : > { %v15002_v10 = vpop.f32.mrf.mxu1  ;;  %v5639_v29 = vadd.f32 %v5627_v62, %v5520_v61 }
 0x773   : > { %v15004_v60 = vpop.f32.mrf.mxu1  ;;  %v15006_v51 = vpop.f32.mrf.mxu0  ;;  %v5758_v46 = vadd.f32 %v14968_v49, %v5639_v29 }
 0x774   : > { %16617 = vst [vmem:[#allocation85_spill] sm:$0xff] %v15006_v51 }
 0x775   : > { %v15008_v34 = vpop.f32.mrf.mxu1  ;;  %v15010_v32 = vpop.f32.mrf.mxu0 }
 0x776   : > { %16618 = vst [vmem:[#allocation71_spill] sm:$0xff] %v15010_v32  ;;  %v5400_v32 = vadd.f32 %v5387_v47, %v5281_v44 }
 0x777   : > { %v15012_v22 = vpop.f32.mrf.mxu1  ;;  %v15014_v55 = vpop.f32.mrf.mxu0 }
 0x778   : > { %16619 = vst [vmem:[#allocation77_spill] sm:$0xff] %v15012_v22  ;;  %16620 = vst [vmem:[#allocation90_spill] sm:$0xff] %v15014_v55  ;;  %v5518_v55 = vadd.f32 %v14950_v41, %v5399_v31  ;;  %v5519_v58 = vadd.f32 %v14952_v48, %v5400_v32  ;;  %v5521_v41 = vadd.f32 %v14958_v9, %v5402_v11 }
 0x779   : > { %v15016_v38 = vpop.f32.mrf.mxu1  ;;  %v15018_v16 = vpop.f32.mrf.mxu0 }
 0x77a   : > { %16621 = vst [vmem:[#allocation76_spill] sm:$0xff] %v15018_v16  ;;  %v5636_v16 = vadd.f32 %v5619_v7, %v5517_v6  ;;  %v5638_v47 = vadd.f32 %v5625_v20, %v5519_v58  ;;  %v5522_v7 = vadd.f32 %v14960_v12, %v5403_v1  ;;  %v5640_v15 = vadd.f32 %v5631_v0, %v5521_v41 }
 0x77b   : > { %v15021_v25 = vpop.f32.mrf.mxu1  ;;  %v15023_v8 = vpop.f32.mrf.mxu0  ;;  %v5877_v6 = vadd.f32 %v5865_v26, %v5758_v46 }
 0x77c   : > { %16622 = vst [vmem:[#allocation82_spill] sm:$0xff] %v15023_v8  ;;  %v5637_v8 = vadd.f32 %v5621_v37, %v5518_v55  ;;  %v5755_v44 = vadd.f32 %v14962_v56, %v5636_v16  ;;  %v5757_v19 = vadd.f32 %v14966_v50, %v5638_v47  ;;  %v5641_v37 = vadd.f32 %v5633_v2, %v5522_v7  ;;  %v16626_v47 = vld [vmem:[#allocation85_spill] sm:$0xff] }
 0x77d   : > { %v15025_v39 = vpop.f32.mrf.mxu1  ;;  %v15030_v51 = vpop.f32.mrf.mxu0  ;;  %v5759_v62 = vadd.f32 %v14970_v30, %v5640_v15  ;;  %v16629_v15 = vld [vmem:[#allocation72_spill] sm:$0xff] }
 0x77e   : > { %16623 = vst [vmem:[#allocation94_spill] sm:$0xff] %v15030_v51  ;;  %v5756_v13 = vadd.f32 %v14964_v36, %v5637_v8  ;;  %v5874_v48 = vadd.f32 %v5857_v35, %v5755_v44  ;;  %v5876_v8 = vadd.f32 %v5863_v59, %v5757_v19  ;;  %v5760_v50 = vadd.f32 %v14972_v40, %v5641_v37  ;;  %v16625_v44 = vld [vmem:[#allocation80_spill] sm:$0xff] }
 0x77f   : > { %v15028_v27 = vpop.f32.mrf.mxu1  ;;  %v5995_v59 = vadd.f32 %v14980_v52, %v5877_v6  ;;  %v16624_v1 = vld [vmem:[#allocation77_spill] sm:$0xff]  ;;  %v16630_v46 = vld [vmem:[#allocation90_spill] sm:$0xff] }
 0x780   : > { %v5875_v23 = vadd.f32 %v5859_v45, %v5756_v13  ;;  %v5992_v9 = vadd.f32 %v14974_v43, %v5874_v48  ;;  %v5878_v45 = vadd.f32 %v14992_v18, %v5759_v62  ;;  %v5994_v32 = vadd.f32 %v14978_v4, %v5876_v8  ;;  %v16627_v13 = vld [vmem:[#allocation89_spill] sm:$0xff] }
 0x781   : > { %v15033_v22 = vpop.f32.mrf.mxu1  ;;  %v5879_v43 = vadd.f32 %v14996_v42, %v5760_v50  ;;  %v6114_v16 = vadd.f32 %v15004_v60, %v5995_v59 }
 0x782   : > { %v5993_v35 = vadd.f32 %v14976_v57, %v5875_v23  ;;  %v6111_v12 = vadd.f32 %v6094_v63, %v5992_v9  ;;  %v6113_v57 = vadd.f32 %v15002_v10, %v5994_v32  ;;  %v5996_v63 = vadd.f32 %v14982_v28, %v5878_v45 }
 0x783   : > { %v15036_v21 = vpop.f32.mrf.mxu1  ;;  %v15038_v17 = vpop.f32.mrf.mxu0  ;;  %v5997_v11 = vadd.f32 %v14984_v14, %v5879_v43 }
 0x784   : > { %v6112_v49 = vadd.f32 %v6096_v3, %v5993_v35  ;;  %v6230_v30 = vadd.f32 %v14986_v54, %v6111_v12  ;;  %v6115_v42 = vadd.f32 %v15008_v34, %v5996_v63  ;;  %v6232_v54 = vadd.f32 %v14990_v24, %v6113_v57  ;;  %v16628_v34 = vld [vmem:[#allocation71_spill] sm:$0xff]  ;;  %v16631_v35 = vld [vmem:[#allocation76_spill] sm:$0xff] }
 0x785   : > { %v6570_v51 = vpop.f32.mrf.mxu1  ;;  %v15042_v31 = vpop.f32.mrf.mxu0  ;;  %v6116_v28 = vadd.f32 %v16624_v1, %v5997_v11 }
 0x786   : > { %v6231_v18 = vadd.f32 %v14988_v5, %v6112_v49  ;;  %v6349_v4 = vadd.f32 %v15016_v38, %v6230_v30  ;;  %v6233_v5 = vadd.f32 %v16625_v44, %v6114_v16  ;;  %v6351_v38 = vadd.f32 %v15025_v39, %v6232_v54  ;;  %v16633_v30 = vld [vmem:[#allocation94_spill] sm:$0xff] }
 0x787   : > { %v6572_v53 = vpop.f32.mrf.mxu1  ;;  %v15046_v33 = vpop.f32.mrf.mxu0  ;;  %v6234_v14 = vadd.f32 %v16627_v13, %v6115_v42  ;;  %v6235_v19 = vadd.f32 %v16629_v15, %v6116_v28  ;;  %v16634_v15 = vld [vmem:[#allocation35_spill] sm:$0xff] }
 0x788   : > { %v6350_v10 = vadd.f32 %v15021_v25, %v6231_v18  ;;  %v6468_v60 = vadd.f32 %v16626_v47, %v6349_v4  ;;  %v6352_v24 = vadd.f32 %v15028_v27, %v6233_v5  ;;  %v6470_v9 = vadd.f32 %v16630_v46, %v6351_v38  ;;  %v16632_v27 = vld [vmem:[#allocation82_spill] sm:$0xff]  ;;  %v16638_v46 = vld [vmem:[#allocation27_spill] sm:$0xff] }
 0x789   : > { %v6576_v56 = vpop.f32.mrf.mxu1  ;;  %v15050_v20 = vpop.f32.mrf.mxu0  ;;  %v6353_v23 = vadd.f32 %v15033_v22, %v6234_v14  ;;  %v6354_v39 = vadd.f32 %v15036_v21, %v6235_v19  ;;  %v16635_v19 = vld [vmem:[#allocation44_spill] sm:$0xff] }
 0x78a   : > { %v6469_v48 = vadd.f32 %v16628_v34, %v6350_v10  ;;  %v6587_v7 = vadd.f32 %v6570_v51, %v6468_v60  ;;  %v6471_v6 = vadd.f32 %v16631_v35, %v6352_v24  ;;  %v6589_v50 = vadd.f32 %v6576_v56, %v6470_v9  ;;  %v16639_v9 = vld [vmem:[#allocation36_spill] sm:$0xff]  ;;  %v16643_v35 = vld [vmem:[#allocation41_spill] sm:$0xff] }
 0x78b   : > { %v6578_v36 = vpop.f32.mrf.mxu1  ;;  %v15058_v2 = vpop.f32.mrf.mxu0  ;;  %v6472_v51 = vadd.f32 %v16632_v27, %v6353_v23  ;;  %v6473_v57 = vadd.f32 %v16633_v30, %v6354_v39  ;;  %v16636_v23 = vmov 1.0   ;;  %v16642_v39 = vld [vmem:[#allocation45_spill] sm:$0xff]  ;;  %v16648_v27 = vld [vmem:[#allocation42_spill] sm:$0xff] }
 0x78c   : > { %v6588_v8 = vadd.f32 %v6572_v53, %v6469_v48  ;;  %v6706_v12 = vadd.f32 %v15038_v17, %v6587_v7  ;;  %v6590_v43 = vadd.f32 %v6578_v36, %v6471_v6  ;;  %v6708_v63 = vadd.f32 %v15046_v33, %v6589_v50  ;;  %v16644_v6 = vld [vmem:[#allocation43_spill] sm:$0xff] }
 0x78d   : > { %v6582_v0 = vpop.f32.mrf.mxu1  ;;  %v6703_v40 = vpop.f32.mrf.mxu0  ;;  %v16646_v50 = vld [vmem:[#allocation59_spill] sm:$0xff] }
 0x78e   : > { %v6707_v49 = vadd.f32 %v15042_v31, %v6588_v8  ;;  %v6591_v53 = vadd.f32 %v6582_v0, %v6472_v51  ;;  %v6709_v56 = vadd.f32 %v15050_v20, %v6590_v43  ;;  %v16640_v8 = vld [vmem:[#allocation32_spill] sm:$0xff]  ;;  %v16652_v43 = vld [vmem:[#allocation67_spill] sm:$0xff] }
 0x78f   : > { %v6584_v55 = vpop.f32.mrf.mxu1  ;;  %v16649_v51 = vld [vmem:[#allocation64_spill] sm:$0xff] }
 0x790   : > { %v6592_v4 = vadd.f32 %v6584_v55, %v6473_v57  ;;  %v6710_v31 = vadd.f32 %v15058_v2, %v6591_v53 }
 0x791   : > { %v6808_v26 = vpop.f32.mrf.mxu1 }
 0x792   : > { %v6825_v22 = vadd.f32 %v6808_v26, %v6706_v12  ;;  %v6711_v33 = vadd.f32 %v6703_v40, %v6592_v4  ;;  %v16645_v12 = vld [vmem:[#allocation37_spill] sm:$0xff] }
 0x793   : > { %v6810_v3 = vpop.f32.mrf.mxu1 }
 0x794   : > { %v6927_v52 = vpop.f32.mrf.mxu0  ;;  %v6826_v21 = vadd.f32 %v6810_v3, %v6707_v49  ;;  %v16651_v49 = vld [vmem:[#allocation5_spill] sm:$0xff] }
 0x795   : > { %v6814_v58 = vpop.f32.mrf.mxu1  ;;  %v6944_v18 = vadd.f32 %v6927_v52, %v6825_v22 }
 0x796   : > { %v6929_v61 = vpop.f32.mrf.mxu0  ;;  %v6827_v11 = vadd.f32 %v6814_v58, %v6708_v63 }
 0x797   : > { %v6816_v41 = vpop.f32.mrf.mxu1  ;;  %v6945_v42 = vadd.f32 %v6929_v61, %v6826_v21 }
 0x798   : > { %v6933_v29 = vpop.f32.mrf.mxu0  ;;  %v6828_v26 = vadd.f32 %v6816_v41, %v6709_v56 }
 0x799   : > { %v6820_v25 = vpop.f32.mrf.mxu1  ;;  %v6946_v1 = vadd.f32 %v6933_v29, %v6827_v11 }
 0x79a   : > { %v6935_v37 = vpop.f32.mrf.mxu0  ;;  %v6829_v44 = vadd.f32 %v6820_v25, %v6710_v31  ;;  %v9764_v25 = vld [vmem:[%s15525_s6] ss:$0 sm:$0xff]  ;;  %v7311_v31 = vld [vmem:[%s15523_s4 + $0x8] sm:$0xff] }
 0x79b   : > { %v6822_v62 = vpop.f32.mrf.mxu1  ;;  %v6947_v55 = vadd.f32 %v6935_v37, %v6828_v26  ;;  %vm7274_vm5 = vcmp.eq.s32.totalorder %v16634_v15, %v9764_v25  ;;  %vm7273_vm3 = vcmp.eq.s32.totalorder %v16635_v19, %v9764_v25  ;;  %v16637_v37 = vmov 0.0   ;;  %v7312_v26 = vld [vmem:[%s15523_s4 + $0x10] sm:$0xf] }
 0x79c   : > { %v6939_v32 = vpop.f32.mrf.mxu0  ;;  %v6830_v58 = vadd.f32 %v6822_v62, %v6711_v33  ;;  %9782 = vmatpush1.msk.msra.mxu1 %vm7274_vm5, %v16636_v23  ;;  %vm7272_vm10 = vcmp.eq.s32.totalorder %v16638_v46, %v9764_v25  ;;  %vm7271_vm14 = vcmp.eq.s32.totalorder %v16639_v9, %v9764_v25  ;;  %vm7270_vm2 = vcmp.eq.s32.totalorder %v16640_v8, %v9764_v25  ;;  %v16641_v62 = vld [vmem:[#allocation49_spill] sm:$0xff] }
 0x79d   : > { %v7046_v45 = vpop.f32.mrf.mxu1  ;;  %v6948_v2 = vadd.f32 %v6939_v32, %v6829_v44  ;;  %7343 = vmatprep.subr.mxu1 %v16637_v37  ;;  %vm7269_vm13 = vcmp.eq.s32.totalorder %v16641_v62, %v9764_v25  ;;  %vm7268_vm1 = vcmp.eq.s32.totalorder %v16642_v39, %v9764_v25  ;;  %vm7267_vm8 = vcmp.eq.s32.totalorder %v16643_v35, %v9764_v25  ;;  %v16650_v32 = vld [vmem:[#allocation66_spill] sm:$0xff] }
 0x79e   : > { %v6941_v17 = vpop.f32.mrf.mxu0  ;;  %v7063_v54 = vadd.f32 %v7046_v45, %v6944_v18  ;;  %9783 = vmatpush1.msk.msra.mxu1 %vm7273_vm3, %v16636_v23  ;;  %vm7266_vm12 = vcmp.eq.s32.totalorder %v16644_v6, %v9764_v25  ;;  %vm7265_vm9 = vcmp.eq.s32.totalorder %v16645_v12, %v9764_v25  ;;  %vm7264_vm0 = vcmp.eq.s32.totalorder %v16646_v50, %v9764_v25  ;;  %v16647_v45 = vld [vmem:[#allocation46_spill] sm:$0xff]  ;;  %v9806_v6 = vld [vmem:[%s15526_s7 + $0x20] sm:$0xff]  ;;  %v9834_v12 = vld [vmem:[%s15526_s7 + $0xb8] sm:$0xff] }
 0x79f   : > { %v7048_v59 = vpop.f32.mrf.mxu1  ;;  %v6949_v41 = vadd.f32 %v6941_v17, %v6830_v58  ;;  %7345 = vmatprep.subr.mxu1 %v16637_v37  ;;  %vm7263_vm6 = vcmp.eq.s32.totalorder %v16647_v45, %v9764_v25  ;;  %vm7262_vm5 = vcmp.eq.s32.totalorder %v16648_v27, %v9764_v25  ;;  %vm7261_vm3 = vcmp.eq.s32.totalorder %v16649_v51, %v9764_v25  ;;  %v9807_v62 = vld [vmem:[%s15526_s7 + $0x28] sm:$0xff]  ;;  %v9810_v27 = vld [vmem:[%s15526_s7 + $0x38] sm:$0xff]  ;;  %v9833_v51 = vld [vmem:[%s15526_s7 + $0xb0] sm:$0xff] }
 0x7a0   : > { %v7064_v28 = vadd.f32 %v7048_v59, %v6945_v42  ;;  %9784 = vmatpush1.msk.msra.mxu1 %vm7272_vm10, %v16636_v23  ;;  %vm7260_vm10 = vcmp.eq.s32.totalorder %v16650_v32, %v9764_v25 }
 0x7a1   : > { %v7052_v16 = vpop.f32.mrf.mxu1  ;;  %7347 = vmatprep.subr.mxu1 %v16637_v37 }
 0x7a2   : > { %v7065_v5 = vadd.f32 %v7052_v16, %v6946_v1  ;;  %9785 = vmatpush1.msk.msra.mxu1 %vm7271_vm14, %v16636_v23  ;;  %vm7259_vm14 = vcmp.eq.s32.totalorder %v16651_v49, %v9764_v25  ;;  %v9809_v49 = vld [vmem:[%s15526_s7 + $0x30] sm:$0xff] }
 0x7a3   : > { %v7054_v10 = vpop.f32.mrf.mxu1  ;;  %7349 = vmatprep.subr.mxu1 %v16637_v37 }
 0x7a4   : > { %v7165_v36 = vpop.f32.mrf.mxu0  ;;  %v7066_v61 = vadd.f32 %v7054_v10, %v6947_v55  ;;  %9786 = vmatpush1.msk.msra.mxu1 %vm7270_vm2, %v16636_v23  ;;  %vm7275_vm2 = vcmp.eq.s32.totalorder %v16652_v43, %v9764_v25  ;;  %v9840_v43 = vld [vmem:[%s15526_s7 + $0xd8] sm:$0xff] }
 0x7a5   : > { %v15092_v0 = vadd.f32 %v7165_v36, %v7063_v54  ;;  %v7058_v3 = vpop.f32.mrf.mxu1  ;;  %7351 = vmatprep.subr.mxu1 %v16637_v37  ;;  %v9781_v22 = vsel %vm7275_vm2, 1.0, %v16637_v37  ;;  %v7310_v36 = vld [vmem:[%s15523_s4] sm:$0xff] }
 0x7a6   : > { %v7167_v52 = vpop.f32.mrf.mxu0  ;;  %v7067_v13 = vadd.f32 %v7058_v3, %v6948_v2  ;;  %9787 = vmatpush1.msk.msra.mxu1 %vm7269_vm13, %v16636_v23  ;;  %vm16653_vm13 = vcmask 1039360  }
 0x7a7   : > { %v15094_v47 = vadd.f32 %v7167_v52, %v7064_v28  ;;  %7194 = vrot.lane.b32.xlu0 %v15092_v0, %s16261_s25  ;;  %v7060_v40 = vpop.f32.mrf.mxu1  ;;  %7353 = vmatprep.subr.mxu1 %v16637_v37 }
 0x7a8   : > { %v7171_v20 = vpop.f32.mrf.mxu0  ;;  %v7068_v34 = vadd.f32 %v7060_v40, %v6949_v41  ;;  %9788 = vmatpush1.msk.msra.mxu1 %vm7268_vm1, %v16636_v23  ;;  %vm16654_vm1 = vmmov %vm16653_vm13  ;;  %v7426_v40 = vld [vmem:[%s15526_s7 + $0x8] sm:$0xff]  ;;  %v9828_v41 = vld [vmem:[%s15526_s7 + $0x98] sm:$0xff] }
 0x7a9   : > { %v15098_v60 = vadd.f32 %v7171_v20, %v7065_v5  ;;  %7196 = vrot.lane.b32.xlu1 %v15094_v47, %s16261_s25  ;;  %7355 = vmatprep.subr.mxu1 %v16637_v37 }
 0x7aa   : > { %v7173_v38 = vpop.f32.mrf.mxu0  ;;  %9789 = vmatpush1.msk.msra.mxu1 %vm7267_vm8, %v16636_v23  ;;  %vm7328_vm8 = vcmask 23552   ;;  %9934 = vmatpush3.msra.mxu0 %v7426_v40 }
 0x7ab   : > { %v15102_v14 = vadd.f32 %v7173_v38, %v7066_v61  ;;  %7198 = vrot.lane.b32.xlu0 %v15098_v60, %s16261_s25  ;;  %7357 = vmatprep.subr.mxu1 %v16637_v37  ;;  %v7425_v38 = vld [vmem:[%s15526_s7] sm:$0xff] }
 0x7ac   : > { %v7177_v29 = vpop.f32.mrf.mxu0  ;;  %9790 = vmatpush1.msk.msra.mxu1 %vm7266_vm12, %v16636_v23  ;;  %9935 = vmatprep.subr.mxu0 %v16637_v37  ;;  %vm10335_vm12 = vmmov 0  }
 0x7ad   : > { %v15106_v48 = vadd.f32 %v7177_v29, %v7067_v13  ;;  %7200 = vrot.lane.b32.xlu1 %v15102_v14, %s16261_s25  ;;  %7359 = vmatprep.subr.mxu1 %v16637_v37  ;;  %v9827_v13 = vld [vmem:[%s15526_s7 + $0x90] sm:$0xff] }
 0x7ae   : > { %v7179_v24 = vpop.f32.mrf.mxu0  ;;  %9791 = vmatpush1.msk.msra.mxu1 %vm7265_vm9, %v16636_v23  ;;  %9936 = vmatpush3.msra.mxu0 %v7425_v38  ;;  %v9843_v38 = vld [vmem:[%s15526_s7 + $0xe8] sm:$0xff] }
 0x7af   : > { %v15110_v7 = vadd.f32 %v7179_v24, %v7068_v34  ;;  %7202 = vrot.lane.b32.xlu0 %v15106_v48, %s16261_s25  ;;  %7361 = vmatprep.subr.mxu1 %v16637_v37 }
 0x7b0   : > { %9792 = vmatpush1.msk.msra.mxu1 %vm7264_vm0, %v16636_v23  ;;  %9937 = vmatprep.mubr.msk.f32.mxu0 %vm10335_vm12, %v16637_v37 }
 0x7b1   : > { %7204 = vrot.lane.b32.xlu1 %v15110_v7, %s16261_s25  ;;  %7363 = vmatprep.subr.mxu1 %v16637_v37  ;;  %s9075_s25 = scalar_lea.hbm %s15530_s11, %s9862_s30 }
 0x7b2   : > { %9793 = vmatpush1.msk.msra.mxu1 %vm7263_vm6, %v16636_v23  ;;  %9940 = vmatprep.subr.mxu0 %v16637_v37 }
 0x7b3   : > { %7365 = vmatprep.subr.mxu1 %v16637_v37 }
 0x7b4   : > { %9794 = vmatpush1.msk.msra.mxu1 %vm7262_vm5, %v16636_v23 }
 0x7b5   : > { %7367 = vmatprep.subr.mxu1 %v16637_v37 }
 0x7b6   : > { %9795 = vmatpush1.msk.msra.mxu1 %vm7261_vm3, %v16636_v23 }
 0x7b7   : > { %7369 = vmatprep.subr.mxu1 %v16637_v37 }
 0x7b8   : > { %9796 = vmatpush1.msk.msra.mxu1 %vm7260_vm10, %v16636_v23 }
 0x7b9   : > { %7371 = vmatprep.subr.mxu1 %v16637_v37 }
 0x7ba   : > { %9797 = vmatpush1.msk.msra.mxu1 %vm7259_vm14, %v16636_v23  ;;  %v9803_v23 = vld [vmem:[%s15526_s7 + $0x10] sm:$0xff] }
 0x7bb   : > { %7403 = vmatprep.subr.mxu1 %v16637_v37 }
 0x7bc   : > { %9798 = vmatpush2.msk.msra.mxu1 %vm3997_vm7, %v9781_v22  ;;  %vm16655_vm7 = vmmov %vm16654_vm1 }
 0x7bd   : > { %9996 = vmatprep.subr.mxu1 %v16637_v37 }
 0x819   : > { %v7195_v59 = vpop.permute.xlu0 %7194 }
 0x81b   : > { %v7197_v30 = vpop.permute.xlu1 %7196 }
 0x81c   : > { %v7206_v57 = vsel %vm16653_vm13, %v7195_v59, %v7197_v30  ;;  %v7216_v53 = vmax.f32 %v15094_v47, %v7197_v30  ;;  %v9813_v59 = vld [vmem:[%s15526_s7 + $0x48] sm:$0xff]  ;;  %v9839_v30 = vld [vmem:[%s15526_s7 + $0xd0] sm:$0xff] }
 0x81d   : > { %v7215_v63 = vmax.f32 %v15092_v0, %v7206_v57  ;;  %v7199_v21 = vpop.permute.xlu0 %7198 }
 0x81e   : > { %7229 = vrot.lane.b32.xlu1 %v7216_v53, %s10316_s14 }
 0x81f   : > { %v7201_v18 = vpop.permute.xlu1 %7200  ;;  %7227 = vrot.lane.b32.xlu0 %v7215_v63, %s10316_s14 }
 0x820   : > { %v7207_v16 = vsel %vm16654_vm1, %v7199_v21, %v7201_v18  ;;  %v7218_v4 = vmax.f32 %v15102_v14, %v7201_v18 }
 0x821   : > { %v7217_v17 = vmax.f32 %v15098_v60, %v7207_v16  ;;  %v7203_v56 = vpop.permute.xlu0 %7202  ;;  %v9816_v16 = vld [vmem:[%s15526_s7 + $0x58] sm:$0xff] }
 0x822   : > { %7233 = vrot.lane.b32.xlu1 %v7218_v4, %s10316_s14 }
 0x823   : > { %7231 = vrot.lane.b32.xlu0 %v7217_v17, %s10316_s14  ;;  %v7205_v11 = vpop.permute.xlu1 %7204 }
 0x824   : > { %v7208_v42 = vsel %vm16655_vm7, %v7203_v56, %v7205_v11  ;;  %v7220_v54 = vmax.f32 %v15110_v7, %v7205_v11  ;;  %v9804_v7 = vld [vmem:[%s15526_s7 + $0x18] sm:$0xff]  ;;  %v9815_v11 = vld [vmem:[%s15526_s7 + $0x50] sm:$0xff] }
 0x825   : > { %v7219_v10 = vmax.f32 %v15106_v48, %v7208_v42  ;;  %v9852_v42 = vld [vmem:[%s15526_s7 + $0x118] sm:$0xff] }
 0x826   : > { %7237 = vrot.lane.b32.xlu1 %v7220_v54, %s10316_s14 }
 0x827   : > { %7235 = vrot.lane.b32.xlu0 %v7219_v10, %s10316_s14  ;;  %s376_s14 = scalar_lea.vmem [#allocation2], %s375_s16 }
 0x828   : > { %s9077_s29 = sshll.u32 %s376_s14, 4  ;;  %s9078_s29 = int_to_ptr.vmem [resolvable:$true] %s9077_s29 }
 0x829   : > { %s10227_s15 = scalar_lea.vmem %s9078_s29, 16  ;;  %p10234_p0 = scmp.lt.s32.totalorder %s9078_s29, %s10232_s0 }
 0x82a   : > { %7320 = vperm.xlu1 %10181, %v7311_v31   ;;  %v9819_v31 = vld [vmem:[%s15526_s7 + $0x68] sm:$0xff]  ;;  %p10228_p11 = scmp.ne.s32.totalorder %s9078_s29, %s10227_s15  ;;  %p10235_p1 = scmp.lt.s32.totalorder %s10233_s21, %s10227_s15 }
 0x82b   : > { %7315 = vperm.xlu0 %10180, %v7310_v36   ;;  %v9851_v36 = vld [vmem:[%s15526_s7 + $0x110] sm:$0xff] }
 0x82c   : > { %p10229_p12 = pnand %p10228_p11, %p10435_p5  ;;  %p10236_p2 = por %p10235_p1, %p10234_p0 }
 0x82e   : > { %p10230_p13 = pneg %p10229_p12 }
 0x82f   : > { %7325 = vperm.xlu0 %10180, %v7312_v26  }
 0x830   : > { %p10237_p3 = pnand %p10236_p2, %p10230_p13 }
 0x890   : > { %v7230_v1 = vpop.permute.xlu1 %7229 }
 0x891   : > { %v7249_v28 = vmax.f32 %v7216_v53, %v7230_v1  ;;  %v7228_v0 = vpop.permute.xlu0 %7227  ;;  %v9812_v53 = vld [vmem:[%s15526_s7 + $0x40] sm:$0xff] }
 0x892   : > { %v7239_v33 = vsel %vm4822_vm4, %v7228_v0, %v7230_v1  ;;  %v9818_v1 = vld [vmem:[%s15526_s7 + $0x60] sm:$0xff] }
 0x893   : > { %v7248_v3 = vmax.f32 %v7215_v63, %v7239_v33  ;;  %9799 = vmatprep.mubr.msk.f32.mxu1 %vm7328_vm8, %v7249_v28  ;;  %v9846_v63 = vld [vmem:[%s15526_s7 + $0xf8] sm:$0xff] }
 0x894   : > { %v7234_v52 = vpop.permute.xlu1 %7233  ;;  %v9858_v28 = vld [vmem:[%s15526_s7 + $0x138] sm:$0xff] }
 0x895   : > { %v7251_v44 = vmax.f32 %v7218_v4, %v7234_v52  ;;  %v7232_v55 = vpop.permute.xlu0 %7231  ;;  %7406 = vmatmul.mubr.f32.vlgmr.msra.gmra.mxu1 %v7248_v3  ;;  %v9822_v33 = vld [vmem:[%s15526_s7 + $0x78] sm:$0xff]  ;;  %v9857_v3 = vld [vmem:[%s15526_s7 + $0x130] sm:$0xff] }
 0x896   : > { %v7240_v5 = vsel %vm4822_vm4, %v7232_v55, %v7234_v52  ;;  %9997 = vmatpush3.msra.mxu1 %v9828_v41  ;;  %v9842_v41 = vld [vmem:[%s15526_s7 + $0xe0] sm:$0xff] }
 0x897   : > { %v7250_v47 = vmax.f32 %v7217_v17, %v7240_v5  ;;  %9800 = vmatprep.mubr.msk.f32.mxu1 %vm7328_vm8, %v7251_v44  ;;  %9998 = vmatprep.subr.mxu1 %v16637_v37  ;;  %v9845_v17 = vld [vmem:[%s15526_s7 + $0xf0] sm:$0xff]  ;;  %v9825_v5 = vld [vmem:[%s15526_s7 + $0x88] sm:$0xff] }
 0x898   : > { %v7238_v20 = vpop.permute.xlu1 %7237  ;;  %9999 = vmatpush3.msra.mxu1 %v9827_v13  ;;  %v9821_v44 = vld [vmem:[%s15526_s7 + $0x70] sm:$0xff] }
 0x899   : > { %v7253_v58 = vmax.f32 %v7220_v54, %v7238_v20  ;;  %v7236_v2 = vpop.permute.xlu0 %7235  ;;  %7411 = vmatmul.mubr.f32.gmra.mxu1 %v7250_v47  ;;  %10010 = vmatprep.subr.mxu1 %v16637_v37  ;;  %v9824_v47 = vld [vmem:[%s15526_s7 + $0x80] sm:$0xff] }
 0x89a   : > { %v7241_v61 = vsel %vm4822_vm4, %v7236_v2, %v7238_v20  ;;  %v9831_v20 = vld [vmem:[%s15526_s7 + $0xa8] sm:$0xff] }
 0x89b   : > { %v7252_v60 = vmax.f32 %v7219_v10, %v7241_v61  ;;  %9801 = vmatprep.mubr.msk.f32.mxu1 %vm7328_vm8, %v7253_v58  ;;  %v9830_v58 = vld [vmem:[%s15526_s7 + $0xa0] sm:$0xff]  ;;  %v9837_v61 = vld [vmem:[%s15526_s7 + $0xc8] sm:$0xff] }
 0x89d   : > { %7416 = vmatmul.mubr.f32.gmra.mxu1 %v7252_v60  ;;  %v9836_v60 = vld [vmem:[%s15526_s7 + $0xc0] sm:$0xff] }
 0x89e   : > { %10000 = vmatprep.mubr.msk.f32.mxu1 %vm10335_vm12, %v16637_v37 }
 0x8a5   : > { %v7321_v25 = vpop.permute.xlu1 %7320 }
 0x8a6   : > { %v7316_v14 = vpop.permute.xlu0 %7315 }
 0x8aa   : > { %v7326_v21 = vpop.permute.xlu0 %7325 }
 0x955   : > { %v7407_v29 = vpop.f32.mrf.mxu1 }
 0x956   : > { %v7408_v34 = vadd.f32 %v7407_v29, %v7316_v14  ;;  %v9849_v14 = vld [vmem:[%s15526_s7 + $0x108] sm:$0xff]  ;;  %v9848_v29 = vld [vmem:[%s15526_s7 + $0x100] sm:$0xff] }
 0x957   : > { %v7409_v48 = vpop.f32.mrf.mxu1 }
 0x958   : > { %v15221_v24 = vmax.f32 %v7408_v34, 0.0  ;;  %v9855_v34 = vld [vmem:[%s15526_s7 + $0x128] sm:$0xff]  ;;  %v9854_v48 = vld [vmem:[%s15526_s7 + $0x120] sm:$0xff] }
 0x959   : > { %v7412_v15 = vpop.f32.mrf.mxu1 }
 0x95a   : > { %v7413_v19 = vadd.f32 %v7412_v15, %v7321_v25  ;;  %9938 = vmatmul.mubr.msk.f32.vlgmr.msra.gmra.mxu0 %vm2617_vm11, %v15221_v24  ;;  %v7504_v8 = vrot.slane %v15221_v24, 1  ;;  %v7581_v45 = vrot.slane %v15221_v24, 2  ;;  %v7658_v22 = vrot.slane %v15221_v24, 3  ;;  %v8970_v25 = vld [vmem:[%s15528_s9 + $0x28] sm:$0xff]  ;;  %v8969_v15 = vld [vmem:[%s15528_s9 + $0x20] sm:$0xff] }
 0x95b   : > { %v7414_v46 = vpop.f32.mrf.mxu1  ;;  %9941 = vmatpush3.msra.mxu0 %v9804_v7  ;;  %9944 = vmatprep.mubr.msk.f32.mxu0 %vm10335_vm12, %v16637_v37  ;;  %v7735_v18 = vrot.slane %v15221_v24, 4  ;;  %v7812_v10 = vrot.slane %v15221_v24, 5  ;;  %v7889_v0 = vrot.slane %v15221_v24, 6  ;;  %v7966_v55 = vrot.slane %v15221_v24, 7  ;;  %v8971_v7 = vld [vmem:[%s15528_s9 + $0x30] sm:$0x3] }
 0x95c   : > { %v15233_v9 = vmax.f32 %v7413_v19, 0.0  ;;  %9942 = vmatprep.subr.mxu0 %v16637_v37  ;;  %v8968_v19 = vld [vmem:[%s15528_s9 + $0x18] sm:$0xff]  ;;  %v8966_v46 = vld [vmem:[%s15528_s9 + $0x8] sm:$0xff] }
 0x95d   : > { %v7417_v39 = vpop.f32.mrf.mxu1  ;;  %9943 = vmatpush3.msra.mxu0 %v9803_v23  ;;  %v8967_v23 = vld [vmem:[%s15528_s9 + $0x10] sm:$0xff] }
 0x95e   : > { %9945 = vmatmul.mubr.msk.f32.vlgmr.msra.gmra.mxu0 %vm2617_vm11, %v7504_v8  ;;  %9947 = vmatprep.subr.mxu0 %v16637_v37  ;;  %v8120_v35 = vrot.slane %v15233_v9, 1  ;;  %v8274_v32 = vrot.slane %v15233_v9, 3  ;;  %v8428_v57 = vrot.slane %v15233_v9, 5  ;;  %v7418_v4 = vadd.f32 %v7417_v39, %v7326_v21 }
 0x95f   : > { %v7419_v50 = vpop.f32.mrf.mxu1  ;;  %9948 = vmatpush3.msra.mxu0 %v9807_v62  ;;  %9951 = vmatprep.mubr.msk.f32.mxu0 %vm10335_vm12, %v16637_v37  ;;  %v8582_v56 = vrot.slane %v15233_v9, 7  ;;  %v8197_v2 = vrot.slane %v15233_v9, 2  ;;  %v8351_v40 = vrot.slane %v15233_v9, 4  ;;  %v8505_v13 = vrot.slane %v15233_v9, 6 }
 0x960   : > { %9949 = vmatprep.subr.mxu0 %v16637_v37  ;;  %10001 = vmatmul.mubr.msk.f32.vlgmr.msra.gmra.mxu1 %vm2617_vm11, %v8120_v35  ;;  %v15320_v54 = vmax.f32 %v7418_v4, 0.0 }
 0x961   : > { %9950 = vmatpush3.msra.mxu0 %v9806_v6  ;;  %10011 = vmatpush3.msra.mxu1 %v9834_v12 }
 0x962   : > { %9952 = vmatmul.mubr.msk.f32.vlgmr.msra.gmra.mxu0 %vm2617_vm11, %v7581_v45  ;;  %9954 = vmatprep.subr.mxu0 %v16637_v37  ;;  %v8736_v26 = vrot.slane %v15320_v54, 1  ;;  %v8890_v52 = vrot.slane %v15320_v54, 3  ;;  %v8813_v24 = vrot.slane %v15320_v54, 2 }
 0x963   : > { %10012 = vmatprep.subr.mxu1 %v16637_v37  ;;  %9955 = vmatpush3.msra.mxu0 %v9810_v27 }
 0x964   : > { %10013 = vmatpush3.msra.mxu1 %v9833_v51  ;;  %10014 = vmatprep.mubr.msk.f32.mxu1 %vm10335_vm12, %v16637_v37 }
 0x965   : > { %9956 = vmatprep.subr.mxu0 %v16637_v37  ;;  %10015 = vmatmul.mubr.msk.f32.vlgmr.msra.gmra.mxu1 %vm2617_vm11, %v8274_v32 }
 0x966   : > { %10024 = vmatprep.subr.mxu1 %v16637_v37  ;;  %9957 = vmatpush3.msra.mxu0 %v9809_v49 }
 0x967   : > { %9958 = vmatprep.mubr.msk.f32.mxu0 %vm10335_vm12, %v16637_v37  ;;  %10025 = vmatpush3.msra.mxu1 %v9840_v43 }
 0x968   : > { %9959 = vmatmul.mubr.msk.f32.vlgmr.msra.gmra.mxu0 %vm2617_vm11, %v7658_v22  ;;  %9961 = vmatprep.subr.mxu0 %v16637_v37 }
 0x969   : > { %10026 = vmatprep.subr.mxu1 %v16637_v37  ;;  %9962 = vmatpush3.msra.mxu0 %v9813_v59 }
 0x96a   : > { %10027 = vmatpush3.msra.mxu1 %v9839_v30  ;;  %10028 = vmatprep.mubr.msk.f32.mxu1 %vm10335_vm12, %v16637_v37 }
 0x96b   : > { %9963 = vmatprep.subr.mxu0 %v16637_v37  ;;  %10029 = vmatmul.mubr.msk.f32.vlgmr.msra.gmra.mxu1 %vm2617_vm11, %v8428_v57 }
 0x96c   : > { %10038 = vmatprep.subr.mxu1 %v16637_v37  ;;  %9964 = vmatpush3.msra.mxu0 %v9812_v53 }
 0x96d   : > { %9965 = vmatprep.mubr.msk.f32.mxu0 %vm10335_vm12, %v16637_v37  ;;  %10039 = vmatpush3.msra.mxu1 %v9846_v63 }
 0x96e   : > { %9966 = vmatmul.mubr.msk.f32.vlgmr.msra.gmra.mxu0 %vm2617_vm11, %v7735_v18  ;;  %9968 = vmatprep.subr.mxu0 %v16637_v37 }
 0x96f   : > { %10040 = vmatprep.subr.mxu1 %v16637_v37  ;;  %9969 = vmatpush3.msra.mxu0 %v9816_v16 }
 0x970   : > { %10041 = vmatpush3.msra.mxu1 %v9845_v17  ;;  %10042 = vmatprep.mubr.msk.f32.mxu1 %vm10335_vm12, %v16637_v37 }
 0x971   : > { %9970 = vmatprep.subr.mxu0 %v16637_v37  ;;  %10043 = vmatmul.mubr.msk.f32.vlgmr.msra.gmra.mxu1 %vm2617_vm11, %v8582_v56 }
 0x972   : > { %10052 = vmatprep.subr.mxu1 %v16637_v37  ;;  %9971 = vmatpush3.msra.mxu0 %v9815_v11 }
 0x973   : > { %9972 = vmatprep.mubr.msk.f32.mxu0 %vm10335_vm12, %v16637_v37  ;;  %10053 = vmatpush3.msra.mxu1 %v9852_v42 }
 0x974   : > { %9973 = vmatmul.mubr.msk.f32.vlgmr.msra.gmra.mxu0 %vm2617_vm11, %v7812_v10  ;;  %9975 = vmatprep.subr.mxu0 %v16637_v37 }
 0x975   : > { %10054 = vmatprep.subr.mxu1 %v16637_v37  ;;  %9976 = vmatpush3.msra.mxu0 %v9819_v31 }
 0x976   : > { %10055 = vmatpush3.msra.mxu1 %v9851_v36  ;;  %10056 = vmatprep.mubr.msk.f32.mxu1 %vm10335_vm12, %v16637_v37 }
 0x977   : > { %9977 = vmatprep.subr.mxu0 %v16637_v37  ;;  %10057 = vmatmul.mubr.msk.f32.vlgmr.msra.gmra.mxu1 %vm2617_vm11, %v8736_v26 }
 0x978   : > { %10066 = vmatprep.subr.mxu1 %v16637_v37  ;;  %9978 = vmatpush3.msra.mxu0 %v9818_v1 }
 0x979   : > { %9979 = vmatprep.mubr.msk.f32.mxu0 %vm10335_vm12, %v16637_v37  ;;  %10067 = vmatpush3.msra.mxu1 %v9858_v28 }
 0x97a   : > { %9980 = vmatmul.mubr.msk.f32.vlgmr.msra.gmra.mxu0 %vm2617_vm11, %v7889_v0  ;;  %9982 = vmatprep.subr.mxu0 %v16637_v37 }
 0x97b   : > { %10068 = vmatprep.subr.mxu1 %v16637_v37  ;;  %9983 = vmatpush3.msra.mxu0 %v9822_v33 }
 0x97c   : > { %10069 = vmatpush3.msra.mxu1 %v9857_v3  ;;  %10070 = vmatprep.mubr.msk.f32.mxu1 %vm10335_vm12, %v16637_v37 }
 0x97d   : > { %9984 = vmatprep.subr.mxu0 %v16637_v37  ;;  %10071 = vmatmul.mubr.msk.f32.vlgmr.msra.gmra.mxu1 %vm2617_vm11, %v8890_v52 }
 0x97e   : > { %9985 = vmatpush3.msra.mxu0 %v9821_v44  ;;  %9986 = vmatprep.mubr.msk.f32.mxu0 %vm10335_vm12, %v16637_v37 }
 0x97f   : > { %9987 = vmatmul.mubr.msk.f32.vlgmr.msra.gmra.mxu0 %vm2617_vm11, %v7966_v55  ;;  %9989 = vmatprep.subr.mxu0 %v16637_v37 }
 0x980   : > { %9990 = vmatpush3.msra.mxu0 %v9825_v5  ;;  %9993 = vmatprep.mubr.msk.f32.mxu0 %vm10335_vm12, %v16637_v37 }
 0x981   : > { %9991 = vmatprep.subr.mxu0 %v16637_v37 }
 0x982   : > { %9992 = vmatpush3.msra.mxu0 %v9824_v47 }
 0x983   : > { %9994 = vmatmul.mubr.msk.f32.vlgmr.msra.gmra.mxu0 %vm2617_vm11, %v15233_v9  ;;  %10003 = vmatprep.subr.mxu0 %v16637_v37  ;;  %v8965_v9 = vld [vmem:[%s15528_s9] sm:$0xff] }
 0x984   : > { %10004 = vmatpush3.msra.mxu0 %v9831_v20  ;;  %10007 = vmatprep.mubr.msk.f32.mxu0 %vm10335_vm12, %v16637_v37 }
 0x985   : > { %10005 = vmatprep.subr.mxu0 %v16637_v37 }
 0x986   : > { %10006 = vmatpush3.msra.mxu0 %v9830_v58 }
 0x987   : > { %10008 = vmatmul.mubr.msk.f32.vlgmr.msra.gmra.mxu0 %vm2617_vm11, %v8197_v2  ;;  %10017 = vmatprep.subr.mxu0 %v16637_v37 }
 0x988   : > { %10018 = vmatpush3.msra.mxu0 %v9837_v61  ;;  %10021 = vmatprep.mubr.msk.f32.mxu0 %vm10335_vm12, %v16637_v37 }
 0x989   : > { %10019 = vmatprep.subr.mxu0 %v16637_v37 }
 0x98a   : > { %10020 = vmatpush3.msra.mxu0 %v9836_v60 }
 0x98b   : > { %10022 = vmatmul.mubr.msk.f32.vlgmr.msra.gmra.mxu0 %vm2617_vm11, %v8351_v40  ;;  %10031 = vmatprep.subr.mxu0 %v16637_v37 }
 0x98c   : > { %10032 = vmatpush3.msra.mxu0 %v9843_v38  ;;  %10035 = vmatprep.mubr.msk.f32.mxu0 %vm10335_vm12, %v16637_v37 }
 0x98d   : > { %10033 = vmatprep.subr.mxu0 %v16637_v37 }
 0x98e   : > { %10034 = vmatpush3.msra.mxu0 %v9842_v41 }
 0x98f   : > { %10036 = vmatmul.mubr.msk.f32.vlgmr.msra.gmra.mxu0 %vm2617_vm11, %v8505_v13  ;;  %10045 = vmatprep.subr.mxu0 %v16637_v37 }
 0x990   : > { %10046 = vmatpush3.msra.mxu0 %v9849_v14  ;;  %10049 = vmatprep.mubr.msk.f32.mxu0 %vm10335_vm12, %v16637_v37 }
 0x991   : > { %10047 = vmatprep.subr.mxu0 %v16637_v37 }
 0x992   : > { %10048 = vmatpush3.msra.mxu0 %v9848_v29 }
 0x993   : > { %10050 = vmatmul.mubr.msk.f32.vlgmr.msra.gmra.mxu0 %vm2617_vm11, %v15320_v54  ;;  %10059 = vmatprep.subr.mxu0 %v16637_v37 }
 0x994   : > { %10060 = vmatpush3.msra.mxu0 %v9855_v34  ;;  %10063 = vmatprep.mubr.msk.f32.mxu0 %vm10335_vm12, %v16637_v37 }
 0x995   : > { %10061 = vmatprep.subr.mxu0 %v16637_v37 }
 0x996   : > { %10062 = vmatpush3.msra.mxu0 %v9854_v48 }
 0x997   : > { %10064 = vmatmul.mubr.msk.f32.vlgmr.msra.gmra.mxu0 %vm2617_vm11, %v8813_v24  ;;  %10073 = vmatprep.subr.mxu0 %v16637_v37  ;;  %vm8973_vm11 = vcmask 408576  }
 0x998   : > { %10087 = vmatprep.mubr.msk.f32.mxu0 %vm10335_vm12, %v16637_v37  ;;  %10074 = vmatpush3.msk.msra.mxu0 %vm4272_vm15, %v8971_v7  ;;  %vm9050_vm15 = vcmask 73728  }
 0x999   : > { %10075 = vmatprep.subr.mxu0 %v16637_v37 }
 0x99a   : > { %10076 = vmatpush3.msra.mxu0 %v8970_v25 }
 0x99b   : > { %10077 = vmatprep.subr.mxu0 %v16637_v37 }
 0x99c   : > { %10078 = vmatpush3.msra.mxu0 %v8969_v15 }
 0x99d   : > { %10079 = vmatprep.subr.mxu0 %v16637_v37 }
 0x99e   : > { %10080 = vmatpush3.msra.mxu0 %v8968_v19 }
 0x99f   : > { %10081 = vmatprep.subr.mxu0 %v16637_v37 }
 0x9a0   : > { %10082 = vmatpush3.msra.mxu0 %v8967_v23 }
 0x9a1   : > { %10083 = vmatprep.subr.mxu0 %v16637_v37 }
 0x9a2   : > { %10084 = vmatpush3.msra.mxu0 %v8966_v46  ;;  %v8972_v46 = vld [vmem:[%s15529_s10] sm:$0x1] }
 0x9a3   : > { %10085 = vmatprep.subr.mxu0 %v16637_v37  ;;  %v7424_v37 = vld [vmem:[%s15527_s8] sm:$0x1] }
 0x9a4   : > { %10086 = vmatpush3.msra.mxu0 %v8965_v9 }
 0xa1a   : > { %v7496_v8 = vpop.f32.mrf.mxu0 }
 0xa1b   : > { %v7500_v63 = vadd.f32 %v7496_v8, %v7424_v37 }
 0xa1c   : > { %v9939_v62 = vpop.f32.mrf.mxu0 }
 0xa1e   : > { %v7573_v39 = vpop.f32.mrf.mxu0 }
 0xa1f   : > { %v7577_v18 = vadd.f32 %v7573_v39, %v7500_v63 }
 0xa20   : > { %v9946_v35 = vpop.f32.mrf.mxu0  ;;  %v8189_v6 = vpop.f32.mrf.mxu1 }
 0xa22   : > { %v7650_v12 = vpop.f32.mrf.mxu0  ;;  %v10002_v50 = vpop.f32.mrf.mxu1 }
 0xa23   : > { %v7654_v17 = vadd.f32 %v7650_v12, %v7577_v18 }
 0xa24   : > { %v9953_v45 = vpop.f32.mrf.mxu0 }
 0xa25   : > { %v8343_v27 = vpop.f32.mrf.mxu1 }
 0xa27   : > { %v10016_v51 = vpop.f32.mrf.mxu1 }
 0xa28   : > { %v7727_v32 = vpop.f32.mrf.mxu0 }
 0xa29   : > { %v7731_v11 = vadd.f32 %v7727_v32, %v7654_v17 }
 0xa2a   : > { %v9960_v49 = vpop.f32.mrf.mxu0 }
 0xa2b   : > { %v8497_v43 = vpop.f32.mrf.mxu1 }
 0xa2d   : > { %v10030_v22 = vpop.f32.mrf.mxu1 }
 0xa2e   : > { %v7804_v59 = vpop.f32.mrf.mxu0 }
 0xa2f   : > { %v7808_v54 = vadd.f32 %v7804_v59, %v7731_v11 }
 0xa30   : > { %v9967_v30 = vpop.f32.mrf.mxu0 }
 0xa31   : > { %v8651_v57 = vpop.f32.mrf.mxu1 }
 0xa33   : > { %v10044_v53 = vpop.f32.mrf.mxu1 }
 0xa34   : > { %v7881_v21 = vpop.f32.mrf.mxu0 }
 0xa35   : > { %v7885_v36 = vadd.f32 %v7881_v21, %v7808_v54 }
 0xa36   : > { %v9974_v16 = vpop.f32.mrf.mxu0 }
 0xa37   : > { %v8805_v4 = vpop.f32.mrf.mxu1 }
 0xa39   : > { %v10058_v56 = vpop.f32.mrf.mxu1 }
 0xa3a   : > { %v7958_v42 = vpop.f32.mrf.mxu0 }
 0xa3b   : > { %v7962_v28 = vadd.f32 %v7958_v42, %v7885_v36 }
 0xa3c   : > { %v9981_v10 = vpop.f32.mrf.mxu0 }
 0xa3d   : > { %v8959_v31 = vpop.f32.mrf.mxu1 }
 0xa3f   : > { %v8035_v26 = vpop.f32.mrf.mxu0  ;;  %v10072_v1 = vpop.f32.mrf.mxu1 }
 0xa40   : > { %v8039_v33 = vadd.f32 %v8035_v26, %v7962_v28 }
 0xa41   : > { %v9988_v0 = vpop.f32.mrf.mxu0 }
 0xa43   : > { %v8112_v3 = vpop.f32.mrf.mxu0 }
 0xa44   : > { %v8116_v52 = vadd.f32 %v8112_v3, %v8039_v33 }
 0xa45   : > { %v9995_v44 = vpop.f32.mrf.mxu0 }
 0xa46   : > { %v8193_v55 = vadd.f32 %v8189_v6, %v8116_v52 }
 0xa47   : > { %v8266_v5 = vpop.f32.mrf.mxu0 }
 0xa48   : > { %v8270_v47 = vadd.f32 %v8266_v5, %v8193_v55 }
 0xa49   : > { %v10009_v20 = vpop.f32.mrf.mxu0 }
 0xa4a   : > { %v8347_v58 = vadd.f32 %v8343_v27, %v8270_v47 }
 0xa4b   : > { %v8420_v2 = vpop.f32.mrf.mxu0 }
 0xa4c   : > { %v8424_v61 = vadd.f32 %v8420_v2, %v8347_v58 }
 0xa4d   : > { %v10023_v60 = vpop.f32.mrf.mxu0 }
 0xa4e   : > { %v8501_v40 = vadd.f32 %v8497_v43, %v8424_v61 }
 0xa4f   : > { %v8574_v38 = vpop.f32.mrf.mxu0 }
 0xa50   : > { %v8578_v41 = vadd.f32 %v8574_v38, %v8501_v40 }
 0xa51   : > { %v10037_v13 = vpop.f32.mrf.mxu0 }
 0xa52   : > { %v8655_v14 = vadd.f32 %v8651_v57, %v8578_v41 }
 0xa53   : > { %v8728_v29 = vpop.f32.mrf.mxu0 }
 0xa54   : > { %v8732_v34 = vadd.f32 %v8728_v29, %v8655_v14 }
 0xa55   : > { %v10051_v48 = vpop.f32.mrf.mxu0 }
 0xa56   : > { %v8809_v24 = vadd.f32 %v8805_v4, %v8732_v34 }
 0xa57   : > { %v8882_v7 = vpop.f32.mrf.mxu0 }
 0xa58   : > { %v8886_v25 = vadd.f32 %v8882_v7, %v8809_v24 }
 0xa59   : > { %v10065_v15 = vpop.f32.mrf.mxu0 }
 0xa5a   : > { %v8963_v19 = vadd.f32 %v8959_v31, %v8886_v25 }
 0xa5c   : > { %v8964_v23 = vmax.f32 %v8963_v19, 0.0 }
 0xa5e   : > { %10088 = vmatmul.mubr.msk.f32.vlgmr.msra.gmra.mxu0 %vm8973_vm11, %v8964_v23 }
 0xb1e   : > { %v9046_v9 = vpop.f32.mrf.mxu0 }
 0xb1f   : > { %v9047_v8 = vadd.f32 %v9046_v9, %v8972_v46 }
 0xb20   : > { %v10089_v62 = vpop.f32.mrf.mxu0 }
 0xb21   : > { %v9051_v39 = vsel %vm9050_vm15, %v9047_v8, -inf }
 0xb22   : > { %9052 = vmax.xlane.f32.xlu1 %v9051_v39 }
 0xbab   : > { %v9053_v35 = vpop.xlane.xlu1 %9052 }
 0xbac   : > { %v9054_v6 = vsub.f32 %v9047_v8, %v9053_v35 }
 0xbae   : > { %v9055_v12 = vmul.f32 1.442695, %v9054_v6 }
 0xbb0   : > { %10222 = vpow2.f32 %v9055_v12 }
 0xbbd   : > { %v10223_v50 = vpop.eup %10222 }
 0xbbe   : > { %v9057_v45 = vsel %vm9050_vm15, %v10223_v50, 0.0 }
 0xbbf   : > { %9058 = vadd.xlane.f32.xlu0 %v9057_v45 }
 0xc48   : > { %v9059_v27 = vpop.xlane.xlu0 %9058 }
 0xc49   : > { %10224 = vlog2.f32 %v9059_v27 }
 0xc56   : > { %v10225_v51 = vpop.eup %10224 }
 0xc57   : > { %v9061_v32 = vmul.f32 0.6931472, %v10225_v51 }
 0xc59   : > { %v9062_v49 = vsub.f32 %v9054_v6, %v9061_v32 }
 0xc5b   : > { %9063 = vst.msk [vmem:[%s376_s14] sm:$0x1] %vm9050_vm15, %v9062_v49 }
 0xc5c   : > { %10240 = shalt.err (!%p10237_p3)
}
 0xc5d   : > { %s10241_s12 = scalar_lea.hbm %s9075_s25, 16  ;;  %s10245_s14 = scalar_lea.hbm %s15530_s11, 32 }
 0xc5e   : > { %p10242_p4 = scmp.ne.s32.totalorder %s9075_s25, %s10241_s12  ;;  %p10246_p9 = scmp.lt.s32.totalorder %s9075_s25, %s15530_s11 }
 0xc5f   : > { %p10247_p10 = scmp.lt.s32.totalorder %s10245_s14, %s10241_s12 }
 0xc60   : > { %p10243_p7 = pnand %p10242_p4, %p10435_p5 }
 0xc61   : > { %p10248_p11 = por %p10247_p10, %p10246_p9 }
 0xc62   : > { %p10244_p8 = pneg %p10243_p7 }
 0xc64   : > { %p10249_p12 = pnand %p10248_p11, %p10244_p8 }
 0xc66   : > { %10252 = shalt.err (!%p10249_p12)
}
 0xc67   : > { %10094 = dma.vmem_to_hbm [thread:$0]  (%p10435_p5), %s9078_s29, 16, %s9075_s25, %s9065_s22  }
 0xc68 PF: > { %p10100_p13 = scmp.ge.s32.totalorder %s10287_s20, 2  ;;  %s9089_s0 = sand.u32 1, %s10275_s17  }
 0xc69   : > { %s9090_s15 = scalar_lea.sflag [#allocation3], %s9089_s0 }
 0xc6a   : > { %p10097_p0 = pnand %p10100_p13, %p10439_p6 }
 0xc6c   : > { %p10098_p1 = pneg %p10097_p0 }
 0xc6e   : > { %10270 = dma.done.wait (%p10098_p1), %s9090_s15, 16  }
 0xc6f   : > { %10272 = vsyncadd (%p10098_p1), %s9090_s15, 4294967280  ;;  %p21_p2 = scmp.ge.s32.totalorder %s10422_s23, 4   ;;  %s16656_s17 = smov %s10279_s18 }
 0xc70   : > { %s16657_s18 = smov %s10283_s19  ;;  %s16658_s19 = smov %s10433_s26 }
 0xc71   : > { %s16659_s20 = smov %s10422_s23  ;;  %23 = sbr.rel (!%p21_p2) target bundleno = 6 (0x6), region = 166 }
 0xc76   :  { %9094 = vsyncpa [#allocation3], 1 }
 0xc77   :  { %9096 = vsyncpa [#allocation3 + $0x1], 1 }

</bundles_post_ra>
